<compile_context>
chip_gen: v7x
topology: tpu7x:2x2x1
jax: 0.10.0
libtpu: 0.0.40
codegen_flags: <defaults>
</compile_context>

<pallas_src>
import functools

import jax
import jax.numpy as jnp
import numpy as np
from jax import lax
from jax.experimental import pallas as pl
from jax.experimental.pallas import tpu as pltpu


def get_group_size(channels, max_groups=32):
    # Stand-in for the repo's getGroupSize(): number of GroupNorm groups
    # (largest divisor of `channels` that is <= 32; 512 -> 32 groups).
    for g in range(max_groups, 0, -1):
        if channels % g == 0:
            return g
    return 1


# ----------------------------- in-kernel ops ------------------------------ #

def _conv1d(x, w, b, dil):
    """x: (W, Cin) f32, w: (K, Cin, Cout) bf16, b: (1, Cout) f32. 'same' conv."""
    K = w.shape[0]
    Wlen = x.shape[0]
    pad = dil * (K // 2)
    t = lax.broadcasted_iota(jnp.int32, (Wlen, 1), 0)
    acc = None
    for k in range(K):
        off = k * dil - pad  # static per tap
        if off == 0:
            shifted = x
        else:
            shifted = pltpu.roll(x, shift=(-off) % Wlen, axis=0)
            # Only |off| boundary rows are actually zeroed; kept as a full-tile
            # select because it hides under the per-tap MXU matmul.
            valid = jnp.logical_and(t + off >= 0, t + off < Wlen)
            shifted = jnp.where(valid, shifted, 0.0)
        contrib = jnp.dot(shifted.astype(w.dtype), w[k],
                          preferred_element_type=jnp.float32)
        acc = contrib if acc is None else acc + contrib
    return acc + b


def _group_norm_relu(x, gamma, beta, M, eps=1e-5):
    """x: (W, C) f32. M: (C, G) one-hot group indicator. gamma/beta: (1, C).

    Folded affine: y = relu(x * scale + shift)."""
    Wlen, C = x.shape
    G = M.shape[1]
    n = float(Wlen * (C // G))
    s1 = jnp.sum(x, axis=0, keepdims=True)          # (1, C)
    s2 = jnp.sum(x * x, axis=0, keepdims=True)      # (1, C)
    g1 = jnp.dot(s1, M, preferred_element_type=jnp.float32) / n    # (1, G) mean
    g2 = jnp.dot(s2, M, preferred_element_type=jnp.float32) / n    # (1, G) E[x^2]
    var_g = g2 - g1 * g1
    inv_g = lax.rsqrt(var_g + eps)                   # (1, G)
    # spread per-group stats back to channels: (1,G) @ M^T via dot_general
    dn = (((1,), (1,)), ((), ()))
    mean_c = lax.dot_general(g1, M, dn, preferred_element_type=jnp.float32)  # (1, C)
    inv_c = lax.dot_general(inv_g, M, dn, preferred_element_type=jnp.float32)  # (1, C)
    scale = inv_c * gamma                            # (1, C)
    shift = beta - mean_c * scale                    # (1, C)
    return jnp.maximum(x * scale + shift, 0.0)


def e_hwr_kernel(x_ref,
                 w1, b1, ga1, be1,
                 w2, b2, ga2, be2,
                 w3, b3, ga3, be3,
                 w4, b4, ga4, be4,
                 w5, b5, m_ref,
                 out_ref, *, n_class):
    x = x_ref[0].astype(jnp.float32)     # (W, n_in)
    M = m_ref[...]                       # (512, G)

    def block(h, w_r, b_r, g_r, be_r, dil):
        h = _conv1d(h, w_r[...], b_r[...], dil)
        # Dropout(0.1) -> identity at inference; ReLU fused into GroupNorm.
        return _group_norm_relu(h, g_r[...], be_r[...], M)

    h = block(x, w1, b1, ga1, be1, 1)    # Conv1d(n_in,512,3,1,1,1)
    h = block(h, w2, b2, ga2, be2, 2)    # Conv1d(512,512,3,1,2,2)
    h = block(h, w3, b3, ga3, be3, 4)    # Conv1d(512,512,3,1,4,4)
    h = block(h, w4, b4, ga4, be4, 1)    # Conv1d(512,512,5,1,2,1)
    logits = _conv1d(h, w5[...], b5[...], 1)   # Conv1d(512, n_class_padded, 1)

    # Mask the (zero-weight) padded class columns before the log-softmax.
    cidx = lax.broadcasted_iota(jnp.int32, logits.shape, 1)
    logits = jnp.where(cidx < n_class, logits, jnp.float32(-1e30))
    m = jnp.max(logits, axis=-1, keepdims=True)
    lse = m + jnp.log(jnp.sum(jnp.exp(logits - m), axis=-1, keepdims=True))
    out_ref[0] = (logits - lse).astype(out_ref.dtype)


# ------------------------------- wrapper ----------------------------------- #

def e_hwr_forward(x_nchw, params):
    """x_nchw: (B, n_in, 1, W) like the PyTorch NCHW input (H must be 1)."""
    B, n_in, H, W = x_nchw.shape
    assert H == 1, "E_HWR expects H == 1 (x.view(B, C, W))"
    x = jnp.transpose(x_nchw.reshape(B, n_in, W), (0, 2, 1))  # (B, W, n_in)

    (w1, b1, ga1, be1, w2, b2, ga2, be2, w3, b3, ga3, be3,
     w4, b4, ga4, be4, w5, b5, M) = params
    n_class = w5.shape[2]
    cpad = max(128, ((n_class + 127) // 128) * 128)   # lane-dense class dim

    # Pad the class dim of the last conv with zero weights / zero bias.
    w5p = jnp.zeros((1, w5.shape[1], cpad), w5.dtype).at[:, :, :n_class].set(w5)
    b5p = jnp.zeros((1, cpad), b5.dtype).at[:, :n_class].set(b5)

    def bf16(w):
        return w.astype(jnp.bfloat16)

    # bf16 weights (pre-cast once, not per-tap in the kernel); f32 biases/GN/M.
    kparams = (bf16(w1), b1, ga1, be1,
               bf16(w2), b2, ga2, be2,
               bf16(w3), b3, ga3, be3,
               bf16(w4), b4, ga4, be4,
               bf16(w5p), b5p, M)

    try:
        kind = jax.devices()[0].device_kind.lower()
    except Exception:
        kind = ""
    is_v7 = ("v7" in kind) or ("7x" in kind)
    vmem_limit = (48 if is_v7 else 64) * 1024 * 1024  # v7x has only 64 MiB VMEM

    def full_spec(a):
        nd = a.ndim
        return pl.BlockSpec(a.shape, lambda b, _nd=nd: (0,) * _nd)

    in_specs = [pl.BlockSpec((1, W, n_in), lambda b: (b, 0, 0))]
    in_specs += [full_spec(p) for p in kparams]

    kernel = functools.partial(e_hwr_kernel, n_class=n_class)

    out = pl.pallas_call(
        kernel,
        out_shape=jax.ShapeDtypeStruct((B, W, cpad), jnp.float32),
        grid=(B,),
        in_specs=in_specs,
        out_specs=pl.BlockSpec((1, W, cpad), lambda b: (b, 0, 0)),
        compiler_params=pltpu.CompilerParams(
            dimension_semantics=("parallel",),   # shard batch across cores (v7x)
            vmem_limit_bytes=vmem_limit),
    )(x, *kparams)

    out = out[:, :, :n_class]                    # drop padded class columns
    # pred.permute(2, 0, 1): (B, n_class, W) -> (W, B, n_class)
    return jnp.transpose(out, (1, 0, 2))


def init_params(key, n_in, n_class, channels=512):
    groups = get_group_size(channels)
    ks = jax.random.split(key, 10)

    def conv_p(k, cin, cout, ksz):
        bound = 1.0 / np.sqrt(cin * ksz)
        w = jax.random.uniform(k, (ksz, cin, cout), jnp.float32, -bound, bound)
        b = jax.random.uniform(jax.random.fold_in(k, 1), (1, cout),
                               jnp.float32, -bound, bound)
        return w, b

    def gn_p(k, c):
        ga = jnp.ones((1, c), jnp.float32) + 0.1 * jax.random.normal(k, (1, c))
        be = 0.1 * jax.random.normal(jax.random.fold_in(k, 1), (1, c))
        return ga, be

    w1, b1 = conv_p(ks[0], n_in, channels, 3)
    w2, b2 = conv_p(ks[1], channels, channels, 3)
    w3, b3 = conv_p(ks[2], channels, channels, 3)
    w4, b4 = conv_p(ks[3], channels, channels, 5)
    w5, b5 = conv_p(ks[4], channels, n_class, 1)
    ga1, be1 = gn_p(ks[5], channels)
    ga2, be2 = gn_p(ks[6], channels)
    ga3, be3 = gn_p(ks[7], channels)
    ga4, be4 = gn_p(ks[8], channels)
    gs = channels // groups
    M = (jnp.arange(channels)[:, None] // gs
         == jnp.arange(groups)[None, :]).astype(jnp.float32)      # (C, G)
    return (w1, b1, ga1, be1, w2, b2, ga2, be2, w3, b3, ga3, be3,
            w4, b4, ga4, be4, w5, b5, M)


# -------------------------- pure-JAX reference ----------------------------- #

def reference_forward(x_nchw, params):
    """Matches the kernel's precision choices (bf16 matmul operands, f32 accum)."""
    B, n_in, H, W = x_nchw.shape
    x = jnp.transpose(x_nchw.reshape(B, n_in, W), (0, 2, 1))
    (w1, b1, ga1, be1, w2, b2, ga2, be2, w3, b3, ga3, be3,
     w4, b4, ga4, be4, w5, b5, M) = params
    G = M.shape[1]

    def conv(x, w, b, dil):
        w = w.astype(jnp.bfloat16)
        K = w.shape[0]
        pad = dil * (K // 2)
        Wlen = x.shape[1]
        xp = jnp.pad(x, ((0, 0), (pad, pad), (0, 0)))
        acc = None
        for k in range(K):
            contrib = jnp.einsum(
                'bwc,cd->bwd',
                xp[:, k * dil:k * dil + Wlen].astype(jnp.bfloat16), w[k],
                preferred_element_type=jnp.float32)
            acc = contrib if acc is None else acc + contrib
        return acc + b

    def gn(x, ga, be, eps=1e-5):
        B_, Wlen, C = x.shape
        xg = x.reshape(B_, Wlen, G, C // G)
        mean = xg.mean(axis=(1, 3), keepdims=True)
        var = ((xg - mean) ** 2).mean(axis=(1, 3), keepdims=True)
        y = (xg - mean) / jnp.sqrt(var + eps)
        return y.reshape(B_, Wlen, C) * ga + be

    h = jax.nn.relu(gn(conv(x, w1, b1, 1), ga1, be1))
    h = jax.nn.relu(gn(conv(h, w2, b2, 2), ga2, be2))
    h = jax.nn.relu(gn(conv(h, w3, b3, 4), ga3, be3))
    h = jax.nn.relu(gn(conv(h, w4, b4, 1), ga4, be4))
    logits = conv(h, w5, b5, 1)
    pred = jax.nn.log_softmax(logits, axis=-1)
    return jnp.transpose(pred, (1, 0, 2))


if __name__ == "__main__":
    key = jax.random.PRNGKey(0)
    B, n_in, W, n_class = 2, 8, 16, 16
    kx, kp = jax.random.split(key)
    x = jax.random.normal(kx, (B, n_in, 1, W), jnp.float32)   # NCHW, H == 1
    params = init_params(kp, n_in, n_class)

    out = jax.block_until_ready(e_hwr_forward(x, params))
    assert out.shape == (W, B, n_class)

    ref = reference_forward(x, params)
    np.testing.assert_allclose(np.asarray(out), np.asarray(ref),
                               rtol=5e-3, atol=5e-3)
    print("KERNEL_OK")
</pallas_src>

<mosaic_0001>
module attributes {stable_mosaic.version = 11 : i64} {
  func.func @e_hwr_kernel(%arg0: i32, %arg1: memref<1x16x8xf32, #tpu.memory_space<vmem>>, %arg2: memref<3x8x512xbf16, #tpu.memory_space<vmem>>, %arg3: memref<1x512xf32, #tpu.memory_space<vmem>>, %arg4: memref<1x512xf32, #tpu.memory_space<vmem>>, %arg5: memref<1x512xf32, #tpu.memory_space<vmem>>, %arg6: memref<3x512x512xbf16, #tpu.memory_space<vmem>>, %arg7: memref<1x512xf32, #tpu.memory_space<vmem>>, %arg8: memref<1x512xf32, #tpu.memory_space<vmem>>, %arg9: memref<1x512xf32, #tpu.memory_space<vmem>>, %arg10: memref<3x512x512xbf16, #tpu.memory_space<vmem>>, %arg11: memref<1x512xf32, #tpu.memory_space<vmem>>, %arg12: memref<1x512xf32, #tpu.memory_space<vmem>>, %arg13: memref<1x512xf32, #tpu.memory_space<vmem>>, %arg14: memref<5x512x512xbf16, #tpu.memory_space<vmem>>, %arg15: memref<1x512xf32, #tpu.memory_space<vmem>>, %arg16: memref<1x512xf32, #tpu.memory_space<vmem>>, %arg17: memref<1x512xf32, #tpu.memory_space<vmem>>, %arg18: memref<1x512x128xbf16, #tpu.memory_space<vmem>>, %arg19: memref<1x128xf32, #tpu.memory_space<vmem>>, %arg20: memref<512x32xf32, #tpu.memory_space<vmem>>, %arg21: memref<1x16x128xf32, #tpu.memory_space<vmem>>) attributes {dimension_semantics = [#tpu.dimension_semantics<parallel>], iteration_bounds = array<i64: 2>, scalar_prefetch = 0 : i64, scratch_operands = 0 : i64, tpu.core_type = #tpu.core_type<tc>, window_params = [{transform_indices = @transform_0, window_bounds = array<i64: 1, 16, 8>}, {pipeline_mode = #tpu.pipeline_mode<synchronous>, transform_indices = @transform_1, window_bounds = array<i64: 3, 8, 512>}, {pipeline_mode = #tpu.pipeline_mode<synchronous>, transform_indices = @transform_2, window_bounds = array<i64: 1, 512>}, {pipeline_mode = #tpu.pipeline_mode<synchronous>, transform_indices = @transform_3, window_bounds = array<i64: 1, 512>}, {pipeline_mode = #tpu.pipeline_mode<synchronous>, transform_indices = @transform_4, window_bounds = array<i64: 1, 512>}, {pipeline_mode = #tpu.pipeline_mode<synchronous>, transform_indices = @transform_5, window_bounds = array<i64: 3, 512, 512>}, {pipeline_mode = #tpu.pipeline_mode<synchronous>, transform_indices = @transform_6, window_bounds = array<i64: 1, 512>}, {pipeline_mode = #tpu.pipeline_mode<synchronous>, transform_indices = @transform_7, window_bounds = array<i64: 1, 512>}, {pipeline_mode = #tpu.pipeline_mode<synchronous>, transform_indices = @transform_8, window_bounds = array<i64: 1, 512>}, {pipeline_mode = #tpu.pipeline_mode<synchronous>, transform_indices = @transform_9, window_bounds = array<i64: 3, 512, 512>}, {pipeline_mode = #tpu.pipeline_mode<synchronous>, transform_indices = @transform_10, window_bounds = array<i64: 1, 512>}, {pipeline_mode = #tpu.pipeline_mode<synchronous>, transform_indices = @transform_11, window_bounds = array<i64: 1, 512>}, {pipeline_mode = #tpu.pipeline_mode<synchronous>, transform_indices = @transform_12, window_bounds = array<i64: 1, 512>}, {pipeline_mode = #tpu.pipeline_mode<synchronous>, transform_indices = @transform_13, window_bounds = array<i64: 5, 512, 512>}, {pipeline_mode = #tpu.pipeline_mode<synchronous>, transform_indices = @transform_14, window_bounds = array<i64: 1, 512>}, {pipeline_mode = #tpu.pipeline_mode<synchronous>, transform_indices = @transform_15, window_bounds = array<i64: 1, 512>}, {pipeline_mode = #tpu.pipeline_mode<synchronous>, transform_indices = @transform_16, window_bounds = array<i64: 1, 512>}, {pipeline_mode = #tpu.pipeline_mode<synchronous>, transform_indices = @transform_17, window_bounds = array<i64: 1, 512, 128>}, {pipeline_mode = #tpu.pipeline_mode<synchronous>, transform_indices = @transform_18, window_bounds = array<i64: 1, 128>}, {pipeline_mode = #tpu.pipeline_mode<synchronous>, transform_indices = @transform_19, window_bounds = array<i64: 512, 32>}, {transform_indices = @transform_20, window_bounds = array<i64: 1, 16, 128>}]} {
    %c0 = arith.constant 0 : index
    %c0_0 = arith.constant 0 : index
    %c0_1 = arith.constant 0 : index
    %0 = vector.load %arg1[%c0, %c0_0, %c0_1] : memref<1x16x8xf32, #tpu.memory_space<vmem>>, vector<1x16x8xf32>
    %1 = vector.shape_cast %0 : vector<1x16x8xf32> to vector<16x8xf32>
    %c0_2 = arith.constant 0 : index
    %c0_3 = arith.constant 0 : index
    %2 = vector.load %arg20[%c0_2, %c0_3] : memref<512x32xf32, #tpu.memory_space<vmem>>, vector<512x32xf32>
    %c0_4 = arith.constant 0 : index
    %c0_5 = arith.constant 0 : index
    %c0_6 = arith.constant 0 : index
    %3 = vector.load %arg2[%c0_4, %c0_5, %c0_6] : memref<3x8x512xbf16, #tpu.memory_space<vmem>>, vector<3x8x512xbf16>
    %c0_7 = arith.constant 0 : index
    %c0_8 = arith.constant 0 : index
    %4 = vector.load %arg3[%c0_7, %c0_8] : memref<1x512xf32, #tpu.memory_space<vmem>>, vector<1x512xf32>
    %5 = tpu.iota {dimensions = array<i32: 0>} : vector<16x1xi32>
    %c1_i32 = arith.constant 1 : i32
    %6 = tpu.dynamic_rotate %1 by %c1_i32 dim 0 : vector<16x8xf32>, i32 -> vector<16x8xf32>
    %c-1_i32 = arith.constant -1 : i32
    %7 = vector.broadcast %c-1_i32 : i32 to vector<16x1xi32>
    %8 = arith.addi %5, %7 : vector<16x1xi32>
    %c0_i32 = arith.constant 0 : i32
    %9 = vector.broadcast %c0_i32 : i32 to vector<16x1xi32>
    %10 = arith.cmpi sge, %8, %9 : vector<16x1xi32>
    %c-1_i32_9 = arith.constant -1 : i32
    %11 = vector.broadcast %c-1_i32_9 : i32 to vector<16x1xi32>
    %12 = arith.addi %5, %11 : vector<16x1xi32>
    %c16_i32 = arith.constant 16 : i32
    %13 = vector.broadcast %c16_i32 : i32 to vector<16x1xi32>
    %14 = arith.cmpi slt, %12, %13 : vector<16x1xi32>
    %15 = arith.andi %10, %14 : vector<16x1xi1>
    %cst = arith.constant 0.000000e+00 : f32
    %16 = vector.shape_cast %15 : vector<16x1xi1> to vector<16x1xi1>
    %17 = vector.broadcast %16 : vector<16x1xi1> to vector<16x8xi1>
    %18 = vector.broadcast %cst : f32 to vector<16x8xf32>
    %19 = arith.select %17, %6, %18 : vector<16x8xi1>, vector<16x8xf32>
    %20 = arith.truncf %19 : vector<16x8xf32> to vector<16x8xbf16>
    %21 = vector.extract_strided_slice %3 {offsets = [0, 0, 0], sizes = [1, 8, 512], strides = [1, 1, 1]} : vector<3x8x512xbf16> to vector<1x8x512xbf16>
    %22 = vector.shape_cast %21 : vector<1x8x512xbf16> to vector<8x512xbf16>
    %cst_10 = arith.constant dense<0.000000e+00> : vector<16x512xf32>
    %23 = tpu.matmul %20, %22, %cst_10 {dimension_numbers = #tpu.dot_dimension_numbers<[1], [0], [0], [1], [0, 0, 1, 1], [], []>} : vector<16x8xbf16>, vector<8x512xbf16>, vector<16x512xf32> -> vector<16x512xf32>
    %24 = arith.truncf %1 : vector<16x8xf32> to vector<16x8xbf16>
    %25 = vector.extract_strided_slice %3 {offsets = [1, 0, 0], sizes = [1, 8, 512], strides = [1, 1, 1]} : vector<3x8x512xbf16> to vector<1x8x512xbf16>
    %26 = vector.shape_cast %25 : vector<1x8x512xbf16> to vector<8x512xbf16>
    %cst_11 = arith.constant dense<0.000000e+00> : vector<16x512xf32>
    %27 = tpu.matmul %24, %26, %cst_11 {dimension_numbers = #tpu.dot_dimension_numbers<[1], [0], [0], [1], [0, 0, 1, 1], [], []>} : vector<16x8xbf16>, vector<8x512xbf16>, vector<16x512xf32> -> vector<16x512xf32>
    %28 = arith.addf %23, %27 : vector<16x512xf32>
    %c15_i32 = arith.constant 15 : i32
    %29 = tpu.dynamic_rotate %1 by %c15_i32 dim 0 : vector<16x8xf32>, i32 -> vector<16x8xf32>
    %c1_i32_12 = arith.constant 1 : i32
    %30 = vector.broadcast %c1_i32_12 : i32 to vector<16x1xi32>
    %31 = arith.addi %5, %30 : vector<16x1xi32>
    %c0_i32_13 = arith.constant 0 : i32
    %32 = vector.broadcast %c0_i32_13 : i32 to vector<16x1xi32>
    %33 = arith.cmpi sge, %31, %32 : vector<16x1xi32>
    %c1_i32_14 = arith.constant 1 : i32
    %34 = vector.broadcast %c1_i32_14 : i32 to vector<16x1xi32>
    %35 = arith.addi %5, %34 : vector<16x1xi32>
    %c16_i32_15 = arith.constant 16 : i32
    %36 = vector.broadcast %c16_i32_15 : i32 to vector<16x1xi32>
    %37 = arith.cmpi slt, %35, %36 : vector<16x1xi32>
    %38 = arith.andi %33, %37 : vector<16x1xi1>
    %cst_16 = arith.constant 0.000000e+00 : f32
    %39 = vector.shape_cast %38 : vector<16x1xi1> to vector<16x1xi1>
    %40 = vector.broadcast %39 : vector<16x1xi1> to vector<16x8xi1>
    %41 = vector.broadcast %cst_16 : f32 to vector<16x8xf32>
    %42 = arith.select %40, %29, %41 : vector<16x8xi1>, vector<16x8xf32>
    %43 = arith.truncf %42 : vector<16x8xf32> to vector<16x8xbf16>
    %44 = vector.extract_strided_slice %3 {offsets = [2, 0, 0], sizes = [1, 8, 512], strides = [1, 1, 1]} : vector<3x8x512xbf16> to vector<1x8x512xbf16>
    %45 = vector.shape_cast %44 : vector<1x8x512xbf16> to vector<8x512xbf16>
    %cst_17 = arith.constant dense<0.000000e+00> : vector<16x512xf32>
    %46 = tpu.matmul %43, %45, %cst_17 {dimension_numbers = #tpu.dot_dimension_numbers<[1], [0], [0], [1], [0, 0, 1, 1], [], []>} : vector<16x8xbf16>, vector<8x512xbf16>, vector<16x512xf32> -> vector<16x512xf32>
    %47 = arith.addf %28, %46 : vector<16x512xf32>
    %48 = vector.broadcast %4 : vector<1x512xf32> to vector<16x512xf32>
    %49 = arith.addf %47, %48 : vector<16x512xf32>
    %c0_18 = arith.constant 0 : index
    %c0_19 = arith.constant 0 : index
    %50 = vector.load %arg4[%c0_18, %c0_19] : memref<1x512xf32, #tpu.memory_space<vmem>>, vector<1x512xf32>
    %c0_20 = arith.constant 0 : index
    %c0_21 = arith.constant 0 : index
    %51 = vector.load %arg5[%c0_20, %c0_21] : memref<1x512xf32, #tpu.memory_space<vmem>>, vector<1x512xf32>
    %cst_22 = arith.constant dense<0.000000e+00> : vector<512xf32>
    %52 = vector.multi_reduction <add>, %49, %cst_22 [0] : vector<16x512xf32> to vector<512xf32>
    %53 = vector.shape_cast %52 : vector<512xf32> to vector<1x512xf32>
    %54 = arith.mulf %49, %49 : vector<16x512xf32>
    %cst_23 = arith.constant dense<0.000000e+00> : vector<512xf32>
    %55 = vector.multi_reduction <add>, %54, %cst_23 [0] : vector<16x512xf32> to vector<512xf32>
    %56 = vector.shape_cast %55 : vector<512xf32> to vector<1x512xf32>
    %cst_24 = arith.constant dense<0.000000e+00> : vector<1x32xf32>
    %57 = tpu.matmul %53, %2, %cst_24 {dimension_numbers = #tpu.dot_dimension_numbers<[1], [0], [0], [1], [0, 0, 1, 1], [], []>} : vector<1x512xf32>, vector<512x32xf32>, vector<1x32xf32> -> vector<1x32xf32>
    %cst_25 = arith.constant 2.560000e+02 : f32
    %58 = vector.broadcast %cst_25 : f32 to vector<1x32xf32>
    %59 = arith.divf %57, %58 : vector<1x32xf32>
    %cst_26 = arith.constant dense<0.000000e+00> : vector<1x32xf32>
    %60 = tpu.matmul %56, %2, %cst_26 {dimension_numbers = #tpu.dot_dimension_numbers<[1], [0], [0], [1], [0, 0, 1, 1], [], []>} : vector<1x512xf32>, vector<512x32xf32>, vector<1x32xf32> -> vector<1x32xf32>
    %cst_27 = arith.constant 2.560000e+02 : f32
    %61 = vector.broadcast %cst_27 : f32 to vector<1x32xf32>
    %62 = arith.divf %60, %61 : vector<1x32xf32>
    %63 = arith.mulf %59, %59 : vector<1x32xf32>
    %64 = arith.subf %62, %63 : vector<1x32xf32>
    %cst_28 = arith.constant 9.99999974E-6 : f32
    %65 = vector.broadcast %cst_28 : f32 to vector<1x32xf32>
    %66 = arith.addf %64, %65 : vector<1x32xf32>
    %67 = math.rsqrt %66 : vector<1x32xf32>
    %cst_29 = arith.constant dense<0.000000e+00> : vector<1x512xf32>
    %68 = tpu.matmul %59, %2, %cst_29 {dimension_numbers = #tpu.dot_dimension_numbers<[1], [1], [0], [0], [0, 0, 1, 0], [], []>} : vector<1x32xf32>, vector<512x32xf32>, vector<1x512xf32> -> vector<1x512xf32>
    %cst_30 = arith.constant dense<0.000000e+00> : vector<1x512xf32>
    %69 = tpu.matmul %67, %2, %cst_30 {dimension_numbers = #tpu.dot_dimension_numbers<[1], [1], [0], [0], [0, 0, 1, 0], [], []>} : vector<1x32xf32>, vector<512x32xf32>, vector<1x512xf32> -> vector<1x512xf32>
    %70 = arith.mulf %69, %50 : vector<1x512xf32>
    %71 = arith.mulf %68, %70 : vector<1x512xf32>
    %72 = arith.subf %51, %71 : vector<1x512xf32>
    %73 = vector.broadcast %70 : vector<1x512xf32> to vector<16x512xf32>
    %74 = arith.mulf %49, %73 : vector<16x512xf32>
    %75 = vector.broadcast %72 : vector<1x512xf32> to vector<16x512xf32>
    %76 = arith.addf %74, %75 : vector<16x512xf32>
    %cst_31 = arith.constant 0.000000e+00 : f32
    %77 = vector.broadcast %cst_31 : f32 to vector<16x512xf32>
    %78 = arith.maximumf %76, %77 : vector<16x512xf32>
    %c0_32 = arith.constant 0 : index
    %c0_33 = arith.constant 0 : index
    %c0_34 = arith.constant 0 : index
    %79 = vector.load %arg6[%c0_32, %c0_33, %c0_34] : memref<3x512x512xbf16, #tpu.memory_space<vmem>>, vector<3x512x512xbf16>
    %c0_35 = arith.constant 0 : index
    %c0_36 = arith.constant 0 : index
    %80 = vector.load %arg7[%c0_35, %c0_36] : memref<1x512xf32, #tpu.memory_space<vmem>>, vector<1x512xf32>
    %81 = tpu.iota {dimensions = array<i32: 0>} : vector<16x1xi32>
    %c2_i32 = arith.constant 2 : i32
    %82 = tpu.dynamic_rotate %78 by %c2_i32 dim 0 : vector<16x512xf32>, i32 -> vector<16x512xf32>
    %c-2_i32 = arith.constant -2 : i32
    %83 = vector.broadcast %c-2_i32 : i32 to vector<16x1xi32>
    %84 = arith.addi %81, %83 : vector<16x1xi32>
    %c0_i32_37 = arith.constant 0 : i32
    %85 = vector.broadcast %c0_i32_37 : i32 to vector<16x1xi32>
    %86 = arith.cmpi sge, %84, %85 : vector<16x1xi32>
    %c-2_i32_38 = arith.constant -2 : i32
    %87 = vector.broadcast %c-2_i32_38 : i32 to vector<16x1xi32>
    %88 = arith.addi %81, %87 : vector<16x1xi32>
    %c16_i32_39 = arith.constant 16 : i32
    %89 = vector.broadcast %c16_i32_39 : i32 to vector<16x1xi32>
    %90 = arith.cmpi slt, %88, %89 : vector<16x1xi32>
    %91 = arith.andi %86, %90 : vector<16x1xi1>
    %cst_40 = arith.constant 0.000000e+00 : f32
    %92 = vector.shape_cast %91 : vector<16x1xi1> to vector<16x1xi1>
    %93 = vector.broadcast %92 : vector<16x1xi1> to vector<16x512xi1>
    %94 = vector.broadcast %cst_40 : f32 to vector<16x512xf32>
    %95 = arith.select %93, %82, %94 : vector<16x512xi1>, vector<16x512xf32>
    %96 = arith.truncf %95 : vector<16x512xf32> to vector<16x512xbf16>
    %97 = vector.extract_strided_slice %79 {offsets = [0, 0, 0], sizes = [1, 512, 512], strides = [1, 1, 1]} : vector<3x512x512xbf16> to vector<1x512x512xbf16>
    %98 = vector.shape_cast %97 : vector<1x512x512xbf16> to vector<512x512xbf16>
    %cst_41 = arith.constant dense<0.000000e+00> : vector<16x512xf32>
    %99 = tpu.matmul %96, %98, %cst_41 {dimension_numbers = #tpu.dot_dimension_numbers<[1], [0], [0], [1], [0, 0, 1, 1], [], []>} : vector<16x512xbf16>, vector<512x512xbf16>, vector<16x512xf32> -> vector<16x512xf32>
    %100 = arith.truncf %78 : vector<16x512xf32> to vector<16x512xbf16>
    %101 = vector.extract_strided_slice %79 {offsets = [1, 0, 0], sizes = [1, 512, 512], strides = [1, 1, 1]} : vector<3x512x512xbf16> to vector<1x512x512xbf16>
    %102 = vector.shape_cast %101 : vector<1x512x512xbf16> to vector<512x512xbf16>
    %cst_42 = arith.constant dense<0.000000e+00> : vector<16x512xf32>
    %103 = tpu.matmul %100, %102, %cst_42 {dimension_numbers = #tpu.dot_dimension_numbers<[1], [0], [0], [1], [0, 0, 1, 1], [], []>} : vector<16x512xbf16>, vector<512x512xbf16>, vector<16x512xf32> -> vector<16x512xf32>
    %104 = arith.addf %99, %103 : vector<16x512xf32>
    %c14_i32 = arith.constant 14 : i32
    %105 = tpu.dynamic_rotate %78 by %c14_i32 dim 0 : vector<16x512xf32>, i32 -> vector<16x512xf32>
    %c2_i32_43 = arith.constant 2 : i32
    %106 = vector.broadcast %c2_i32_43 : i32 to vector<16x1xi32>
    %107 = arith.addi %81, %106 : vector<16x1xi32>
    %c0_i32_44 = arith.constant 0 : i32
    %108 = vector.broadcast %c0_i32_44 : i32 to vector<16x1xi32>
    %109 = arith.cmpi sge, %107, %108 : vector<16x1xi32>
    %c2_i32_45 = arith.constant 2 : i32
    %110 = vector.broadcast %c2_i32_45 : i32 to vector<16x1xi32>
    %111 = arith.addi %81, %110 : vector<16x1xi32>
    %c16_i32_46 = arith.constant 16 : i32
    %112 = vector.broadcast %c16_i32_46 : i32 to vector<16x1xi32>
    %113 = arith.cmpi slt, %111, %112 : vector<16x1xi32>
    %114 = arith.andi %109, %113 : vector<16x1xi1>
    %cst_47 = arith.constant 0.000000e+00 : f32
    %115 = vector.shape_cast %114 : vector<16x1xi1> to vector<16x1xi1>
    %116 = vector.broadcast %115 : vector<16x1xi1> to vector<16x512xi1>
    %117 = vector.broadcast %cst_47 : f32 to vector<16x512xf32>
    %118 = arith.select %116, %105, %117 : vector<16x512xi1>, vector<16x512xf32>
    %119 = arith.truncf %118 : vector<16x512xf32> to vector<16x512xbf16>
    %120 = vector.extract_strided_slice %79 {offsets = [2, 0, 0], sizes = [1, 512, 512], strides = [1, 1, 1]} : vector<3x512x512xbf16> to vector<1x512x512xbf16>
    %121 = vector.shape_cast %120 : vector<1x512x512xbf16> to vector<512x512xbf16>
    %cst_48 = arith.constant dense<0.000000e+00> : vector<16x512xf32>
    %122 = tpu.matmul %119, %121, %cst_48 {dimension_numbers = #tpu.dot_dimension_numbers<[1], [0], [0], [1], [0, 0, 1, 1], [], []>} : vector<16x512xbf16>, vector<512x512xbf16>, vector<16x512xf32> -> vector<16x512xf32>
    %123 = arith.addf %104, %122 : vector<16x512xf32>
    %124 = vector.broadcast %80 : vector<1x512xf32> to vector<16x512xf32>
    %125 = arith.addf %123, %124 : vector<16x512xf32>
    %c0_49 = arith.constant 0 : index
    %c0_50 = arith.constant 0 : index
    %126 = vector.load %arg8[%c0_49, %c0_50] : memref<1x512xf32, #tpu.memory_space<vmem>>, vector<1x512xf32>
    %c0_51 = arith.constant 0 : index
    %c0_52 = arith.constant 0 : index
    %127 = vector.load %arg9[%c0_51, %c0_52] : memref<1x512xf32, #tpu.memory_space<vmem>>, vector<1x512xf32>
    %cst_53 = arith.constant dense<0.000000e+00> : vector<512xf32>
    %128 = vector.multi_reduction <add>, %125, %cst_53 [0] : vector<16x512xf32> to vector<512xf32>
    %129 = vector.shape_cast %128 : vector<512xf32> to vector<1x512xf32>
    %130 = arith.mulf %125, %125 : vector<16x512xf32>
    %cst_54 = arith.constant dense<0.000000e+00> : vector<512xf32>
    %131 = vector.multi_reduction <add>, %130, %cst_54 [0] : vector<16x512xf32> to vector<512xf32>
    %132 = vector.shape_cast %131 : vector<512xf32> to vector<1x512xf32>
    %cst_55 = arith.constant dense<0.000000e+00> : vector<1x32xf32>
    %133 = tpu.matmul %129, %2, %cst_55 {dimension_numbers = #tpu.dot_dimension_numbers<[1], [0], [0], [1], [0, 0, 1, 1], [], []>} : vector<1x512xf32>, vector<512x32xf32>, vector<1x32xf32> -> vector<1x32xf32>
    %cst_56 = arith.constant 2.560000e+02 : f32
    %134 = vector.broadcast %cst_56 : f32 to vector<1x32xf32>
    %135 = arith.divf %133, %134 : vector<1x32xf32>
    %cst_57 = arith.constant dense<0.000000e+00> : vector<1x32xf32>
    %136 = tpu.matmul %132, %2, %cst_57 {dimension_numbers = #tpu.dot_dimension_numbers<[1], [0], [0], [1], [0, 0, 1, 1], [], []>} : vector<1x512xf32>, vector<512x32xf32>, vector<1x32xf32> -> vector<1x32xf32>
    %cst_58 = arith.constant 2.560000e+02 : f32
    %137 = vector.broadcast %cst_58 : f32 to vector<1x32xf32>
    %138 = arith.divf %136, %137 : vector<1x32xf32>
    %139 = arith.mulf %135, %135 : vector<1x32xf32>
    %140 = arith.subf %138, %139 : vector<1x32xf32>
    %cst_59 = arith.constant 9.99999974E-6 : f32
    %141 = vector.broadcast %cst_59 : f32 to vector<1x32xf32>
    %142 = arith.addf %140, %141 : vector<1x32xf32>
    %143 = math.rsqrt %142 : vector<1x32xf32>
    %cst_60 = arith.constant dense<0.000000e+00> : vector<1x512xf32>
    %144 = tpu.matmul %135, %2, %cst_60 {dimension_numbers = #tpu.dot_dimension_numbers<[1], [1], [0], [0], [0, 0, 1, 0], [], []>} : vector<1x32xf32>, vector<512x32xf32>, vector<1x512xf32> -> vector<1x512xf32>
    %cst_61 = arith.constant dense<0.000000e+00> : vector<1x512xf32>
    %145 = tpu.matmul %143, %2, %cst_61 {dimension_numbers = #tpu.dot_dimension_numbers<[1], [1], [0], [0], [0, 0, 1, 0], [], []>} : vector<1x32xf32>, vector<512x32xf32>, vector<1x512xf32> -> vector<1x512xf32>
    %146 = arith.mulf %145, %126 : vector<1x512xf32>
    %147 = arith.mulf %144, %146 : vector<1x512xf32>
    %148 = arith.subf %127, %147 : vector<1x512xf32>
    %149 = vector.broadcast %146 : vector<1x512xf32> to vector<16x512xf32>
    %150 = arith.mulf %125, %149 : vector<16x512xf32>
    %151 = vector.broadcast %148 : vector<1x512xf32> to vector<16x512xf32>
    %152 = arith.addf %150, %151 : vector<16x512xf32>
    %cst_62 = arith.constant 0.000000e+00 : f32
    %153 = vector.broadcast %cst_62 : f32 to vector<16x512xf32>
    %154 = arith.maximumf %152, %153 : vector<16x512xf32>
    %c0_63 = arith.constant 0 : index
    %c0_64 = arith.constant 0 : index
    %c0_65 = arith.constant 0 : index
    %155 = vector.load %arg10[%c0_63, %c0_64, %c0_65] : memref<3x512x512xbf16, #tpu.memory_space<vmem>>, vector<3x512x512xbf16>
    %c0_66 = arith.constant 0 : index
    %c0_67 = arith.constant 0 : index
    %156 = vector.load %arg11[%c0_66, %c0_67] : memref<1x512xf32, #tpu.memory_space<vmem>>, vector<1x512xf32>
    %157 = tpu.iota {dimensions = array<i32: 0>} : vector<16x1xi32>
    %c4_i32 = arith.constant 4 : i32
    %158 = tpu.dynamic_rotate %154 by %c4_i32 dim 0 : vector<16x512xf32>, i32 -> vector<16x512xf32>
    %c-4_i32 = arith.constant -4 : i32
    %159 = vector.broadcast %c-4_i32 : i32 to vector<16x1xi32>
    %160 = arith.addi %157, %159 : vector<16x1xi32>
    %c0_i32_68 = arith.constant 0 : i32
    %161 = vector.broadcast %c0_i32_68 : i32 to vector<16x1xi32>
    %162 = arith.cmpi sge, %160, %161 : vector<16x1xi32>
    %c-4_i32_69 = arith.constant -4 : i32
    %163 = vector.broadcast %c-4_i32_69 : i32 to vector<16x1xi32>
    %164 = arith.addi %157, %163 : vector<16x1xi32>
    %c16_i32_70 = arith.constant 16 : i32
    %165 = vector.broadcast %c16_i32_70 : i32 to vector<16x1xi32>
    %166 = arith.cmpi slt, %164, %165 : vector<16x1xi32>
    %167 = arith.andi %162, %166 : vector<16x1xi1>
    %cst_71 = arith.constant 0.000000e+00 : f32
    %168 = vector.shape_cast %167 : vector<16x1xi1> to vector<16x1xi1>
    %169 = vector.broadcast %168 : vector<16x1xi1> to vector<16x512xi1>
    %170 = vector.broadcast %cst_71 : f32 to vector<16x512xf32>
    %171 = arith.select %169, %158, %170 : vector<16x512xi1>, vector<16x512xf32>
    %172 = arith.truncf %171 : vector<16x512xf32> to vector<16x512xbf16>
    %173 = vector.extract_strided_slice %155 {offsets = [0, 0, 0], sizes = [1, 512, 512], strides = [1, 1, 1]} : vector<3x512x512xbf16> to vector<1x512x512xbf16>
    %174 = vector.shape_cast %173 : vector<1x512x512xbf16> to vector<512x512xbf16>
    %cst_72 = arith.constant dense<0.000000e+00> : vector<16x512xf32>
    %175 = tpu.matmul %172, %174, %cst_72 {dimension_numbers = #tpu.dot_dimension_numbers<[1], [0], [0], [1], [0, 0, 1, 1], [], []>} : vector<16x512xbf16>, vector<512x512xbf16>, vector<16x512xf32> -> vector<16x512xf32>
    %176 = arith.truncf %154 : vector<16x512xf32> to vector<16x512xbf16>
    %177 = vector.extract_strided_slice %155 {offsets = [1, 0, 0], sizes = [1, 512, 512], strides = [1, 1, 1]} : vector<3x512x512xbf16> to vector<1x512x512xbf16>
    %178 = vector.shape_cast %177 : vector<1x512x512xbf16> to vector<512x512xbf16>
    %cst_73 = arith.constant dense<0.000000e+00> : vector<16x512xf32>
    %179 = tpu.matmul %176, %178, %cst_73 {dimension_numbers = #tpu.dot_dimension_numbers<[1], [0], [0], [1], [0, 0, 1, 1], [], []>} : vector<16x512xbf16>, vector<512x512xbf16>, vector<16x512xf32> -> vector<16x512xf32>
    %180 = arith.addf %175, %179 : vector<16x512xf32>
    %c12_i32 = arith.constant 12 : i32
    %181 = tpu.dynamic_rotate %154 by %c12_i32 dim 0 : vector<16x512xf32>, i32 -> vector<16x512xf32>
    %c4_i32_74 = arith.constant 4 : i32
    %182 = vector.broadcast %c4_i32_74 : i32 to vector<16x1xi32>
    %183 = arith.addi %157, %182 : vector<16x1xi32>
    %c0_i32_75 = arith.constant 0 : i32
    %184 = vector.broadcast %c0_i32_75 : i32 to vector<16x1xi32>
    %185 = arith.cmpi sge, %183, %184 : vector<16x1xi32>
    %c4_i32_76 = arith.constant 4 : i32
    %186 = vector.broadcast %c4_i32_76 : i32 to vector<16x1xi32>
    %187 = arith.addi %157, %186 : vector<16x1xi32>
    %c16_i32_77 = arith.constant 16 : i32
    %188 = vector.broadcast %c16_i32_77 : i32 to vector<16x1xi32>
    %189 = arith.cmpi slt, %187, %188 : vector<16x1xi32>
    %190 = arith.andi %185, %189 : vector<16x1xi1>
    %cst_78 = arith.constant 0.000000e+00 : f32
    %191 = vector.shape_cast %190 : vector<16x1xi1> to vector<16x1xi1>
    %192 = vector.broadcast %191 : vector<16x1xi1> to vector<16x512xi1>
    %193 = vector.broadcast %cst_78 : f32 to vector<16x512xf32>
    %194 = arith.select %192, %181, %193 : vector<16x512xi1>, vector<16x512xf32>
    %195 = arith.truncf %194 : vector<16x512xf32> to vector<16x512xbf16>
    %196 = vector.extract_strided_slice %155 {offsets = [2, 0, 0], sizes = [1, 512, 512], strides = [1, 1, 1]} : vector<3x512x512xbf16> to vector<1x512x512xbf16>
    %197 = vector.shape_cast %196 : vector<1x512x512xbf16> to vector<512x512xbf16>
    %cst_79 = arith.constant dense<0.000000e+00> : vector<16x512xf32>
    %198 = tpu.matmul %195, %197, %cst_79 {dimension_numbers = #tpu.dot_dimension_numbers<[1], [0], [0], [1], [0, 0, 1, 1], [], []>} : vector<16x512xbf16>, vector<512x512xbf16>, vector<16x512xf32> -> vector<16x512xf32>
    %199 = arith.addf %180, %198 : vector<16x512xf32>
    %200 = vector.broadcast %156 : vector<1x512xf32> to vector<16x512xf32>
    %201 = arith.addf %199, %200 : vector<16x512xf32>
    %c0_80 = arith.constant 0 : index
    %c0_81 = arith.constant 0 : index
    %202 = vector.load %arg12[%c0_80, %c0_81] : memref<1x512xf32, #tpu.memory_space<vmem>>, vector<1x512xf32>
    %c0_82 = arith.constant 0 : index
    %c0_83 = arith.constant 0 : index
    %203 = vector.load %arg13[%c0_82, %c0_83] : memref<1x512xf32, #tpu.memory_space<vmem>>, vector<1x512xf32>
    %cst_84 = arith.constant dense<0.000000e+00> : vector<512xf32>
    %204 = vector.multi_reduction <add>, %201, %cst_84 [0] : vector<16x512xf32> to vector<512xf32>
    %205 = vector.shape_cast %204 : vector<512xf32> to vector<1x512xf32>
    %206 = arith.mulf %201, %201 : vector<16x512xf32>
    %cst_85 = arith.constant dense<0.000000e+00> : vector<512xf32>
    %207 = vector.multi_reduction <add>, %206, %cst_85 [0] : vector<16x512xf32> to vector<512xf32>
    %208 = vector.shape_cast %207 : vector<512xf32> to vector<1x512xf32>
    %cst_86 = arith.constant dense<0.000000e+00> : vector<1x32xf32>
    %209 = tpu.matmul %205, %2, %cst_86 {dimension_numbers = #tpu.dot_dimension_numbers<[1], [0], [0], [1], [0, 0, 1, 1], [], []>} : vector<1x512xf32>, vector<512x32xf32>, vector<1x32xf32> -> vector<1x32xf32>
    %cst_87 = arith.constant 2.560000e+02 : f32
    %210 = vector.broadcast %cst_87 : f32 to vector<1x32xf32>
    %211 = arith.divf %209, %210 : vector<1x32xf32>
    %cst_88 = arith.constant dense<0.000000e+00> : vector<1x32xf32>
    %212 = tpu.matmul %208, %2, %cst_88 {dimension_numbers = #tpu.dot_dimension_numbers<[1], [0], [0], [1], [0, 0, 1, 1], [], []>} : vector<1x512xf32>, vector<512x32xf32>, vector<1x32xf32> -> vector<1x32xf32>
    %cst_89 = arith.constant 2.560000e+02 : f32
    %213 = vector.broadcast %cst_89 : f32 to vector<1x32xf32>
    %214 = arith.divf %212, %213 : vector<1x32xf32>
    %215 = arith.mulf %211, %211 : vector<1x32xf32>
    %216 = arith.subf %214, %215 : vector<1x32xf32>
    %cst_90 = arith.constant 9.99999974E-6 : f32
    %217 = vector.broadcast %cst_90 : f32 to vector<1x32xf32>
    %218 = arith.addf %216, %217 : vector<1x32xf32>
    %219 = math.rsqrt %218 : vector<1x32xf32>
    %cst_91 = arith.constant dense<0.000000e+00> : vector<1x512xf32>
    %220 = tpu.matmul %211, %2, %cst_91 {dimension_numbers = #tpu.dot_dimension_numbers<[1], [1], [0], [0], [0, 0, 1, 0], [], []>} : vector<1x32xf32>, vector<512x32xf32>, vector<1x512xf32> -> vector<1x512xf32>
    %cst_92 = arith.constant dense<0.000000e+00> : vector<1x512xf32>
    %221 = tpu.matmul %219, %2, %cst_92 {dimension_numbers = #tpu.dot_dimension_numbers<[1], [1], [0], [0], [0, 0, 1, 0], [], []>} : vector<1x32xf32>, vector<512x32xf32>, vector<1x512xf32> -> vector<1x512xf32>
    %222 = arith.mulf %221, %202 : vector<1x512xf32>
    %223 = arith.mulf %220, %222 : vector<1x512xf32>
    %224 = arith.subf %203, %223 : vector<1x512xf32>
    %225 = vector.broadcast %222 : vector<1x512xf32> to vector<16x512xf32>
    %226 = arith.mulf %201, %225 : vector<16x512xf32>
    %227 = vector.broadcast %224 : vector<1x512xf32> to vector<16x512xf32>
    %228 = arith.addf %226, %227 : vector<16x512xf32>
    %cst_93 = arith.constant 0.000000e+00 : f32
    %229 = vector.broadcast %cst_93 : f32 to vector<16x512xf32>
    %230 = arith.maximumf %228, %229 : vector<16x512xf32>
    %c0_94 = arith.constant 0 : index
    %c0_95 = arith.constant 0 : index
    %c0_96 = arith.constant 0 : index
    %231 = vector.load %arg14[%c0_94, %c0_95, %c0_96] : memref<5x512x512xbf16, #tpu.memory_space<vmem>>, vector<5x512x512xbf16>
    %c0_97 = arith.constant 0 : index
    %c0_98 = arith.constant 0 : index
    %232 = vector.load %arg15[%c0_97, %c0_98] : memref<1x512xf32, #tpu.memory_space<vmem>>, vector<1x512xf32>
    %233 = tpu.iota {dimensions = array<i32: 0>} : vector<16x1xi32>
    %c2_i32_99 = arith.constant 2 : i32
    %234 = tpu.dynamic_rotate %230 by %c2_i32_99 dim 0 : vector<16x512xf32>, i32 -> vector<16x512xf32>
    %c-2_i32_100 = arith.constant -2 : i32
    %235 = vector.broadcast %c-2_i32_100 : i32 to vector<16x1xi32>
    %236 = arith.addi %233, %235 : vector<16x1xi32>
    %c0_i32_101 = arith.constant 0 : i32
    %237 = vector.broadcast %c0_i32_101 : i32 to vector<16x1xi32>
    %238 = arith.cmpi sge, %236, %237 : vector<16x1xi32>
    %c-2_i32_102 = arith.constant -2 : i32
    %239 = vector.broadcast %c-2_i32_102 : i32 to vector<16x1xi32>
    %240 = arith.addi %233, %239 : vector<16x1xi32>
    %c16_i32_103 = arith.constant 16 : i32
    %241 = vector.broadcast %c16_i32_103 : i32 to vector<16x1xi32>
    %242 = arith.cmpi slt, %240, %241 : vector<16x1xi32>
    %243 = arith.andi %238, %242 : vector<16x1xi1>
    %cst_104 = arith.constant 0.000000e+00 : f32
    %244 = vector.shape_cast %243 : vector<16x1xi1> to vector<16x1xi1>
    %245 = vector.broadcast %244 : vector<16x1xi1> to vector<16x512xi1>
    %246 = vector.broadcast %cst_104 : f32 to vector<16x512xf32>
    %247 = arith.select %245, %234, %246 : vector<16x512xi1>, vector<16x512xf32>
    %248 = arith.truncf %247 : vector<16x512xf32> to vector<16x512xbf16>
    %249 = vector.extract_strided_slice %231 {offsets = [0, 0, 0], sizes = [1, 512, 512], strides = [1, 1, 1]} : vector<5x512x512xbf16> to vector<1x512x512xbf16>
    %250 = vector.shape_cast %249 : vector<1x512x512xbf16> to vector<512x512xbf16>
    %cst_105 = arith.constant dense<0.000000e+00> : vector<16x512xf32>
    %251 = tpu.matmul %248, %250, %cst_105 {dimension_numbers = #tpu.dot_dimension_numbers<[1], [0], [0], [1], [0, 0, 1, 1], [], []>} : vector<16x512xbf16>, vector<512x512xbf16>, vector<16x512xf32> -> vector<16x512xf32>
    %c1_i32_106 = arith.constant 1 : i32
    %252 = tpu.dynamic_rotate %230 by %c1_i32_106 dim 0 : vector<16x512xf32>, i32 -> vector<16x512xf32>
    %c-1_i32_107 = arith.constant -1 : i32
    %253 = vector.broadcast %c-1_i32_107 : i32 to vector<16x1xi32>
    %254 = arith.addi %233, %253 : vector<16x1xi32>
    %c0_i32_108 = arith.constant 0 : i32
    %255 = vector.broadcast %c0_i32_108 : i32 to vector<16x1xi32>
    %256 = arith.cmpi sge, %254, %255 : vector<16x1xi32>
    %c-1_i32_109 = arith.constant -1 : i32
    %257 = vector.broadcast %c-1_i32_109 : i32 to vector<16x1xi32>
    %258 = arith.addi %233, %257 : vector<16x1xi32>
    %c16_i32_110 = arith.constant 16 : i32
    %259 = vector.broadcast %c16_i32_110 : i32 to vector<16x1xi32>
    %260 = arith.cmpi slt, %258, %259 : vector<16x1xi32>
    %261 = arith.andi %256, %260 : vector<16x1xi1>
    %cst_111 = arith.constant 0.000000e+00 : f32
    %262 = vector.shape_cast %261 : vector<16x1xi1> to vector<16x1xi1>
    %263 = vector.broadcast %262 : vector<16x1xi1> to vector<16x512xi1>
    %264 = vector.broadcast %cst_111 : f32 to vector<16x512xf32>
    %265 = arith.select %263, %252, %264 : vector<16x512xi1>, vector<16x512xf32>
    %266 = arith.truncf %265 : vector<16x512xf32> to vector<16x512xbf16>
    %267 = vector.extract_strided_slice %231 {offsets = [1, 0, 0], sizes = [1, 512, 512], strides = [1, 1, 1]} : vector<5x512x512xbf16> to vector<1x512x512xbf16>
    %268 = vector.shape_cast %267 : vector<1x512x512xbf16> to vector<512x512xbf16>
    %cst_112 = arith.constant dense<0.000000e+00> : vector<16x512xf32>
    %269 = tpu.matmul %266, %268, %cst_112 {dimension_numbers = #tpu.dot_dimension_numbers<[1], [0], [0], [1], [0, 0, 1, 1], [], []>} : vector<16x512xbf16>, vector<512x512xbf16>, vector<16x512xf32> -> vector<16x512xf32>
    %270 = arith.addf %251, %269 : vector<16x512xf32>
    %271 = arith.truncf %230 : vector<16x512xf32> to vector<16x512xbf16>
    %272 = vector.extract_strided_slice %231 {offsets = [2, 0, 0], sizes = [1, 512, 512], strides = [1, 1, 1]} : vector<5x512x512xbf16> to vector<1x512x512xbf16>
    %273 = vector.shape_cast %272 : vector<1x512x512xbf16> to vector<512x512xbf16>
    %cst_113 = arith.constant dense<0.000000e+00> : vector<16x512xf32>
    %274 = tpu.matmul %271, %273, %cst_113 {dimension_numbers = #tpu.dot_dimension_numbers<[1], [0], [0], [1], [0, 0, 1, 1], [], []>} : vector<16x512xbf16>, vector<512x512xbf16>, vector<16x512xf32> -> vector<16x512xf32>
    %275 = arith.addf %270, %274 : vector<16x512xf32>
    %c15_i32_114 = arith.constant 15 : i32
    %276 = tpu.dynamic_rotate %230 by %c15_i32_114 dim 0 : vector<16x512xf32>, i32 -> vector<16x512xf32>
    %c1_i32_115 = arith.constant 1 : i32
    %277 = vector.broadcast %c1_i32_115 : i32 to vector<16x1xi32>
    %278 = arith.addi %233, %277 : vector<16x1xi32>
    %c0_i32_116 = arith.constant 0 : i32
    %279 = vector.broadcast %c0_i32_116 : i32 to vector<16x1xi32>
    %280 = arith.cmpi sge, %278, %279 : vector<16x1xi32>
    %c1_i32_117 = arith.constant 1 : i32
    %281 = vector.broadcast %c1_i32_117 : i32 to vector<16x1xi32>
    %282 = arith.addi %233, %281 : vector<16x1xi32>
    %c16_i32_118 = arith.constant 16 : i32
    %283 = vector.broadcast %c16_i32_118 : i32 to vector<16x1xi32>
    %284 = arith.cmpi slt, %282, %283 : vector<16x1xi32>
    %285 = arith.andi %280, %284 : vector<16x1xi1>
    %cst_119 = arith.constant 0.000000e+00 : f32
    %286 = vector.shape_cast %285 : vector<16x1xi1> to vector<16x1xi1>
    %287 = vector.broadcast %286 : vector<16x1xi1> to vector<16x512xi1>
    %288 = vector.broadcast %cst_119 : f32 to vector<16x512xf32>
    %289 = arith.select %287, %276, %288 : vector<16x512xi1>, vector<16x512xf32>
    %290 = arith.truncf %289 : vector<16x512xf32> to vector<16x512xbf16>
    %291 = vector.extract_strided_slice %231 {offsets = [3, 0, 0], sizes = [1, 512, 512], strides = [1, 1, 1]} : vector<5x512x512xbf16> to vector<1x512x512xbf16>
    %292 = vector.shape_cast %291 : vector<1x512x512xbf16> to vector<512x512xbf16>
    %cst_120 = arith.constant dense<0.000000e+00> : vector<16x512xf32>
    %293 = tpu.matmul %290, %292, %cst_120 {dimension_numbers = #tpu.dot_dimension_numbers<[1], [0], [0], [1], [0, 0, 1, 1], [], []>} : vector<16x512xbf16>, vector<512x512xbf16>, vector<16x512xf32> -> vector<16x512xf32>
    %294 = arith.addf %275, %293 : vector<16x512xf32>
    %c14_i32_121 = arith.constant 14 : i32
    %295 = tpu.dynamic_rotate %230 by %c14_i32_121 dim 0 : vector<16x512xf32>, i32 -> vector<16x512xf32>
    %c2_i32_122 = arith.constant 2 : i32
    %296 = vector.broadcast %c2_i32_122 : i32 to vector<16x1xi32>
    %297 = arith.addi %233, %296 : vector<16x1xi32>
    %c0_i32_123 = arith.constant 0 : i32
    %298 = vector.broadcast %c0_i32_123 : i32 to vector<16x1xi32>
    %299 = arith.cmpi sge, %297, %298 : vector<16x1xi32>
    %c2_i32_124 = arith.constant 2 : i32
    %300 = vector.broadcast %c2_i32_124 : i32 to vector<16x1xi32>
    %301 = arith.addi %233, %300 : vector<16x1xi32>
    %c16_i32_125 = arith.constant 16 : i32
    %302 = vector.broadcast %c16_i32_125 : i32 to vector<16x1xi32>
    %303 = arith.cmpi slt, %301, %302 : vector<16x1xi32>
    %304 = arith.andi %299, %303 : vector<16x1xi1>
    %cst_126 = arith.constant 0.000000e+00 : f32
    %305 = vector.shape_cast %304 : vector<16x1xi1> to vector<16x1xi1>
    %306 = vector.broadcast %305 : vector<16x1xi1> to vector<16x512xi1>
    %307 = vector.broadcast %cst_126 : f32 to vector<16x512xf32>
    %308 = arith.select %306, %295, %307 : vector<16x512xi1>, vector<16x512xf32>
    %309 = arith.truncf %308 : vector<16x512xf32> to vector<16x512xbf16>
    %310 = vector.extract_strided_slice %231 {offsets = [4, 0, 0], sizes = [1, 512, 512], strides = [1, 1, 1]} : vector<5x512x512xbf16> to vector<1x512x512xbf16>
    %311 = vector.shape_cast %310 : vector<1x512x512xbf16> to vector<512x512xbf16>
    %cst_127 = arith.constant dense<0.000000e+00> : vector<16x512xf32>
    %312 = tpu.matmul %309, %311, %cst_127 {dimension_numbers = #tpu.dot_dimension_numbers<[1], [0], [0], [1], [0, 0, 1, 1], [], []>} : vector<16x512xbf16>, vector<512x512xbf16>, vector<16x512xf32> -> vector<16x512xf32>
    %313 = arith.addf %294, %312 : vector<16x512xf32>
    %314 = vector.broadcast %232 : vector<1x512xf32> to vector<16x512xf32>
    %315 = arith.addf %313, %314 : vector<16x512xf32>
    %c0_128 = arith.constant 0 : index
    %c0_129 = arith.constant 0 : index
    %316 = vector.load %arg16[%c0_128, %c0_129] : memref<1x512xf32, #tpu.memory_space<vmem>>, vector<1x512xf32>
    %c0_130 = arith.constant 0 : index
    %c0_131 = arith.constant 0 : index
    %317 = vector.load %arg17[%c0_130, %c0_131] : memref<1x512xf32, #tpu.memory_space<vmem>>, vector<1x512xf32>
    %cst_132 = arith.constant dense<0.000000e+00> : vector<512xf32>
    %318 = vector.multi_reduction <add>, %315, %cst_132 [0] : vector<16x512xf32> to vector<512xf32>
    %319 = vector.shape_cast %318 : vector<512xf32> to vector<1x512xf32>
    %320 = arith.mulf %315, %315 : vector<16x512xf32>
    %cst_133 = arith.constant dense<0.000000e+00> : vector<512xf32>
    %321 = vector.multi_reduction <add>, %320, %cst_133 [0] : vector<16x512xf32> to vector<512xf32>
    %322 = vector.shape_cast %321 : vector<512xf32> to vector<1x512xf32>
    %cst_134 = arith.constant dense<0.000000e+00> : vector<1x32xf32>
    %323 = tpu.matmul %319, %2, %cst_134 {dimension_numbers = #tpu.dot_dimension_numbers<[1], [0], [0], [1], [0, 0, 1, 1], [], []>} : vector<1x512xf32>, vector<512x32xf32>, vector<1x32xf32> -> vector<1x32xf32>
    %cst_135 = arith.constant 2.560000e+02 : f32
    %324 = vector.broadcast %cst_135 : f32 to vector<1x32xf32>
    %325 = arith.divf %323, %324 : vector<1x32xf32>
    %cst_136 = arith.constant dense<0.000000e+00> : vector<1x32xf32>
    %326 = tpu.matmul %322, %2, %cst_136 {dimension_numbers = #tpu.dot_dimension_numbers<[1], [0], [0], [1], [0, 0, 1, 1], [], []>} : vector<1x512xf32>, vector<512x32xf32>, vector<1x32xf32> -> vector<1x32xf32>
    %cst_137 = arith.constant 2.560000e+02 : f32
    %327 = vector.broadcast %cst_137 : f32 to vector<1x32xf32>
    %328 = arith.divf %326, %327 : vector<1x32xf32>
    %329 = arith.mulf %325, %325 : vector<1x32xf32>
    %330 = arith.subf %328, %329 : vector<1x32xf32>
    %cst_138 = arith.constant 9.99999974E-6 : f32
    %331 = vector.broadcast %cst_138 : f32 to vector<1x32xf32>
    %332 = arith.addf %330, %331 : vector<1x32xf32>
    %333 = math.rsqrt %332 : vector<1x32xf32>
    %cst_139 = arith.constant dense<0.000000e+00> : vector<1x512xf32>
    %334 = tpu.matmul %325, %2, %cst_139 {dimension_numbers = #tpu.dot_dimension_numbers<[1], [1], [0], [0], [0, 0, 1, 0], [], []>} : vector<1x32xf32>, vector<512x32xf32>, vector<1x512xf32> -> vector<1x512xf32>
    %cst_140 = arith.constant dense<0.000000e+00> : vector<1x512xf32>
    %335 = tpu.matmul %333, %2, %cst_140 {dimension_numbers = #tpu.dot_dimension_numbers<[1], [1], [0], [0], [0, 0, 1, 0], [], []>} : vector<1x32xf32>, vector<512x32xf32>, vector<1x512xf32> -> vector<1x512xf32>
    %336 = arith.mulf %335, %316 : vector<1x512xf32>
    %337 = arith.mulf %334, %336 : vector<1x512xf32>
    %338 = arith.subf %317, %337 : vector<1x512xf32>
    %339 = vector.broadcast %336 : vector<1x512xf32> to vector<16x512xf32>
    %340 = arith.mulf %315, %339 : vector<16x512xf32>
    %341 = vector.broadcast %338 : vector<1x512xf32> to vector<16x512xf32>
    %342 = arith.addf %340, %341 : vector<16x512xf32>
    %cst_141 = arith.constant 0.000000e+00 : f32
    %343 = vector.broadcast %cst_141 : f32 to vector<16x512xf32>
    %344 = arith.maximumf %342, %343 : vector<16x512xf32>
    %c0_142 = arith.constant 0 : index
    %c0_143 = arith.constant 0 : index
    %c0_144 = arith.constant 0 : index
    %345 = vector.load %arg18[%c0_142, %c0_143, %c0_144] : memref<1x512x128xbf16, #tpu.memory_space<vmem>>, vector<1x512x128xbf16>
    %c0_145 = arith.constant 0 : index
    %c0_146 = arith.constant 0 : index
    %346 = vector.load %arg19[%c0_145, %c0_146] : memref<1x128xf32, #tpu.memory_space<vmem>>, vector<1x128xf32>
    %347 = arith.truncf %344 : vector<16x512xf32> to vector<16x512xbf16>
    %348 = vector.shape_cast %345 : vector<1x512x128xbf16> to vector<512x128xbf16>
    %cst_147 = arith.constant dense<0.000000e+00> : vector<16x128xf32>
    %349 = tpu.matmul %347, %348, %cst_147 {dimension_numbers = #tpu.dot_dimension_numbers<[1], [0], [0], [1], [0, 0, 1, 1], [], []>} : vector<16x512xbf16>, vector<512x128xbf16>, vector<16x128xf32> -> vector<16x128xf32>
    %350 = vector.broadcast %346 : vector<1x128xf32> to vector<16x128xf32>
    %351 = arith.addf %349, %350 : vector<16x128xf32>
    %352 = tpu.iota {dimensions = array<i32: 1>} : vector<16x128xi32>
    %c16_i32_148 = arith.constant 16 : i32
    %353 = vector.broadcast %c16_i32_148 : i32 to vector<16x128xi32>
    %354 = arith.cmpi slt, %352, %353 : vector<16x128xi32>
    %cst_149 = arith.constant -1.000000e+30 : f32
    %355 = vector.broadcast %cst_149 : f32 to vector<16x128xf32>
    %356 = arith.select %354, %351, %355 : vector<16x128xi1>, vector<16x128xf32>
    %cst_150 = arith.constant dense<0xFF800000> : vector<16xf32>
    %357 = vector.multi_reduction <maximumf>, %356, %cst_150 [1] : vector<16x128xf32> to vector<16xf32>
    %358 = vector.shape_cast %357 : vector<16xf32> to vector<16x1xf32>
    %359 = vector.broadcast %358 : vector<16x1xf32> to vector<16x128xf32>
    %360 = arith.subf %356, %359 : vector<16x128xf32>
    %361 = math.exp %360 : vector<16x128xf32>
    %cst_151 = arith.constant dense<0.000000e+00> : vector<16xf32>
    %362 = vector.multi_reduction <add>, %361, %cst_151 [1] : vector<16x128xf32> to vector<16xf32>
    %363 = vector.shape_cast %362 : vector<16xf32> to vector<16x1xf32>
    %364 = math.log %363 : vector<16x1xf32>
    %365 = arith.addf %358, %364 : vector<16x1xf32>
    %366 = vector.broadcast %365 : vector<16x1xf32> to vector<16x128xf32>
    %367 = arith.subf %356, %366 : vector<16x128xf32>
    %c0_152 = arith.constant 0 : index
    %c0_153 = arith.constant 0 : index
    %c0_154 = arith.constant 0 : index
    %368 = vector.load %arg21[%c0_152, %c0_153, %c0_154] : memref<1x16x128xf32, #tpu.memory_space<vmem>>, vector<1x16x128xf32>
    %369 = vector.shape_cast %368 : vector<1x16x128xf32> to vector<16x128xf32>
    %370 = vector.shape_cast %367 : vector<16x128xf32> to vector<1x16x128xf32>
    tpu.vector_store %arg21[%c0_152, %c0_153, %c0_154], %370 {strides = array<i32>} : memref<1x16x128xf32, #tpu.memory_space<vmem>>, vector<1x16x128xf32>,
    return
  }
  func.func @transform_0(%arg0: i32) -> (i32, i32, i32) {
    %c0_i32 = arith.constant 0 : i32
    %c0_i32_0 = arith.constant 0 : i32
    %c0_i32_1 = arith.constant 0 : i32
    return %arg0, %c0_i32, %c0_i32_0 : i32, i32, i32
  }
  func.func @transform_1(%arg0: i32) -> (i32, i32, i32) {
    %c0_i32 = arith.constant 0 : i32
    %c0_i32_0 = arith.constant 0 : i32
    %c0_i32_1 = arith.constant 0 : i32
    %c0_i32_2 = arith.constant 0 : i32
    return %c0_i32, %c0_i32_0, %c0_i32_1 : i32, i32, i32
  }
  func.func @transform_2(%arg0: i32) -> (i32, i32) {
    %c0_i32 = arith.constant 0 : i32
    %c0_i32_0 = arith.constant 0 : i32
    %c0_i32_1 = arith.constant 0 : i32
    return %c0_i32, %c0_i32_0 : i32, i32
  }
  func.func @transform_3(%arg0: i32) -> (i32, i32) {
    %c0_i32 = arith.constant 0 : i32
    %c0_i32_0 = arith.constant 0 : i32
    %c0_i32_1 = arith.constant 0 : i32
    return %c0_i32, %c0_i32_0 : i32, i32
  }
  func.func @transform_4(%arg0: i32) -> (i32, i32) {
    %c0_i32 = arith.constant 0 : i32
    %c0_i32_0 = arith.constant 0 : i32
    %c0_i32_1 = arith.constant 0 : i32
    return %c0_i32, %c0_i32_0 : i32, i32
  }
  func.func @transform_5(%arg0: i32) -> (i32, i32, i32) {
    %c0_i32 = arith.constant 0 : i32
    %c0_i32_0 = arith.constant 0 : i32
    %c0_i32_1 = arith.constant 0 : i32
    %c0_i32_2 = arith.constant 0 : i32
    return %c0_i32, %c0_i32_0, %c0_i32_1 : i32, i32, i32
  }
  func.func @transform_6(%arg0: i32) -> (i32, i32) {
    %c0_i32 = arith.constant 0 : i32
    %c0_i32_0 = arith.constant 0 : i32
    %c0_i32_1 = arith.constant 0 : i32
    return %c0_i32, %c0_i32_0 : i32, i32
  }
  func.func @transform_7(%arg0: i32) -> (i32, i32) {
    %c0_i32 = arith.constant 0 : i32
    %c0_i32_0 = arith.constant 0 : i32
    %c0_i32_1 = arith.constant 0 : i32
    return %c0_i32, %c0_i32_0 : i32, i32
  }
  func.func @transform_8(%arg0: i32) -> (i32, i32) {
    %c0_i32 = arith.constant 0 : i32
    %c0_i32_0 = arith.constant 0 : i32
    %c0_i32_1 = arith.constant 0 : i32
    return %c0_i32, %c0_i32_0 : i32, i32
  }
  func.func @transform_9(%arg0: i32) -> (i32, i32, i32) {
    %c0_i32 = arith.constant 0 : i32
    %c0_i32_0 = arith.constant 0 : i32
    %c0_i32_1 = arith.constant 0 : i32
    %c0_i32_2 = arith.constant 0 : i32
    return %c0_i32, %c0_i32_0, %c0_i32_1 : i32, i32, i32
  }
  func.func @transform_10(%arg0: i32) -> (i32, i32) {
    %c0_i32 = arith.constant 0 : i32
    %c0_i32_0 = arith.constant 0 : i32
    %c0_i32_1 = arith.constant 0 : i32
    return %c0_i32, %c0_i32_0 : i32, i32
  }
  func.func @transform_11(%arg0: i32) -> (i32, i32) {
    %c0_i32 = arith.constant 0 : i32
    %c0_i32_0 = arith.constant 0 : i32
    %c0_i32_1 = arith.constant 0 : i32
    return %c0_i32, %c0_i32_0 : i32, i32
  }
  func.func @transform_12(%arg0: i32) -> (i32, i32) {
    %c0_i32 = arith.constant 0 : i32
    %c0_i32_0 = arith.constant 0 : i32
    %c0_i32_1 = arith.constant 0 : i32
    return %c0_i32, %c0_i32_0 : i32, i32
  }
  func.func @transform_13(%arg0: i32) -> (i32, i32, i32) {
    %c0_i32 = arith.constant 0 : i32
    %c0_i32_0 = arith.constant 0 : i32
    %c0_i32_1 = arith.constant 0 : i32
    %c0_i32_2 = arith.constant 0 : i32
    return %c0_i32, %c0_i32_0, %c0_i32_1 : i32, i32, i32
  }
  func.func @transform_14(%arg0: i32) -> (i32, i32) {
    %c0_i32 = arith.constant 0 : i32
    %c0_i32_0 = arith.constant 0 : i32
    %c0_i32_1 = arith.constant 0 : i32
    return %c0_i32, %c0_i32_0 : i32, i32
  }
  func.func @transform_15(%arg0: i32) -> (i32, i32) {
    %c0_i32 = arith.constant 0 : i32
    %c0_i32_0 = arith.constant 0 : i32
    %c0_i32_1 = arith.constant 0 : i32
    return %c0_i32, %c0_i32_0 : i32, i32
  }
  func.func @transform_16(%arg0: i32) -> (i32, i32) {
    %c0_i32 = arith.constant 0 : i32
    %c0_i32_0 = arith.constant 0 : i32
    %c0_i32_1 = arith.constant 0 : i32
    return %c0_i32, %c0_i32_0 : i32, i32
  }
  func.func @transform_17(%arg0: i32) -> (i32, i32, i32) {
    %c0_i32 = arith.constant 0 : i32
    %c0_i32_0 = arith.constant 0 : i32
    %c0_i32_1 = arith.constant 0 : i32
    %c0_i32_2 = arith.constant 0 : i32
    return %c0_i32, %c0_i32_0, %c0_i32_1 : i32, i32, i32
  }
  func.func @transform_18(%arg0: i32) -> (i32, i32) {
    %c0_i32 = arith.constant 0 : i32
    %c0_i32_0 = arith.constant 0 : i32
    %c0_i32_1 = arith.constant 0 : i32
    return %c0_i32, %c0_i32_0 : i32, i32
  }
  func.func @transform_19(%arg0: i32) -> (i32, i32) {
    %c0_i32 = arith.constant 0 : i32
    %c0_i32_0 = arith.constant 0 : i32
    %c0_i32_1 = arith.constant 0 : i32
    return %c0_i32, %c0_i32_0 : i32, i32
  }
  func.func @transform_20(%arg0: i32) -> (i32, i32, i32) {
    %c0_i32 = arith.constant 0 : i32
    %c0_i32_0 = arith.constant 0 : i32
    %c0_i32_1 = arith.constant 0 : i32
    return %arg0, %c0_i32, %c0_i32_0 : i32, i32, i32
  }
}

</mosaic_0001>

<bundles_post_ra>
// kernel: tpu_custom_call.1
= control target key start
LH: loop header
LB: loop body
LE: loop exit
PB: predicated region body
PF: predicated region fallthrough
CT: control target
= control target key end

     0   :  { %s26673_s0 = inlined_call_operand.hbm [shape: f32[2,16,8], index: 0, kind: input, shape index: {}]   ;;  %s26674_s1 = inlined_call_operand.hbm [shape: bf16[3,8,512], index: 1, kind: input, shape index: {}]   ;;  %s26675_s2 = inlined_call_operand.hbm [shape: f32[1,512], index: 2, kind: input, shape index: {}]   ;;  %s26676_s3 = inlined_call_operand.hbm [shape: f32[1,512], index: 3, kind: input, shape index: {}]   ;;  %s26677_s4 = inlined_call_operand.hbm [shape: f32[1,512], index: 4, kind: input, shape index: {}]   ;;  %s26678_s5 = inlined_call_operand.hbm [shape: bf16[3,512,512], index: 5, kind: input, shape index: {}]   ;;  %s26679_s6 = inlined_call_operand.hbm [shape: f32[1,512], index: 6, kind: input, shape index: {}]   ;;  %s26680_s7 = inlined_call_operand.hbm [shape: f32[1,512], index: 7, kind: input, shape index: {}]   ;;  %s26681_s8 = inlined_call_operand.hbm [shape: f32[1,512], index: 8, kind: input, shape index: {}]   ;;  %s26682_s9 = inlined_call_operand.hbm [shape: bf16[3,512,512], index: 9, kind: input, shape index: {}]   ;;  %s26683_s10 = inlined_call_operand.hbm [shape: f32[1,512], index: 10, kind: input, shape index: {}]   ;;  %s26684_s11 = inlined_call_operand.hbm [shape: f32[1,512], index: 11, kind: input, shape index: {}]   ;;  %s26685_s12 = inlined_call_operand.hbm [shape: f32[1,512], index: 12, kind: input, shape index: {}]   ;;  %s26686_s13 = inlined_call_operand.hbm [shape: bf16[5,512,512], index: 13, kind: input, shape index: {}]   ;;  %s26687_s14 = inlined_call_operand.hbm [shape: f32[1,512], index: 14, kind: input, shape index: {}]   ;;  %s26688_s15 = inlined_call_operand.hbm [shape: f32[1,512], index: 15, kind: input, shape index: {}]   ;;  %s26689_s16 = inlined_call_operand.hbm [shape: f32[1,512], index: 16, kind: input, shape index: {}]   ;;  %s26690_s17 = inlined_call_operand.hbm [shape: bf16[1,512,128], index: 17, kind: input, shape index: {}]   ;;  %s26691_s18 = inlined_call_operand.hbm [shape: f32[1,128], index: 18, kind: input, shape index: {}]   ;;  %s26692_s19 = inlined_call_operand.hbm [shape: f32[512,32], index: 19, kind: input, shape index: {}]   ;;  %s26693_s20 = inlined_call_operand.hbm [shape: f32[2,16,128], index: 20, kind: output, shape index: {}]  }
   0x1   :  { %26810 = sst [smem:[#allocation79_spill]] %s26673_s0 }
   0x2   :  { %26811 = sst [smem:[#allocation80_spill]] %s26674_s1 }
   0x3   :  { %26812 = sst [smem:[#allocation81_spill]] %s26675_s2 }
   0x4   :  { %26813 = sst [smem:[#allocation82_spill]] %s26676_s3 }
   0x5   :  { %26814 = sst [smem:[#allocation83_spill]] %s26677_s4 }
   0x6   :  { %26815 = sst [smem:[#allocation84_spill]] %s26678_s5 }
   0x7   :  { %26816 = sst [smem:[#allocation85_spill]] %s26679_s6 }
   0x8   :  { %26817 = sst [smem:[#allocation86_spill]] %s26680_s7 }
   0x9   :  { %26818 = sst [smem:[#allocation87_spill]] %s26681_s8 }
   0xa   :  { %26819 = sst [smem:[#allocation88_spill]] %s26682_s9 }
   0xb   :  { %26820 = sst [smem:[#allocation89_spill]] %s26689_s16 }
   0xc   :  { %26821 = sst [smem:[#allocation90_spill]] %s26691_s18 }
   0xd   :  { %26822 = sst [smem:[#allocation91_spill]] %s26692_s19 }
   0xe   :  { %26823 = sst [smem:[#allocation92_spill]] %s26693_s20 }
   0xf   :  { %25 = vsyncpa [#allocation3], 0 }
  0x10   :  { %27 = vsyncpa [#allocation3 + $0x1], 0 }
  0x11   :  { %28 = vsyncpa [#allocation6], 0 }
  0x12   :  { %29 = vsyncpa [#allocation9], 0 }
  0x13   :  { %30 = vsyncpa [#allocation12], 0 }
  0x14   :  { %31 = vsyncpa [#allocation15], 0 }
  0x15   :  { %32 = vsyncpa [#allocation18], 0 }
  0x16   :  { %33 = vsyncpa [#allocation21], 0 }
  0x17   :  { %34 = vsyncpa [#allocation24], 0 }
  0x18   :  { %35 = vsyncpa [#allocation27], 0 }
  0x19   :  { %36 = vsyncpa [#allocation30], 0 }
  0x1a   :  { %37 = vsyncpa [#allocation33], 0 }
  0x1b   :  { %38 = vsyncpa [#allocation4], 0 }
  0x1c   :  { %40 = vsyncpa [#allocation4 + $0x1], 0  ;;  %s24079_s1 = smov 0   ;;  %s24081_s22 = smov 0  }
  0x1d   :  { %s24083_s23 = smov 0   ;;  %s24085_s24 = smov 0  }
  0x1e LB: > { %26824 = sst [smem:[#allocation47_spill]] %s23928_s1  ;;  %s23942_s2 = smov [#allocation5]   ;;  %s23940_s24 = sphi %s24085_s24, %s24504_s24   ;;  %s23936_s23 = sphi %s24083_s23, %s27033_s23   ;;  %s23932_s22 = sphi %s24081_s22, %s27032_s22   ;;  %s23928_s1 = sphi %s24079_s1, %s27031_s1  }
  0x1f   : > { %26825 = sst [smem:[#allocation48_spill]] %s23932_s22  ;;  %s514_s25 = sshll.u32 %s23942_s2, 4  ;;  %s24105_s25 = int_to_ptr.vmem [resolvable:$true] %s514_s25 }
  0x20   : > { %26826 = sst [smem:[#allocation49_spill]] %s23936_s23  ;;  %s24100_s3 = sadd.s32 4294967295, %s23940_s24  }
  0x21   : > { %26827 = sst [smem:[#allocation50_spill]] %s23940_s24  ;;  %p16018_p0 = scmp.ge.s32.totalorder %s23940_s24, 1 }
  0x22   : > { %26828 = sst [smem:[#allocation51_spill]] %s24100_s3  ;;  %p26711_p1 = scmp.eq.s32.totalorder %s24100_s3, 0 }
  0x23   : > { %p502_p2 = scmp.lt.s32.totalorder %s23940_s24, 3  ;;  %s23943_s27 = smov [#allocation8]  }
  0x24   : > { %s539_s28 = sshll.u32 %s23943_s27, 4  ;;  %s23944_s29 = smov [#allocation11]   ;;  %s24120_s28 = int_to_ptr.vmem [resolvable:$true] %s539_s28 }
  0x25   : > { %p24107_p3 = pnand %p16018_p0, %p502_p2  ;;  %s560_s30 = sshll.u32 %s23944_s29, 4  ;;  %s24122_s30 = int_to_ptr.vmem [resolvable:$true] %s560_s30 }
  0x26   : > { %s26832_s2 = sld [smem:[#allocation80_spill]] }
  0x27   : > { %s26829_s26 = scalar_select %p24107_p3, 1, 0 }
  0x28   : > { %p20932_p5 = pneg %p24107_p3 }
  0x29   : > { %26830 = sst [smem:[#allocation52_spill]] %s26829_s26 }
  0x2a   : > { %p24116_p6 = pnand %p20932_p5, %p26711_p1 }
  0x2c   : > { %s23272_s20 = scalar_lea.hbm %s26832_s2, 768  ;;  %p24132_p8 = pneg %p24116_p6 }
  0x2d   : > { %p23273_p7 = scmp.ne.s32.totalorder %s26832_s2, %s23272_s20  ;;  %p23279_p11 = scmp.lt.u32.totalorder %s23272_s20, %s26832_s2 }
  0x2f   : > { %p23275_p9 = pnand %p24132_p8, %p23273_p7 }
  0x31   : > { %p23276_p10 = pneg %p23275_p9 }
  0x33   : > { %p23281_p12 = pnand %p23279_p11, %p23276_p10 }
  0x35   : > { %23284 = shalt.err (!%p23281_p12)
}
  0x36   : > { %s23285_s1 = scalar_lea.vmem %s24105_s25, 768  ;;  %p23293_p5 = scmp.lt.s32.totalorder %s24105_s25, %s24105_s25 }
  0x37   : > { %p23286_p13 = scmp.ne.s32.totalorder %s24105_s25, %s23285_s1  ;;  %p23294_p4 = scmp.lt.s32.totalorder %s23285_s1, %s23285_s1 }
  0x39   : > { %p23288_p0 = pnand %p23286_p13, %p24132_p8  ;;  %p23295_p7 = por %p23294_p4, %p23293_p5 }
  0x3b   : > { %p23289_p2 = pneg %p23288_p0 }
  0x3d   : > { %p23296_p9 = pnand %p23295_p7, %p23289_p2 }
  0x3f   : > { %23299 = shalt.err (!%p23296_p9)
}
  0x40   : > { %s23945_s26 = smov 256   ;;  %s23946_s20 = smov 16  }
  0x41   : > { %20935 = dma.hbm_to_vmem [thread:$0]  (!%p24116_p6), %s26832_s2, 768, %s24105_s25, [#allocation6], %s23945_s26, %s23945_s26, %s23946_s20  }
  0x42   : > { %s26834_s22 = sld [smem:[#allocation82_spill]] }
  0x48   : > { %s26835_s19 = smov %s26834_s22  ;;  %s23300_s1 = scalar_lea.hbm %s26834_s22, 64 }
  0x49   : > { %p23301_p4 = scmp.ne.s32.totalorder %s26835_s19, %s23300_s1  ;;  %p23307_p12 = scmp.lt.u32.totalorder %s23300_s1, %s26835_s19 }
  0x4b   : > { %p23303_p10 = pnand %p23301_p4, %p24132_p8 }
  0x4d   : > { %p23304_p11 = pneg %p23303_p10 }
  0x4f   : > { %p23309_p13 = pnand %p23307_p12, %p23304_p11 }
  0x51   : > { %23312 = shalt.err (!%p23309_p13)
}
  0x52   : > { %s23313_s25 = scalar_lea.vmem %s24120_s28, 64  ;;  %p23321_p7 = scmp.lt.s32.totalorder %s24120_s28, %s24120_s28 }
  0x53   : > { %p23314_p0 = scmp.ne.s32.totalorder %s24120_s28, %s23313_s25  ;;  %p23322_p9 = scmp.lt.s32.totalorder %s23313_s25, %s23313_s25 }
  0x55   : > { %p23316_p2 = pnand %p23314_p0, %p24132_p8  ;;  %p23323_p4 = por %p23322_p9, %p23321_p7 }
  0x57   : > { %p23317_p5 = pneg %p23316_p2 }
  0x59   : > { %p23324_p10 = pnand %p23323_p4, %p23317_p5 }
  0x5b   : > { %23327 = shalt.err (!%p23324_p10)
}
  0x5c   : > { %20941 = dma.hbm_to_vmem [thread:$0]  (!%p24116_p6), %s26835_s19, 64, %s24120_s28, [#allocation9]  }
  0x5d   : > { %s26836_s5 = sld [smem:[#allocation84_spill]] }
  0x63   : > { %s23328_s24 = scalar_lea.hbm %s26836_s5, 49152 }
  0x64   : > { %p23329_p11 = scmp.ne.s32.totalorder %s26836_s5, %s23328_s24  ;;  %p23335_p0 = scmp.lt.u32.totalorder %s23328_s24, %s26836_s5 }
  0x66   : > { %p23331_p12 = pnand %p23329_p11, %p24132_p8 }
  0x68   : > { %p23332_p13 = pneg %p23331_p12 }
  0x6a   : > { %p23337_p2 = pnand %p23335_p0, %p23332_p13 }
  0x6c   : > { %23340 = shalt.err (!%p23337_p2)
}
  0x6d   : > { %s23341_s28 = scalar_lea.vmem %s24122_s30, 49152  ;;  %p23349_p4 = scmp.lt.s32.totalorder %s24122_s30, %s24122_s30 }
  0x6e   : > { %p23342_p5 = scmp.ne.s32.totalorder %s24122_s30, %s23341_s28  ;;  %p23350_p10 = scmp.lt.s32.totalorder %s23341_s28, %s23341_s28 }
  0x70   : > { %p23344_p7 = pnand %p23342_p5, %p24132_p8  ;;  %p23351_p11 = por %p23350_p10, %p23349_p4 }
  0x72   : > { %p23345_p9 = pneg %p23344_p7 }
  0x74   : > { %p23352_p12 = pnand %p23351_p11, %p23345_p9 }
  0x76   : > { %23355 = shalt.err (!%p23352_p12)
}
  0x77   : > { %20947 = dma.hbm_to_vmem [thread:$0]  (!%p24116_p6), %s26836_s5, 49152, %s24122_s30, [#allocation12], %s23945_s26, %s23945_s26, %s23946_s20  }
  0x78   : > { %s23947_s16 = smov [#allocation14]   ;;  %s23948_s22 = smov [#allocation17]  }
  0x79   : > { %s585_s18 = sshll.u32 %s23947_s16, 4  ;;  %s606_s23 = sshll.u32 %s23948_s22, 4  ;;  %s586_s18 = int_to_ptr.vmem [resolvable:$true] %s585_s18  ;;  %s607_s23 = int_to_ptr.vmem [resolvable:$true] %s606_s23 }
  0x7a   : > { %s26837_s7 = sld [smem:[#allocation86_spill]] }
  0x80   : > { %s23356_s0 = scalar_lea.hbm %s26837_s7, 64 }
  0x81   : > { %p23357_p13 = scmp.ne.s32.totalorder %s26837_s7, %s23356_s0  ;;  %p23363_p5 = scmp.lt.u32.totalorder %s23356_s0, %s26837_s7 }
  0x83   : > { %p23359_p0 = pnand %p23357_p13, %p24132_p8 }
  0x85   : > { %p23360_p2 = pneg %p23359_p0 }
  0x87   : > { %p23365_p7 = pnand %p23363_p5, %p23360_p2 }
  0x89   : > { %23368 = shalt.err (!%p23365_p7)
}
  0x8a   : > { %s23369_s30 = scalar_lea.vmem %s586_s18, 64  ;;  %p23377_p11 = scmp.lt.s32.totalorder %s586_s18, %s586_s18 }
  0x8b   : > { %p23370_p9 = scmp.ne.s32.totalorder %s586_s18, %s23369_s30  ;;  %p23378_p12 = scmp.lt.s32.totalorder %s23369_s30, %s23369_s30 }
  0x8d   : > { %p23372_p4 = pnand %p23370_p9, %p24132_p8  ;;  %p23379_p1 = por %p23378_p12, %p23377_p11 }
  0x8f   : > { %p23373_p10 = pneg %p23372_p4 }
  0x91   : > { %p23380_p3 = pnand %p23379_p1, %p23373_p10 }
  0x93   : > { %23383 = shalt.err (!%p23380_p3)
}
  0x94   : > { %20953 = dma.hbm_to_vmem [thread:$0]  (!%p24116_p6), %s26837_s7, 64, %s586_s18, [#allocation15]  }
  0x95   : > { %s26838_s9 = sld [smem:[#allocation88_spill]] }
  0x9b   : > { %s23384_s3 = scalar_lea.hbm %s26838_s9, 49152 }
  0x9c   : > { %p23385_p13 = scmp.ne.s32.totalorder %s26838_s9, %s23384_s3  ;;  %p23391_p3 = scmp.lt.u32.totalorder %s23384_s3, %s26838_s9 }
  0x9e   : > { %p23387_p0 = pnand %p23385_p13, %p24132_p8 }
  0xa0   : > { %p23388_p1 = pneg %p23387_p0 }
  0xa2   : > { %p23393_p2 = pnand %p23391_p3, %p23388_p1 }
  0xa4   : > { %23396 = shalt.err (!%p23393_p2)
}
  0xa5   : > { %s23397_s1 = scalar_lea.vmem %s607_s23, 49152  ;;  %p23405_p4 = scmp.lt.s32.totalorder %s607_s23, %s607_s23 }
  0xa6   : > { %p23398_p5 = scmp.ne.s32.totalorder %s607_s23, %s23397_s1  ;;  %p23406_p10 = scmp.lt.s32.totalorder %s23397_s1, %s23397_s1 }
  0xa8   : > { %p23400_p7 = pnand %p23398_p5, %p24132_p8  ;;  %p23407_p11 = por %p23406_p10, %p23405_p4 }
  0xaa   : > { %p23401_p9 = pneg %p23400_p7 }
  0xac   : > { %p23408_p12 = pnand %p23407_p11, %p23401_p9 }
  0xae   : > { %23411 = shalt.err (!%p23408_p12)
}
  0xaf   : > { %20959 = dma.hbm_to_vmem [thread:$0]  (!%p24116_p6), %s26838_s9, 49152, %s607_s23, [#allocation18], %s23945_s26, %s23945_s26, %s23946_s20  }
  0xb0   : > { %s23949_s25 = smov [#allocation20]   ;;  %s23950_s22 = smov [#allocation23]  }
  0xb1   : > { %s631_s16 = sshll.u32 %s23949_s25, 4  ;;  %s652_s24 = sshll.u32 %s23950_s22, 4  ;;  %s632_s16 = int_to_ptr.vmem [resolvable:$true] %s631_s16  ;;  %s653_s24 = int_to_ptr.vmem [resolvable:$true] %s652_s24 }
  0xb2   : > { %s23412_s21 = scalar_lea.hbm %s26684_s11, 64 }
  0xb3   : > { %p23413_p13 = scmp.ne.s32.totalorder %s26684_s11, %s23412_s21  ;;  %p23419_p3 = scmp.lt.u32.totalorder %s23412_s21, %s26684_s11 }
  0xb5   : > { %p23415_p0 = pnand %p23413_p13, %p24132_p8 }
  0xb7   : > { %p23416_p1 = pneg %p23415_p0 }
  0xb9   : > { %p23421_p2 = pnand %p23419_p3, %p23416_p1 }
  0xbb   : > { %23424 = shalt.err (!%p23421_p2)
}
  0xbc   : > { %s23425_s23 = scalar_lea.vmem %s632_s16, 64  ;;  %p23433_p4 = scmp.lt.s32.totalorder %s632_s16, %s632_s16 }
  0xbd   : > { %p23426_p5 = scmp.ne.s32.totalorder %s632_s16, %s23425_s23  ;;  %p23434_p10 = scmp.lt.s32.totalorder %s23425_s23, %s23425_s23 }
  0xbf   : > { %p23428_p7 = pnand %p23426_p5, %p24132_p8  ;;  %p23435_p11 = por %p23434_p10, %p23433_p4 }
  0xc1   : > { %p23429_p9 = pneg %p23428_p7 }
  0xc3   : > { %p23436_p12 = pnand %p23435_p11, %p23429_p9 }
  0xc5   : > { %23439 = shalt.err (!%p23436_p12)
}
  0xc6   : > { %20965 = dma.hbm_to_vmem [thread:$0]  (!%p24116_p6), %s26684_s11, 64, %s632_s16, [#allocation21]  }
  0xc7   : > { %s23440_s0 = scalar_lea.hbm %s26686_s13, 81920 }
  0xc8   : > { %p23441_p13 = scmp.ne.s32.totalorder %s26686_s13, %s23440_s0  ;;  %p23447_p3 = scmp.lt.u32.totalorder %s23440_s0, %s26686_s13 }
  0xca   : > { %p23443_p0 = pnand %p23441_p13, %p24132_p8 }
  0xcc   : > { %p23444_p1 = pneg %p23443_p0 }
  0xce   : > { %p23449_p2 = pnand %p23447_p3, %p23444_p1 }
  0xd0   : > { %23452 = shalt.err (!%p23449_p2)
}
  0xd1   : > { %s23453_s18 = scalar_lea.vmem %s653_s24, 81920  ;;  %p23461_p4 = scmp.lt.s32.totalorder %s653_s24, %s653_s24 }
  0xd2   : > { %p23454_p5 = scmp.ne.s32.totalorder %s653_s24, %s23453_s18  ;;  %p23462_p10 = scmp.lt.s32.totalorder %s23453_s18, %s23453_s18 }
  0xd4   : > { %p23456_p7 = pnand %p23454_p5, %p24132_p8  ;;  %p23463_p11 = por %p23462_p10, %p23461_p4 }
  0xd6   : > { %p23457_p9 = pneg %p23456_p7 }
  0xd8   : > { %p23464_p12 = pnand %p23463_p11, %p23457_p9 }
  0xda   : > { %23467 = shalt.err (!%p23464_p12)
}
  0xdb   : > { %20971 = dma.hbm_to_vmem [thread:$0]  (!%p24116_p6), %s26686_s13, 81920, %s653_s24, [#allocation24], %s23945_s26, %s23945_s26, %s23946_s20  }
  0xdc   : > { %s23951_s30 = smov [#allocation26]   ;;  %s23952_s22 = smov [#allocation29]  }
  0xdd   : > { %s677_s25 = sshll.u32 %s23951_s30, 4  ;;  %s698_s3 = sshll.u32 %s23952_s22, 4  ;;  %s678_s25 = int_to_ptr.vmem [resolvable:$true] %s677_s25  ;;  %s699_s3 = int_to_ptr.vmem [resolvable:$true] %s698_s3 }
  0xde   : > { %s23468_s29 = scalar_lea.hbm %s26688_s15, 64 }
  0xdf   : > { %p23469_p13 = scmp.ne.s32.totalorder %s26688_s15, %s23468_s29  ;;  %p23475_p3 = scmp.lt.u32.totalorder %s23468_s29, %s26688_s15 }
  0xe1   : > { %p23471_p0 = pnand %p23469_p13, %p24132_p8 }
  0xe3   : > { %p23472_p1 = pneg %p23471_p0 }
  0xe5   : > { %p23477_p2 = pnand %p23475_p3, %p23472_p1 }
  0xe7   : > { %23480 = shalt.err (!%p23477_p2)
}
  0xe8   : > { %s23481_s26 = scalar_lea.vmem %s678_s25, 64  ;;  %p23489_p4 = scmp.lt.s32.totalorder %s678_s25, %s678_s25 }
  0xe9   : > { %p23482_p5 = scmp.ne.s32.totalorder %s678_s25, %s23481_s26  ;;  %p23490_p10 = scmp.lt.s32.totalorder %s23481_s26, %s23481_s26 }
  0xeb   : > { %p23484_p7 = pnand %p23482_p5, %p24132_p8  ;;  %p23491_p11 = por %p23490_p10, %p23489_p4 }
  0xed   : > { %p23485_p9 = pneg %p23484_p7 }
  0xef   : > { %p23492_p12 = pnand %p23491_p11, %p23485_p9 }
  0xf1   : > { %23495 = shalt.err (!%p23492_p12)
}
  0xf2   : > { %20977 = dma.hbm_to_vmem [thread:$0]  (!%p24116_p6), %s26688_s15, 64, %s678_s25, [#allocation27]  }
  0xf3   : > { %s23496_s22 = scalar_lea.hbm %s26690_s17, 4096 }
  0xf4   : > { %p23497_p13 = scmp.ne.s32.totalorder %s26690_s17, %s23496_s22  ;;  %p23503_p3 = scmp.lt.u32.totalorder %s23496_s22, %s26690_s17 }
  0xf6   : > { %p23499_p0 = pnand %p23497_p13, %p24132_p8 }
  0xf8   : > { %p23500_p1 = pneg %p23499_p0 }
  0xfa   : > { %p23505_p2 = pnand %p23503_p3, %p23500_p1 }
  0xfc   : > { %23508 = shalt.err (!%p23505_p2)
}
  0xfd   : > { %s23509_s1 = scalar_lea.vmem %s699_s3, 4096  ;;  %p23517_p4 = scmp.lt.s32.totalorder %s699_s3, %s699_s3 }
  0xfe   : > { %p23510_p5 = scmp.ne.s32.totalorder %s699_s3, %s23509_s1  ;;  %p23518_p10 = scmp.lt.s32.totalorder %s23509_s1, %s23509_s1 }
 0x100   : > { %p23512_p7 = pnand %p23510_p5, %p24132_p8  ;;  %p23519_p11 = por %p23518_p10, %p23517_p4 }
 0x102   : > { %p23513_p9 = pneg %p23512_p7 }
 0x104   : > { %p23520_p12 = pnand %p23519_p11, %p23513_p9 }
 0x106   : > { %23523 = shalt.err (!%p23520_p12)
}
 0x107   : > { %s23953_s25 = smov 64   ;;  %s23954_s18 = smov 4  }
 0x108   : > { %20983 = dma.hbm_to_vmem [thread:$0]  (!%p24116_p6), %s26690_s17, 4096, %s699_s3, [#allocation30], %s23953_s25, %s23953_s25, %s23954_s18  }
 0x109   : > { %s23955_s20 = smov [#allocation7]   ;;  %s23956_s23 = smov [#allocation10]  }
 0x10a   : > { %s528_s24 = sshll.u32 %s23955_s20, 4  ;;  %s550_s30 = sshll.u32 %s23956_s23, 4  ;;  %s529_s24 = int_to_ptr.vmem [resolvable:$true] %s528_s24  ;;  %s551_s30 = int_to_ptr.vmem [resolvable:$true] %s550_s30 }
 0x10b   : > { %s26839_s21 = sld [smem:[#allocation81_spill]] }
 0x111   : > { %s23524_s29 = scalar_lea.hbm %s26839_s21, 64 }
 0x112   : > { %p23525_p13 = scmp.ne.s32.totalorder %s26839_s21, %s23524_s29  ;;  %p23531_p3 = scmp.lt.u32.totalorder %s23524_s29, %s26839_s21 }
 0x114   : > { %p23527_p0 = pnand %p23525_p13, %p24132_p8 }
 0x116   : > { %p23528_p1 = pneg %p23527_p0 }
 0x118   : > { %p23533_p2 = pnand %p23531_p3, %p23528_p1 }
 0x11a   : > { %23536 = shalt.err (!%p23533_p2)
}
 0x11b   : > { %s23537_s3 = scalar_lea.vmem %s529_s24, 64  ;;  %p23545_p4 = scmp.lt.s32.totalorder %s529_s24, %s529_s24 }
 0x11c   : > { %p23538_p5 = scmp.ne.s32.totalorder %s529_s24, %s23537_s3  ;;  %p23546_p10 = scmp.lt.s32.totalorder %s23537_s3, %s23537_s3 }
 0x11e   : > { %p23540_p7 = pnand %p23538_p5, %p24132_p8  ;;  %p23547_p11 = por %p23546_p10, %p23545_p4 }
 0x120   : > { %p23541_p9 = pneg %p23540_p7 }
 0x122   : > { %p23548_p12 = pnand %p23547_p11, %p23541_p9 }
 0x124   : > { %23551 = shalt.err (!%p23548_p12)
}
 0x125   : > { %20938 = dma.hbm_to_vmem [thread:$0]  (!%p24116_p6), %s26839_s21, 64, %s529_s24, [#allocation6]  }
 0x126   : > { %s26840_s16 = sld [smem:[#allocation83_spill]] }
 0x12c   : > { %s23552_s26 = scalar_lea.hbm %s26840_s16, 64 }
 0x12d   : > { %p23553_p13 = scmp.ne.s32.totalorder %s26840_s16, %s23552_s26  ;;  %p23559_p3 = scmp.lt.u32.totalorder %s23552_s26, %s26840_s16 }
 0x12f   : > { %p23555_p0 = pnand %p23553_p13, %p24132_p8 }
 0x131   : > { %p23556_p1 = pneg %p23555_p0 }
 0x133   : > { %p23561_p2 = pnand %p23559_p3, %p23556_p1 }
 0x135   : > { %23564 = shalt.err (!%p23561_p2)
}
 0x136   : > { %s23565_s29 = scalar_lea.vmem %s551_s30, 64  ;;  %p23573_p4 = scmp.lt.s32.totalorder %s551_s30, %s551_s30 }
 0x137   : > { %p23566_p5 = scmp.ne.s32.totalorder %s551_s30, %s23565_s29  ;;  %p23574_p10 = scmp.lt.s32.totalorder %s23565_s29, %s23565_s29 }
 0x139   : > { %p23568_p7 = pnand %p23566_p5, %p24132_p8  ;;  %p23575_p11 = por %p23574_p10, %p23573_p4 }
 0x13b   : > { %p23569_p9 = pneg %p23568_p7 }
 0x13d   : > { %p23576_p12 = pnand %p23575_p11, %p23569_p9 }
 0x13f   : > { %23579 = shalt.err (!%p23576_p12)
}
 0x140   : > { %20944 = dma.hbm_to_vmem [thread:$0]  (!%p24116_p6), %s26840_s16, 64, %s551_s30, [#allocation9]  }
 0x141   : > { %s23957_s1 = smov [#allocation13]   ;;  %s23958_s25 = smov [#allocation16]  }
 0x142   : > { %s574_s3 = sshll.u32 %s23957_s1, 4  ;;  %s596_s18 = sshll.u32 %s23958_s25, 4  ;;  %s575_s3 = int_to_ptr.vmem [resolvable:$true] %s574_s3  ;;  %s597_s18 = int_to_ptr.vmem [resolvable:$true] %s596_s18 }
 0x143   : > { %s26841_s6 = sld [smem:[#allocation85_spill]] }
 0x149   : > { %s23580_s26 = scalar_lea.hbm %s26841_s6, 64 }
 0x14a   : > { %p23581_p13 = scmp.ne.s32.totalorder %s26841_s6, %s23580_s26  ;;  %p23587_p3 = scmp.lt.u32.totalorder %s23580_s26, %s26841_s6 }
 0x14c   : > { %p23583_p0 = pnand %p23581_p13, %p24132_p8 }
 0x14e   : > { %p23584_p1 = pneg %p23583_p0 }
 0x150   : > { %p23589_p2 = pnand %p23587_p3, %p23584_p1 }
 0x152   : > { %23592 = shalt.err (!%p23589_p2)
}
 0x153   : > { %s23593_s30 = scalar_lea.vmem %s575_s3, 64  ;;  %p23601_p4 = scmp.lt.s32.totalorder %s575_s3, %s575_s3 }
 0x154   : > { %p23594_p5 = scmp.ne.s32.totalorder %s575_s3, %s23593_s30  ;;  %p23602_p10 = scmp.lt.s32.totalorder %s23593_s30, %s23593_s30 }
 0x156   : > { %p23596_p7 = pnand %p23594_p5, %p24132_p8  ;;  %p23603_p11 = por %p23602_p10, %p23601_p4 }
 0x158   : > { %p23597_p9 = pneg %p23596_p7 }
 0x15a   : > { %p23604_p12 = pnand %p23603_p11, %p23597_p9 }
 0x15c   : > { %23607 = shalt.err (!%p23604_p12)
}
 0x15d   : > { %20950 = dma.hbm_to_vmem [thread:$0]  (!%p24116_p6), %s26841_s6, 64, %s575_s3, [#allocation12]  }
 0x15e   : > { %s26842_s8 = sld [smem:[#allocation87_spill]] }
 0x164   : > { %s23608_s25 = scalar_lea.hbm %s26842_s8, 64 }
 0x165   : > { %p23609_p13 = scmp.ne.s32.totalorder %s26842_s8, %s23608_s25  ;;  %p23615_p3 = scmp.lt.u32.totalorder %s23608_s25, %s26842_s8 }
 0x167   : > { %p23611_p0 = pnand %p23609_p13, %p24132_p8 }
 0x169   : > { %p23612_p1 = pneg %p23611_p0 }
 0x16b   : > { %p23617_p2 = pnand %p23615_p3, %p23612_p1 }
 0x16d   : > { %23620 = shalt.err (!%p23617_p2)
}
 0x16e   : > { %s23621_s23 = scalar_lea.vmem %s597_s18, 64  ;;  %p23629_p4 = scmp.lt.s32.totalorder %s597_s18, %s597_s18 }
 0x16f   : > { %p23622_p5 = scmp.ne.s32.totalorder %s597_s18, %s23621_s23  ;;  %p23630_p10 = scmp.lt.s32.totalorder %s23621_s23, %s23621_s23 }
 0x171   : > { %p23624_p7 = pnand %p23622_p5, %p24132_p8  ;;  %p23631_p11 = por %p23630_p10, %p23629_p4 }
 0x173   : > { %p23625_p9 = pneg %p23624_p7 }
 0x175   : > { %p23632_p12 = pnand %p23631_p11, %p23625_p9 }
 0x177   : > { %23635 = shalt.err (!%p23632_p12)
}
 0x178   : > { %20956 = dma.hbm_to_vmem [thread:$0]  (!%p24116_p6), %s26842_s8, 64, %s597_s18, [#allocation15]  }
 0x179   : > { %s23959_s0 = smov [#allocation19]   ;;  %s23960_s29 = smov [#allocation22]  }
 0x17a   : > { %s620_s30 = sshll.u32 %s23959_s0, 4  ;;  %s642_s24 = sshll.u32 %s23960_s29, 4  ;;  %s621_s30 = int_to_ptr.vmem [resolvable:$true] %s620_s30  ;;  %s643_s24 = int_to_ptr.vmem [resolvable:$true] %s642_s24 }
 0x17b   : > { %s23636_s25 = scalar_lea.hbm %s26683_s10, 64 }
 0x17c   : > { %p23637_p13 = scmp.ne.s32.totalorder %s26683_s10, %s23636_s25  ;;  %p23643_p3 = scmp.lt.u32.totalorder %s23636_s25, %s26683_s10 }
 0x17e   : > { %p23639_p0 = pnand %p23637_p13, %p24132_p8 }
 0x180   : > { %p23640_p1 = pneg %p23639_p0 }
 0x182   : > { %p23645_p2 = pnand %p23643_p3, %p23640_p1 }
 0x184   : > { %23648 = shalt.err (!%p23645_p2)
}
 0x185   : > { %s23649_s18 = scalar_lea.vmem %s621_s30, 64  ;;  %p23657_p4 = scmp.lt.s32.totalorder %s621_s30, %s621_s30 }
 0x186   : > { %p23650_p5 = scmp.ne.s32.totalorder %s621_s30, %s23649_s18  ;;  %p23658_p10 = scmp.lt.s32.totalorder %s23649_s18, %s23649_s18 }
 0x188   : > { %p23652_p7 = pnand %p23650_p5, %p24132_p8  ;;  %p23659_p11 = por %p23658_p10, %p23657_p4 }
 0x18a   : > { %p23653_p9 = pneg %p23652_p7 }
 0x18c   : > { %p23660_p12 = pnand %p23659_p11, %p23653_p9 }
 0x18e   : > { %23663 = shalt.err (!%p23660_p12)
}
 0x18f   : > { %20962 = dma.hbm_to_vmem [thread:$0]  (!%p24116_p6), %s26683_s10, 64, %s621_s30, [#allocation18]  }
 0x190   : > { %s23664_s29 = scalar_lea.hbm %s26685_s12, 64 }
 0x191   : > { %p23665_p13 = scmp.ne.s32.totalorder %s26685_s12, %s23664_s29  ;;  %p23671_p3 = scmp.lt.u32.totalorder %s23664_s29, %s26685_s12 }
 0x193   : > { %p23667_p0 = pnand %p23665_p13, %p24132_p8 }
 0x195   : > { %p23668_p1 = pneg %p23667_p0 }
 0x197   : > { %p23673_p2 = pnand %p23671_p3, %p23668_p1 }
 0x199   : > { %23676 = shalt.err (!%p23673_p2)
}
 0x19a   : > { %s23677_s2 = scalar_lea.vmem %s643_s24, 64  ;;  %p23685_p4 = scmp.lt.s32.totalorder %s643_s24, %s643_s24 }
 0x19b   : > { %p23678_p5 = scmp.ne.s32.totalorder %s643_s24, %s23677_s2  ;;  %p23686_p10 = scmp.lt.s32.totalorder %s23677_s2, %s23677_s2 }
 0x19d   : > { %p23680_p7 = pnand %p23678_p5, %p24132_p8  ;;  %p23687_p11 = por %p23686_p10, %p23685_p4 }
 0x19f   : > { %p23681_p9 = pneg %p23680_p7 }
 0x1a1   : > { %p23688_p12 = pnand %p23687_p11, %p23681_p9 }
 0x1a3   : > { %23691 = shalt.err (!%p23688_p12)
}
 0x1a4   : > { %20968 = dma.hbm_to_vmem [thread:$0]  (!%p24116_p6), %s26685_s12, 64, %s643_s24, [#allocation21]  }
 0x1a5   : > { %s23961_s20 = smov [#allocation25]   ;;  %s23962_s23 = smov [#allocation28]  }
 0x1a6   : > { %s666_s18 = sshll.u32 %s23961_s20, 4  ;;  %s688_s3 = sshll.u32 %s23962_s23, 4  ;;  %s667_s18 = int_to_ptr.vmem [resolvable:$true] %s666_s18  ;;  %s689_s3 = int_to_ptr.vmem [resolvable:$true] %s688_s3 }
 0x1a7   : > { %s23692_s29 = scalar_lea.hbm %s26687_s14, 64 }
 0x1a8   : > { %p23693_p13 = scmp.ne.s32.totalorder %s26687_s14, %s23692_s29  ;;  %p23699_p3 = scmp.lt.u32.totalorder %s23692_s29, %s26687_s14 }
 0x1aa   : > { %p23695_p0 = pnand %p23693_p13, %p24132_p8 }
 0x1ac   : > { %p23696_p1 = pneg %p23695_p0 }
 0x1ae   : > { %p23701_p2 = pnand %p23699_p3, %p23696_p1 }
 0x1b0   : > { %23704 = shalt.err (!%p23701_p2)
}
 0x1b1   : > { %s23705_s24 = scalar_lea.vmem %s667_s18, 64  ;;  %p23713_p4 = scmp.lt.s32.totalorder %s667_s18, %s667_s18 }
 0x1b2   : > { %p23706_p5 = scmp.ne.s32.totalorder %s667_s18, %s23705_s24  ;;  %p23714_p10 = scmp.lt.s32.totalorder %s23705_s24, %s23705_s24 }
 0x1b4   : > { %p23708_p7 = pnand %p23706_p5, %p24132_p8  ;;  %p23715_p11 = por %p23714_p10, %p23713_p4 }
 0x1b6   : > { %p23709_p9 = pneg %p23708_p7 }
 0x1b8   : > { %p23716_p12 = pnand %p23715_p11, %p23709_p9 }
 0x1ba   : > { %23719 = shalt.err (!%p23716_p12)
}
 0x1bb   : > { %20974 = dma.hbm_to_vmem [thread:$0]  (!%p24116_p6), %s26687_s14, 64, %s667_s18, [#allocation24]  }
 0x1bc   : > { %s26843_s23 = sld [smem:[#allocation89_spill]] }
 0x1c2   : > { %s26844_s0 = smov %s26843_s23  ;;  %s23720_s22 = scalar_lea.hbm %s26843_s23, 64 }
 0x1c3   : > { %p23721_p13 = scmp.ne.s32.totalorder %s26844_s0, %s23720_s22  ;;  %p23727_p3 = scmp.lt.u32.totalorder %s23720_s22, %s26844_s0 }
 0x1c5   : > { %p23723_p0 = pnand %p23721_p13, %p24132_p8 }
 0x1c7   : > { %p23724_p1 = pneg %p23723_p0 }
 0x1c9   : > { %p23729_p2 = pnand %p23727_p3, %p23724_p1 }
 0x1cb   : > { %23732 = shalt.err (!%p23729_p2)
}
 0x1cc   : > { %s23733_s5 = scalar_lea.vmem %s689_s3, 64  ;;  %p23741_p4 = scmp.lt.s32.totalorder %s689_s3, %s689_s3 }
 0x1cd   : > { %p23734_p5 = scmp.ne.s32.totalorder %s689_s3, %s23733_s5  ;;  %p23742_p10 = scmp.lt.s32.totalorder %s23733_s5, %s23733_s5 }
 0x1cf   : > { %p23736_p7 = pnand %p23734_p5, %p24132_p8  ;;  %p23743_p11 = por %p23742_p10, %p23741_p4 }
 0x1d1   : > { %p23737_p9 = pneg %p23736_p7 }
 0x1d3   : > { %p23744_p12 = pnand %p23743_p11, %p23737_p9 }
 0x1d5   : > { %23747 = shalt.err (!%p23744_p12)
}
 0x1d6   : > { %20980 = dma.hbm_to_vmem [thread:$0]  (!%p24116_p6), %s26844_s0, 64, %s689_s3, [#allocation27]  }
 0x1d7   : > { %s23963_s2 = smov [#allocation31]   ;;  %s23964_s26 = smov [#allocation32]  }
 0x1d8   : > { %s712_s30 = sshll.u32 %s23963_s2, 4  ;;  %s722_s20 = sshll.u32 %s23964_s26, 4  ;;  %s713_s30 = int_to_ptr.vmem [resolvable:$true] %s712_s30  ;;  %s723_s20 = int_to_ptr.vmem [resolvable:$true] %s722_s20 }
 0x1d9   : > { %s26845_s29 = sld [smem:[#allocation90_spill]] }
 0x1df   : > { %s23748_s28 = scalar_lea.hbm %s26845_s29, 16 }
 0x1e0   : > { %p23749_p13 = scmp.ne.s32.totalorder %s26845_s29, %s23748_s28  ;;  %p23755_p3 = scmp.lt.u32.totalorder %s23748_s28, %s26845_s29 }
 0x1e2   : > { %p23751_p0 = pnand %p23749_p13, %p24132_p8 }
 0x1e4   : > { %p23752_p1 = pneg %p23751_p0 }
 0x1e6   : > { %p23757_p2 = pnand %p23755_p3, %p23752_p1 }
 0x1e8   : > { %23760 = shalt.err (!%p23757_p2)
}
 0x1e9   : > { %s23761_s3 = scalar_lea.vmem %s713_s30, 16  ;;  %s23768_s24 = scalar_lea.vmem %s713_s30, 32 }
 0x1ea   : > { %p23762_p5 = scmp.ne.s32.totalorder %s713_s30, %s23761_s3  ;;  %p23769_p4 = scmp.lt.s32.totalorder %s713_s30, %s713_s30 }
 0x1eb   : > { %p23770_p10 = scmp.lt.s32.totalorder %s23768_s24, %s23761_s3 }
 0x1ec   : > { %p23764_p7 = pnand %p23762_p5, %p24132_p8 }
 0x1ed   : > { %p23771_p11 = por %p23770_p10, %p23769_p4 }
 0x1ee   : > { %p23765_p9 = pneg %p23764_p7 }
 0x1f0   : > { %p23772_p12 = pnand %p23771_p11, %p23765_p9 }
 0x1f2   : > { %23775 = shalt.err (!%p23772_p12)
}
 0x1f3   : > { %20986 = dma.hbm_to_vmem [thread:$0]  (!%p24116_p6), %s26845_s29, 16, %s713_s30, [#allocation30]  }
 0x1f4   : > { %s26846_s28 = sld [smem:[#allocation91_spill]] }
 0x1fa   : > { %s23776_s1 = scalar_lea.hbm %s26846_s28, 8192 }
 0x1fb   : > { %p23777_p13 = scmp.ne.s32.totalorder %s26846_s28, %s23776_s1  ;;  %p23783_p3 = scmp.lt.u32.totalorder %s23776_s1, %s26846_s28 }
 0x1fd   : > { %p23779_p0 = pnand %p23777_p13, %p24132_p8 }
 0x1ff   : > { %p23780_p1 = pneg %p23779_p0 }
 0x201   : > { %p23785_p2 = pnand %p23783_p3, %p23780_p1 }
 0x203   : > { %23788 = shalt.err (!%p23785_p2)
}
 0x204   : > { %s23789_s24 = scalar_lea.vmem %s723_s20, 8192  ;;  %p23797_p4 = scmp.lt.s32.totalorder %s723_s20, %s723_s20 }
 0x205   : > { %p23790_p5 = scmp.ne.s32.totalorder %s723_s20, %s23789_s24  ;;  %p23798_p10 = scmp.lt.s32.totalorder %s23789_s24, %s23789_s24 }
 0x207   : > { %p23792_p7 = pnand %p23790_p5, %p24132_p8  ;;  %p23799_p11 = por %p23798_p10, %p23797_p4 }
 0x209   : > { %p23793_p9 = pneg %p23792_p7 }
 0x20b   : > { %p23800_p12 = pnand %p23799_p11, %p23793_p9 }
 0x20d   : > { %23803 = shalt.err (!%p23800_p12)
}
 0x20e   : > { %s26715_s30 = smov 128   ;;  %s26847_s2 = sld [smem:[#allocation50_spill]] }
 0x20f   : > { %s26848_s26 = sld [smem:[#allocation49_spill]]  ;;  %s26849_s23 = sld [smem:[#allocation48_spill]] }
 0x210   : > { %s26850_s22 = sld [smem:[#allocation47_spill]]  ;;  %s26851_s1 = sld [smem:[#allocation51_spill]] }
 0x211   : > { %s26716_s27 = smov 8  }
 0x212   : > { %20989 = dma.hbm_to_vmem [thread:$0]  (!%p24116_p6), %s26846_s28, 8192, %s723_s20, [#allocation33], %s26715_s30, %s26715_s30, %s26716_s27  }
 0x214   : > { %s16017_s18 = sadd.s32 4294967294, %s26847_s2   ;;  %s24504_s24 = sadd.s32 1, %s26847_s2  }
 0x215   : > { %s53_s3 = sadd.s32 1, %s26848_s26  ;;  %s50_s0 = ssub.s32 %s26847_s2, %s24504_s24 }
 0x216   : > { %p60_p8 = scmp.ne.s32.totalorder %s26848_s26, %s26849_s23  ;;  %p51_p13 = scmp.eq.s32.totalorder %s50_s0, 0 }
 0x217   : > { %p61_p0 = scmp.eq.s32.totalorder %s26847_s2, 0  ;;  %p66_p1 = scmp.ne.s32.totalorder %s26849_s23, %s26850_s22 }
 0x218   : > { %p489_p3 = scmp.eq.s32.totalorder %s26851_s1, 1  ;;  %p26852_p5 = scmp.eq.s32.totalorder %s26851_s1, 0 }
 0x219   : > { %s24516_s4 = scalar_select %p51_p13, %s26848_s26, %s53_s3  }
 0x21a   : > { %p62_p2 = por %p61_p0, %p60_p8  ;;  %p24520_p7 = por %p26852_p5, %p66_p1 }
 0x21b   : > { %p24524_p6 = por %p489_p3, %p60_p8  ;;  %p495_p9 = scmp.eq.s32.totalorder %s16017_s18, 1 }
 0x21c   : > { %p21017_p4 = scmp.lt.s32.totalorder %s26847_s2, 2  ;;  %s736_s5 = sand.u32 1, %s26848_s26  }
 0x21d   : > { %s26854_s20 = scalar_select %p24524_p6, 1, 0 }
 0x21e   : > { %p24530_p10 = por %p495_p9, %p66_p1  ;;  %s16039_s23 = sshll.u32 %s736_s5, 4 }
 0x21f   : > { %s18254_s22 = sshll.u32 %s26847_s2, 8  ;;  %s26856_s1 = sld [smem:[#allocation79_spill]] }
 0x220   : > { %s26855_s0 = scalar_select %p24530_p10, 1, 0 }
 0x221   : > { %s740_s7 = scalar_lea.vmem [#allocation2], %s16039_s23  ;;  %p24540_p11 = pnand %p21017_p4, %p62_p2 }
 0x222   : > { %s747_s8 = sshll.u32 %s740_s7, 4  ;;  %s24546_s2 = scalar_lea.sflag [#allocation3], %s736_s5  ;;  %s24544_s8 = int_to_ptr.vmem [resolvable:$true] %s747_s8 }
 0x223   : > { %p23806_p8 = pneg %p24540_p11 }
 0x225   : > { %s26857_s27 = smov %s26856_s1  ;;  %s24538_s6 = scalar_lea.hbm %s26856_s1, %s18254_s22 }
 0x226   : > { %s23804_s26 = scalar_lea.hbm %s24538_s6, 256  ;;  %s23809_s23 = scalar_lea.hbm %s26857_s27, 512 }
 0x227   : > { %p23805_p12 = scmp.ne.s32.totalorder %s24538_s6, %s23804_s26  ;;  %p23810_p1 = scmp.lt.u32.totalorder %s24538_s6, %s26857_s27 }
 0x228   : > { %p23811_p3 = scmp.lt.u32.totalorder %s23809_s23, %s23804_s26  ;;  %p23813_p5 = scmp.lt.u32.totalorder %s23804_s26, %s24538_s6 }
 0x229   : > { %p23807_p13 = pnand %p23806_p8, %p23805_p12 }
 0x22a   : > { %p23812_p2 = por %p23811_p3, %p23810_p1 }
 0x22b   : > { %p23808_p0 = pneg %p23807_p13 }
 0x22c   : > { %p23814_p9 = por %p23813_p5, %p23812_p2 }
 0x22e   : > { %p23815_p4 = pnand %p23814_p9, %p23808_p0 }
 0x230   : > { %23818 = shalt.err (!%p23815_p4)
}
 0x231   : > { %s23819_s5 = scalar_lea.vmem %s24544_s8, 256  ;;  %s23967_s1 = smov [#allocation2]  }
 0x232   : > { %p23820_p12 = scmp.ne.s32.totalorder %s24544_s8, %s23819_s5  ;;  %s23824_s30 = sshll.u32 %s23967_s1, 4  ;;  %s23825_s30 = int_to_ptr.vmem [resolvable:$false] %s23824_s30 }
 0x233   : > { %s23826_s7 = scalar_lea.vmem %s23825_s30, 512  ;;  %p23827_p6 = scmp.lt.s32.totalorder %s24544_s8, %s23825_s30 }
 0x234   : > { %p23822_p13 = pnand %p23820_p12, %p23806_p8  ;;  %p23828_p1 = scmp.lt.s32.totalorder %s23826_s7, %s23819_s5 }
 0x236   : > { %p23823_p10 = pneg %p23822_p13  ;;  %p23829_p3 = por %p23828_p1, %p23827_p6 }
 0x238   : > { %p23830_p2 = pnand %p23829_p3, %p23823_p10 }
 0x23a   : > { %23833 = shalt.err (!%p23830_p2)
}
 0x23b   : > { %s26859_s26 = smov 8   ;;  %s26860_s23 = smov 128  }
 0x23c   : > { %20993 = dma.hbm_to_vmem [thread:$0]  (!%p24540_p11), %s24538_s6, 256, %s24544_s8, %s24546_s2, %s26860_s23, %s26860_s23, %s26859_s26  }
 0x23d   : > { %s26861_s22 = sld [smem:[#allocation52_spill]] }
 0x243   : > { %p26862_p8 = scmp.ne.s32.totalorder %s26861_s22, 0 }
 0x245   : > { %759 = sbr.rel (%p26862_p8) target bundleno = 5453 (0x154d), region = 100 }
 0x24c   : > { %s26863_s3 = sld [smem:[#allocation48_spill]] }
 0x252   : > { %s24580_s1 = sand.u32 1, %s26863_s3  }
 0x253   : > { %s16043_s5 = sshll.u32 %s24580_s1, 4  ;;  %s762_s30 = scalar_lea.sflag [#allocation3], %s24580_s1 }
 0x254   : > { %s24586_s18 = scalar_lea.vmem [#allocation2], %s16043_s5 }
 0x255   : > { %23879 = dma.done.wait (%p24520_p7), %s762_s30, 256  }
 0x256   : > { %23881 = vsyncadd (%p24520_p7), %s762_s30, 4294967040  ;;  %s26864_s6 = sld [smem:[#allocation51_spill]] }
 0x25c   : > { %p26865_p6 = scmp.eq.s32.totalorder %s26864_s6, 0 }
 0x25e   : > { %23883 = dma.done.wait (%p26865_p6), [#allocation6], 832   ;;  %p26866_p10 = pmov %p26865_p6 }
 0x25f   : > { %p26867_p11 = pmov %p26865_p6 }
 0x260   : > { %23885 = vsyncadd (%p26866_p10), [#allocation6], 4294966464 }
 0x261   : > { %23887 = dma.done.wait (%p26867_p11), [#allocation9], 128   ;;  %p26868_p0 = pmov %p26865_p6 }
 0x263   : > { %23889 = vsyncadd (%p26868_p0), [#allocation9], 4294967168  ;;  %p26869_p5 = pmov %p26868_p0 }
 0x264   : > { %p26870_p9 = pmov %p26868_p0 }
 0x265   : > { %23891 = dma.done.wait (%p26869_p5), [#allocation12], 49216  }
 0x266   : > { %23893 = vsyncadd (%p26870_p9), [#allocation12], 4294918080  ;;  %p26871_p7 = pmov %p26868_p0 }
 0x267   : > { %p26872_p4 = pmov %p26868_p0 }
 0x268   : > { %23895 = dma.done.wait (%p26871_p7), [#allocation15], 128  }
 0x269   : > { %23897 = vsyncadd (%p26872_p4), [#allocation15], 4294967168  ;;  %p26873_p12 = pmov %p26868_p0 }
 0x26a   : > { %p26874_p13 = pmov %p26868_p0 }
 0x26b   : > { %23899 = dma.done.wait (%p26873_p12), [#allocation18], 49216  }
 0x26c   : > { %23901 = vsyncadd (%p26874_p13), [#allocation18], 4294918080  ;;  %p26875_p1 = pmov %p26868_p0 }
 0x26d   : > { %p26876_p3 = pmov %p26868_p0 }
 0x26e   : > { %23903 = dma.done.wait (%p26875_p1), [#allocation21], 128  }
 0x26f   : > { %23905 = vsyncadd (%p26876_p3), [#allocation21], 4294967168  ;;  %p26877_p2 = pmov %p26868_p0 }
 0x270   : > { %p26878_p8 = pmov %p26868_p0 }
 0x271   : > { %23907 = dma.done.wait (%p26877_p2), [#allocation24], 81984  }
 0x272   : > { %23909 = vsyncadd (%p26878_p8), [#allocation24], 4294885312  ;;  %p26879_p6 = pmov %p26868_p0 }
 0x273   : > { %p26880_p10 = pmov %p26868_p0 }
 0x274   : > { %23911 = dma.done.wait (%p26879_p6), [#allocation27], 128  }
 0x275   : > { %23913 = vsyncadd (%p26880_p10), [#allocation27], 4294967168  ;;  %p26881_p11 = pmov %p26868_p0 }
 0x277   : > { %23915 = dma.done.wait (%p26881_p11), [#allocation30], 4112  }
 0x278   : > { %23917 = vsyncadd (%p26868_p0), [#allocation30], 4294963184  ;;  %p26882_p5 = pmov %p26868_p0 }
 0x279   : > { %p26883_p9 = pmov %p26868_p0 }
 0x27a   : > { %23919 = dma.done.wait (%p26882_p5), [#allocation33], 8192  }
 0x27b   : > { %23921 = vsyncadd (%p26883_p9), [#allocation33], 4294959104  ;;  %v23968_v0 = vmov 0   ;;  %v26718_v1 = vlaneseq  ;;  %v967_v2 = vld [vmem:[#allocation5 + $0x10] sm:$0xff]  ;;  %vm1010_vm0 = vcmask 1043456   ;;  %v968_v3 = vld [vmem:[#allocation5 + $0x18] sm:$0xff] }
 0x27c   : > { %1055 = vmatprep.mubr.bf16.mxu0 %v23968_v0  ;;  %1098 = vmatprep.mubr.bf16.mxu1 %v23968_v0  ;;  %v24635_v4 = vld [vmem:[%s24586_s18] sm:$0xff]  ;;  %v16065_v6 = vcombine.high %v967_v2, %v967_v2  ;;  %v16067_v7 = vcombine.high %v968_v3, %v968_v3  ;;  %v16064_v8 = vcombine.low %v967_v2, %v967_v2  ;;  %v24641_v10 = vld [vmem:[%s24586_s18 + $0x8] sm:$0xff]  ;;  %vm1006_vm1 = vcmask 64512   ;;  %s18255_s8 = sshll.u32 %s26864_s6, 8  ;;  %s897_s25 = scalar_lea.vmem [#allocation34], %s16043_s5 }
 0x27d   : > { %v24638_v5 = vshrl.u32 %v26718_v1, 7  ;;  %v16066_v9 = vcombine.low %v968_v3, %v968_v3  ;;  %v965_v11 = vld [vmem:[#allocation5] sm:$0xff]  ;;  %v966_v12 = vld [vmem:[#allocation5 + $0x8] sm:$0xff]  ;;  %v995_v15 = vpack.c.bf16 %v24641_v10, %v24635_v4  ;;  %v975_v22 = vrot.slane %v24635_v4, 7  ;;  %v919_v54 = vld [vmem:[#allocation32 + $0x90] sm:$0xff]  ;;  %s15763_s2 = sshll.u32 %s897_s25, 4  ;;  %s26629_s2 = int_to_ptr.vmem [resolvable:$true] %s15763_s2 }
 0x27e   : > { %16068 = vmatprep.subr.msk.bf16.mxu0 %vm1010_vm0, %v16065_v6  ;;  %16070 = vmatprep.subr.msk.bf16.mxu1 %vm1010_vm0, %v16067_v7  ;;  %v1012_v13 = vsel %vm1010_vm0, %v16064_v8, 0  ;;  %v16073_v16 = vcombine.high %v965_v11, %v965_v11  ;;  %v969_v17 = vld [vmem:[#allocation5 + $0x20] sm:$0xff]  ;;  %v970_v18 = vld [vmem:[#allocation5 + $0x28] sm:$0xff]  ;;  %v16075_v19 = vcombine.high %v966_v12, %v966_v12  ;;  %v16072_v20 = vcombine.low %v965_v11, %v965_v11  ;;  %v951_v56 = vld [vmem:[#allocation32 + $0x190] sm:$0xff]  ;;  %s27024_s23 = sld [smem:[#allocation92_spill]]  ;;  %s15750_s30 = scalar_lea.sflag [#allocation4], %s24580_s1 }
 0x27f   : > { %26884 = vst [vmem:[#allocation53_spill] sm:$0xff] %v24638_v5  ;;  %v1018_v14 = vsel %vm1010_vm0, %v16066_v9, 0  ;;  %1024 = vmatpush1.bf16.msra.mxu0 %v1012_v13  ;;  %v16074_v21 = vcombine.low %v966_v12, %v966_v12  ;;  %v976_v23 = vrot.slane %v24641_v10, 7  ;;  %vm977_vm2 = vcmp.lt.s32.totalorder %v24638_v5, 1  ;;  %v917_v35 = vld [vmem:[#allocation32 + $0x80] sm:$0xff]  ;;  %v918_v36 = vld [vmem:[#allocation32 + $0x88] sm:$0xff] }
 0x280   : > { %1067 = vmatpush1.bf16.msra.mxu1 %v1018_v14  ;;  %16076 = vmatprep.subr.msk.bf16.mxu0 %vm1010_vm0, %v16073_v16  ;;  %v24654_v24 = vadd.s32 4294967295, %v24638_v5  ;;  %v1123_v25 = vsel %vm1010_vm0, %v16072_v20, 0  ;;  %v16081_v27 = vcombine.high %v969_v17, %v969_v17  ;;  %v16083_v28 = vcombine.high %v970_v18, %v970_v18  ;;  %v949_v37 = vld [vmem:[#allocation32 + $0x180] sm:$0xff]  ;;  %v950_v38 = vld [vmem:[#allocation32 + $0x188] sm:$0xff]  ;;  %v920_v55 = vld [vmem:[#allocation32 + $0x98] sm:$0xff]  ;;  %s23834_s18 = scalar_lea.vmem %s26629_s2, 256 }
 0x281   : > { %16078 = vmatprep.subr.msk.bf16.mxu1 %vm1010_vm0, %v16075_v19  ;;  %v1129_v26 = vsel %vm1010_vm0, %v16074_v21, 0  ;;  %v979_v29 = vsel %vm977_vm2, %v976_v23, %v975_v22  ;;  %v978_v30 = vsel %vm977_vm2, %v975_v22, %v976_v23  ;;  %v24673_v32 = vadd.s32 8, %v24638_v5  ;;  %v901_v48 = vld [vmem:[#allocation32] sm:$0xff]  ;;  %v902_v49 = vld [vmem:[#allocation32 + $0x8] sm:$0xff]  ;;  %v952_v57 = vld [vmem:[#allocation32 + $0x198] sm:$0xff]  ;;  %p23835_p7 = scmp.ne.s32.totalorder %s26629_s2, %s23834_s18  ;;  %p27026_p4 = scmp.ne.s32.totalorder %s26854_s20, 0 }
 0x282   : > { %26885 = vst [vmem:[#allocation54_spill] sm:$0xff] %v24654_v24  ;;  %16069 = vmatmul.mubr.msk.bf16.vlgmr.msra.gmra.mrb[0].mxu0 %vm1006_vm1, %v995_v15  ;;  %vm982_vm3 = vcmp.ge.s32.totalorder %v24654_v24, 0  ;;  %v16080_v33 = vcombine.low %v969_v17, %v969_v17  ;;  %v16082_v34 = vcombine.low %v970_v18, %v970_v18  ;;  %v1220_v40 = vrot.slane %v24635_v4, 1  ;;  %v933_v50 = vld [vmem:[#allocation32 + $0x100] sm:$0xff]  ;;  %v934_v51 = vld [vmem:[#allocation32 + $0x108] sm:$0xff]  ;;  %v903_v59 = vld [vmem:[#allocation32 + $0x10] sm:$0xff] }
 0x283   : > { %16071 = vmatmul.mubr.msk.bf16.vlgmr.msra.gmra.mrb[0].mxu1 %vm1006_vm1, %v995_v15  ;;  %1135 = vmatpush1.bf16.msra.mxu0 %v1123_v25  ;;  %v992_v31 = vsel %vm982_vm3, %v979_v29, 0.0  ;;  %26886 = vst [vmem:[#allocation55_spill] sm:$0xff] %v24673_v32  ;;  %v24677_v41 = vadd.s32 1, %v24673_v32  ;;  %v1221_v42 = vrot.slane %v24641_v10, 1  ;;  %vm1222_vm4 = vcmp.lt.s32.totalorder %v24638_v5, 7  ;;  %v904_v60 = vld [vmem:[#allocation32 + $0x18] sm:$0xff]  ;;  %p23836_p12 = pnand %p23835_p7, %p27026_p4 }
 0x284   : > { %1178 = vmatpush1.bf16.msra.mxu1 %v1129_v26  ;;  %1166 = vmatprep.mubr.bf16.mxu0 %v23968_v0  ;;  %v994_v39 = vpack.c.bf16 %v978_v30, %v992_v31  ;;  %v1254_v43 = vsel %vm1010_vm0, %v16080_v33, 0  ;;  %v1260_v44 = vsel %vm1010_vm0, %v16082_v34, 0  ;;  %v24683_v45 = vpack.c.bf16 %v918_v36, %v917_v35  ;;  %v935_v61 = vld [vmem:[#allocation32 + $0x110] sm:$0xff]  ;;  %v936_v62 = vld [vmem:[#allocation32 + $0x118] sm:$0xff]  ;;  %v921_v2 = vld [vmem:[#allocation32 + $0xa0] sm:$0xff]  ;;  %s27025_s3 = smov %s27024_s23  ;;  %s26627_s22 = scalar_lea.hbm %s27024_s23, %s18255_s8 }
 0x285   : > { %1209 = vmatprep.mubr.bf16.mxu1 %v23968_v0  ;;  %16084 = vmatprep.subr.msk.bf16.mxu0 %vm1010_vm0, %v16081_v27  ;;  %26887 = vst [vmem:[#allocation56_spill] sm:$0xff] %v24677_v41  ;;  %v24685_v46 = vpack.c.bf16 %v950_v38, %v949_v37  ;;  %v1224_v47 = vsel %vm1222_vm4, %v1221_v42, %v1220_v40  ;;  %vm1230_vm5 = vcmp.lt.s32.totalorder %v24677_v41, 16  ;;  %v922_v3 = vld [vmem:[#allocation32 + $0xa8] sm:$0xff]  ;;  %v953_v4 = vld [vmem:[#allocation32 + $0x1a0] sm:$0xff]  ;;  %v923_v19 = vld [vmem:[#allocation32 + $0xb0] sm:$0xff]  ;;  %vm1741_vm6 = vcmask 261120   ;;  %p23837_p13 = pneg %p23836_p12 }
 0x286   : > { %16086 = vmatprep.subr.msk.bf16.mxu1 %vm1010_vm0, %v16083_v28  ;;  %26888 = vst [vmem:[#allocation57_spill] sm:$0xff] %v24683_v45  ;;  %v1223_v52 = vsel %vm1222_vm4, %v1220_v40, %v1221_v42  ;;  %v1238_v53 = vsel %vm1230_vm5, %v1224_v47, 0.0  ;;  %v24700_v63 = vpack.c.bf16 %v902_v49, %v901_v48  ;;  %v954_v6 = vld [vmem:[#allocation32 + $0x1a8] sm:$0xff]  ;;  %v24704_v7 = vpack.c.bf16 %v920_v55, %v919_v54  ;;  %v905_v9 = vld [vmem:[#allocation32 + $0x20] sm:$0xff]  ;;  %v924_v20 = vld [vmem:[#allocation32 + $0xb8] sm:$0xff]  ;;  %s23971_s5 = smov [#allocation34]  }
 0x287   : > { %26889 = vst [vmem:[#allocation58_spill] sm:$0xff] %v24685_v46  ;;  %v1239_v58 = vpack.c.bf16 %v1238_v53, %v1223_v52  ;;  %v24706_v8 = vpack.c.bf16 %v952_v57, %v951_v56  ;;  %v906_v10 = vld [vmem:[#allocation32 + $0x28] sm:$0xff]  ;;  %v937_v11 = vld [vmem:[#allocation32 + $0x120] sm:$0xff]  ;;  %v24712_v13 = vpack.c.bf16 %v904_v60, %v903_v59  ;;  %v24714_v14 = vpack.c.bf16 %v936_v62, %v935_v61  ;;  %v955_v21 = vld [vmem:[#allocation32 + $0x1b0] sm:$0xff]  ;;  %s23838_s6 = sshll.u32 %s23971_s5, 4  ;;  %s23839_s6 = int_to_ptr.vmem [resolvable:$false] %s23838_s6 }
 0x288   : > { %v938_v12 = vld [vmem:[#allocation32 + $0x128] sm:$0xff]  ;;  %v24718_v15 = vpack.c.bf16 %v922_v3, %v921_v2  ;;  %v24720_v16 = vpack.c.bf16 %v954_v6, %v953_v4  ;;  %v24724_v17 = vpack.c.bf16 %v906_v10, %v905_v9  ;;  %v24732_v22 = vpack.c.bf16 %v924_v20, %v923_v19  ;;  %v956_v23 = vld [vmem:[#allocation32 + $0x1b8] sm:$0xff]  ;;  %v907_v25 = vld [vmem:[#allocation32 + $0x30] sm:$0xff]  ;;  %s23840_s9 = scalar_lea.vmem %s23839_s6, 512  ;;  %p23841_p1 = scmp.lt.s32.totalorder %s26629_s2, %s23839_s6 }
 0x289   : > { %v24726_v18 = vpack.c.bf16 %v938_v12, %v937_v11  ;;  %v908_v26 = vld [vmem:[#allocation32 + $0x38] sm:$0xff]  ;;  %v24734_v27 = vpack.c.bf16 %v956_v23, %v955_v21  ;;  %v939_v29 = vld [vmem:[#allocation32 + $0x130] sm:$0xff]  ;;  %v925_v33 = vld [vmem:[#allocation32 + $0xc0] sm:$0xff]  ;;  %vm23970_vm11 = vmmov 1   ;;  %p23842_p3 = scmp.lt.s32.totalorder %s23840_s9, %s23834_s18 }
 0x28a   : > { %v24736_v28 = vpack.c.bf16 %v908_v26, %v907_v25  ;;  %v940_v30 = vld [vmem:[#allocation32 + $0x138] sm:$0xff]  ;;  %v926_v34 = vld [vmem:[#allocation32 + $0xc8] sm:$0xff]  ;;  %v957_v35 = vld [vmem:[#allocation32 + $0x1c0] sm:$0xff] }
 0x28b   : > { %v24739_v31 = vpack.c.bf16 %v940_v30, %v939_v29  ;;  %v24744_v36 = vpack.c.bf16 %v926_v34, %v925_v33  ;;  %v958_v37 = vld [vmem:[#allocation32 + $0x1c8] sm:$0xff]  ;;  %v909_v38 = vld [vmem:[#allocation32 + $0x40] sm:$0xff]  ;;  %v927_v48 = vld [vmem:[#allocation32 + $0xd0] sm:$0xff]  ;;  %p23843_p2 = por %p23842_p3, %p23841_p1 }
 0x28c   : > { %v24746_v40 = vpack.c.bf16 %v958_v37, %v957_v35  ;;  %v928_v49 = vld [vmem:[#allocation32 + $0xd8] sm:$0xff]  ;;  %v911_v53 = vld [vmem:[#allocation32 + $0x50] sm:$0xff]  ;;  %v929_v60 = vld [vmem:[#allocation32 + $0xe0] sm:$0xff] }
 0x28d   : > { %v960_v52 = vld [vmem:[#allocation32 + $0x1d8] sm:$0xff]  ;;  %v943_v57 = vld [vmem:[#allocation32 + $0x150] sm:$0xff]  ;;  %v930_v61 = vld [vmem:[#allocation32 + $0xe8] sm:$0xff]  ;;  %p23844_p8 = pnand %p23843_p2, %p23837_p13 }
 0x28e   : > { %16077 = vmatmul.mubr.msk.bf16.vlgmr.msra.gmra.mrb[0].mxu0 %vm1006_vm1, %v994_v39  ;;  %v912_v54 = vld [vmem:[#allocation32 + $0x58] sm:$0xff]  ;;  %v961_v62 = vld [vmem:[#allocation32 + $0x1e0] sm:$0xff]  ;;  %v24768_v2 = vpack.c.bf16 %v930_v61, %v929_v60  ;;  %v962_v3 = vld [vmem:[#allocation32 + $0x1e8] sm:$0xff] }
 0x28f   : > { %16079 = vmatmul.mubr.msk.bf16.vlgmr.msra.gmra.mrb[0].mxu1 %vm1006_vm1, %v994_v39  ;;  %1266 = vmatpush1.bf16.msra.mxu0 %v1254_v43  ;;  %v910_v39 = vld [vmem:[#allocation32 + $0x48] sm:$0xff]  ;;  %v941_v43 = vld [vmem:[#allocation32 + $0x140] sm:$0xff]  ;;  %v24760_v56 = vpack.c.bf16 %v912_v54, %v911_v53  ;;  %v24770_v9 = vpack.c.bf16 %v962_v3, %v961_v62  ;;  %v931_v20 = vld [vmem:[#allocation32 + $0xf0] sm:$0xff] }
 0x290   : > { %1309 = vmatpush1.bf16.msra.mxu1 %v1260_v44  ;;  %1297 = vmatprep.mubr.bf16.mxu0 %v23968_v0  ;;  %v24748_v42 = vpack.c.bf16 %v910_v39, %v909_v38  ;;  %v942_v44 = vld [vmem:[#allocation32 + $0x148] sm:$0xff]  ;;  %26890 = vst [vmem:[#allocation59_spill] sm:$0xff] %v24768_v2  ;;  %v913_v4 = vld [vmem:[#allocation32 + $0x60] sm:$0xff]  ;;  %v932_v21 = vld [vmem:[#allocation32 + $0xf8] sm:$0xff] }
 0x291   : > { %1340 = vmatprep.mubr.bf16.mxu1 %v23968_v0  ;;  %19405 = vmatprep.subr.bf16.mxu0 %v24683_v45  ;;  %v24702_v0 = vpack.c.bf16 %v934_v51, %v933_v50  ;;  %v24751_v47 = vpack.c.bf16 %v942_v44, %v941_v43  ;;  %v959_v50 = vld [vmem:[#allocation32 + $0x1d0] sm:$0xff]  ;;  %v24756_v51 = vpack.c.bf16 %v928_v49, %v927_v48  ;;  %v914_v6 = vld [vmem:[#allocation32 + $0x68] sm:$0xff]  ;;  %v945_v11 = vld [vmem:[#allocation32 + $0x160] sm:$0xff]  ;;  %v24795_v43 = vsub.s32 1, %v24638_v5 }
 0x292   : > { %19437 = vmatprep.subr.bf16.mxu1 %v24685_v46  ;;  %v24758_v55 = vpack.c.bf16 %v960_v52, %v959_v50  ;;  %26891 = vst [vmem:[#allocation60_spill] sm:$0xff] %v24770_v9  ;;  %v24772_v10 = vpack.c.bf16 %v914_v6, %v913_v4  ;;  %v946_v12 = vld [vmem:[#allocation32 + $0x168] sm:$0xff]  ;;  %v963_v23 = vld [vmem:[#allocation32 + $0x1f0] sm:$0xff]  ;;  %v24780_v25 = vpack.c.bf16 %v932_v21, %v931_v20  ;;  %v964_v26 = vld [vmem:[#allocation32 + $0x1f8] sm:$0xff]  ;;  %v24798_v44 = vsub.s32 3, %v24638_v5 }
 0x293   : > { %v24775_v19 = vpack.c.bf16 %v946_v12, %v945_v11  ;;  %v915_v29 = vld [vmem:[#allocation32 + $0x70] sm:$0xff]  ;;  %v916_v30 = vld [vmem:[#allocation32 + $0x78] sm:$0xff]  ;;  %v24782_v33 = vpack.c.bf16 %v964_v26, %v963_v23  ;;  %26898 = vst [vmem:[#allocation67_spill] sm:$0xff] %v24795_v43  ;;  %v24801_v48 = vsub.s32 0, %v24638_v5  ;;  %v24804_v49 = vsub.s32 2, %v24638_v5  ;;  %vm24872_vm7 = vmpackc.low %vm1741_vm6, %vm1741_vm6 }
 0x294   : > { %26892 = vst [vmem:[#allocation61_spill] sm:$0xff] %v24772_v10  ;;  %26894 = vst [vmem:[#allocation63_spill] sm:$0xff] %v24780_v25  ;;  %v24784_v34 = vpack.c.bf16 %v916_v30, %v915_v29  ;;  %v947_v35 = vld [vmem:[#allocation32 + $0x170] sm:$0xff]  ;;  %v948_v37 = vld [vmem:[#allocation32 + $0x178] sm:$0xff] }
 0x295   : > { %26893 = vst [vmem:[#allocation62_spill] sm:$0xff] %v24775_v19  ;;  %26895 = vst [vmem:[#allocation64_spill] sm:$0xff] %v24782_v33  ;;  %v24787_v38 = vpack.c.bf16 %v948_v37, %v947_v35  ;;  %v971_v39 = vld [vmem:[#allocation7] sm:$0xf] }
 0x296   : > { %26896 = vst [vmem:[#allocation65_spill] sm:$0xff] %v24784_v34  ;;  %26899 = vst [vmem:[#allocation68_spill] sm:$0xff] %v24798_v44  ;;  %v1367_v50 = vrot.slane %v971_v39, %v24795_v43  ;;  %v1375_v52 = vrot.slane %v971_v39, %v24798_v44  ;;  %v1363_v53 = vrot.slane %v971_v39, %v24801_v48 }
 0x297   : > { %26897 = vst [vmem:[#allocation66_spill] sm:$0xff] %v24787_v38  ;;  %26900 = vst [vmem:[#allocation69_spill] sm:$0xff] %v24801_v48  ;;  %v1371_v54 = vrot.slane %v971_v39, %v24804_v49 }
 0x298   : > { %26901 = vst [vmem:[#allocation70_spill] sm:$0xff] %v24804_v49 }
 0x29a   : > { %16085 = vmatmul.mubr.msk.bf16.vlgmr.msra.gmra.mrb[0].mxu0 %vm1006_vm1, %v1239_v58 }
 0x29b   : > { %16087 = vmatmul.mubr.msk.bf16.vlgmr.msra.gmra.mrb[0].mxu1 %vm1006_vm1, %v1239_v58  ;;  %19407 = vmatpush3.bf16.msra.mxu0 %v24700_v63  ;;  %v944_v58 = vld [vmem:[#allocation32 + $0x158] sm:$0xff] }
 0x29c   : > { %19439 = vmatpush3.bf16.msra.mxu1 %v24702_v0  ;;  %19409 = vmatprep.subr.bf16.mxu0 %v24704_v7  ;;  %v24763_v59 = vpack.c.bf16 %v944_v58, %v943_v57 }
 0x29d   : > { %19441 = vmatprep.subr.bf16.mxu1 %v24706_v8 }
 0x29f   : > { %19411 = vmatpush3.bf16.msra.mxu0 %v24712_v13 }
 0x2a0   : > { %19443 = vmatpush3.bf16.msra.mxu1 %v24714_v14  ;;  %19413 = vmatprep.subr.bf16.mxu0 %v24718_v15 }
 0x2a1   : > { %19445 = vmatprep.subr.bf16.mxu1 %v24720_v16 }
 0x2a3   : > { %19415 = vmatpush3.bf16.msra.mxu0 %v24724_v17 }
 0x2a4   : > { %19447 = vmatpush3.bf16.msra.mxu1 %v24726_v18  ;;  %19417 = vmatprep.subr.bf16.mxu0 %v24732_v22 }
 0x2a5   : > { %19449 = vmatprep.subr.bf16.mxu1 %v24734_v27 }
 0x2a7   : > { %19419 = vmatpush3.bf16.msra.mxu0 %v24736_v28 }
 0x2a8   : > { %19451 = vmatpush3.bf16.msra.mxu1 %v24739_v31  ;;  %19421 = vmatprep.subr.bf16.mxu0 %v24744_v36 }
 0x2a9   : > { %19453 = vmatprep.subr.bf16.mxu1 %v24746_v40 }
 0x2ab   : > { %19423 = vmatpush3.bf16.msra.mxu0 %v24748_v42 }
 0x2ac   : > { %19455 = vmatpush3.bf16.msra.mxu1 %v24751_v47  ;;  %19425 = vmatprep.subr.bf16.mxu0 %v24756_v51 }
 0x2ad   : > { %19457 = vmatprep.subr.bf16.mxu1 %v24758_v55 }
 0x2af   : > { %19427 = vmatpush3.bf16.msra.mxu0 %v24760_v56 }
 0x2b0   : > { %19459 = vmatpush3.bf16.msra.mxu1 %v24763_v59  ;;  %19429 = vmatprep.subr.bf16.mxu0 %v24768_v2 }
 0x2b1   : > { %19461 = vmatprep.subr.bf16.mxu1 %v24770_v9 }
 0x2b3   : > { %19431 = vmatpush3.bf16.msra.mxu0 %v24772_v10 }
 0x2b4   : > { %19463 = vmatpush3.bf16.msra.mxu1 %v24775_v19  ;;  %19433 = vmatprep.subr.bf16.mxu0 %v24780_v25 }
 0x2b5   : > { %19465 = vmatprep.subr.bf16.mxu1 %v24782_v33 }
 0x2b7   : > { %19435 = vmatpush3.bf16.msra.mxu0 %v24784_v34 }
 0x2b8   : > { %19467 = vmatpush3.bf16.msra.mxu1 %v24787_v38  ;;  %19469 = vmatprep.subr.bf16.mxu0 %v24683_v45 }
 0x2b9   : > { %19501 = vmatprep.subr.bf16.mxu1 %v24685_v46 }
 0x36d   : > { %v1299_v57 = vpop.f32.mrb[0].mxu0 }
 0x36e   : > { %v1342_v58 = vpop.f32.mrb[0].mxu1  ;;  %v1301_v60 = vpop.f32.mrb[1].mxu0  ;;  %v24814_v11 = vadd.f32 %v1363_v53, %v1299_v57 }
 0x36f   : > { %v1344_v61 = vpop.f32.mrb[1].mxu1  ;;  %v24810_v62 = vadd.f32 %v1367_v50, %v1301_v60  ;;  %v1303_v4 = vpop.f32.mrb[2].mxu0  ;;  %v24816_v12 = vadd.f32 %v1371_v54, %v1342_v58 }
 0x370   : > { %v24812_v3 = vadd.f32 %v1375_v52, %v1344_v61  ;;  %v1346_v6 = vpop.f32.mrb[2].mxu1  ;;  %v24818_v20 = vadd.f32 %v1363_v53, %v1303_v4  ;;  %v1305_v23 = vpop.f32.mrb[3].mxu0 }
 0x371   : > { %26902 = vst [vmem:[#allocation71_spill] sm:$0xff] %v24810_v62  ;;  %v24820_v21 = vadd.f32 %v1371_v54, %v1346_v6  ;;  %v1348_v26 = vpop.f32.mrb[3].mxu1  ;;  %v24822_v29 = vadd.f32 %v1367_v50, %v1305_v23  ;;  %v1419_v35 = vmul.f32 %v24810_v62, %v24810_v62 }
 0x372   : > { %26903 = vst [vmem:[#allocation72_spill] sm:$0xff] %v24812_v3  ;;  %v24824_v30 = vadd.f32 %v1375_v52, %v1348_v26  ;;  %v1421_v37 = vmul.f32 %v24812_v3, %v24812_v3  ;;  %v1390_v39 = vadd.f32 %v24818_v20, %v24814_v11 }
 0x373   : > { %26904 = vst [vmem:[#allocation73_spill] sm:$0xff] %v24822_v29  ;;  %v1404_v53 = vadd.f32 %v24820_v21, %v24816_v12  ;;  %v1397_v54 = vadd.f32 %v24822_v29, %v24810_v62  ;;  %v1423_v50 = vmul.f32 %v24822_v29, %v24822_v29 }
 0x374   : > { %26905 = vst [vmem:[#allocation74_spill] sm:$0xff] %v24824_v30  ;;  %v1411_v52 = vadd.f32 %v24824_v30, %v24812_v3  ;;  %v1425_v57 = vmul.f32 %v24824_v30, %v24824_v30  ;;  %v1391_v58 = vrot.slane %v1390_v39, 4 }
 0x375   : > { %v1405_v60 = vrot.slane %v1404_v53, 4  ;;  %v1398_v61 = vrot.slane %v1397_v54, 4  ;;  %v1433_v4 = vadd.f32 %v1423_v50, %v1419_v35 }
 0x376   : > { %v1412_v6 = vrot.slane %v1411_v52, 4  ;;  %v1447_v23 = vadd.f32 %v1425_v57, %v1421_v37  ;;  %v1392_v26 = vadd.f32 %v1391_v58, %v1390_v39 }
 0x377   : > { %v1406_v1 = vadd.f32 %v1405_v60, %v1404_v53  ;;  %v1399_v41 = vadd.f32 %v1398_v61, %v1397_v54  ;;  %v1434_v24 = vrot.slane %v1433_v4, 4 }
 0x378   : > { %v1413_v32 = vadd.f32 %v1412_v6, %v1411_v52  ;;  %v1448_v62 = vrot.slane %v1447_v23, 4  ;;  %v1393_v5 = vrot.slane %v1392_v26, 2 }
 0x379   : > { %v1407_v29 = vrot.slane %v1406_v1, 2  ;;  %v1400_v44 = vrot.slane %v1399_v41, 2  ;;  %v1435_v3 = vadd.f32 %v1434_v24, %v1433_v4  ;;  %v1422_v24 = vmul.f32 %v24818_v20, %v24818_v20 }
 0x37a   : > { %v1414_v43 = vrot.slane %v1413_v32, 2  ;;  %v1449_v49 = vadd.f32 %v1448_v62, %v1447_v23  ;;  %v1394_v48 = vadd.f32 %v1393_v5, %v1392_v26  ;;  %v26909_v26 = vld [vmem:[#allocation65_spill] sm:$0xff] }
 0x37b   : > { %v1408_v30 = vadd.f32 %v1407_v29, %v1406_v1  ;;  %v1401_v46 = vadd.f32 %v1400_v44, %v1399_v41  ;;  %v1436_v38 = vrot.slane %v1435_v3, 2  ;;  %v1418_v41 = vmul.f32 %v24814_v11, %v24814_v11 }
 0x37c   : > { %v1415_v45 = vadd.f32 %v1414_v43, %v1413_v32  ;;  %v1450_v35 = vrot.slane %v1449_v49, 2  ;;  %v1395_v50 = vrot.slane %v1394_v48, 1  ;;  %v1424_v32 = vmul.f32 %v24820_v21, %v24820_v21 }
 0x37d   : > { %v1409_v37 = vrot.slane %v1408_v30, 1  ;;  %v1402_v39 = vrot.slane %v1401_v46, 1  ;;  %v1437_v54 = vadd.f32 %v1436_v38, %v1435_v3  ;;  %v26906_v3 = vmov 0 }
 0x37e   : > { %v1416_v53 = vrot.slane %v1415_v45, 1  ;;  %v1451_v57 = vadd.f32 %v1450_v35, %v1449_v49  ;;  %v1396_v6 = vadd.f32 %v1395_v50, %v1394_v48  ;;  %v26907_v3 = vsel %vm24872_vm7, 4294967295, %v26906_v3  ;;  %v26910_v35 = vld [vmem:[#allocation66_spill] sm:$0xff] }
 0x37f   : > { %v1403_v52 = vadd.f32 %v1402_v39, %v1401_v46  ;;  %v1438_v60 = vrot.slane %v1437_v54, 1  ;;  %v1410_v34 = vadd.f32 %v1409_v37, %v1408_v30  ;;  %v1426_v46 = vadd.f32 %v1422_v24, %v1418_v41  ;;  %26908 = vst [vmem:[#allocation75_spill] sm:$0xff] %v26907_v3  ;;  %v26911_v39 = vld [vmem:[#allocation57_spill] sm:$0xff] }
 0x380   : > { %v1417_v58 = vadd.f32 %v1416_v53, %v1415_v45  ;;  %v1452_v61 = vrot.slane %v1451_v57, 1  ;;  %v1420_v45 = vmul.f32 %v24816_v12, %v24816_v12  ;;  %v26912_v53 = vld [vmem:[#allocation58_spill] sm:$0xff] }
 0x381   : > { %1518 = vmatprep.mubr.f32.mxu0 %v1403_v52  ;;  %v1439_v5 = vadd.f32 %v1438_v60, %v1437_v54  ;;  %v1427_v38 = vrot.slane %v1426_v46, 4 }
 0x382   : > { %1588 = vmatprep.mubr.f32.mxu1 %v1417_v58  ;;  %v1453_v1 = vadd.f32 %v1452_v61, %v1451_v57  ;;  %1519 = vmatmul.mubr.f32.vlgmr.msra.gmra.mrb[4].mxu0 %v1396_v6 }
 0x383   : > { %1589 = vmatmul.mubr.f32.vlgmr.msra.gmra.mrb[4].mxu1 %v1410_v34  ;;  %19471 = vmatpush3.bf16.msra.mxu0 %v24700_v63  ;;  %v1440_v34 = vadd.f32 %v1424_v32, %v1420_v45  ;;  %v1428_v44 = vadd.f32 %v1427_v38, %v1426_v46 }
 0x384   : > { %19503 = vmatpush3.bf16.msra.mxu1 %v24702_v0  ;;  %1660 = vmatprep.mubr.f32.mxu0 %v1439_v5 }
 0x385   : > { %1730 = vmatprep.mubr.f32.mxu1 %v1453_v1  ;;  %19473 = vmatprep.subr.bf16.mxu0 %v24704_v7  ;;  %v1441_v43 = vrot.slane %v1440_v34, 4  ;;  %v1429_v49 = vrot.slane %v1428_v44, 2 }
 0x386   : > { %19505 = vmatprep.subr.bf16.mxu1 %v24706_v8 }
 0x387   : > { %19475 = vmatpush3.bf16.msra.mxu0 %v24712_v13  ;;  %v1442_v48 = vadd.f32 %v1441_v43, %v1440_v34  ;;  %v1430_v29 = vadd.f32 %v1429_v49, %v1428_v44 }
 0x388   : > { %19507 = vmatpush3.bf16.msra.mxu1 %v24714_v14  ;;  %19477 = vmatprep.subr.bf16.mxu0 %v24718_v15 }
 0x389   : > { %19509 = vmatprep.subr.bf16.mxu1 %v24720_v16  ;;  %v1443_v62 = vrot.slane %v1442_v48, 2  ;;  %v1431_v4 = vrot.slane %v1430_v29, 1 }
 0x38b   : > { %19479 = vmatpush3.bf16.msra.mxu0 %v24724_v17  ;;  %v1444_v30 = vadd.f32 %v1443_v62, %v1442_v48  ;;  %v1432_v50 = vadd.f32 %v1431_v4, %v1430_v29  ;;  %v21112_v62 = vld [vmem:[#allocation11 + $0x400] ss:$16 sps:$4 sm:$0xff]   ;;  %v21114_v29 = vld [vmem:[#allocation11 + $0x404] ss:$16 sps:$4 sm:$0xff]   ;;  %v21117_v4 = vld [vmem:[#allocation11 + $0x40c] ss:$16 sps:$4 sm:$0xff]  }
 0x38c   : > { %19511 = vmatpush3.bf16.msra.mxu1 %v24726_v18  ;;  %19481 = vmatprep.subr.bf16.mxu0 %v24732_v22 }
 0x38d   : > { %19513 = vmatprep.subr.bf16.mxu1 %v24734_v27  ;;  %v1445_v23 = vrot.slane %v1444_v30, 1 }
 0x38f   : > { %19483 = vmatpush3.bf16.msra.mxu0 %v24736_v28  ;;  %v1446_v37 = vadd.f32 %v1445_v23, %v1444_v30  ;;  %v21115_v30 = vld [vmem:[#allocation11 + $0x408] ss:$16 sps:$4 sm:$0xff]   ;;  %v21120_v23 = vld [vmem:[#allocation11 + $0x424] ss:$16 sps:$4 sm:$0xff]  }
 0x390   : > { %19515 = vmatpush3.bf16.msra.mxu1 %v24739_v31  ;;  %19485 = vmatprep.subr.bf16.mxu0 %v24744_v36 }
 0x391   : > { %19517 = vmatprep.subr.bf16.mxu1 %v24746_v40 }
 0x393   : > { %19487 = vmatpush3.bf16.msra.mxu0 %v24748_v42 }
 0x394   : > { %19519 = vmatpush3.bf16.msra.mxu1 %v24751_v47  ;;  %19489 = vmatprep.subr.bf16.mxu0 %v24756_v51 }
 0x395   : > { %19521 = vmatprep.subr.bf16.mxu1 %v24758_v55 }
 0x397   : > { %19491 = vmatpush3.bf16.msra.mxu0 %v24760_v56 }
 0x398   : > { %19523 = vmatpush3.bf16.msra.mxu1 %v24763_v59  ;;  %19493 = vmatprep.subr.bf16.mxu0 %v24768_v2 }
 0x399   : > { %19525 = vmatprep.subr.bf16.mxu1 %v24770_v9 }
 0x39b   : > { %19495 = vmatpush3.bf16.msra.mxu0 %v24772_v10 }
 0x39c   : > { %19527 = vmatpush3.bf16.msra.mxu1 %v24775_v19  ;;  %19497 = vmatprep.subr.bf16.mxu0 %v24780_v25 }
 0x39d   : > { %19529 = vmatprep.subr.bf16.mxu1 %v24782_v33 }
 0x39f   : > { %19499 = vmatpush3.bf16.msra.mxu0 %v26909_v26 }
 0x3a0   : > { %19531 = vmatpush3.bf16.msra.mxu1 %v26910_v35  ;;  %19534 = vmatprep.subr.msk.bf16.mxu0 %vm24872_vm7, %v26911_v39 }
 0x3a1   : > { %19582 = vmatprep.subr.msk.bf16.mxu1 %vm24872_vm7, %v26912_v53 }
 0x3a2   : > { %1661 = vmatmul.mubr.f32.vlgmr.msra.gmra.mrb[6].mxu0 %v1432_v50  ;;  %v21123_v50 = vld [vmem:[#allocation11 + $0x42c] ss:$16 sps:$4 sm:$0xff]  }
 0x3a3   : > { %1731 = vmatmul.mubr.f32.vlgmr.msra.gmra.mrb[6].mxu1 %v1446_v37  ;;  %v21118_v37 = vld [vmem:[#allocation11 + $0x420] ss:$16 sps:$4 sm:$0xff]  }
 0x3a8   : > { %19537 = vmatpush3.bf16.xpose.msk.msra.mxu0 %vm24872_vm7, %v24700_v63 }
 0x3a9   : > { %19585 = vmatpush3.bf16.xpose.msk.msra.mxu1 %vm24872_vm7, %v24702_v0  ;;  %19540 = vmatprep.subr.msk.bf16.mxu0 %vm24872_vm7, %v24704_v7 }
 0x3aa   : > { %19588 = vmatprep.subr.msk.bf16.mxu1 %vm24872_vm7, %v24706_v8 }
 0x3b0   : > { %19543 = vmatpush3.bf16.xpose.msk.msra.mxu0 %vm24872_vm7, %v24712_v13 }
 0x3b1   : > { %19591 = vmatpush3.bf16.xpose.msk.msra.mxu1 %vm24872_vm7, %v24714_v14  ;;  %19546 = vmatprep.subr.msk.bf16.mxu0 %vm24872_vm7, %v24718_v15 }
 0x3b2   : > { %19594 = vmatprep.subr.msk.bf16.mxu1 %vm24872_vm7, %v24720_v16 }
 0x3b8   : > { %19549 = vmatpush3.bf16.xpose.msk.msra.mxu0 %vm24872_vm7, %v24724_v17 }
 0x3b9   : > { %19597 = vmatpush3.bf16.xpose.msk.msra.mxu1 %vm24872_vm7, %v24726_v18  ;;  %19552 = vmatprep.subr.msk.bf16.mxu0 %vm24872_vm7, %v24732_v22 }
 0x3ba   : > { %19600 = vmatprep.subr.msk.bf16.mxu1 %vm24872_vm7, %v24734_v27 }
 0x3c0   : > { %19555 = vmatpush3.bf16.xpose.msk.msra.mxu0 %vm24872_vm7, %v24736_v28 }
 0x3c1   : > { %19603 = vmatpush3.bf16.xpose.msk.msra.mxu1 %vm24872_vm7, %v24739_v31  ;;  %19558 = vmatprep.subr.msk.bf16.mxu0 %vm24872_vm7, %v24744_v36 }
 0x3c2   : > { %19606 = vmatprep.subr.msk.bf16.mxu1 %vm24872_vm7, %v24746_v40 }
 0x3c8   : > { %19561 = vmatpush3.bf16.xpose.msk.msra.mxu0 %vm24872_vm7, %v24748_v42 }
 0x3c9   : > { %19609 = vmatpush3.bf16.xpose.msk.msra.mxu1 %vm24872_vm7, %v24751_v47  ;;  %19564 = vmatprep.subr.msk.bf16.mxu0 %vm24872_vm7, %v24756_v51 }
 0x3ca   : > { %19612 = vmatprep.subr.msk.bf16.mxu1 %vm24872_vm7, %v24758_v55 }
 0x3d0   : > { %19567 = vmatpush3.bf16.xpose.msk.msra.mxu0 %vm24872_vm7, %v24760_v56 }
 0x3d1   : > { %19615 = vmatpush3.bf16.xpose.msk.msra.mxu1 %vm24872_vm7, %v24763_v59  ;;  %19570 = vmatprep.subr.msk.bf16.mxu0 %vm24872_vm7, %v24768_v2 }
 0x3d2   : > { %19618 = vmatprep.subr.msk.bf16.mxu1 %vm24872_vm7, %v24770_v9 }
 0x3d8   : > { %19573 = vmatpush3.bf16.xpose.msk.msra.mxu0 %vm24872_vm7, %v24772_v10 }
 0x3d9   : > { %19621 = vmatpush3.bf16.xpose.msk.msra.mxu1 %vm24872_vm7, %v24775_v19  ;;  %19576 = vmatprep.subr.msk.bf16.mxu0 %vm24872_vm7, %v24780_v25 }
 0x3da   : > { %19624 = vmatprep.subr.msk.bf16.mxu1 %vm24872_vm7, %v24782_v33 }
 0x3e0   : > { %19579 = vmatpush3.bf16.xpose.msk.msra.mxu0 %vm24872_vm7, %v26909_v26 }
 0x3e1   : > { %19627 = vmatpush3.bf16.xpose.msk.msra.mxu1 %vm24872_vm7, %v26910_v35  ;;  %19630 = vmatprep.subr.msk.bf16.mxu0 %vm24872_vm7, %v26911_v39 }
 0x3e2   : > { %19678 = vmatprep.subr.msk.bf16.mxu1 %vm24872_vm7, %v26912_v53 }
 0x455   : > { %v18288_v54 = vpop.f32.mrb[4].mxu0 }
 0x456   : > { %v18323_v57 = vpop.f32.mrb[4].mxu1  ;;  %v18289_v52 = vpop.f32.mrb[5].mxu0 }
 0x457   : > { %v18324_v58 = vpop.f32.mrb[5].mxu1  ;;  %v18290_v60 = vadd.f32 %v18289_v52, %v18288_v54  ;;  %v21121_v54 = vld [vmem:[#allocation11 + $0x428] ss:$16 sps:$4 sm:$0xff]   ;;  %v21129_v52 = vld [vmem:[#allocation11 + $0x44c] ss:$16 sps:$4 sm:$0xff]  }
 0x458   : > { %v18325_v61 = vadd.f32 %v18324_v58, %v18323_v57  ;;  %v21126_v57 = vld [vmem:[#allocation11 + $0x444] ss:$16 sps:$4 sm:$0xff]   ;;  %v21124_v58 = vld [vmem:[#allocation11 + $0x440] ss:$16 sps:$4 sm:$0xff]  }
 0x45a   : > { %v1591_v6 = vadd.f32 %v18325_v61, %v18290_v60  ;;  %v21127_v60 = vld [vmem:[#allocation11 + $0x448] ss:$16 sps:$4 sm:$0xff]   ;;  %v21132_v61 = vld [vmem:[#allocation11 + $0x464] ss:$16 sps:$4 sm:$0xff]  }
 0x45c   : > { %v1595_v5 = vmul.f32 0.00390625, %v1591_v6  ;;  %v21135_v6 = vld [vmem:[#allocation11 + $0x46c] ss:$16 sps:$4 sm:$0xff]  }
 0x45e   : > { %18428 = vmatprep.mubr.msk.f32.mxu0 %vm1741_vm6, %v1595_v5  ;;  %18462 = vmatprep.mubr.msk.f32.mxu1 %vm1741_vm6, %v1595_v5  ;;  %v1737_v43 = vmul.f32 %v1595_v5, %v1595_v5 }
 0x45f   : > { %18429 = vmatmul.mubr.msk.f32.vlgmr.msra.gmra.mrb[8].mxu0 %vm1741_vm6, %v1595_v5  ;;  %18463 = vmatmul.mubr.msk.f32.vlgmr.msra.gmra.mrb[8].mxu1 %vm1741_vm6, %v1595_v5  ;;  %v21130_v5 = vld [vmem:[#allocation11 + $0x460] ss:$16 sps:$4 sm:$0xff]  }
 0x460   : > { %19633 = vmatpush3.bf16.xpose.msk.msra.mxu0 %vm24872_vm7, %v24700_v63  ;;  %19681 = vmatpush3.bf16.xpose.msk.msra.mxu1 %vm24872_vm7, %v24702_v0 }
 0x461   : > { %19636 = vmatprep.subr.msk.bf16.mxu0 %vm24872_vm7, %v24704_v7  ;;  %19684 = vmatprep.subr.msk.bf16.mxu1 %vm24872_vm7, %v24706_v8 }
 0x468   : > { %19639 = vmatpush3.bf16.xpose.msk.msra.mxu0 %vm24872_vm7, %v24712_v13  ;;  %19687 = vmatpush3.bf16.xpose.msk.msra.mxu1 %vm24872_vm7, %v24714_v14 }
 0x469   : > { %19642 = vmatprep.subr.msk.bf16.mxu0 %vm24872_vm7, %v24718_v15  ;;  %19690 = vmatprep.subr.msk.bf16.mxu1 %vm24872_vm7, %v24720_v16 }
 0x470   : > { %19645 = vmatpush3.bf16.xpose.msk.msra.mxu0 %vm24872_vm7, %v24724_v17  ;;  %19693 = vmatpush3.bf16.xpose.msk.msra.mxu1 %vm24872_vm7, %v24726_v18 }
 0x471   : > { %19648 = vmatprep.subr.msk.bf16.mxu0 %vm24872_vm7, %v24732_v22  ;;  %19696 = vmatprep.subr.msk.bf16.mxu1 %vm24872_vm7, %v24734_v27 }
 0x475   : > { %v18358_v1 = vpop.f32.mrb[6].mxu0 }
 0x476   : > { %v18393_v24 = vpop.f32.mrb[6].mxu1  ;;  %v18359_v32 = vpop.f32.mrb[7].mxu0 }
 0x477   : > { %v18394_v41 = vpop.f32.mrb[7].mxu1  ;;  %v18360_v45 = vadd.f32 %v18359_v32, %v18358_v1  ;;  %v21133_v1 = vld [vmem:[#allocation11 + $0x468] ss:$16 sps:$4 sm:$0xff]   ;;  %v21141_v32 = vld [vmem:[#allocation11 + $0x48c] ss:$16 sps:$4 sm:$0xff]  }
 0x478   : > { %v18395_v46 = vadd.f32 %v18394_v41, %v18393_v24  ;;  %19651 = vmatpush3.bf16.xpose.msk.msra.mxu0 %vm24872_vm7, %v24736_v28  ;;  %19699 = vmatpush3.bf16.xpose.msk.msra.mxu1 %vm24872_vm7, %v24739_v31  ;;  %v21138_v24 = vld [vmem:[#allocation11 + $0x484] ss:$16 sps:$4 sm:$0xff]   ;;  %v21136_v41 = vld [vmem:[#allocation11 + $0x480] ss:$16 sps:$4 sm:$0xff]  }
 0x479   : > { %19654 = vmatprep.subr.msk.bf16.mxu0 %vm24872_vm7, %v24744_v36  ;;  %19702 = vmatprep.subr.msk.bf16.mxu1 %vm24872_vm7, %v24746_v40 }
 0x47a   : > { %v1733_v34 = vadd.f32 %v18395_v46, %v18360_v45  ;;  %v21139_v45 = vld [vmem:[#allocation11 + $0x488] ss:$16 sps:$4 sm:$0xff]   ;;  %v21144_v46 = vld [vmem:[#allocation11 + $0x4a4] ss:$16 sps:$4 sm:$0xff]  }
 0x47c   : > { %v1736_v38 = vmul.f32 0.00390625, %v1733_v34  ;;  %v21147_v34 = vld [vmem:[#allocation11 + $0x4ac] ss:$16 sps:$4 sm:$0xff]  }
 0x47e   : > { %v1738_v44 = vsub.f32 %v1736_v38, %v1737_v43  ;;  %v21142_v38 = vld [vmem:[#allocation11 + $0x4a0] ss:$16 sps:$4 sm:$0xff]   ;;  %v21145_v43 = vld [vmem:[#allocation11 + $0x4a8] ss:$16 sps:$4 sm:$0xff]  }
 0x480   : > { %v1739_v48 = vadd.f32 1e-05, %v1738_v44  ;;  %19657 = vmatpush3.bf16.xpose.msk.msra.mxu0 %vm24872_vm7, %v24748_v42  ;;  %19705 = vmatpush3.bf16.xpose.msk.msra.mxu1 %vm24872_vm7, %v24751_v47  ;;  %v21150_v44 = vld [vmem:[#allocation11 + $0x4c4] ss:$16 sps:$4 sm:$0xff]  }
 0x481   : > { %19660 = vmatprep.subr.msk.bf16.mxu0 %vm24872_vm7, %v24756_v51  ;;  %19708 = vmatprep.subr.msk.bf16.mxu1 %vm24872_vm7, %v24758_v55 }
 0x482   : > { %23256 = vrsqrt.f32 %v1739_v48  ;;  %v21153_v48 = vld [vmem:[#allocation11 + $0x4cc] ss:$16 sps:$4 sm:$0xff]  }
 0x488   : > { %19663 = vmatpush3.bf16.xpose.msk.msra.mxu0 %vm24872_vm7, %v24760_v56  ;;  %19711 = vmatpush3.bf16.xpose.msk.msra.mxu1 %vm24872_vm7, %v24763_v59 }
 0x489   : > { %19666 = vmatprep.subr.msk.bf16.mxu0 %vm24872_vm7, %v24768_v2  ;;  %19714 = vmatprep.subr.msk.bf16.mxu1 %vm24872_vm7, %v24770_v9 }
 0x48c   : > { %v23257_v49 = vpop.eup %23256 }
 0x48d   : > { %18496 = vmatprep.mubr.msk.f32.mxu0 %vm1741_vm6, %v23257_v49  ;;  %18530 = vmatprep.mubr.msk.f32.mxu1 %vm1741_vm6, %v23257_v49 }
 0x490   : > { %19669 = vmatpush3.bf16.xpose.msk.msra.mxu0 %vm24872_vm7, %v24772_v10  ;;  %19717 = vmatpush3.bf16.xpose.msk.msra.mxu1 %vm24872_vm7, %v24775_v19 }
 0x491   : > { %19672 = vmatprep.subr.msk.bf16.mxu0 %vm24872_vm7, %v24780_v25  ;;  %19720 = vmatprep.subr.msk.bf16.mxu1 %vm24872_vm7, %v24782_v33 }
 0x498   : > { %19675 = vmatpush3.bf16.xpose.msk.msra.mxu0 %vm24872_vm7, %v26909_v26  ;;  %19723 = vmatpush3.bf16.xpose.msk.msra.mxu1 %vm24872_vm7, %v26910_v35 }
 0x499   : > { %3414 = vmatprep.subr.bf16.mxu0 %v21114_v29  ;;  %3500 = vmatprep.subr.bf16.mxu1 %v21117_v4  ;;  %v21156_v29 = vld [vmem:[#allocation11 + $0x4e4] ss:$16 sps:$4 sm:$0xff]   ;;  %v21154_v4 = vld [vmem:[#allocation11 + $0x4e0] ss:$16 sps:$4 sm:$0xff]  }
 0x49f   : > { %18497 = vmatmul.mubr.msk.f32.vlgmr.msra.gmra.mrb[10].mxu0 %vm1741_vm6, %v23257_v49  ;;  %18531 = vmatmul.mubr.msk.f32.vlgmr.msra.gmra.mrb[10].mxu1 %vm1741_vm6, %v23257_v49  ;;  %v21148_v49 = vld [vmem:[#allocation11 + $0x4c0] ss:$16 sps:$4 sm:$0xff]  }
 0x4a0   : > { %3415 = vmatpush1.bf16.msra.mxu0 %v21112_v62  ;;  %3501 = vmatpush1.bf16.msra.mxu1 %v21115_v30  ;;  %v21151_v62 = vld [vmem:[#allocation11 + $0x4c8] ss:$16 sps:$4 sm:$0xff]   ;;  %v21159_v30 = vld [vmem:[#allocation11 + $0x4ec] ss:$16 sps:$4 sm:$0xff]  }
 0x4a1   : > { %3416 = vmatprep.subr.bf16.mxu0 %v21120_v23  ;;  %3502 = vmatprep.subr.bf16.mxu1 %v21123_v50  ;;  %v21157_v23 = vld [vmem:[#allocation11 + $0x4e8] ss:$16 sps:$4 sm:$0xff]   ;;  %v21162_v50 = vld [vmem:[#allocation11 + $0x504] ss:$16 sps:$4 sm:$0xff]  }
 0x4a4   : > { %3417 = vmatpush1.bf16.msra.mxu0 %v21118_v37  ;;  %3503 = vmatpush1.bf16.msra.mxu1 %v21121_v54  ;;  %v21165_v37 = vld [vmem:[#allocation11 + $0x50c] ss:$16 sps:$4 sm:$0xff]   ;;  %v21160_v54 = vld [vmem:[#allocation11 + $0x500] ss:$16 sps:$4 sm:$0xff]  }
 0x4a5   : > { %3418 = vmatprep.subr.bf16.mxu0 %v21126_v57  ;;  %3504 = vmatprep.subr.bf16.mxu1 %v21129_v52  ;;  %v21163_v57 = vld [vmem:[#allocation11 + $0x508] ss:$16 sps:$4 sm:$0xff]   ;;  %v21168_v52 = vld [vmem:[#allocation11 + $0x524] ss:$16 sps:$4 sm:$0xff]  }
 0x4a8   : > { %3419 = vmatpush1.bf16.msra.mxu0 %v21124_v58  ;;  %3505 = vmatpush1.bf16.msra.mxu1 %v21127_v60  ;;  %v21171_v58 = vld [vmem:[#allocation11 + $0x52c] ss:$16 sps:$4 sm:$0xff]   ;;  %v21166_v60 = vld [vmem:[#allocation11 + $0x520] ss:$16 sps:$4 sm:$0xff]  }
 0x4a9   : > { %3420 = vmatprep.subr.bf16.mxu0 %v21132_v61  ;;  %3506 = vmatprep.subr.bf16.mxu1 %v21135_v6  ;;  %v21169_v61 = vld [vmem:[#allocation11 + $0x528] ss:$16 sps:$4 sm:$0xff]   ;;  %v21174_v6 = vld [vmem:[#allocation11 + $0x544] ss:$16 sps:$4 sm:$0xff]  }
 0x4ac   : > { %3421 = vmatpush1.bf16.msra.mxu0 %v21130_v5  ;;  %3507 = vmatpush1.bf16.msra.mxu1 %v21133_v1  ;;  %v21177_v5 = vld [vmem:[#allocation11 + $0x54c] ss:$16 sps:$4 sm:$0xff]   ;;  %v21172_v1 = vld [vmem:[#allocation11 + $0x540] ss:$16 sps:$4 sm:$0xff]  }
 0x4ad   : > { %3422 = vmatprep.subr.bf16.mxu0 %v21138_v24  ;;  %3508 = vmatprep.subr.bf16.mxu1 %v21141_v32  ;;  %v21175_v24 = vld [vmem:[#allocation11 + $0x548] ss:$16 sps:$4 sm:$0xff]   ;;  %v21180_v32 = vld [vmem:[#allocation11 + $0x564] ss:$16 sps:$4 sm:$0xff]  }
 0x4b0   : > { %3423 = vmatpush1.bf16.msra.mxu0 %v21136_v41  ;;  %3509 = vmatpush1.bf16.msra.mxu1 %v21139_v45  ;;  %v21183_v41 = vld [vmem:[#allocation11 + $0x56c] ss:$16 sps:$4 sm:$0xff]   ;;  %v21178_v45 = vld [vmem:[#allocation11 + $0x560] ss:$16 sps:$4 sm:$0xff]  }
 0x4b1   : > { %3424 = vmatprep.subr.bf16.mxu0 %v21144_v46  ;;  %3510 = vmatprep.subr.bf16.mxu1 %v21147_v34  ;;  %v21181_v46 = vld [vmem:[#allocation11 + $0x568] ss:$16 sps:$4 sm:$0xff]   ;;  %v21186_v34 = vld [vmem:[#allocation11 + $0x584] ss:$16 sps:$4 sm:$0xff]  }
 0x4b4   : > { %3425 = vmatpush1.bf16.msra.mxu0 %v21142_v38  ;;  %3511 = vmatpush1.bf16.msra.mxu1 %v21145_v43  ;;  %v21189_v38 = vld [vmem:[#allocation11 + $0x58c] ss:$16 sps:$4 sm:$0xff]   ;;  %v21184_v43 = vld [vmem:[#allocation11 + $0x580] ss:$16 sps:$4 sm:$0xff]  }
 0x4b5   : > { %3426 = vmatprep.subr.bf16.mxu0 %v21150_v44  ;;  %3512 = vmatprep.subr.bf16.mxu1 %v21153_v48  ;;  %v21187_v44 = vld [vmem:[#allocation11 + $0x588] ss:$16 sps:$4 sm:$0xff]   ;;  %v21192_v48 = vld [vmem:[#allocation11 + $0x5a4] ss:$16 sps:$4 sm:$0xff]  }
 0x4b8   : > { %3427 = vmatpush1.bf16.msra.mxu0 %v21148_v49  ;;  %3513 = vmatpush1.bf16.msra.mxu1 %v21151_v62  ;;  %v21195_v49 = vld [vmem:[#allocation11 + $0x5ac] ss:$16 sps:$4 sm:$0xff]   ;;  %v21190_v62 = vld [vmem:[#allocation11 + $0x5a0] ss:$16 sps:$4 sm:$0xff]  }
 0x4b9   : > { %3428 = vmatprep.subr.bf16.mxu0 %v21156_v29  ;;  %3514 = vmatprep.subr.bf16.mxu1 %v21159_v30  ;;  %v21193_v29 = vld [vmem:[#allocation11 + $0x5a8] ss:$16 sps:$4 sm:$0xff]   ;;  %v21198_v30 = vld [vmem:[#allocation11 + $0x5c4] ss:$16 sps:$4 sm:$0xff]  }
 0x4bc   : > { %3429 = vmatpush1.bf16.msra.mxu0 %v21154_v4  ;;  %3515 = vmatpush1.bf16.msra.mxu1 %v21157_v23  ;;  %v21201_v4 = vld [vmem:[#allocation11 + $0x5cc] ss:$16 sps:$4 sm:$0xff]   ;;  %v21196_v23 = vld [vmem:[#allocation11 + $0x5c0] ss:$16 sps:$4 sm:$0xff]  }
 0x4bd   : > { %3430 = vmatprep.subr.bf16.mxu0 %v21162_v50  ;;  %3516 = vmatprep.subr.bf16.mxu1 %v21165_v37  ;;  %v21199_v50 = vld [vmem:[#allocation11 + $0x5c8] ss:$16 sps:$4 sm:$0xff]   ;;  %v21204_v37 = vld [vmem:[#allocation11 + $0x5e4] ss:$16 sps:$4 sm:$0xff]  }
 0x4c0   : > { %3431 = vmatpush1.bf16.msra.mxu0 %v21160_v54  ;;  %3517 = vmatpush1.bf16.msra.mxu1 %v21163_v57  ;;  %v21207_v54 = vld [vmem:[#allocation11 + $0x5ec] ss:$16 sps:$4 sm:$0xff]   ;;  %v21202_v57 = vld [vmem:[#allocation11 + $0x5e0] ss:$16 sps:$4 sm:$0xff]  }
 0x4c1   : > { %3432 = vmatprep.subr.bf16.mxu0 %v21168_v52  ;;  %3518 = vmatprep.subr.bf16.mxu1 %v21171_v58  ;;  %v21205_v52 = vld [vmem:[#allocation11 + $0x5e8] ss:$16 sps:$4 sm:$0xff]   ;;  %v21210_v58 = vld [vmem:[#allocation11 + $0x604] ss:$16 sps:$4 sm:$0xff]  }
 0x4c4   : > { %3433 = vmatpush1.bf16.msra.mxu0 %v21166_v60  ;;  %3519 = vmatpush1.bf16.msra.mxu1 %v21169_v61  ;;  %v21213_v60 = vld [vmem:[#allocation11 + $0x60c] ss:$16 sps:$4 sm:$0xff]  }
 0x4c5   : > { %3434 = vmatprep.subr.bf16.mxu0 %v21174_v6  ;;  %3520 = vmatprep.subr.bf16.mxu1 %v21177_v5 }
 0x4c8   : > { %3435 = vmatpush1.bf16.msra.mxu0 %v21172_v1  ;;  %3521 = vmatpush1.bf16.msra.mxu1 %v21175_v24  ;;  %v1388_v24 = vld [vmem:[#allocation8] sm:$0xf] }
 0x4c9   : > { %3436 = vmatprep.subr.bf16.mxu0 %v21180_v32  ;;  %3522 = vmatprep.subr.bf16.mxu1 %v21183_v41  ;;  %v23969_v32 = vmov 1966171168  }
 0x4ca   : > { %v2260_v41 = vunpack.c.l.s4 %v23969_v32  ;;  %v26917_v32 = vld [vmem:[#allocation53_spill] sm:$0xff] }
 0x4cb   : > { %vm2737_vm8 = vcmp.lt.s32.totalorder %v26917_v32, 2  ;;  %vm4406_vm9 = vcmp.lt.s32.totalorder %v26917_v32, 6 }
 0x4cc   : > { %3437 = vmatpush1.bf16.msra.mxu0 %v21178_v45  ;;  %3523 = vmatpush1.bf16.msra.mxu1 %v21181_v46  ;;  %v26913_v45 = vld [vmem:[#allocation69_spill] sm:$0xff] }
 0x4cd   : > { %3438 = vmatprep.subr.bf16.mxu0 %v21186_v34  ;;  %3524 = vmatprep.subr.bf16.mxu1 %v21189_v38  ;;  %v2228_v46 = vrot.slane %v1388_v24, %v26913_v45  ;;  %v26914_v34 = vld [vmem:[#allocation70_spill] sm:$0xff] }
 0x4ce   : > { %v2236_v38 = vrot.slane %v1388_v24, %v26914_v34 }
 0x4d0   : > { %3439 = vmatpush1.bf16.msra.mxu0 %v21184_v43  ;;  %3525 = vmatpush1.bf16.msra.mxu1 %v21187_v44  ;;  %v26915_v43 = vld [vmem:[#allocation67_spill] sm:$0xff] }
 0x4d1   : > { %3440 = vmatprep.subr.bf16.mxu0 %v21192_v48  ;;  %3526 = vmatprep.subr.bf16.mxu1 %v21195_v49  ;;  %v2232_v44 = vrot.slane %v1388_v24, %v26915_v43  ;;  %v26916_v48 = vld [vmem:[#allocation68_spill] sm:$0xff] }
 0x4d2   : > { %v2240_v49 = vrot.slane %v1388_v24, %v26916_v48 }
 0x4d4   : > { %3441 = vmatpush1.bf16.msra.mxu0 %v21190_v62  ;;  %3527 = vmatpush1.bf16.msra.mxu1 %v21193_v29 }
 0x4d5   : > { %3442 = vmatprep.subr.bf16.mxu0 %v21198_v30  ;;  %3528 = vmatprep.subr.bf16.mxu1 %v21201_v4  ;;  %v2261_v30 = vunpack.c.0.s8 %v2260_v41 }
 0x4d7   : > { %v25091_v3 = vsub.s32 %v2261_v30, %v26917_v32 }
 0x4d8   : > { %3443 = vmatpush1.bf16.msra.mxu0 %v21196_v23  ;;  %3529 = vmatpush1.bf16.msra.mxu1 %v21199_v50 }
 0x4d9   : > { %3444 = vmatprep.subr.bf16.mxu0 %v21204_v37  ;;  %3530 = vmatprep.subr.bf16.mxu1 %v21207_v54  ;;  %26918 = vst [vmem:[#allocation76_spill] sm:$0xff] %v25091_v3 }
 0x4dc   : > { %3445 = vmatpush1.bf16.msra.mxu0 %v21202_v57  ;;  %3531 = vmatpush1.bf16.msra.mxu1 %v21205_v52 }
 0x4dd   : > { %3457 = vmatprep.subr.bf16.mxu0 %v21210_v58  ;;  %3543 = vmatprep.subr.bf16.mxu1 %v21213_v60 }
 0x532   : > { %v2003_v61 = vpop.f32.mrb[8].mxu0  ;;  %v2074_v6 = vpop.f32.mrb[8].mxu1 }
 0x533   : > { %v2005_v5 = vpop.f32.mrb[9].mxu0  ;;  %v2076_v1 = vpop.f32.mrb[9].mxu1 }
 0x572   : > { %v2148_v62 = vpop.f32.mrb[10].mxu0  ;;  %v2219_v29 = vpop.f32.mrb[10].mxu1 }
 0x573   : > { %v2245_v4 = vmul.f32 %v2228_v46, %v2148_v62  ;;  %v2247_v23 = vmul.f32 %v2236_v38, %v2219_v29  ;;  %v2150_v50 = vpop.f32.mrb[11].mxu0  ;;  %v2221_v37 = vpop.f32.mrb[11].mxu1  ;;  %v1389_v38 = vld [vmem:[#allocation10] sm:$0xf] }
 0x574   : > { %v2246_v54 = vmul.f32 %v2232_v44, %v2150_v50  ;;  %v2248_v57 = vmul.f32 %v2240_v49, %v2221_v37 }
 0x575   : > { %v2249_v52 = vmul.f32 %v2245_v4, %v2003_v61  ;;  %v2251_v58 = vmul.f32 %v2247_v23, %v2074_v6  ;;  %v2286_v6 = vrot.slane %v2245_v4, %v26913_v45 }
 0x576   : > { %v2250_v60 = vmul.f32 %v2246_v54, %v2005_v5  ;;  %v2252_v35 = vmul.f32 %v2248_v57, %v2076_v1  ;;  %v2290_v46 = vrot.slane %v2246_v54, %v26913_v45  ;;  %v2298_v44 = vrot.slane %v2248_v57, %v26913_v45  ;;  %v26919_v1 = vld [vmem:[#allocation71_spill] sm:$0xff] }
 0x577   : > { %v2294_v5 = vrot.slane %v2247_v23, %v26913_v45  ;;  %v2299_v23 = vmul.f32 %v2286_v6, %v24814_v11  ;;  %v2303_v57 = vmul.f32 %v2286_v6, %v24818_v20 }
 0x578   : > { %v2257_v26 = vcombine.low %v2249_v52, %v2250_v60  ;;  %v2258_v33 = vcombine.low %v2251_v58, %v2252_v35  ;;  %v2300_v62 = vmul.f32 %v2290_v46, %v26919_v1  ;;  %v26920_v35 = vld [vmem:[#allocation73_spill] sm:$0xff] }
 0x579   : > { %v2304_v29 = vmul.f32 %v2290_v46, %v26920_v35  ;;  %v2301_v52 = vmul.f32 %v2294_v5, %v24816_v12  ;;  %v2305_v58 = vmul.f32 %v2294_v5, %v24820_v21 }
 0x57a   : > { %v2265_v24 = vrot.slane %v2257_v26, %v25091_v3  ;;  %v2272_v25 = vrot.slane %v2258_v33, %v25091_v3  ;;  %v26921_v26 = vld [vmem:[#allocation72_spill] sm:$0xff]  ;;  %v26922_v33 = vld [vmem:[#allocation74_spill] sm:$0xff] }
 0x57b   : > { %v2302_v30 = vmul.f32 %v2298_v44, %v26921_v26  ;;  %v21217_v26 = vld [vmem:[#allocation11 + $0x628] ss:$16 sps:$4 sm:$0xff]  }
 0x57c   : > { %v2273_v41 = vcombine.low %v2265_v24, %v2272_v25  ;;  %v2306_v25 = vmul.f32 %v2298_v44, %v26922_v33 }
 0x57e   : > { %v2280_v61 = vrot.slane %v2273_v41, %v25091_v3  ;;  %v21222_v3 = vld [vmem:[#allocation11 + $0x644] ss:$16 sps:$4 sm:$0xff]  }
 0x580   : > { %v2282_v49 = vsub.f32 %v1389_v38, %v2280_v61 }
 0x582   : > { %v2323_v50 = vrot.slane %v2282_v49, %v26916_v48  ;;  %v2315_v37 = vrot.slane %v2282_v49, %v26915_v43  ;;  %v2311_v54 = vrot.slane %v2282_v49, %v26913_v45  ;;  %v2319_v4 = vrot.slane %v2282_v49, %v26914_v34  ;;  %v21225_v34 = vld [vmem:[#allocation11 + $0x64c] ss:$16 sps:$4 sm:$0xff]  }
 0x584   : > { %v2331_v60 = vadd.f32 %v2323_v50, %v2302_v30  ;;  %v2335_v24 = vadd.f32 %v2323_v50, %v2306_v25  ;;  %v2329_v41 = vadd.f32 %v2315_v37, %v2300_v62  ;;  %v2333_v46 = vadd.f32 %v2315_v37, %v2304_v29  ;;  %v21208_v25 = vld [vmem:[#allocation11 + $0x600] ss:$16 sps:$4 sm:$0xff]   ;;  %v21211_v50 = vld [vmem:[#allocation11 + $0x608] ss:$16 sps:$4 sm:$0xff]  }
 0x585   : > { %v2328_v38 = vadd.f32 %v2311_v54, %v2299_v23  ;;  %v2332_v44 = vadd.f32 %v2311_v54, %v2303_v57  ;;  %v2330_v61 = vadd.f32 %v2319_v4, %v2301_v52  ;;  %v2334_v1 = vadd.f32 %v2319_v4, %v2305_v58  ;;  %v21216_v58 = vld [vmem:[#allocation11 + $0x624] ss:$16 sps:$4 sm:$0xff]  }
 0x586   : > { %v25114_v35 = vmax.f32 %v2331_v60, 0.0  ;;  %v25116_v49 = vmax.f32 %v2335_v24, 0.0  ;;  %v2337_v11 = vmax.f32 %v2329_v41, 0.0  ;;  %v2341_v20 = vmax.f32 %v2333_v46, 0.0  ;;  %v21219_v24 = vld [vmem:[#allocation11 + $0x62c] ss:$16 sps:$4 sm:$0xff]  }
 0x587   : > { %v25118_v6 = vmax.f32 %v2328_v38, 0.0  ;;  %v25120_v12 = vmax.f32 %v2332_v44, 0.0  ;;  %v25122_v21 = vmax.f32 %v2330_v61, 0.0  ;;  %v25124_v5 = vmax.f32 %v2334_v1, 0.0 }
 0x588   : > { %v2732_v62 = vrot.slane %v25114_v35, 6  ;;  %v2736_v29 = vrot.slane %v25116_v49, 6  ;;  %v2771_v33 = vpack.c.bf16 %v2341_v20, %v2337_v11  ;;  %v2773_v52 = vpack.c.bf16 %v25116_v49, %v25114_v35 }
 0x589   : > { %v2729_v37 = vrot.slane %v25118_v6, 6  ;;  %v2733_v54 = vrot.slane %v25120_v12, 6  ;;  %v2770_v4 = vpack.c.bf16 %v25120_v12, %v25118_v6  ;;  %v4398_v23 = vrot.slane %v25118_v6, 2 }
 0x58a   : > { %v4402_v57 = vrot.slane %v25120_v12, 2  ;;  %v2731_v60 = vrot.slane %v25122_v21, 6  ;;  %3446 = vmatprep.mubr.bf16.mxu0 %v2771_v33  ;;  %3532 = vmatprep.mubr.bf16.mxu1 %v2771_v33  ;;  %v2735_v41 = vrot.slane %v25124_v5, 6  ;;  %v25142_v46 = vpack.c.bf16 %v25124_v5, %v25122_v21  ;;  %v21214_v33 = vld [vmem:[#allocation11 + $0x620] ss:$16 sps:$4 sm:$0xff]  }
 0x58b   : > { %v4400_v38 = vrot.slane %v25122_v21, 2  ;;  %v4404_v44 = vrot.slane %v25124_v5, 2  ;;  %3447 = vmatmul.mubr.bf16.vlgmr.msra.gmra.mrb[12].mxu0 %v2770_v4  ;;  %3533 = vmatmul.mubr.bf16.vlgmr.msra.gmra.mrb[12].mxu1 %v2770_v4  ;;  %v2730_v61 = vrot.slane %v2337_v11, 6  ;;  %v2734_v1 = vrot.slane %v2341_v20, 6 }
 0x58c   : > { %v2738_v6 = vsel %vm2737_vm8, %v2729_v37, %v2733_v54  ;;  %v2742_v12 = vsel %vm2737_vm8, %v2733_v54, %v2729_v37  ;;  %3458 = vmatpush1.bf16.msra.mxu0 %v21208_v25  ;;  %3544 = vmatpush1.bf16.msra.mxu1 %v21211_v50  ;;  %v2741_v21 = vsel %vm2737_vm8, %v2732_v62, %v2736_v29  ;;  %v4399_v4 = vrot.slane %v2337_v11, 2 }
 0x58d   : > { %v25150_v30 = vpack.c.bf16 %v2738_v6, %v2742_v12  ;;  %v2745_v5 = vsel %vm2737_vm8, %v2736_v29, %v2732_v62  ;;  %3489 = vmatprep.mubr.bf16.mxu0 %v2773_v52  ;;  %3575 = vmatprep.mubr.bf16.mxu1 %v2773_v52  ;;  %v2739_v37 = vsel %vm2737_vm8, %v2730_v61, %v2734_v1  ;;  %v4403_v54 = vrot.slane %v2341_v20, 2 }
 0x58e   : > { %v2743_v25 = vsel %vm2737_vm8, %v2734_v1, %v2730_v61  ;;  %v25160_v50 = vpack.c.bf16 %v2741_v21, %v2745_v5  ;;  %3459 = vmatprep.subr.bf16.mxu0 %v21216_v58  ;;  %3545 = vmatprep.subr.bf16.mxu1 %v21219_v24  ;;  %v2740_v11 = vsel %vm2737_vm8, %v2731_v60, %v2735_v41  ;;  %v21220_v58 = vld [vmem:[#allocation11 + $0x640] ss:$16 sps:$4 sm:$0xff]   ;;  %v21223_v24 = vld [vmem:[#allocation11 + $0x648] ss:$16 sps:$4 sm:$0xff]   ;;  %v26924_v12 = vrot.slane %v25114_v35, 2 }
 0x58f   : > { %v25162_v6 = vpack.c.bf16 %v2739_v37, %v2743_v25  ;;  %v2744_v62 = vsel %vm2737_vm8, %v2735_v41, %v2731_v60  ;;  %v4408_v52 = vsel %vm4406_vm9, %v4399_v4, %v4403_v54  ;;  %v4412_v61 = vsel %vm4406_vm9, %v4403_v54, %v4399_v4  ;;  %v21228_v5 = vld [vmem:[#allocation11 + $0x664] ss:$16 sps:$4 sm:$0xff]   ;;  %v21231_v4 = vld [vmem:[#allocation11 + $0x66c] ss:$16 sps:$4 sm:$0xff]   ;;  %v21226_v54 = vld [vmem:[#allocation11 + $0x660] ss:$16 sps:$4 sm:$0xff]  }
 0x590   : > { %v25168_v29 = vpack.c.bf16 %v2740_v11, %v2744_v62  ;;  %v4407_v20 = vsel %vm4406_vm9, %v4398_v23, %v4402_v57  ;;  %3460 = vmatpush1.bf16.msra.mxu0 %v21214_v33  ;;  %3546 = vmatpush1.bf16.msra.mxu1 %v21217_v26  ;;  %v25176_v1 = vpack.c.bf16 %v4412_v61, %v4408_v52  ;;  %v26923_v41 = vrot.slane %v25116_v49, 2  ;;  %v21229_v11 = vld [vmem:[#allocation11 + $0x668] ss:$16 sps:$4 sm:$0xff]   ;;  %v21234_v35 = vld [vmem:[#allocation11 + $0x684] ss:$16 sps:$4 sm:$0xff]  }
 0x591   : > { %v4411_v60 = vsel %vm4406_vm9, %v4402_v57, %v4398_v23  ;;  %3461 = vmatprep.subr.bf16.mxu0 %v21222_v3  ;;  %3547 = vmatprep.subr.bf16.mxu1 %v21225_v34  ;;  %v26925_v26 = vmov %v26924_v12  ;;  %v4409_v57 = vsel %vm4406_vm9, %v4400_v38, %v4404_v44  ;;  %v4413_v3 = vsel %vm4406_vm9, %v4404_v44, %v4400_v38  ;;  %v21237_v49 = vld [vmem:[#allocation11 + $0x68c] ss:$16 sps:$4 sm:$0xff]   ;;  %v21232_v62 = vld [vmem:[#allocation11 + $0x680] ss:$16 sps:$4 sm:$0xff]   ;;  %v21235_v52 = vld [vmem:[#allocation11 + $0x688] ss:$16 sps:$4 sm:$0xff]  }
 0x592   : > { %v4410_v21 = vsel %vm4406_vm9, %v26924_v12, %v26923_v41  ;;  %v25186_v33 = vpack.c.bf16 %v4411_v60, %v4407_v20  ;;  %v26926_v37 = vmov %v26923_v41  ;;  %v25200_v34 = vpack.c.bf16 %v4413_v3, %v4409_v57  ;;  %v21240_v61 = vld [vmem:[#allocation11 + $0x6a4] ss:$16 sps:$4 sm:$0xff]   ;;  %v21243_v20 = vld [vmem:[#allocation11 + $0x6ac] ss:$16 sps:$4 sm:$0xff]   ;;  %v21238_v38 = vld [vmem:[#allocation11 + $0x6a0] ss:$16 sps:$4 sm:$0xff]  }
 0x593   : > { %v4414_v23 = vsel %vm4406_vm9, %v26926_v37, %v26925_v26  ;;  %v21241_v44 = vld [vmem:[#allocation11 + $0x6a8] ss:$16 sps:$4 sm:$0xff]   ;;  %v21244_v60 = vld [vmem:[#allocation11 + $0x6c0] ss:$16 sps:$4 sm:$0xff]   ;;  %v21252_v12 = vld [vmem:[#allocation11 + $0x6e4] ss:$16 sps:$4 sm:$0xff]  }
 0x594   : > { %v25196_v25 = vpack.c.bf16 %v4414_v23, %v4410_v21  ;;  %3462 = vmatpush1.bf16.msra.mxu0 %v21220_v58  ;;  %3548 = vmatpush1.bf16.msra.mxu1 %v21223_v24  ;;  %v21246_v58 = vld [vmem:[#allocation11 + $0x6c4] ss:$16 sps:$4 sm:$0xff]   ;;  %v21249_v24 = vld [vmem:[#allocation11 + $0x6cc] ss:$16 sps:$4 sm:$0xff]   ;;  %v21247_v41 = vld [vmem:[#allocation11 + $0x6c8] ss:$16 sps:$4 sm:$0xff]  }
 0x595   : > { %3463 = vmatprep.subr.bf16.mxu0 %v21228_v5  ;;  %3549 = vmatprep.subr.bf16.mxu1 %v21231_v4  ;;  %v21255_v21 = vld [vmem:[#allocation11 + $0x6ec] ss:$16 sps:$4 sm:$0xff]   ;;  %v21250_v5 = vld [vmem:[#allocation11 + $0x6e0] ss:$16 sps:$4 sm:$0xff]   ;;  %v21253_v4 = vld [vmem:[#allocation11 + $0x6e8] ss:$16 sps:$4 sm:$0xff]  }
 0x596   : > { %v21258_v26 = vld [vmem:[#allocation11 + $0x704] ss:$16 sps:$4 sm:$0xff]   ;;  %v21261_v37 = vld [vmem:[#allocation11 + $0x70c] ss:$16 sps:$4 sm:$0xff]   ;;  %v21256_v23 = vld [vmem:[#allocation11 + $0x700] ss:$16 sps:$4 sm:$0xff]  }
 0x597   : > { %v21259_v57 = vld [vmem:[#allocation11 + $0x708] ss:$16 sps:$4 sm:$0xff]   ;;  %v21264_v3 = vld [vmem:[#allocation11 + $0x724] ss:$16 sps:$4 sm:$0xff]  }
 0x598   : > { %3464 = vmatpush1.bf16.msra.mxu0 %v21226_v54  ;;  %3550 = vmatpush1.bf16.msra.mxu1 %v21229_v11  ;;  %v21267_v54 = vld [vmem:[#allocation11 + $0x72c] ss:$16 sps:$4 sm:$0xff]   ;;  %v21262_v11 = vld [vmem:[#allocation11 + $0x720] ss:$16 sps:$4 sm:$0xff]  }
 0x599   : > { %3465 = vmatprep.subr.bf16.mxu0 %v21234_v35  ;;  %3551 = vmatprep.subr.bf16.mxu1 %v21237_v49  ;;  %v21265_v35 = vld [vmem:[#allocation11 + $0x728] ss:$16 sps:$4 sm:$0xff]   ;;  %v21270_v49 = vld [vmem:[#allocation11 + $0x744] ss:$16 sps:$4 sm:$0xff]  }
 0x59c   : > { %3466 = vmatpush1.bf16.msra.mxu0 %v21232_v62  ;;  %3552 = vmatpush1.bf16.msra.mxu1 %v21235_v52  ;;  %v21273_v62 = vld [vmem:[#allocation11 + $0x74c] ss:$16 sps:$4 sm:$0xff]   ;;  %v21268_v52 = vld [vmem:[#allocation11 + $0x740] ss:$16 sps:$4 sm:$0xff]  }
 0x59d   : > { %3467 = vmatprep.subr.bf16.mxu0 %v21240_v61  ;;  %3553 = vmatprep.subr.bf16.mxu1 %v21243_v20  ;;  %v21271_v61 = vld [vmem:[#allocation11 + $0x748] ss:$16 sps:$4 sm:$0xff]   ;;  %v21276_v20 = vld [vmem:[#allocation11 + $0x764] ss:$16 sps:$4 sm:$0xff]  }
 0x5a0   : > { %3468 = vmatpush1.bf16.msra.mxu0 %v21238_v38  ;;  %3554 = vmatpush1.bf16.msra.mxu1 %v21241_v44  ;;  %v21279_v38 = vld [vmem:[#allocation11 + $0x76c] ss:$16 sps:$4 sm:$0xff]   ;;  %v21274_v44 = vld [vmem:[#allocation11 + $0x760] ss:$16 sps:$4 sm:$0xff]  }
 0x5a1   : > { %3469 = vmatprep.subr.bf16.mxu0 %v21246_v58  ;;  %3555 = vmatprep.subr.bf16.mxu1 %v21249_v24  ;;  %v21277_v58 = vld [vmem:[#allocation11 + $0x768] ss:$16 sps:$4 sm:$0xff]   ;;  %v21282_v24 = vld [vmem:[#allocation11 + $0x784] ss:$16 sps:$4 sm:$0xff]  }
 0x5a4   : > { %3470 = vmatpush1.bf16.msra.mxu0 %v21244_v60  ;;  %3556 = vmatpush1.bf16.msra.mxu1 %v21247_v41  ;;  %v21285_v60 = vld [vmem:[#allocation11 + $0x78c] ss:$16 sps:$4 sm:$0xff]   ;;  %v21280_v41 = vld [vmem:[#allocation11 + $0x780] ss:$16 sps:$4 sm:$0xff]  }
 0x5a5   : > { %3471 = vmatprep.subr.bf16.mxu0 %v21252_v12  ;;  %3557 = vmatprep.subr.bf16.mxu1 %v21255_v21  ;;  %v21283_v12 = vld [vmem:[#allocation11 + $0x788] ss:$16 sps:$4 sm:$0xff]   ;;  %v21288_v21 = vld [vmem:[#allocation11 + $0x7a4] ss:$16 sps:$4 sm:$0xff]  }
 0x5a8   : > { %3472 = vmatpush1.bf16.msra.mxu0 %v21250_v5  ;;  %3558 = vmatpush1.bf16.msra.mxu1 %v21253_v4  ;;  %v21291_v5 = vld [vmem:[#allocation11 + $0x7ac] ss:$16 sps:$4 sm:$0xff]   ;;  %v21286_v4 = vld [vmem:[#allocation11 + $0x7a0] ss:$16 sps:$4 sm:$0xff]  }
 0x5a9   : > { %3473 = vmatprep.subr.bf16.mxu0 %v21258_v26  ;;  %3559 = vmatprep.subr.bf16.mxu1 %v21261_v37  ;;  %v21289_v26 = vld [vmem:[#allocation11 + $0x7a8] ss:$16 sps:$4 sm:$0xff]   ;;  %v21294_v37 = vld [vmem:[#allocation11 + $0x7c4] ss:$16 sps:$4 sm:$0xff]  }
 0x5ac   : > { %3474 = vmatpush1.bf16.msra.mxu0 %v21256_v23  ;;  %3560 = vmatpush1.bf16.msra.mxu1 %v21259_v57  ;;  %v21297_v23 = vld [vmem:[#allocation11 + $0x7cc] ss:$16 sps:$4 sm:$0xff]   ;;  %v21292_v57 = vld [vmem:[#allocation11 + $0x7c0] ss:$16 sps:$4 sm:$0xff]  }
 0x5ad   : > { %3475 = vmatprep.subr.bf16.mxu0 %v21264_v3  ;;  %3561 = vmatprep.subr.bf16.mxu1 %v21267_v54  ;;  %v21295_v3 = vld [vmem:[#allocation11 + $0x7c8] ss:$16 sps:$4 sm:$0xff]   ;;  %v21300_v54 = vld [vmem:[#allocation11 + $0x7e4] ss:$16 sps:$4 sm:$0xff]  }
 0x5b0   : > { %3476 = vmatpush1.bf16.msra.mxu0 %v21262_v11  ;;  %3562 = vmatpush1.bf16.msra.mxu1 %v21265_v35  ;;  %v21303_v11 = vld [vmem:[#allocation11 + $0x7ec] ss:$16 sps:$4 sm:$0xff]   ;;  %v2746_v35 = vadd.s32 4294967294, %v26917_v32 }
 0x5b1   : > { %3477 = vmatprep.subr.bf16.mxu0 %v21270_v49  ;;  %3563 = vmatprep.subr.bf16.mxu1 %v21273_v62  ;;  %v21298_v49 = vld [vmem:[#allocation11 + $0x7e0] ss:$16 sps:$4 sm:$0xff]   ;;  %v21301_v62 = vld [vmem:[#allocation11 + $0x7e8] ss:$16 sps:$4 sm:$0xff]  }
 0x5b2   : > { %vm2748_vm10 = vcmp.ge.s32.totalorder %v2746_v35, 0  ;;  %v21339_v35 = vld [vmem:[#allocation11 + $0xac] ss:$16 sps:$4 sm:$0xff]  }
 0x5b3   : > { %vm25204_vm12 = vmpackc.low %vm23970_vm11, %vm2748_vm10 }
 0x5b4   : > { %3478 = vmatpush1.bf16.msra.mxu0 %v21268_v52  ;;  %3564 = vmatpush1.bf16.msra.mxu1 %v21271_v61  ;;  %v21306_v52 = vld [vmem:[#allocation11 + $0x4] ss:$16 sps:$4 sm:$0xff]   ;;  %v21309_v61 = vld [vmem:[#allocation11 + $0xc] ss:$16 sps:$4 sm:$0xff]  }
 0x5b5   : > { %3479 = vmatprep.subr.bf16.mxu0 %v21276_v20  ;;  %3565 = vmatprep.subr.bf16.mxu1 %v21279_v38  ;;  %v21304_v20 = vld [vmem:[#allocation11] ss:$16 sps:$4 sm:$0xff]   ;;  %v26927_v38 = vmov 0 }
 0x5b6   : > { %v26928_v38 = vsel %vm25204_vm12, 4294967295, %v26927_v38 }
 0x5b7   : > { %26929 = vst [vmem:[#allocation71_spill] sm:$0xff] %v26928_v38 }
 0x5b8   : > { %3480 = vmatpush1.bf16.msra.mxu0 %v21274_v44  ;;  %3566 = vmatpush1.bf16.msra.mxu1 %v21277_v58  ;;  %v21307_v44 = vld [vmem:[#allocation11 + $0x8] ss:$16 sps:$4 sm:$0xff]   ;;  %v21312_v58 = vld [vmem:[#allocation11 + $0x24] ss:$16 sps:$4 sm:$0xff]  }
 0x5b9   : > { %3481 = vmatprep.subr.bf16.mxu0 %v21282_v24  ;;  %3567 = vmatprep.subr.bf16.mxu1 %v21285_v60  ;;  %v21315_v24 = vld [vmem:[#allocation11 + $0x2c] ss:$16 sps:$4 sm:$0xff]   ;;  %v21310_v60 = vld [vmem:[#allocation11 + $0x20] ss:$16 sps:$4 sm:$0xff]  }
 0x5bc   : > { %3482 = vmatpush1.bf16.msra.mxu0 %v21280_v41  ;;  %3568 = vmatpush1.bf16.msra.mxu1 %v21283_v12  ;;  %v21313_v41 = vld [vmem:[#allocation11 + $0x28] ss:$16 sps:$4 sm:$0xff]   ;;  %v21318_v12 = vld [vmem:[#allocation11 + $0x44] ss:$16 sps:$4 sm:$0xff]  }
 0x5bd   : > { %3483 = vmatprep.subr.bf16.mxu0 %v21288_v21  ;;  %3569 = vmatprep.subr.bf16.mxu1 %v21291_v5  ;;  %v21321_v21 = vld [vmem:[#allocation11 + $0x4c] ss:$16 sps:$4 sm:$0xff]   ;;  %v21316_v5 = vld [vmem:[#allocation11 + $0x40] ss:$16 sps:$4 sm:$0xff]  }
 0x5c0   : > { %3484 = vmatpush1.bf16.msra.mxu0 %v21286_v4  ;;  %3570 = vmatpush1.bf16.msra.mxu1 %v21289_v26  ;;  %v21324_v4 = vld [vmem:[#allocation11 + $0x64] ss:$16 sps:$4 sm:$0xff]   ;;  %v21327_v26 = vld [vmem:[#allocation11 + $0x6c] ss:$16 sps:$4 sm:$0xff]  }
 0x5c1   : > { %3485 = vmatprep.subr.bf16.mxu0 %v21294_v37  ;;  %3571 = vmatprep.subr.bf16.mxu1 %v21297_v23  ;;  %v21322_v37 = vld [vmem:[#allocation11 + $0x60] ss:$16 sps:$4 sm:$0xff]   ;;  %v21325_v23 = vld [vmem:[#allocation11 + $0x68] ss:$16 sps:$4 sm:$0xff]  }
 0x5c4   : > { %3486 = vmatpush1.bf16.msra.mxu0 %v21292_v57  ;;  %3572 = vmatpush1.bf16.msra.mxu1 %v21295_v3  ;;  %v21330_v57 = vld [vmem:[#allocation11 + $0x84] ss:$16 sps:$4 sm:$0xff]   ;;  %v21328_v3 = vld [vmem:[#allocation11 + $0x80] ss:$16 sps:$4 sm:$0xff]  }
 0x5c5   : > { %3487 = vmatprep.subr.bf16.mxu0 %v21300_v54  ;;  %3573 = vmatprep.subr.bf16.mxu1 %v21303_v11  ;;  %v21331_v54 = vld [vmem:[#allocation11 + $0x88] ss:$16 sps:$4 sm:$0xff]   ;;  %v21336_v11 = vld [vmem:[#allocation11 + $0xa4] ss:$16 sps:$4 sm:$0xff]  }
 0x5c8   : > { %3488 = vmatpush1.bf16.msra.mxu0 %v21298_v49  ;;  %3574 = vmatpush1.bf16.msra.mxu1 %v21301_v62  ;;  %v21334_v49 = vld [vmem:[#allocation11 + $0xa0] ss:$16 sps:$4 sm:$0xff]   ;;  %v21337_v62 = vld [vmem:[#allocation11 + $0xa8] ss:$16 sps:$4 sm:$0xff]  }
 0x5c9   : > { %4226 = vmatprep.subr.bf16.mxu0 %v21306_v52  ;;  %4312 = vmatprep.subr.bf16.mxu1 %v21309_v61  ;;  %v21342_v52 = vld [vmem:[#allocation11 + $0xc4] ss:$16 sps:$4 sm:$0xff]   ;;  %v21345_v61 = vld [vmem:[#allocation11 + $0xcc] ss:$16 sps:$4 sm:$0xff]  }
 0x5cb   : > { %3490 = vmatmul.mubr.bf16.vlgmr.msra.gmra.mrb[12].mxu0 %v25142_v46  ;;  %3576 = vmatmul.mubr.bf16.vlgmr.msra.gmra.mrb[12].mxu1 %v25142_v46  ;;  %v21319_v46 = vld [vmem:[#allocation11 + $0x48] ss:$16 sps:$4 sm:$0xff]  }
 0x5cc   : > { %4227 = vmatpush1.bf16.msra.mxu0 %v21304_v20  ;;  %16478 = vmatprep.mubr.msk.bf16.mxu0 %vm25204_vm12, %v25162_v6  ;;  %v21340_v20 = vld [vmem:[#allocation11 + $0xc0] ss:$16 sps:$4 sm:$0xff]  }
 0x5cd   : > { %4313 = vmatpush1.bf16.msra.mxu1 %v21307_v44  ;;  %16490 = vmatprep.mubr.msk.bf16.mxu1 %vm25204_vm12, %v25162_v6  ;;  %v21333_v6 = vld [vmem:[#allocation11 + $0x8c] ss:$16 sps:$4 sm:$0xff]   ;;  %v21343_v44 = vld [vmem:[#allocation11 + $0xc8] ss:$16 sps:$4 sm:$0xff]  }
 0x5ce   : > { %4228 = vmatprep.subr.bf16.mxu0 %v21312_v58  ;;  %4314 = vmatprep.subr.bf16.mxu1 %v21315_v24  ;;  %v21348_v58 = vld [vmem:[#allocation11 + $0xe4] ss:$16 sps:$4 sm:$0xff]   ;;  %v21351_v24 = vld [vmem:[#allocation11 + $0xec] ss:$16 sps:$4 sm:$0xff]  }
 0x5d0   : > { %4229 = vmatpush1.bf16.msra.mxu0 %v21310_v60  ;;  %v21346_v60 = vld [vmem:[#allocation11 + $0xe0] ss:$16 sps:$4 sm:$0xff]  }
 0x5d1   : > { %4315 = vmatpush1.bf16.msra.mxu1 %v21313_v41  ;;  %4230 = vmatprep.subr.bf16.mxu0 %v21318_v12  ;;  %v21349_v41 = vld [vmem:[#allocation11 + $0xe8] ss:$16 sps:$4 sm:$0xff]   ;;  %v21354_v12 = vld [vmem:[#allocation11 + $0x104] ss:$16 sps:$4 sm:$0xff]  }
 0x5d2   : > { %4316 = vmatprep.subr.bf16.mxu1 %v21321_v21  ;;  %v21357_v21 = vld [vmem:[#allocation11 + $0x10c] ss:$16 sps:$4 sm:$0xff]  }
 0x5d4   : > { %4231 = vmatpush1.bf16.msra.mxu0 %v21316_v5  ;;  %v21352_v5 = vld [vmem:[#allocation11 + $0x100] ss:$16 sps:$4 sm:$0xff]  }
 0x5d5   : > { %4317 = vmatpush1.bf16.msra.mxu1 %v21319_v46  ;;  %4232 = vmatprep.subr.bf16.mxu0 %v21324_v4  ;;  %v21355_v46 = vld [vmem:[#allocation11 + $0x108] ss:$16 sps:$4 sm:$0xff]   ;;  %v21360_v4 = vld [vmem:[#allocation11 + $0x124] ss:$16 sps:$4 sm:$0xff]  }
 0x5d6   : > { %4318 = vmatprep.subr.bf16.mxu1 %v21327_v26  ;;  %v21363_v26 = vld [vmem:[#allocation11 + $0x12c] ss:$16 sps:$4 sm:$0xff]  }
 0x5d8   : > { %4233 = vmatpush1.bf16.msra.mxu0 %v21322_v37  ;;  %v21358_v37 = vld [vmem:[#allocation11 + $0x120] ss:$16 sps:$4 sm:$0xff]  }
 0x5d9   : > { %4319 = vmatpush1.bf16.msra.mxu1 %v21325_v23  ;;  %4234 = vmatprep.subr.bf16.mxu0 %v21330_v57  ;;  %v21361_v23 = vld [vmem:[#allocation11 + $0x128] ss:$16 sps:$4 sm:$0xff]   ;;  %v21366_v57 = vld [vmem:[#allocation11 + $0x144] ss:$16 sps:$4 sm:$0xff]  }
 0x5da   : > { %4320 = vmatprep.subr.bf16.mxu1 %v21333_v6  ;;  %v21369_v6 = vld [vmem:[#allocation11 + $0x14c] ss:$16 sps:$4 sm:$0xff]  }
 0x5dc   : > { %4235 = vmatpush1.bf16.msra.mxu0 %v21328_v3  ;;  %v21364_v3 = vld [vmem:[#allocation11 + $0x140] ss:$16 sps:$4 sm:$0xff]  }
 0x5dd   : > { %4321 = vmatpush1.bf16.msra.mxu1 %v21331_v54  ;;  %4236 = vmatprep.subr.bf16.mxu0 %v21336_v11  ;;  %v21367_v54 = vld [vmem:[#allocation11 + $0x148] ss:$16 sps:$4 sm:$0xff]   ;;  %v21372_v11 = vld [vmem:[#allocation11 + $0x164] ss:$16 sps:$4 sm:$0xff]  }
 0x5de   : > { %4322 = vmatprep.subr.bf16.mxu1 %v21339_v35  ;;  %v21375_v35 = vld [vmem:[#allocation11 + $0x16c] ss:$16 sps:$4 sm:$0xff]  }
 0x5e0   : > { %4237 = vmatpush1.bf16.msra.mxu0 %v21334_v49  ;;  %v21370_v49 = vld [vmem:[#allocation11 + $0x160] ss:$16 sps:$4 sm:$0xff]  }
 0x5e1   : > { %4323 = vmatpush1.bf16.msra.mxu1 %v21337_v62  ;;  %4238 = vmatprep.subr.bf16.mxu0 %v21342_v52  ;;  %v21373_v62 = vld [vmem:[#allocation11 + $0x168] ss:$16 sps:$4 sm:$0xff]   ;;  %v21378_v52 = vld [vmem:[#allocation11 + $0x184] ss:$16 sps:$4 sm:$0xff]  }
 0x5e2   : > { %4324 = vmatprep.subr.bf16.mxu1 %v21345_v61  ;;  %v21381_v61 = vld [vmem:[#allocation11 + $0x18c] ss:$16 sps:$4 sm:$0xff]  }
 0x5e4   : > { %4239 = vmatpush1.bf16.msra.mxu0 %v21340_v20  ;;  %v21376_v20 = vld [vmem:[#allocation11 + $0x180] ss:$16 sps:$4 sm:$0xff]  }
 0x5e5   : > { %4325 = vmatpush1.bf16.msra.mxu1 %v21343_v44  ;;  %4240 = vmatprep.subr.bf16.mxu0 %v21348_v58  ;;  %v21379_v44 = vld [vmem:[#allocation11 + $0x188] ss:$16 sps:$4 sm:$0xff]   ;;  %v21384_v58 = vld [vmem:[#allocation11 + $0x1a4] ss:$16 sps:$4 sm:$0xff]  }
 0x5e6   : > { %4326 = vmatprep.subr.bf16.mxu1 %v21351_v24  ;;  %v21387_v24 = vld [vmem:[#allocation11 + $0x1ac] ss:$16 sps:$4 sm:$0xff]  }
 0x5e8   : > { %4241 = vmatpush1.bf16.msra.mxu0 %v21346_v60  ;;  %v21382_v60 = vld [vmem:[#allocation11 + $0x1a0] ss:$16 sps:$4 sm:$0xff]  }
 0x5e9   : > { %4327 = vmatpush1.bf16.msra.mxu1 %v21349_v41  ;;  %4242 = vmatprep.subr.bf16.mxu0 %v21354_v12  ;;  %v21385_v41 = vld [vmem:[#allocation11 + $0x1a8] ss:$16 sps:$4 sm:$0xff]   ;;  %v21390_v12 = vld [vmem:[#allocation11 + $0x1c4] ss:$16 sps:$4 sm:$0xff]  }
 0x5ea   : > { %4328 = vmatprep.subr.bf16.mxu1 %v21357_v21  ;;  %v21393_v21 = vld [vmem:[#allocation11 + $0x1cc] ss:$16 sps:$4 sm:$0xff]  }
 0x5ec   : > { %4243 = vmatpush1.bf16.msra.mxu0 %v21352_v5  ;;  %v21388_v5 = vld [vmem:[#allocation11 + $0x1c0] ss:$16 sps:$4 sm:$0xff]  }
 0x5ed   : > { %4329 = vmatpush1.bf16.msra.mxu1 %v21355_v46  ;;  %4244 = vmatprep.subr.bf16.mxu0 %v21360_v4  ;;  %v21391_v46 = vld [vmem:[#allocation11 + $0x1c8] ss:$16 sps:$4 sm:$0xff]   ;;  %v21396_v4 = vld [vmem:[#allocation11 + $0x1e4] ss:$16 sps:$4 sm:$0xff]  }
 0x5ee   : > { %4330 = vmatprep.subr.bf16.mxu1 %v21363_v26  ;;  %v21399_v26 = vld [vmem:[#allocation11 + $0x1ec] ss:$16 sps:$4 sm:$0xff]  }
 0x5f0   : > { %4245 = vmatpush1.bf16.msra.mxu0 %v21358_v37  ;;  %v21394_v37 = vld [vmem:[#allocation11 + $0x1e0] ss:$16 sps:$4 sm:$0xff]  }
 0x5f1   : > { %4331 = vmatpush1.bf16.msra.mxu1 %v21361_v23  ;;  %4246 = vmatprep.subr.bf16.mxu0 %v21366_v57  ;;  %v21397_v23 = vld [vmem:[#allocation11 + $0x1e8] ss:$16 sps:$4 sm:$0xff]   ;;  %v21402_v57 = vld [vmem:[#allocation11 + $0x204] ss:$16 sps:$4 sm:$0xff]  }
 0x5f2   : > { %4332 = vmatprep.subr.bf16.mxu1 %v21369_v6  ;;  %v21405_v6 = vld [vmem:[#allocation11 + $0x20c] ss:$16 sps:$4 sm:$0xff]  }
 0x5f4   : > { %4247 = vmatpush1.bf16.msra.mxu0 %v21364_v3  ;;  %v21400_v3 = vld [vmem:[#allocation11 + $0x200] ss:$16 sps:$4 sm:$0xff]  }
 0x5f5   : > { %4333 = vmatpush1.bf16.msra.mxu1 %v21367_v54  ;;  %4248 = vmatprep.subr.bf16.mxu0 %v21372_v11  ;;  %v21403_v54 = vld [vmem:[#allocation11 + $0x208] ss:$16 sps:$4 sm:$0xff]   ;;  %v21408_v11 = vld [vmem:[#allocation11 + $0x224] ss:$16 sps:$4 sm:$0xff]  }
 0x5f6   : > { %4334 = vmatprep.subr.bf16.mxu1 %v21375_v35  ;;  %v21411_v35 = vld [vmem:[#allocation11 + $0x22c] ss:$16 sps:$4 sm:$0xff]  }
 0x5f8   : > { %4249 = vmatpush1.bf16.msra.mxu0 %v21370_v49  ;;  %v21406_v49 = vld [vmem:[#allocation11 + $0x220] ss:$16 sps:$4 sm:$0xff]  }
 0x5f9   : > { %4335 = vmatpush1.bf16.msra.mxu1 %v21373_v62  ;;  %4250 = vmatprep.subr.bf16.mxu0 %v21378_v52  ;;  %v21409_v62 = vld [vmem:[#allocation11 + $0x228] ss:$16 sps:$4 sm:$0xff]   ;;  %v21414_v52 = vld [vmem:[#allocation11 + $0x244] ss:$16 sps:$4 sm:$0xff]  }
 0x5fa   : > { %4336 = vmatprep.subr.bf16.mxu1 %v21381_v61  ;;  %v21417_v61 = vld [vmem:[#allocation11 + $0x24c] ss:$16 sps:$4 sm:$0xff]  }
 0x5fc   : > { %4251 = vmatpush1.bf16.msra.mxu0 %v21376_v20  ;;  %v21412_v20 = vld [vmem:[#allocation11 + $0x240] ss:$16 sps:$4 sm:$0xff]  }
 0x5fd   : > { %4337 = vmatpush1.bf16.msra.mxu1 %v21379_v44  ;;  %4252 = vmatprep.subr.bf16.mxu0 %v21384_v58  ;;  %v21420_v44 = vld [vmem:[#allocation11 + $0x264] ss:$16 sps:$4 sm:$0xff]   ;;  %v21423_v58 = vld [vmem:[#allocation11 + $0x26c] ss:$16 sps:$4 sm:$0xff]  }
 0x5fe   : > { %4338 = vmatprep.subr.bf16.mxu1 %v21387_v24  ;;  %v21418_v24 = vld [vmem:[#allocation11 + $0x260] ss:$16 sps:$4 sm:$0xff]  }
 0x600   : > { %4253 = vmatpush1.bf16.msra.mxu0 %v21382_v60  ;;  %v21421_v60 = vld [vmem:[#allocation11 + $0x268] ss:$16 sps:$4 sm:$0xff]  }
 0x601   : > { %4339 = vmatpush1.bf16.msra.mxu1 %v21385_v41  ;;  %4254 = vmatprep.subr.bf16.mxu0 %v21390_v12  ;;  %v21426_v41 = vld [vmem:[#allocation11 + $0x284] ss:$16 sps:$4 sm:$0xff]   ;;  %v21429_v12 = vld [vmem:[#allocation11 + $0x28c] ss:$16 sps:$4 sm:$0xff]  }
 0x602   : > { %4340 = vmatprep.subr.bf16.mxu1 %v21393_v21  ;;  %v21427_v21 = vld [vmem:[#allocation11 + $0x288] ss:$16 sps:$4 sm:$0xff]  }
 0x604   : > { %4255 = vmatpush1.bf16.msra.mxu0 %v21388_v5  ;;  %v21432_v5 = vld [vmem:[#allocation11 + $0x2a4] ss:$16 sps:$4 sm:$0xff]  }
 0x605   : > { %4341 = vmatpush1.bf16.msra.mxu1 %v21391_v46  ;;  %4256 = vmatprep.subr.bf16.mxu0 %v21396_v4  ;;  %v21435_v46 = vld [vmem:[#allocation11 + $0x2ac] ss:$16 sps:$4 sm:$0xff]   ;;  %v21430_v4 = vld [vmem:[#allocation11 + $0x2a0] ss:$16 sps:$4 sm:$0xff]  }
 0x606   : > { %4342 = vmatprep.subr.bf16.mxu1 %v21399_v26  ;;  %v21433_v26 = vld [vmem:[#allocation11 + $0x2a8] ss:$16 sps:$4 sm:$0xff]  }
 0x608   : > { %4257 = vmatpush1.bf16.msra.mxu0 %v21394_v37  ;;  %v21438_v37 = vld [vmem:[#allocation11 + $0x2c4] ss:$16 sps:$4 sm:$0xff]  }
 0x609   : > { %4343 = vmatpush1.bf16.msra.mxu1 %v21397_v23  ;;  %4269 = vmatprep.subr.bf16.mxu0 %v21402_v57  ;;  %v21441_v23 = vld [vmem:[#allocation11 + $0x2cc] ss:$16 sps:$4 sm:$0xff]   ;;  %v21436_v57 = vld [vmem:[#allocation11 + $0x2c0] ss:$16 sps:$4 sm:$0xff]  }
 0x60a   : > { %4355 = vmatprep.subr.bf16.mxu1 %v21405_v6  ;;  %v21439_v6 = vld [vmem:[#allocation11 + $0x2c8] ss:$16 sps:$4 sm:$0xff]  }
 0x60b   : > { %16481 = vmatmul.mubr.msk.bf16.vlgmr.msra.gmra.mrb[12].mxu0 %vm25204_vm12, %v25150_v30 }
 0x60c   : > { %16493 = vmatmul.mubr.msk.bf16.vlgmr.msra.gmra.mrb[12].mxu1 %vm25204_vm12, %v25150_v30  ;;  %4270 = vmatpush1.bf16.msra.mxu0 %v21400_v3  ;;  %v21415_v30 = vld [vmem:[#allocation11 + $0x248] ss:$16 sps:$4 sm:$0xff]   ;;  %v21444_v3 = vld [vmem:[#allocation11 + $0x2e4] ss:$16 sps:$4 sm:$0xff]  }
 0x60d   : > { %16484 = vmatprep.mubr.msk.bf16.mxu0 %vm25204_vm12, %v25160_v50  ;;  %4356 = vmatpush1.bf16.msra.mxu1 %v21403_v54  ;;  %v21447_v54 = vld [vmem:[#allocation11 + $0x2ec] ss:$16 sps:$4 sm:$0xff]  }
 0x60e   : > { %16496 = vmatprep.mubr.msk.bf16.mxu1 %vm25204_vm12, %v25160_v50  ;;  %4271 = vmatprep.subr.bf16.mxu0 %v21408_v11  ;;  %v21424_v50 = vld [vmem:[#allocation11 + $0x280] ss:$16 sps:$4 sm:$0xff]  }
 0x60f   : > { %4357 = vmatprep.subr.bf16.mxu1 %v21411_v35  ;;  %v21442_v11 = vld [vmem:[#allocation11 + $0x2e0] ss:$16 sps:$4 sm:$0xff]   ;;  %v21445_v35 = vld [vmem:[#allocation11 + $0x2e8] ss:$16 sps:$4 sm:$0xff]  }
 0x610   : > { %4272 = vmatpush1.bf16.msra.mxu0 %v21406_v49  ;;  %v21450_v49 = vld [vmem:[#allocation11 + $0x304] ss:$16 sps:$4 sm:$0xff]  }
 0x611   : > { %4358 = vmatpush1.bf16.msra.mxu1 %v21409_v62  ;;  %4273 = vmatprep.subr.bf16.mxu0 %v21414_v52  ;;  %v21453_v62 = vld [vmem:[#allocation11 + $0x30c] ss:$16 sps:$4 sm:$0xff]   ;;  %v21448_v52 = vld [vmem:[#allocation11 + $0x300] ss:$16 sps:$4 sm:$0xff]  }
 0x612   : > { %4359 = vmatprep.subr.bf16.mxu1 %v21417_v61  ;;  %v21451_v61 = vld [vmem:[#allocation11 + $0x308] ss:$16 sps:$4 sm:$0xff]  }
 0x614   : > { %4274 = vmatpush1.bf16.msra.mxu0 %v21412_v20  ;;  %v21456_v20 = vld [vmem:[#allocation11 + $0x324] ss:$16 sps:$4 sm:$0xff]  }
 0x615   : > { %4360 = vmatpush1.bf16.msra.mxu1 %v21415_v30  ;;  %4275 = vmatprep.subr.bf16.mxu0 %v21420_v44  ;;  %v21459_v30 = vld [vmem:[#allocation11 + $0x32c] ss:$16 sps:$4 sm:$0xff]   ;;  %v21454_v44 = vld [vmem:[#allocation11 + $0x320] ss:$16 sps:$4 sm:$0xff]  }
 0x616   : > { %4361 = vmatprep.subr.bf16.mxu1 %v21423_v58  ;;  %v21457_v58 = vld [vmem:[#allocation11 + $0x328] ss:$16 sps:$4 sm:$0xff]  }
 0x618   : > { %4276 = vmatpush1.bf16.msra.mxu0 %v21418_v24  ;;  %v21462_v24 = vld [vmem:[#allocation11 + $0x344] ss:$16 sps:$4 sm:$0xff]  }
 0x619   : > { %4362 = vmatpush1.bf16.msra.mxu1 %v21421_v60  ;;  %4277 = vmatprep.subr.bf16.mxu0 %v21426_v41  ;;  %v21465_v60 = vld [vmem:[#allocation11 + $0x34c] ss:$16 sps:$4 sm:$0xff]   ;;  %v21460_v41 = vld [vmem:[#allocation11 + $0x340] ss:$16 sps:$4 sm:$0xff]  }
 0x61a   : > { %4363 = vmatprep.subr.bf16.mxu1 %v21429_v12  ;;  %v21463_v12 = vld [vmem:[#allocation11 + $0x348] ss:$16 sps:$4 sm:$0xff]  }
 0x61c   : > { %4278 = vmatpush1.bf16.msra.mxu0 %v21424_v50  ;;  %v21468_v50 = vld [vmem:[#allocation11 + $0x364] ss:$16 sps:$4 sm:$0xff]  }
 0x61d   : > { %4364 = vmatpush1.bf16.msra.mxu1 %v21427_v21  ;;  %4279 = vmatprep.subr.bf16.mxu0 %v21432_v5  ;;  %v21471_v21 = vld [vmem:[#allocation11 + $0x36c] ss:$16 sps:$4 sm:$0xff]   ;;  %v21466_v5 = vld [vmem:[#allocation11 + $0x360] ss:$16 sps:$4 sm:$0xff]  }
 0x61e   : > { %4365 = vmatprep.subr.bf16.mxu1 %v21435_v46  ;;  %v21469_v46 = vld [vmem:[#allocation11 + $0x368] ss:$16 sps:$4 sm:$0xff]  }
 0x620   : > { %4280 = vmatpush1.bf16.msra.mxu0 %v21430_v4  ;;  %v21474_v4 = vld [vmem:[#allocation11 + $0x384] ss:$16 sps:$4 sm:$0xff]  }
 0x621   : > { %4366 = vmatpush1.bf16.msra.mxu1 %v21433_v26  ;;  %4281 = vmatprep.subr.bf16.mxu0 %v21438_v37  ;;  %v21477_v26 = vld [vmem:[#allocation11 + $0x38c] ss:$16 sps:$4 sm:$0xff]   ;;  %v21472_v37 = vld [vmem:[#allocation11 + $0x380] ss:$16 sps:$4 sm:$0xff]  }
 0x622   : > { %4367 = vmatprep.subr.bf16.mxu1 %v21441_v23  ;;  %v21475_v23 = vld [vmem:[#allocation11 + $0x388] ss:$16 sps:$4 sm:$0xff]  }
 0x624   : > { %4282 = vmatpush1.bf16.msra.mxu0 %v21436_v57  ;;  %v21480_v57 = vld [vmem:[#allocation11 + $0x3a4] ss:$16 sps:$4 sm:$0xff]  }
 0x625   : > { %4368 = vmatpush1.bf16.msra.mxu1 %v21439_v6  ;;  %4283 = vmatprep.subr.bf16.mxu0 %v21444_v3  ;;  %v21483_v6 = vld [vmem:[#allocation11 + $0x3ac] ss:$16 sps:$4 sm:$0xff]   ;;  %v21478_v3 = vld [vmem:[#allocation11 + $0x3a0] ss:$16 sps:$4 sm:$0xff]  }
 0x626   : > { %4369 = vmatprep.subr.bf16.mxu1 %v21447_v54  ;;  %v21481_v54 = vld [vmem:[#allocation11 + $0x3a8] ss:$16 sps:$4 sm:$0xff]  }
 0x628   : > { %4284 = vmatpush1.bf16.msra.mxu0 %v21442_v11  ;;  %v21486_v11 = vld [vmem:[#allocation11 + $0x3c4] ss:$16 sps:$4 sm:$0xff]  }
 0x629   : > { %4370 = vmatpush1.bf16.msra.mxu1 %v21445_v35  ;;  %4285 = vmatprep.subr.bf16.mxu0 %v21450_v49  ;;  %v21489_v35 = vld [vmem:[#allocation11 + $0x3cc] ss:$16 sps:$4 sm:$0xff]   ;;  %v21484_v49 = vld [vmem:[#allocation11 + $0x3c0] ss:$16 sps:$4 sm:$0xff]  }
 0x62a   : > { %4371 = vmatprep.subr.bf16.mxu1 %v21453_v62  ;;  %v21487_v62 = vld [vmem:[#allocation11 + $0x3c8] ss:$16 sps:$4 sm:$0xff]  }
 0x62c   : > { %4286 = vmatpush1.bf16.msra.mxu0 %v21448_v52  ;;  %v21492_v52 = vld [vmem:[#allocation11 + $0x3e4] ss:$16 sps:$4 sm:$0xff]  }
 0x62d   : > { %4372 = vmatpush1.bf16.msra.mxu1 %v21451_v61  ;;  %4287 = vmatprep.subr.bf16.mxu0 %v21456_v20  ;;  %v21495_v61 = vld [vmem:[#allocation11 + $0x3ec] ss:$16 sps:$4 sm:$0xff]  }
 0x62e   : > { %4373 = vmatprep.subr.bf16.mxu1 %v21459_v30  ;;  %v26930_v20 = vld [vmem:[#allocation55_spill] sm:$0xff] }
 0x62f   : > { %v4416_v30 = vadd.s32 2, %v26930_v20 }
 0x630   : > { %4288 = vmatpush1.bf16.msra.mxu0 %v21454_v44  ;;  %v21490_v44 = vld [vmem:[#allocation11 + $0x3e0] ss:$16 sps:$4 sm:$0xff]  }
 0x631   : > { %4374 = vmatpush1.bf16.msra.mxu1 %v21457_v58  ;;  %4289 = vmatprep.subr.bf16.mxu0 %v21462_v24  ;;  %v21493_v58 = vld [vmem:[#allocation11 + $0x3e8] ss:$16 sps:$4 sm:$0xff]   ;;  %v21498_v24 = vld [vmem:[#allocation11 + $0x804] ss:$16 sps:$4 sm:$0xff]   ;;  %vm4420_vm13 = vcmp.lt.s32.totalorder %v4416_v30, 16 }
 0x632   : > { %4375 = vmatprep.subr.bf16.mxu1 %v21465_v60  ;;  %v21501_v60 = vld [vmem:[#allocation11 + $0x80c] ss:$16 sps:$4 sm:$0xff]   ;;  %vm25230_vm14 = vmpackc.low %vm4420_vm13, %vm23970_vm11  ;;  %v21529_v30 = vld [vmem:[#allocation11 + $0x8a8] ss:$16 sps:$4 sm:$0xff]  }
 0x634   : > { %4290 = vmatpush1.bf16.msra.mxu0 %v21460_v41  ;;  %v21496_v41 = vld [vmem:[#allocation11 + $0x800] ss:$16 sps:$4 sm:$0xff]  }
 0x635   : > { %4376 = vmatpush1.bf16.msra.mxu1 %v21463_v12  ;;  %4291 = vmatprep.subr.bf16.mxu0 %v21468_v50  ;;  %v21499_v12 = vld [vmem:[#allocation11 + $0x808] ss:$16 sps:$4 sm:$0xff]   ;;  %v26931_v50 = vmov 0 }
 0x636   : > { %4377 = vmatprep.subr.bf16.mxu1 %v21471_v21  ;;  %v26932_v50 = vsel %vm25230_vm14, 4294967295, %v26931_v50  ;;  %v21504_v21 = vld [vmem:[#allocation11 + $0x824] ss:$16 sps:$4 sm:$0xff]  }
 0x637   : > { %26933 = vst [vmem:[#allocation73_spill] sm:$0xff] %v26932_v50 }
 0x638   : > { %4292 = vmatpush1.bf16.msra.mxu0 %v21466_v5  ;;  %v21507_v5 = vld [vmem:[#allocation11 + $0x82c] ss:$16 sps:$4 sm:$0xff]  }
 0x639   : > { %4378 = vmatpush1.bf16.msra.mxu1 %v21469_v46  ;;  %4293 = vmatprep.subr.bf16.mxu0 %v21474_v4  ;;  %v21502_v46 = vld [vmem:[#allocation11 + $0x820] ss:$16 sps:$4 sm:$0xff]   ;;  %v21505_v4 = vld [vmem:[#allocation11 + $0x828] ss:$16 sps:$4 sm:$0xff]  }
 0x63a   : > { %4379 = vmatprep.subr.bf16.mxu1 %v21477_v26  ;;  %v21510_v26 = vld [vmem:[#allocation11 + $0x844] ss:$16 sps:$4 sm:$0xff]  }
 0x63c   : > { %4294 = vmatpush1.bf16.msra.mxu0 %v21472_v37  ;;  %v21513_v37 = vld [vmem:[#allocation11 + $0x84c] ss:$16 sps:$4 sm:$0xff]  }
 0x63d   : > { %4380 = vmatpush1.bf16.msra.mxu1 %v21475_v23  ;;  %4295 = vmatprep.subr.bf16.mxu0 %v21480_v57  ;;  %v21508_v23 = vld [vmem:[#allocation11 + $0x840] ss:$16 sps:$4 sm:$0xff]   ;;  %v21516_v57 = vld [vmem:[#allocation11 + $0x864] ss:$16 sps:$4 sm:$0xff]  }
 0x63e   : > { %4381 = vmatprep.subr.bf16.mxu1 %v21483_v6  ;;  %v21519_v6 = vld [vmem:[#allocation11 + $0x86c] ss:$16 sps:$4 sm:$0xff]  }
 0x640   : > { %4296 = vmatpush1.bf16.msra.mxu0 %v21478_v3  ;;  %v21514_v3 = vld [vmem:[#allocation11 + $0x860] ss:$16 sps:$4 sm:$0xff]  }
 0x641   : > { %4382 = vmatpush1.bf16.msra.mxu1 %v21481_v54  ;;  %4297 = vmatprep.subr.bf16.mxu0 %v21486_v11  ;;  %v21517_v54 = vld [vmem:[#allocation11 + $0x868] ss:$16 sps:$4 sm:$0xff]   ;;  %v21522_v11 = vld [vmem:[#allocation11 + $0x884] ss:$16 sps:$4 sm:$0xff]  }
 0x642   : > { %4383 = vmatprep.subr.bf16.mxu1 %v21489_v35  ;;  %v21525_v35 = vld [vmem:[#allocation11 + $0x88c] ss:$16 sps:$4 sm:$0xff]  }
 0x644   : > { %4298 = vmatpush1.bf16.msra.mxu0 %v21484_v49  ;;  %v21523_v49 = vld [vmem:[#allocation11 + $0x888] ss:$16 sps:$4 sm:$0xff]  }
 0x645   : > { %4384 = vmatpush1.bf16.msra.mxu1 %v21487_v62  ;;  %4299 = vmatprep.subr.bf16.mxu0 %v21492_v52  ;;  %v21528_v62 = vld [vmem:[#allocation11 + $0x8a4] ss:$16 sps:$4 sm:$0xff]   ;;  %v21531_v52 = vld [vmem:[#allocation11 + $0x8ac] ss:$16 sps:$4 sm:$0xff]  }
 0x646   : > { %4385 = vmatprep.subr.bf16.mxu1 %v21495_v61  ;;  %v21526_v61 = vld [vmem:[#allocation11 + $0x8a0] ss:$16 sps:$4 sm:$0xff]  }
 0x648   : > { %4300 = vmatpush1.bf16.msra.mxu0 %v21490_v44  ;;  %v21534_v44 = vld [vmem:[#allocation11 + $0x8c4] ss:$16 sps:$4 sm:$0xff]  }
 0x649   : > { %4386 = vmatpush1.bf16.msra.mxu1 %v21493_v58  ;;  %5079 = vmatprep.subr.bf16.mxu0 %v21498_v24  ;;  %v21537_v58 = vld [vmem:[#allocation11 + $0x8cc] ss:$16 sps:$4 sm:$0xff]   ;;  %v21532_v24 = vld [vmem:[#allocation11 + $0x8c0] ss:$16 sps:$4 sm:$0xff]  }
 0x64a   : > { %5165 = vmatprep.subr.bf16.mxu1 %v21501_v60  ;;  %v21535_v60 = vld [vmem:[#allocation11 + $0x8c8] ss:$16 sps:$4 sm:$0xff]  }
 0x64b   : > { %16487 = vmatmul.mubr.msk.bf16.vlgmr.msra.gmra.mrb[12].mxu0 %vm25204_vm12, %v25168_v29 }
 0x64c   : > { %16499 = vmatmul.mubr.msk.bf16.vlgmr.msra.gmra.mrb[12].mxu1 %vm25204_vm12, %v25168_v29  ;;  %5080 = vmatpush1.bf16.msra.mxu0 %v21496_v41  ;;  %v21511_v29 = vld [vmem:[#allocation11 + $0x848] ss:$16 sps:$4 sm:$0xff]   ;;  %v21540_v41 = vld [vmem:[#allocation11 + $0x8e4] ss:$16 sps:$4 sm:$0xff]  }
 0x64d   : > { %16630 = vmatprep.mubr.msk.bf16.mxu0 %vm25230_vm14, %v25176_v1  ;;  %5166 = vmatpush1.bf16.msra.mxu1 %v21499_v12  ;;  %v21543_v12 = vld [vmem:[#allocation11 + $0x8ec] ss:$16 sps:$4 sm:$0xff]  }
 0x64e   : > { %16642 = vmatprep.mubr.msk.bf16.mxu1 %vm25230_vm14, %v25176_v1  ;;  %5081 = vmatprep.subr.bf16.mxu0 %v21504_v21  ;;  %v21520_v1 = vld [vmem:[#allocation11 + $0x880] ss:$16 sps:$4 sm:$0xff]  }
 0x64f   : > { %5167 = vmatprep.subr.bf16.mxu1 %v21507_v5  ;;  %v21538_v21 = vld [vmem:[#allocation11 + $0x8e0] ss:$16 sps:$4 sm:$0xff]   ;;  %v21541_v5 = vld [vmem:[#allocation11 + $0x8e8] ss:$16 sps:$4 sm:$0xff]  }
 0x650   : > { %5082 = vmatpush1.bf16.msra.mxu0 %v21502_v46  ;;  %v21546_v46 = vld [vmem:[#allocation11 + $0x904] ss:$16 sps:$4 sm:$0xff]  }
 0x651   : > { %5168 = vmatpush1.bf16.msra.mxu1 %v21505_v4  ;;  %5083 = vmatprep.subr.bf16.mxu0 %v21510_v26  ;;  %v21549_v4 = vld [vmem:[#allocation11 + $0x90c] ss:$16 sps:$4 sm:$0xff]   ;;  %v21544_v26 = vld [vmem:[#allocation11 + $0x900] ss:$16 sps:$4 sm:$0xff]  }
 0x652   : > { %5169 = vmatprep.subr.bf16.mxu1 %v21513_v37  ;;  %v21547_v37 = vld [vmem:[#allocation11 + $0x908] ss:$16 sps:$4 sm:$0xff]  }
 0x654   : > { %5084 = vmatpush1.bf16.msra.mxu0 %v21508_v23  ;;  %v21552_v23 = vld [vmem:[#allocation11 + $0x924] ss:$16 sps:$4 sm:$0xff]  }
 0x655   : > { %5170 = vmatpush1.bf16.msra.mxu1 %v21511_v29  ;;  %5085 = vmatprep.subr.bf16.mxu0 %v21516_v57  ;;  %v21555_v29 = vld [vmem:[#allocation11 + $0x92c] ss:$16 sps:$4 sm:$0xff]   ;;  %v21550_v57 = vld [vmem:[#allocation11 + $0x920] ss:$16 sps:$4 sm:$0xff]  }
 0x656   : > { %5171 = vmatprep.subr.bf16.mxu1 %v21519_v6  ;;  %v21553_v6 = vld [vmem:[#allocation11 + $0x928] ss:$16 sps:$4 sm:$0xff]  }
 0x658   : > { %5086 = vmatpush1.bf16.msra.mxu0 %v21514_v3  ;;  %v21558_v3 = vld [vmem:[#allocation11 + $0x944] ss:$16 sps:$4 sm:$0xff]  }
 0x659   : > { %5172 = vmatpush1.bf16.msra.mxu1 %v21517_v54  ;;  %5087 = vmatprep.subr.bf16.mxu0 %v21522_v11  ;;  %v21561_v54 = vld [vmem:[#allocation11 + $0x94c] ss:$16 sps:$4 sm:$0xff]   ;;  %v21556_v11 = vld [vmem:[#allocation11 + $0x940] ss:$16 sps:$4 sm:$0xff]  }
 0x65a   : > { %5173 = vmatprep.subr.bf16.mxu1 %v21525_v35  ;;  %v21559_v35 = vld [vmem:[#allocation11 + $0x948] ss:$16 sps:$4 sm:$0xff]  }
 0x65c   : > { %5088 = vmatpush1.bf16.msra.mxu0 %v21520_v1  ;;  %v21564_v1 = vld [vmem:[#allocation11 + $0x964] ss:$16 sps:$4 sm:$0xff]  }
 0x65d   : > { %5174 = vmatpush1.bf16.msra.mxu1 %v21523_v49  ;;  %5089 = vmatprep.subr.bf16.mxu0 %v21528_v62  ;;  %v21567_v49 = vld [vmem:[#allocation11 + $0x96c] ss:$16 sps:$4 sm:$0xff]   ;;  %v21562_v62 = vld [vmem:[#allocation11 + $0x960] ss:$16 sps:$4 sm:$0xff]  }
 0x65e   : > { %5175 = vmatprep.subr.bf16.mxu1 %v21531_v52  ;;  %v21565_v52 = vld [vmem:[#allocation11 + $0x968] ss:$16 sps:$4 sm:$0xff]  }
 0x660   : > { %5090 = vmatpush1.bf16.msra.mxu0 %v21526_v61  ;;  %v21570_v61 = vld [vmem:[#allocation11 + $0x984] ss:$16 sps:$4 sm:$0xff]  }
 0x661   : > { %5176 = vmatpush1.bf16.msra.mxu1 %v21529_v30  ;;  %5091 = vmatprep.subr.bf16.mxu0 %v21534_v44  ;;  %v21573_v30 = vld [vmem:[#allocation11 + $0x98c] ss:$16 sps:$4 sm:$0xff]   ;;  %v21568_v44 = vld [vmem:[#allocation11 + $0x980] ss:$16 sps:$4 sm:$0xff]  }
 0x662   : > { %5177 = vmatprep.subr.bf16.mxu1 %v21537_v58  ;;  %v21571_v58 = vld [vmem:[#allocation11 + $0x988] ss:$16 sps:$4 sm:$0xff]  }
 0x664   : > { %5092 = vmatpush1.bf16.msra.mxu0 %v21532_v24  ;;  %v21576_v24 = vld [vmem:[#allocation11 + $0x9a4] ss:$16 sps:$4 sm:$0xff]  }
 0x665   : > { %5178 = vmatpush1.bf16.msra.mxu1 %v21535_v60  ;;  %5093 = vmatprep.subr.bf16.mxu0 %v21540_v41  ;;  %v21579_v60 = vld [vmem:[#allocation11 + $0x9ac] ss:$16 sps:$4 sm:$0xff]   ;;  %v21574_v41 = vld [vmem:[#allocation11 + $0x9a0] ss:$16 sps:$4 sm:$0xff]  }
 0x666   : > { %5179 = vmatprep.subr.bf16.mxu1 %v21543_v12  ;;  %v21577_v12 = vld [vmem:[#allocation11 + $0x9a8] ss:$16 sps:$4 sm:$0xff]  }
 0x668   : > { %5094 = vmatpush1.bf16.msra.mxu0 %v21538_v21  ;;  %v21582_v21 = vld [vmem:[#allocation11 + $0x9c4] ss:$16 sps:$4 sm:$0xff]  }
 0x669   : > { %5180 = vmatpush1.bf16.msra.mxu1 %v21541_v5  ;;  %5095 = vmatprep.subr.bf16.mxu0 %v21546_v46  ;;  %v21585_v5 = vld [vmem:[#allocation11 + $0x9cc] ss:$16 sps:$4 sm:$0xff]   ;;  %v21580_v46 = vld [vmem:[#allocation11 + $0x9c0] ss:$16 sps:$4 sm:$0xff]  }
 0x66a   : > { %5181 = vmatprep.subr.bf16.mxu1 %v21549_v4  ;;  %v21583_v4 = vld [vmem:[#allocation11 + $0x9c8] ss:$16 sps:$4 sm:$0xff]  }
 0x66c   : > { %5096 = vmatpush1.bf16.msra.mxu0 %v21544_v26  ;;  %v21588_v26 = vld [vmem:[#allocation11 + $0x9e4] ss:$16 sps:$4 sm:$0xff]  }
 0x66d   : > { %5182 = vmatpush1.bf16.msra.mxu1 %v21547_v37  ;;  %5097 = vmatprep.subr.bf16.mxu0 %v21552_v23  ;;  %v21591_v37 = vld [vmem:[#allocation11 + $0x9ec] ss:$16 sps:$4 sm:$0xff]   ;;  %v21586_v23 = vld [vmem:[#allocation11 + $0x9e0] ss:$16 sps:$4 sm:$0xff]  }
 0x66e   : > { %5183 = vmatprep.subr.bf16.mxu1 %v21555_v29  ;;  %v21589_v29 = vld [vmem:[#allocation11 + $0x9e8] ss:$16 sps:$4 sm:$0xff]  }
 0x670   : > { %5098 = vmatpush1.bf16.msra.mxu0 %v21550_v57  ;;  %v21594_v57 = vld [vmem:[#allocation11 + $0xa04] ss:$16 sps:$4 sm:$0xff]  }
 0x671   : > { %5184 = vmatpush1.bf16.msra.mxu1 %v21553_v6  ;;  %5099 = vmatprep.subr.bf16.mxu0 %v21558_v3  ;;  %v21597_v6 = vld [vmem:[#allocation11 + $0xa0c] ss:$16 sps:$4 sm:$0xff]   ;;  %v21592_v3 = vld [vmem:[#allocation11 + $0xa00] ss:$16 sps:$4 sm:$0xff]  }
 0x672   : > { %5185 = vmatprep.subr.bf16.mxu1 %v21561_v54  ;;  %v21595_v54 = vld [vmem:[#allocation11 + $0xa08] ss:$16 sps:$4 sm:$0xff]  }
 0x674   : > { %5100 = vmatpush1.bf16.msra.mxu0 %v21556_v11  ;;  %v21600_v11 = vld [vmem:[#allocation11 + $0xa24] ss:$16 sps:$4 sm:$0xff]  }
 0x675   : > { %5186 = vmatpush1.bf16.msra.mxu1 %v21559_v35  ;;  %5101 = vmatprep.subr.bf16.mxu0 %v21564_v1  ;;  %v21603_v35 = vld [vmem:[#allocation11 + $0xa2c] ss:$16 sps:$4 sm:$0xff]   ;;  %v21598_v1 = vld [vmem:[#allocation11 + $0xa20] ss:$16 sps:$4 sm:$0xff]  }
 0x676   : > { %5187 = vmatprep.subr.bf16.mxu1 %v21567_v49  ;;  %v21601_v49 = vld [vmem:[#allocation11 + $0xa28] ss:$16 sps:$4 sm:$0xff]  }
 0x678   : > { %5102 = vmatpush1.bf16.msra.mxu0 %v21562_v62  ;;  %v21606_v62 = vld [vmem:[#allocation11 + $0xa44] ss:$16 sps:$4 sm:$0xff]  }
 0x679   : > { %5188 = vmatpush1.bf16.msra.mxu1 %v21565_v52  ;;  %5103 = vmatprep.subr.bf16.mxu0 %v21570_v61  ;;  %v21609_v52 = vld [vmem:[#allocation11 + $0xa4c] ss:$16 sps:$4 sm:$0xff]   ;;  %v21604_v61 = vld [vmem:[#allocation11 + $0xa40] ss:$16 sps:$4 sm:$0xff]  }
 0x67a   : > { %5189 = vmatprep.subr.bf16.mxu1 %v21573_v30  ;;  %v21612_v30 = vld [vmem:[#allocation11 + $0xa64] ss:$16 sps:$4 sm:$0xff]  }
 0x67c   : > { %5104 = vmatpush1.bf16.msra.mxu0 %v21568_v44  ;;  %v21615_v44 = vld [vmem:[#allocation11 + $0xa6c] ss:$16 sps:$4 sm:$0xff]  }
 0x67d   : > { %5190 = vmatpush1.bf16.msra.mxu1 %v21571_v58  ;;  %5105 = vmatprep.subr.bf16.mxu0 %v21576_v24  ;;  %v21610_v58 = vld [vmem:[#allocation11 + $0xa60] ss:$16 sps:$4 sm:$0xff]   ;;  %v21613_v24 = vld [vmem:[#allocation11 + $0xa68] ss:$16 sps:$4 sm:$0xff]  }
 0x67e   : > { %5191 = vmatprep.subr.bf16.mxu1 %v21579_v60  ;;  %v21618_v60 = vld [vmem:[#allocation11 + $0xa84] ss:$16 sps:$4 sm:$0xff]  }
 0x680   : > { %5106 = vmatpush1.bf16.msra.mxu0 %v21574_v41  ;;  %v21621_v41 = vld [vmem:[#allocation11 + $0xa8c] ss:$16 sps:$4 sm:$0xff]  }
 0x681   : > { %5192 = vmatpush1.bf16.msra.mxu1 %v21577_v12  ;;  %5107 = vmatprep.subr.bf16.mxu0 %v21582_v21  ;;  %v21619_v12 = vld [vmem:[#allocation11 + $0xa88] ss:$16 sps:$4 sm:$0xff]   ;;  %v21624_v21 = vld [vmem:[#allocation11 + $0xaa4] ss:$16 sps:$4 sm:$0xff]  }
 0x682   : > { %5193 = vmatprep.subr.bf16.mxu1 %v21585_v5  ;;  %v21627_v5 = vld [vmem:[#allocation11 + $0xaac] ss:$16 sps:$4 sm:$0xff]  }
 0x684   : > { %5108 = vmatpush1.bf16.msra.mxu0 %v21580_v46  ;;  %v21622_v46 = vld [vmem:[#allocation11 + $0xaa0] ss:$16 sps:$4 sm:$0xff]  }
 0x685   : > { %5194 = vmatpush1.bf16.msra.mxu1 %v21583_v4  ;;  %5109 = vmatprep.subr.bf16.mxu0 %v21588_v26  ;;  %v21625_v4 = vld [vmem:[#allocation11 + $0xaa8] ss:$16 sps:$4 sm:$0xff]   ;;  %v21630_v26 = vld [vmem:[#allocation11 + $0xac4] ss:$16 sps:$4 sm:$0xff]  }
 0x686   : > { %5195 = vmatprep.subr.bf16.mxu1 %v21591_v37  ;;  %v21633_v37 = vld [vmem:[#allocation11 + $0xacc] ss:$16 sps:$4 sm:$0xff]  }
 0x688   : > { %5110 = vmatpush1.bf16.msra.mxu0 %v21586_v23  ;;  %v21628_v23 = vld [vmem:[#allocation11 + $0xac0] ss:$16 sps:$4 sm:$0xff]  }
 0x689   : > { %5196 = vmatpush1.bf16.msra.mxu1 %v21589_v29  ;;  %5122 = vmatprep.subr.bf16.mxu0 %v21594_v57  ;;  %v21631_v29 = vld [vmem:[#allocation11 + $0xac8] ss:$16 sps:$4 sm:$0xff]   ;;  %v21636_v57 = vld [vmem:[#allocation11 + $0xae4] ss:$16 sps:$4 sm:$0xff]  }
 0x68a   : > { %5208 = vmatprep.subr.bf16.mxu1 %v21597_v6  ;;  %v21639_v6 = vld [vmem:[#allocation11 + $0xaec] ss:$16 sps:$4 sm:$0xff]  }
 0x68b   : > { %16633 = vmatmul.mubr.msk.bf16.vlgmr.msra.gmra.mrb[12].mxu0 %vm25230_vm14, %v25186_v33 }
 0x68c   : > { %16645 = vmatmul.mubr.msk.bf16.vlgmr.msra.gmra.mrb[12].mxu1 %vm25230_vm14, %v25186_v33  ;;  %5123 = vmatpush1.bf16.msra.mxu0 %v21592_v3  ;;  %v21607_v33 = vld [vmem:[#allocation11 + $0xa48] ss:$16 sps:$4 sm:$0xff]   ;;  %v21634_v3 = vld [vmem:[#allocation11 + $0xae0] ss:$16 sps:$4 sm:$0xff]  }
 0x68d   : > { %16636 = vmatprep.mubr.msk.bf16.mxu0 %vm25230_vm14, %v25196_v25  ;;  %5209 = vmatpush1.bf16.msra.mxu1 %v21595_v54  ;;  %v21637_v54 = vld [vmem:[#allocation11 + $0xae8] ss:$16 sps:$4 sm:$0xff]  }
 0x68e   : > { %16648 = vmatprep.mubr.msk.bf16.mxu1 %vm25230_vm14, %v25196_v25  ;;  %5124 = vmatprep.subr.bf16.mxu0 %v21600_v11  ;;  %v21616_v25 = vld [vmem:[#allocation11 + $0xa80] ss:$16 sps:$4 sm:$0xff]   ;;  %v21642_v11 = vld [vmem:[#allocation11 + $0xb04] ss:$16 sps:$4 sm:$0xff]  }
 0x68f   : > { %5210 = vmatprep.subr.bf16.mxu1 %v21603_v35  ;;  %v21645_v35 = vld [vmem:[#allocation11 + $0xb0c] ss:$16 sps:$4 sm:$0xff]  }
 0x690   : > { %5125 = vmatpush1.bf16.msra.mxu0 %v21598_v1  ;;  %v21640_v1 = vld [vmem:[#allocation11 + $0xb00] ss:$16 sps:$4 sm:$0xff]  }
 0x691   : > { %5211 = vmatpush1.bf16.msra.mxu1 %v21601_v49  ;;  %5126 = vmatprep.subr.bf16.mxu0 %v21606_v62  ;;  %v21643_v49 = vld [vmem:[#allocation11 + $0xb08] ss:$16 sps:$4 sm:$0xff]   ;;  %v21648_v62 = vld [vmem:[#allocation11 + $0xb24] ss:$16 sps:$4 sm:$0xff]  }
 0x692   : > { %5212 = vmatprep.subr.bf16.mxu1 %v21609_v52  ;;  %v21651_v52 = vld [vmem:[#allocation11 + $0xb2c] ss:$16 sps:$4 sm:$0xff]  }
 0x694   : > { %5127 = vmatpush1.bf16.msra.mxu0 %v21604_v61  ;;  %v21646_v61 = vld [vmem:[#allocation11 + $0xb20] ss:$16 sps:$4 sm:$0xff]  }
 0x695   : > { %5213 = vmatpush1.bf16.msra.mxu1 %v21607_v33  ;;  %5128 = vmatprep.subr.bf16.mxu0 %v21612_v30  ;;  %v21649_v33 = vld [vmem:[#allocation11 + $0xb28] ss:$16 sps:$4 sm:$0xff]   ;;  %v21654_v30 = vld [vmem:[#allocation11 + $0xb44] ss:$16 sps:$4 sm:$0xff]  }
 0x696   : > { %5214 = vmatprep.subr.bf16.mxu1 %v21615_v44  ;;  %v21657_v44 = vld [vmem:[#allocation11 + $0xb4c] ss:$16 sps:$4 sm:$0xff]  }
 0x698   : > { %5129 = vmatpush1.bf16.msra.mxu0 %v21610_v58  ;;  %v21652_v58 = vld [vmem:[#allocation11 + $0xb40] ss:$16 sps:$4 sm:$0xff]  }
 0x699   : > { %5215 = vmatpush1.bf16.msra.mxu1 %v21613_v24  ;;  %5130 = vmatprep.subr.bf16.mxu0 %v21618_v60  ;;  %v21655_v24 = vld [vmem:[#allocation11 + $0xb48] ss:$16 sps:$4 sm:$0xff]   ;;  %v21660_v60 = vld [vmem:[#allocation11 + $0xb64] ss:$16 sps:$4 sm:$0xff]  }
 0x69a   : > { %5216 = vmatprep.subr.bf16.mxu1 %v21621_v41  ;;  %v21663_v41 = vld [vmem:[#allocation11 + $0xb6c] ss:$16 sps:$4 sm:$0xff]  }
 0x69c   : > { %5131 = vmatpush1.bf16.msra.mxu0 %v21616_v25  ;;  %v21658_v25 = vld [vmem:[#allocation11 + $0xb60] ss:$16 sps:$4 sm:$0xff]  }
 0x69d   : > { %5217 = vmatpush1.bf16.msra.mxu1 %v21619_v12  ;;  %5132 = vmatprep.subr.bf16.mxu0 %v21624_v21  ;;  %v21661_v12 = vld [vmem:[#allocation11 + $0xb68] ss:$16 sps:$4 sm:$0xff]   ;;  %v21666_v21 = vld [vmem:[#allocation11 + $0xb84] ss:$16 sps:$4 sm:$0xff]  }
 0x69e   : > { %5218 = vmatprep.subr.bf16.mxu1 %v21627_v5  ;;  %v21669_v5 = vld [vmem:[#allocation11 + $0xb8c] ss:$16 sps:$4 sm:$0xff]  }
 0x6a0   : > { %5133 = vmatpush1.bf16.msra.mxu0 %v21622_v46  ;;  %v21664_v46 = vld [vmem:[#allocation11 + $0xb80] ss:$16 sps:$4 sm:$0xff]  }
 0x6a1   : > { %5219 = vmatpush1.bf16.msra.mxu1 %v21625_v4  ;;  %5134 = vmatprep.subr.bf16.mxu0 %v21630_v26  ;;  %v21667_v4 = vld [vmem:[#allocation11 + $0xb88] ss:$16 sps:$4 sm:$0xff]   ;;  %v21672_v26 = vld [vmem:[#allocation11 + $0xba4] ss:$16 sps:$4 sm:$0xff]  }
 0x6a2   : > { %5220 = vmatprep.subr.bf16.mxu1 %v21633_v37  ;;  %v21675_v37 = vld [vmem:[#allocation11 + $0xbac] ss:$16 sps:$4 sm:$0xff]  }
 0x6a4   : > { %5135 = vmatpush1.bf16.msra.mxu0 %v21628_v23  ;;  %v21670_v23 = vld [vmem:[#allocation11 + $0xba0] ss:$16 sps:$4 sm:$0xff]  }
 0x6a5   : > { %5221 = vmatpush1.bf16.msra.mxu1 %v21631_v29  ;;  %5136 = vmatprep.subr.bf16.mxu0 %v21636_v57  ;;  %v21673_v29 = vld [vmem:[#allocation11 + $0xba8] ss:$16 sps:$4 sm:$0xff]   ;;  %v21678_v57 = vld [vmem:[#allocation11 + $0xbc4] ss:$16 sps:$4 sm:$0xff]  }
 0x6a6   : > { %5222 = vmatprep.subr.bf16.mxu1 %v21639_v6  ;;  %v21681_v6 = vld [vmem:[#allocation11 + $0xbcc] ss:$16 sps:$4 sm:$0xff]  }
 0x6a8   : > { %5137 = vmatpush1.bf16.msra.mxu0 %v21634_v3  ;;  %v21676_v3 = vld [vmem:[#allocation11 + $0xbc0] ss:$16 sps:$4 sm:$0xff]  }
 0x6a9   : > { %5223 = vmatpush1.bf16.msra.mxu1 %v21637_v54  ;;  %5138 = vmatprep.subr.bf16.mxu0 %v21642_v11  ;;  %v21679_v54 = vld [vmem:[#allocation11 + $0xbc8] ss:$16 sps:$4 sm:$0xff]   ;;  %v21684_v11 = vld [vmem:[#allocation11 + $0xbe4] ss:$16 sps:$4 sm:$0xff]  }
 0x6aa   : > { %5224 = vmatprep.subr.bf16.mxu1 %v21645_v35  ;;  %v21687_v35 = vld [vmem:[#allocation11 + $0xbec] ss:$16 sps:$4 sm:$0xff]  }
 0x6ac   : > { %5139 = vmatpush1.bf16.msra.mxu0 %v21640_v1  ;;  %v21682_v1 = vld [vmem:[#allocation11 + $0xbe0] ss:$16 sps:$4 sm:$0xff]  }
 0x6ad   : > { %5225 = vmatpush1.bf16.msra.mxu1 %v21643_v49  ;;  %5140 = vmatprep.subr.bf16.mxu0 %v21648_v62  ;;  %v21685_v49 = vld [vmem:[#allocation11 + $0xbe8] ss:$16 sps:$4 sm:$0xff]   ;;  %v26935_v62 = vld [vmem:[#allocation64_spill] sm:$0xff] }
 0x6ae   : > { %5226 = vmatprep.subr.bf16.mxu1 %v21651_v52  ;;  %v26936_v52 = vld [vmem:[#allocation65_spill] sm:$0xff] }
 0x6b0   : > { %5141 = vmatpush1.bf16.msra.mxu0 %v21646_v61  ;;  %v26937_v61 = vld [vmem:[#allocation66_spill] sm:$0xff] }
 0x6b1   : > { %5227 = vmatpush1.bf16.msra.mxu1 %v21649_v33  ;;  %5142 = vmatprep.subr.bf16.mxu0 %v21654_v30  ;;  %v2728_v33 = vld [vmem:[#allocation13] sm:$0xf] }
 0x6b2   : > { %5228 = vmatprep.subr.bf16.mxu1 %v21657_v44  ;;  %v5267_v30 = vrot.slane %v2728_v33, %v26915_v43  ;;  %v5263_v44 = vrot.slane %v2728_v33, %v26913_v45 }
 0x6b4   : > { %5143 = vmatpush1.bf16.msra.mxu0 %v21652_v58  ;;  %v5275_v58 = vrot.slane %v2728_v33, %v26916_v48 }
 0x6b5   : > { %5229 = vmatpush1.bf16.msra.mxu1 %v21655_v24  ;;  %5144 = vmatprep.subr.bf16.mxu0 %v21660_v60  ;;  %v26938_v60 = vld [vmem:[#allocation70_spill] sm:$0xff] }
 0x6b6   : > { %5230 = vmatprep.subr.bf16.mxu1 %v21663_v41  ;;  %v5271_v41 = vrot.slane %v2728_v33, %v26938_v60 }
 0x6b8   : > { %5145 = vmatpush1.bf16.msra.mxu0 %v21658_v25 }
 0x6b9   : > { %5231 = vmatpush1.bf16.msra.mxu1 %v21661_v12  ;;  %5146 = vmatprep.subr.bf16.mxu0 %v21666_v21 }
 0x6ba   : > { %5232 = vmatprep.subr.bf16.mxu1 %v21669_v5 }
 0x6bc   : > { %5147 = vmatpush1.bf16.msra.mxu0 %v21664_v46 }
 0x6bd   : > { %5233 = vmatpush1.bf16.msra.mxu1 %v21667_v4  ;;  %5148 = vmatprep.subr.bf16.mxu0 %v21672_v26 }
 0x6be   : > { %5234 = vmatprep.subr.bf16.mxu1 %v21675_v37 }
 0x6c0   : > { %5149 = vmatpush1.bf16.msra.mxu0 %v21670_v23 }
 0x6c1   : > { %5235 = vmatpush1.bf16.msra.mxu1 %v21673_v29  ;;  %5150 = vmatprep.subr.bf16.mxu0 %v21678_v57 }
 0x6c2   : > { %5236 = vmatprep.subr.bf16.mxu1 %v21681_v6 }
 0x6c4   : > { %5151 = vmatpush1.bf16.msra.mxu0 %v21676_v3 }
 0x6c5   : > { %5237 = vmatpush1.bf16.msra.mxu1 %v21679_v54  ;;  %5152 = vmatprep.subr.bf16.mxu0 %v21684_v11 }
 0x6c6   : > { %5238 = vmatprep.subr.bf16.mxu1 %v21687_v35 }
 0x6c8   : > { %5153 = vmatpush1.bf16.msra.mxu0 %v21682_v1 }
 0x6c9   : > { %5239 = vmatpush1.bf16.msra.mxu1 %v21685_v49  ;;  %19725 = vmatprep.subr.bf16.mxu0 %v26911_v39 }
 0x6ca   : > { %19757 = vmatprep.subr.bf16.mxu1 %v26912_v53 }
 0x6cb   : > { %16639 = vmatmul.mubr.msk.bf16.vlgmr.msra.gmra.mrb[12].mxu0 %vm25230_vm14, %v25200_v34 }
 0x6cc   : > { %16651 = vmatmul.mubr.msk.bf16.vlgmr.msra.gmra.mrb[12].mxu1 %vm25230_vm14, %v25200_v34  ;;  %19727 = vmatpush3.bf16.msra.mxu0 %v24700_v63  ;;  %v26934_v34 = vld [vmem:[#allocation63_spill] sm:$0xff] }
 0x6cd   : > { %19759 = vmatpush3.bf16.msra.mxu1 %v24702_v0  ;;  %19729 = vmatprep.subr.bf16.mxu0 %v24704_v7 }
 0x6ce   : > { %19761 = vmatprep.subr.bf16.mxu1 %v24706_v8 }
 0x6d0   : > { %19731 = vmatpush3.bf16.msra.mxu0 %v24712_v13 }
 0x6d1   : > { %19763 = vmatpush3.bf16.msra.mxu1 %v24714_v14  ;;  %19733 = vmatprep.subr.bf16.mxu0 %v24718_v15 }
 0x6d2   : > { %19765 = vmatprep.subr.bf16.mxu1 %v24720_v16 }
 0x6d4   : > { %19735 = vmatpush3.bf16.msra.mxu0 %v24724_v17 }
 0x6d5   : > { %19767 = vmatpush3.bf16.msra.mxu1 %v24726_v18  ;;  %19737 = vmatprep.subr.bf16.mxu0 %v24732_v22 }
 0x6d6   : > { %19769 = vmatprep.subr.bf16.mxu1 %v24734_v27 }
 0x6d8   : > { %19739 = vmatpush3.bf16.msra.mxu0 %v24736_v28 }
 0x6d9   : > { %19771 = vmatpush3.bf16.msra.mxu1 %v24739_v31  ;;  %19741 = vmatprep.subr.bf16.mxu0 %v24744_v36 }
 0x6da   : > { %19773 = vmatprep.subr.bf16.mxu1 %v24746_v40 }
 0x6dc   : > { %19743 = vmatpush3.bf16.msra.mxu0 %v24748_v42 }
 0x6dd   : > { %19775 = vmatpush3.bf16.msra.mxu1 %v24751_v47  ;;  %19745 = vmatprep.subr.bf16.mxu0 %v24756_v51 }
 0x6de   : > { %19777 = vmatprep.subr.bf16.mxu1 %v24758_v55 }
 0x6e0   : > { %19747 = vmatpush3.bf16.msra.mxu0 %v24760_v56 }
 0x6e1   : > { %19779 = vmatpush3.bf16.msra.mxu1 %v24763_v59  ;;  %19749 = vmatprep.subr.bf16.mxu0 %v24768_v2 }
 0x6e2   : > { %19781 = vmatprep.subr.bf16.mxu1 %v24770_v9 }
 0x6e4   : > { %19751 = vmatpush3.bf16.msra.mxu0 %v24772_v10 }
 0x6e5   : > { %19783 = vmatpush3.bf16.msra.mxu1 %v24775_v19  ;;  %19753 = vmatprep.subr.bf16.mxu0 %v26934_v34 }
 0x6e6   : > { %19785 = vmatprep.subr.bf16.mxu1 %v26935_v62 }
 0x6e8   : > { %19755 = vmatpush3.bf16.msra.mxu0 %v26936_v52 }
 0x6e9   : > { %19787 = vmatpush3.bf16.msra.mxu1 %v26937_v61  ;;  %19789 = vmatprep.subr.bf16.mxu0 %v26911_v39 }
 0x6ea   : > { %19821 = vmatprep.subr.bf16.mxu1 %v26912_v53 }
 0x79e   : > { %v5156_v24 = vpop.f32.mrb[12].mxu0 }
 0x79f   : > { %v5242_v25 = vpop.f32.mrb[12].mxu1  ;;  %v5158_v12 = vpop.f32.mrb[13].mxu0  ;;  %v25304_v4 = vadd.f32 %v5263_v44, %v5156_v24 }
 0x7a0   : > { %v25302_v21 = vadd.f32 %v5267_v30, %v5158_v12  ;;  %v5244_v5 = vpop.f32.mrb[13].mxu1  ;;  %v5160_v46 = vpop.f32.mrb[14].mxu0  ;;  %v25310_v57 = vadd.f32 %v5271_v41, %v5242_v25 }
 0x7a1   : > { %v25306_v26 = vadd.f32 %v5275_v58, %v5244_v5  ;;  %v25308_v37 = vadd.f32 %v5263_v44, %v5160_v46  ;;  %v5246_v23 = vpop.f32.mrb[14].mxu1  ;;  %v5162_v29 = vpop.f32.mrb[15].mxu0 }
 0x7a2   : > { %26939 = vst [vmem:[#allocation72_spill] sm:$0xff] %v25302_v21  ;;  %v25312_v6 = vadd.f32 %v5271_v41, %v5246_v23  ;;  %v25314_v3 = vadd.f32 %v5267_v30, %v5162_v29  ;;  %v5248_v54 = vpop.f32.mrb[15].mxu1  ;;  %v5319_v1 = vmul.f32 %v25302_v21, %v25302_v21 }
 0x7a3   : > { %26940 = vst [vmem:[#allocation74_spill] sm:$0xff] %v25306_v26  ;;  %v5290_v11 = vadd.f32 %v25308_v37, %v25304_v4  ;;  %v25318_v35 = vadd.f32 %v5275_v58, %v5248_v54  ;;  %v5321_v30 = vmul.f32 %v25306_v26, %v25306_v26 }
 0x7a4   : > { %26941 = vst [vmem:[#allocation77_spill] sm:$0xff] %v25314_v3  ;;  %v5304_v49 = vadd.f32 %v25312_v6, %v25310_v57  ;;  %v5297_v33 = vadd.f32 %v25314_v3, %v25302_v21  ;;  %v5323_v44 = vmul.f32 %v25314_v3, %v25314_v3 }
 0x7a5   : > { %26942 = vst [vmem:[#allocation78_spill] sm:$0xff] %v25318_v35  ;;  %v5291_v24 = vrot.slane %v5290_v11, 4  ;;  %v5311_v58 = vadd.f32 %v25318_v35, %v25306_v26  ;;  %v5325_v41 = vmul.f32 %v25318_v35, %v25318_v35 }
 0x7a6   : > { %v5305_v25 = vrot.slane %v5304_v49, 4  ;;  %v5298_v12 = vrot.slane %v5297_v33, 4  ;;  %v5333_v5 = vadd.f32 %v5323_v44, %v5319_v1 }
 0x7a7   : > { %v5292_v46 = vadd.f32 %v5291_v24, %v5290_v11  ;;  %v5312_v23 = vrot.slane %v5311_v58, 4  ;;  %v5347_v29 = vadd.f32 %v5325_v41, %v5321_v30 }
 0x7a8   : > { %v5306_v54 = vadd.f32 %v5305_v25, %v5304_v49  ;;  %v5299_v50 = vadd.f32 %v5298_v12, %v5297_v33  ;;  %v5334_v38 = vrot.slane %v5333_v5, 4 }
 0x7a9   : > { %v5293_v20 = vrot.slane %v5292_v46, 2  ;;  %v5313_v3 = vadd.f32 %v5312_v23, %v5311_v58  ;;  %v5348_v21 = vrot.slane %v5347_v29, 4 }
 0x7aa   : > { %v5307_v32 = vrot.slane %v5306_v54, 2  ;;  %v5300_v48 = vrot.slane %v5299_v50, 2  ;;  %v5335_v43 = vadd.f32 %v5334_v38, %v5333_v5 }
 0x7ab   : > { %v5294_v60 = vadd.f32 %v5293_v20, %v5292_v46  ;;  %v5314_v26 = vrot.slane %v5313_v3, 2  ;;  %v5349_v45 = vadd.f32 %v5348_v21, %v5347_v29 }
 0x7ac   : > { %v5308_v53 = vadd.f32 %v5307_v32, %v5306_v54  ;;  %v5301_v35 = vadd.f32 %v5300_v48, %v5299_v50  ;;  %v5336_v39 = vrot.slane %v5335_v43, 2  ;;  %v5322_v32 = vmul.f32 %v25308_v37, %v25308_v37 }
 0x7ad   : > { %v5315_v61 = vadd.f32 %v5314_v26, %v5313_v3  ;;  %v5295_v1 = vrot.slane %v5294_v60, 1  ;;  %v5350_v11 = vrot.slane %v5349_v45, 2 }
 0x7ae   : > { %v5302_v44 = vrot.slane %v5301_v35, 1  ;;  %v5309_v30 = vrot.slane %v5308_v53, 1  ;;  %v5337_v49 = vadd.f32 %v5336_v39, %v5335_v43  ;;  %v5324_v39 = vmul.f32 %v25312_v6, %v25312_v6 }
 0x7af   : > { %v5316_v33 = vrot.slane %v5315_v61, 1  ;;  %v5351_v24 = vadd.f32 %v5350_v11, %v5349_v45  ;;  %v5296_v12 = vadd.f32 %v5295_v1, %v5294_v60  ;;  %v5320_v45 = vmul.f32 %v25310_v57, %v25310_v57  ;;  %v26943_v1 = vld [vmem:[#allocation66_spill] sm:$0xff] }
 0x7b0   : > { %v5303_v41 = vadd.f32 %v5302_v44, %v5301_v35  ;;  %v5338_v58 = vrot.slane %v5337_v49, 1  ;;  %v5310_v38 = vadd.f32 %v5309_v30, %v5308_v53  ;;  %v5318_v53 = vmul.f32 %v25304_v4, %v25304_v4  ;;  %v26944_v44 = vld [vmem:[#allocation57_spill] sm:$0xff]  ;;  %v26951_v30 = vld [vmem:[#allocation76_spill] sm:$0xff] }
 0x7b1   : > { %v5317_v25 = vadd.f32 %v5316_v33, %v5315_v61  ;;  %v5352_v23 = vrot.slane %v5351_v24, 1  ;;  %v5340_v50 = vadd.f32 %v5324_v39, %v5320_v45  ;;  %v26946_v33 = vld [vmem:[#allocation58_spill] sm:$0xff] }
 0x7b2   : > { %5418 = vmatprep.mubr.f32.mxu0 %v5303_v41  ;;  %v5339_v20 = vadd.f32 %v5338_v58, %v5337_v49  ;;  %v5326_v43 = vadd.f32 %v5322_v32, %v5318_v53 }
 0x7b3   : > { %5488 = vmatprep.mubr.f32.mxu1 %v5317_v25  ;;  %5419 = vmatmul.mubr.f32.vlgmr.msra.gmra.mrb[16].mxu0 %v5296_v12  ;;  %v5353_v48 = vadd.f32 %v5352_v23, %v5351_v24  ;;  %v5341_v60 = vrot.slane %v5340_v50, 4 }
 0x7b4   : > { %5489 = vmatmul.mubr.f32.vlgmr.msra.gmra.mrb[16].mxu1 %v5310_v38  ;;  %19791 = vmatpush3.bf16.msra.mxu0 %v24700_v63  ;;  %v5327_v61 = vrot.slane %v5326_v43, 4 }
 0x7b5   : > { %19823 = vmatpush3.bf16.msra.mxu1 %v24702_v0  ;;  %5559 = vmatprep.mubr.f32.mxu0 %v5339_v20  ;;  %v5342_v26 = vadd.f32 %v5341_v60, %v5340_v50 }
 0x7b6   : > { %5629 = vmatprep.mubr.f32.mxu1 %v5353_v48  ;;  %19793 = vmatprep.subr.bf16.mxu0 %v24704_v7  ;;  %v5328_v21 = vadd.f32 %v5327_v61, %v5326_v43 }
 0x7b7   : > { %19825 = vmatprep.subr.bf16.mxu1 %v24706_v8  ;;  %v5343_v35 = vrot.slane %v5342_v26, 2 }
 0x7b8   : > { %19795 = vmatpush3.bf16.msra.mxu0 %v24712_v13  ;;  %v5329_v3 = vrot.slane %v5328_v21, 2 }
 0x7b9   : > { %19827 = vmatpush3.bf16.msra.mxu1 %v24714_v14  ;;  %19797 = vmatprep.subr.bf16.mxu0 %v24718_v15  ;;  %v5344_v46 = vadd.f32 %v5343_v35, %v5342_v26  ;;  %v21688_v35 = vld [vmem:[#allocation17 + $0x400] ss:$16 sps:$4 sm:$0xff]  }
 0x7ba   : > { %19829 = vmatprep.subr.bf16.mxu1 %v24720_v16  ;;  %v5330_v5 = vadd.f32 %v5329_v3, %v5328_v21 }
 0x7bb   : > { %v5345_v54 = vrot.slane %v5344_v46, 1 }
 0x7bc   : > { %19799 = vmatpush3.bf16.msra.mxu0 %v24724_v17  ;;  %v5331_v29 = vrot.slane %v5330_v5, 1 }
 0x7bd   : > { %19831 = vmatpush3.bf16.msra.mxu1 %v24726_v18  ;;  %19801 = vmatprep.subr.bf16.mxu0 %v24732_v22  ;;  %v5346_v49 = vadd.f32 %v5345_v54, %v5344_v46  ;;  %v21691_v46 = vld [vmem:[#allocation17 + $0x408] ss:$16 sps:$4 sm:$0xff]   ;;  %v21696_v54 = vld [vmem:[#allocation17 + $0x424] ss:$16 sps:$4 sm:$0xff]  }
 0x7be   : > { %19833 = vmatprep.subr.bf16.mxu1 %v24734_v27  ;;  %v5332_v11 = vadd.f32 %v5331_v29, %v5330_v5  ;;  %v21690_v5 = vld [vmem:[#allocation17 + $0x404] ss:$16 sps:$4 sm:$0xff]   ;;  %v21693_v29 = vld [vmem:[#allocation17 + $0x40c] ss:$16 sps:$4 sm:$0xff]  }
 0x7c0   : > { %19803 = vmatpush3.bf16.msra.mxu0 %v24736_v28 }
 0x7c1   : > { %19835 = vmatpush3.bf16.msra.mxu1 %v24739_v31  ;;  %19805 = vmatprep.subr.bf16.mxu0 %v24744_v36 }
 0x7c2   : > { %19837 = vmatprep.subr.bf16.mxu1 %v24746_v40 }
 0x7c4   : > { %19807 = vmatpush3.bf16.msra.mxu0 %v24748_v42 }
 0x7c5   : > { %19839 = vmatpush3.bf16.msra.mxu1 %v24751_v47  ;;  %19809 = vmatprep.subr.bf16.mxu0 %v24756_v51 }
 0x7c6   : > { %19841 = vmatprep.subr.bf16.mxu1 %v24758_v55 }
 0x7c8   : > { %19811 = vmatpush3.bf16.msra.mxu0 %v24760_v56 }
 0x7c9   : > { %19843 = vmatpush3.bf16.msra.mxu1 %v24763_v59  ;;  %19813 = vmatprep.subr.bf16.mxu0 %v24768_v2 }
 0x7ca   : > { %19845 = vmatprep.subr.bf16.mxu1 %v24770_v9 }
 0x7cc   : > { %19815 = vmatpush3.bf16.msra.mxu0 %v24772_v10 }
 0x7cd   : > { %19847 = vmatpush3.bf16.msra.mxu1 %v24775_v19  ;;  %19817 = vmatprep.subr.bf16.mxu0 %v26934_v34 }
 0x7ce   : > { %19849 = vmatprep.subr.bf16.mxu1 %v26935_v62 }
 0x7d0   : > { %19819 = vmatpush3.bf16.msra.mxu0 %v26936_v52 }
 0x7d1   : > { %19851 = vmatpush3.bf16.msra.mxu1 %v26943_v1  ;;  %19854 = vmatprep.subr.msk.bf16.mxu0 %vm24872_vm7, %v26944_v44 }
 0x7d2   : > { %19902 = vmatprep.subr.msk.bf16.mxu1 %vm24872_vm7, %v26946_v33 }
 0x7d3   : > { %5560 = vmatmul.mubr.f32.vlgmr.msra.gmra.mrb[18].mxu0 %v5332_v11  ;;  %v21699_v11 = vld [vmem:[#allocation17 + $0x42c] ss:$16 sps:$4 sm:$0xff]  }
 0x7d4   : > { %5630 = vmatmul.mubr.f32.vlgmr.msra.gmra.mrb[18].mxu1 %v5346_v49  ;;  %v21694_v49 = vld [vmem:[#allocation17 + $0x420] ss:$16 sps:$4 sm:$0xff]  }
 0x7d9   : > { %19857 = vmatpush3.bf16.xpose.msk.msra.mxu0 %vm24872_vm7, %v24700_v63 }
 0x7da   : > { %19905 = vmatpush3.bf16.xpose.msk.msra.mxu1 %vm24872_vm7, %v24702_v0  ;;  %19860 = vmatprep.subr.msk.bf16.mxu0 %vm24872_vm7, %v24704_v7 }
 0x7db   : > { %19908 = vmatprep.subr.msk.bf16.mxu1 %vm24872_vm7, %v24706_v8 }
 0x7e1   : > { %19863 = vmatpush3.bf16.xpose.msk.msra.mxu0 %vm24872_vm7, %v24712_v13 }
 0x7e2   : > { %19911 = vmatpush3.bf16.xpose.msk.msra.mxu1 %vm24872_vm7, %v24714_v14  ;;  %19866 = vmatprep.subr.msk.bf16.mxu0 %vm24872_vm7, %v24718_v15 }
 0x7e3   : > { %19914 = vmatprep.subr.msk.bf16.mxu1 %vm24872_vm7, %v24720_v16 }
 0x7e9   : > { %19869 = vmatpush3.bf16.xpose.msk.msra.mxu0 %vm24872_vm7, %v24724_v17 }
 0x7ea   : > { %19917 = vmatpush3.bf16.xpose.msk.msra.mxu1 %vm24872_vm7, %v24726_v18  ;;  %19872 = vmatprep.subr.msk.bf16.mxu0 %vm24872_vm7, %v24732_v22 }
 0x7eb   : > { %19920 = vmatprep.subr.msk.bf16.mxu1 %vm24872_vm7, %v24734_v27 }
 0x7f1   : > { %19875 = vmatpush3.bf16.xpose.msk.msra.mxu0 %vm24872_vm7, %v24736_v28 }
 0x7f2   : > { %19923 = vmatpush3.bf16.xpose.msk.msra.mxu1 %vm24872_vm7, %v24739_v31  ;;  %19878 = vmatprep.subr.msk.bf16.mxu0 %vm24872_vm7, %v24744_v36 }
 0x7f3   : > { %19926 = vmatprep.subr.msk.bf16.mxu1 %vm24872_vm7, %v24746_v40 }
 0x7f9   : > { %19881 = vmatpush3.bf16.xpose.msk.msra.mxu0 %vm24872_vm7, %v24748_v42 }
 0x7fa   : > { %19929 = vmatpush3.bf16.xpose.msk.msra.mxu1 %vm24872_vm7, %v24751_v47  ;;  %19884 = vmatprep.subr.msk.bf16.mxu0 %vm24872_vm7, %v24756_v51 }
 0x7fb   : > { %19932 = vmatprep.subr.msk.bf16.mxu1 %vm24872_vm7, %v24758_v55 }
 0x801   : > { %19887 = vmatpush3.bf16.xpose.msk.msra.mxu0 %vm24872_vm7, %v24760_v56 }
 0x802   : > { %19935 = vmatpush3.bf16.xpose.msk.msra.mxu1 %vm24872_vm7, %v24763_v59  ;;  %19890 = vmatprep.subr.msk.bf16.mxu0 %vm24872_vm7, %v24768_v2 }
 0x803   : > { %19938 = vmatprep.subr.msk.bf16.mxu1 %vm24872_vm7, %v24770_v9 }
 0x809   : > { %19893 = vmatpush3.bf16.xpose.msk.msra.mxu0 %vm24872_vm7, %v24772_v10 }
 0x80a   : > { %19941 = vmatpush3.bf16.xpose.msk.msra.mxu1 %vm24872_vm7, %v24775_v19  ;;  %19896 = vmatprep.subr.msk.bf16.mxu0 %vm24872_vm7, %v26934_v34 }
 0x80b   : > { %19944 = vmatprep.subr.msk.bf16.mxu1 %vm24872_vm7, %v26935_v62 }
 0x811   : > { %19899 = vmatpush3.bf16.xpose.msk.msra.mxu0 %vm24872_vm7, %v26936_v52 }
 0x812   : > { %19947 = vmatpush3.bf16.xpose.msk.msra.mxu1 %vm24872_vm7, %v26943_v1  ;;  %19950 = vmatprep.subr.msk.bf16.mxu0 %vm24872_vm7, %v26944_v44 }
 0x813   : > { %19998 = vmatprep.subr.msk.bf16.mxu1 %vm24872_vm7, %v26946_v33 }
 0x886   : > { %v18564_v24 = vpop.f32.mrb[16].mxu0 }
 0x887   : > { %v18599_v41 = vpop.f32.mrb[16].mxu1  ;;  %v18565_v58 = vpop.f32.mrb[17].mxu0 }
 0x888   : > { %v18566_v25 = vadd.f32 %v18565_v58, %v18564_v24  ;;  %v18600_v12 = vpop.f32.mrb[17].mxu1  ;;  %v21697_v24 = vld [vmem:[#allocation17 + $0x428] ss:$16 sps:$4 sm:$0xff]   ;;  %v21705_v58 = vld [vmem:[#allocation17 + $0x44c] ss:$16 sps:$4 sm:$0xff]  }
 0x889   : > { %v18601_v23 = vadd.f32 %v18600_v12, %v18599_v41  ;;  %v21702_v41 = vld [vmem:[#allocation17 + $0x444] ss:$16 sps:$4 sm:$0xff]   ;;  %v21703_v12 = vld [vmem:[#allocation17 + $0x448] ss:$16 sps:$4 sm:$0xff]  }
 0x88b   : > { %v5491_v38 = vadd.f32 %v18601_v23, %v18566_v25  ;;  %v21700_v25 = vld [vmem:[#allocation17 + $0x440] ss:$16 sps:$4 sm:$0xff]   ;;  %v21708_v23 = vld [vmem:[#allocation17 + $0x464] ss:$16 sps:$4 sm:$0xff]  }
 0x88d   : > { %v5494_v20 = vmul.f32 0.00390625, %v5491_v38  ;;  %v21711_v38 = vld [vmem:[#allocation17 + $0x46c] ss:$16 sps:$4 sm:$0xff]  }
 0x88f   : > { %18704 = vmatprep.mubr.msk.f32.mxu0 %vm1741_vm6, %v5494_v20  ;;  %18738 = vmatprep.mubr.msk.f32.mxu1 %vm1741_vm6, %v5494_v20  ;;  %v5636_v60 = vmul.f32 %v5494_v20, %v5494_v20 }
 0x890   : > { %18705 = vmatmul.mubr.msk.f32.vlgmr.msra.gmra.mrb[20].mxu0 %vm1741_vm6, %v5494_v20  ;;  %18739 = vmatmul.mubr.msk.f32.vlgmr.msra.gmra.mrb[20].mxu1 %vm1741_vm6, %v5494_v20  ;;  %v21706_v20 = vld [vmem:[#allocation17 + $0x460] ss:$16 sps:$4 sm:$0xff]  }
 0x891   : > { %19953 = vmatpush3.bf16.xpose.msk.msra.mxu0 %vm24872_vm7, %v24700_v63  ;;  %20001 = vmatpush3.bf16.xpose.msk.msra.mxu1 %vm24872_vm7, %v24702_v0 }
 0x892   : > { %19956 = vmatprep.subr.msk.bf16.mxu0 %vm24872_vm7, %v24704_v7  ;;  %20004 = vmatprep.subr.msk.bf16.mxu1 %vm24872_vm7, %v24706_v8 }
 0x899   : > { %19959 = vmatpush3.bf16.xpose.msk.msra.mxu0 %vm24872_vm7, %v24712_v13  ;;  %20007 = vmatpush3.bf16.xpose.msk.msra.mxu1 %vm24872_vm7, %v24714_v14 }
 0x89a   : > { %19962 = vmatprep.subr.msk.bf16.mxu0 %vm24872_vm7, %v24718_v15  ;;  %20010 = vmatprep.subr.msk.bf16.mxu1 %vm24872_vm7, %v24720_v16 }
 0x8a1   : > { %19965 = vmatpush3.bf16.xpose.msk.msra.mxu0 %vm24872_vm7, %v24724_v17  ;;  %20013 = vmatpush3.bf16.xpose.msk.msra.mxu1 %vm24872_vm7, %v24726_v18 }
 0x8a2   : > { %19968 = vmatprep.subr.msk.bf16.mxu0 %vm24872_vm7, %v24732_v22  ;;  %20016 = vmatprep.subr.msk.bf16.mxu1 %vm24872_vm7, %v24734_v27 }
 0x8a6   : > { %v18634_v48 = vpop.f32.mrb[18].mxu0 }
 0x8a7   : > { %v18669_v32 = vpop.f32.mrb[18].mxu1  ;;  %v18635_v39 = vpop.f32.mrb[19].mxu0 }
 0x8a8   : > { %v18636_v53 = vadd.f32 %v18635_v39, %v18634_v48  ;;  %v18670_v45 = vpop.f32.mrb[19].mxu1  ;;  %v21709_v48 = vld [vmem:[#allocation17 + $0x468] ss:$16 sps:$4 sm:$0xff]   ;;  %v21717_v39 = vld [vmem:[#allocation17 + $0x48c] ss:$16 sps:$4 sm:$0xff]  }
 0x8a9   : > { %v18671_v43 = vadd.f32 %v18670_v45, %v18669_v32  ;;  %19971 = vmatpush3.bf16.xpose.msk.msra.mxu0 %vm24872_vm7, %v24736_v28  ;;  %20019 = vmatpush3.bf16.xpose.msk.msra.mxu1 %vm24872_vm7, %v24739_v31  ;;  %v21714_v32 = vld [vmem:[#allocation17 + $0x484] ss:$16 sps:$4 sm:$0xff]   ;;  %v21715_v45 = vld [vmem:[#allocation17 + $0x488] ss:$16 sps:$4 sm:$0xff]  }
 0x8aa   : > { %19974 = vmatprep.subr.msk.bf16.mxu0 %vm24872_vm7, %v24744_v36  ;;  %20022 = vmatprep.subr.msk.bf16.mxu1 %vm24872_vm7, %v24746_v40 }
 0x8ab   : > { %v5632_v50 = vadd.f32 %v18671_v43, %v18636_v53  ;;  %v21712_v53 = vld [vmem:[#allocation17 + $0x480] ss:$16 sps:$4 sm:$0xff]   ;;  %v21720_v43 = vld [vmem:[#allocation17 + $0x4a4] ss:$16 sps:$4 sm:$0xff]  }
 0x8ad   : > { %v5635_v61 = vmul.f32 0.00390625, %v5632_v50  ;;  %v21723_v50 = vld [vmem:[#allocation17 + $0x4ac] ss:$16 sps:$4 sm:$0xff]  }
 0x8af   : > { %v5637_v21 = vsub.f32 %v5635_v61, %v5636_v60  ;;  %v21718_v61 = vld [vmem:[#allocation17 + $0x4a0] ss:$16 sps:$4 sm:$0xff]   ;;  %v21721_v60 = vld [vmem:[#allocation17 + $0x4a8] ss:$16 sps:$4 sm:$0xff]  }
 0x8b1   : > { %v5638_v26 = vadd.f32 1e-05, %v5637_v21  ;;  %19977 = vmatpush3.bf16.xpose.msk.msra.mxu0 %vm24872_vm7, %v24748_v42  ;;  %20025 = vmatpush3.bf16.xpose.msk.msra.mxu1 %vm24872_vm7, %v24751_v47  ;;  %v21726_v21 = vld [vmem:[#allocation17 + $0x4c4] ss:$16 sps:$4 sm:$0xff]  }
 0x8b2   : > { %19980 = vmatprep.subr.msk.bf16.mxu0 %vm24872_vm7, %v24756_v51  ;;  %20028 = vmatprep.subr.msk.bf16.mxu1 %vm24872_vm7, %v24758_v55 }
 0x8b3   : > { %23258 = vrsqrt.f32 %v5638_v26  ;;  %v21729_v26 = vld [vmem:[#allocation17 + $0x4cc] ss:$16 sps:$4 sm:$0xff]  }
 0x8b9   : > { %19983 = vmatpush3.bf16.xpose.msk.msra.mxu0 %vm24872_vm7, %v24760_v56  ;;  %20031 = vmatpush3.bf16.xpose.msk.msra.mxu1 %vm24872_vm7, %v24763_v59 }
 0x8ba   : > { %19986 = vmatprep.subr.msk.bf16.mxu0 %vm24872_vm7, %v24768_v2  ;;  %20034 = vmatprep.subr.msk.bf16.mxu1 %vm24872_vm7, %v24770_v9 }
 0x8bd   : > { %v23259_v3 = vpop.eup %23258 }
 0x8be   : > { %18772 = vmatprep.mubr.msk.f32.mxu0 %vm1741_vm6, %v23259_v3  ;;  %18806 = vmatprep.mubr.msk.f32.mxu1 %vm1741_vm6, %v23259_v3 }
 0x8c1   : > { %19989 = vmatpush3.bf16.xpose.msk.msra.mxu0 %vm24872_vm7, %v24772_v10  ;;  %20037 = vmatpush3.bf16.xpose.msk.msra.mxu1 %vm24872_vm7, %v24775_v19 }
 0x8c2   : > { %19992 = vmatprep.subr.msk.bf16.mxu0 %vm24872_vm7, %v26934_v34  ;;  %20040 = vmatprep.subr.msk.bf16.mxu1 %vm24872_vm7, %v26935_v62 }
 0x8c9   : > { %19995 = vmatpush3.bf16.xpose.msk.msra.mxu0 %vm24872_vm7, %v26936_v52  ;;  %20043 = vmatpush3.bf16.xpose.msk.msra.mxu1 %vm24872_vm7, %v26943_v1 }
 0x8ca   : > { %7120 = vmatprep.subr.bf16.mxu0 %v21690_v5  ;;  %7206 = vmatprep.subr.bf16.mxu1 %v21693_v29  ;;  %v21732_v5 = vld [vmem:[#allocation17 + $0x4e4] ss:$16 sps:$4 sm:$0xff]   ;;  %v21730_v29 = vld [vmem:[#allocation17 + $0x4e0] ss:$16 sps:$4 sm:$0xff]  }
 0x8d0   : > { %18773 = vmatmul.mubr.msk.f32.vlgmr.msra.gmra.mrb[22].mxu0 %vm1741_vm6, %v23259_v3  ;;  %18807 = vmatmul.mubr.msk.f32.vlgmr.msra.gmra.mrb[22].mxu1 %vm1741_vm6, %v23259_v3  ;;  %v21724_v3 = vld [vmem:[#allocation17 + $0x4c0] ss:$16 sps:$4 sm:$0xff]  }
 0x8d1   : > { %7121 = vmatpush1.bf16.msra.mxu0 %v21688_v35  ;;  %7207 = vmatpush1.bf16.msra.mxu1 %v21691_v46  ;;  %v21727_v35 = vld [vmem:[#allocation17 + $0x4c8] ss:$16 sps:$4 sm:$0xff]   ;;  %v21735_v46 = vld [vmem:[#allocation17 + $0x4ec] ss:$16 sps:$4 sm:$0xff]  }
 0x8d2   : > { %7122 = vmatprep.subr.bf16.mxu0 %v21696_v54  ;;  %7208 = vmatprep.subr.bf16.mxu1 %v21699_v11  ;;  %v21733_v54 = vld [vmem:[#allocation17 + $0x4e8] ss:$16 sps:$4 sm:$0xff]   ;;  %v21738_v11 = vld [vmem:[#allocation17 + $0x504] ss:$16 sps:$4 sm:$0xff]  }
 0x8d5   : > { %7123 = vmatpush1.bf16.msra.mxu0 %v21694_v49  ;;  %7209 = vmatpush1.bf16.msra.mxu1 %v21697_v24  ;;  %v21741_v49 = vld [vmem:[#allocation17 + $0x50c] ss:$16 sps:$4 sm:$0xff]   ;;  %v21736_v24 = vld [vmem:[#allocation17 + $0x500] ss:$16 sps:$4 sm:$0xff]  }
 0x8d6   : > { %7124 = vmatprep.subr.bf16.mxu0 %v21702_v41  ;;  %7210 = vmatprep.subr.bf16.mxu1 %v21705_v58  ;;  %v21739_v41 = vld [vmem:[#allocation17 + $0x508] ss:$16 sps:$4 sm:$0xff]   ;;  %v21744_v58 = vld [vmem:[#allocation17 + $0x524] ss:$16 sps:$4 sm:$0xff]  }
 0x8d9   : > { %7125 = vmatpush1.bf16.msra.mxu0 %v21700_v25  ;;  %7211 = vmatpush1.bf16.msra.mxu1 %v21703_v12  ;;  %v21747_v25 = vld [vmem:[#allocation17 + $0x52c] ss:$16 sps:$4 sm:$0xff]   ;;  %v21742_v12 = vld [vmem:[#allocation17 + $0x520] ss:$16 sps:$4 sm:$0xff]  }
 0x8da   : > { %7126 = vmatprep.subr.bf16.mxu0 %v21708_v23  ;;  %7212 = vmatprep.subr.bf16.mxu1 %v21711_v38  ;;  %v21745_v23 = vld [vmem:[#allocation17 + $0x528] ss:$16 sps:$4 sm:$0xff]   ;;  %v21750_v38 = vld [vmem:[#allocation17 + $0x544] ss:$16 sps:$4 sm:$0xff]  }
 0x8dd   : > { %7127 = vmatpush1.bf16.msra.mxu0 %v21706_v20  ;;  %7213 = vmatpush1.bf16.msra.mxu1 %v21709_v48  ;;  %v21753_v20 = vld [vmem:[#allocation17 + $0x54c] ss:$16 sps:$4 sm:$0xff]   ;;  %v21748_v48 = vld [vmem:[#allocation17 + $0x540] ss:$16 sps:$4 sm:$0xff]  }
 0x8de   : > { %7128 = vmatprep.subr.bf16.mxu0 %v21714_v32  ;;  %7214 = vmatprep.subr.bf16.mxu1 %v21717_v39  ;;  %v21751_v32 = vld [vmem:[#allocation17 + $0x548] ss:$16 sps:$4 sm:$0xff]   ;;  %v21756_v39 = vld [vmem:[#allocation17 + $0x564] ss:$16 sps:$4 sm:$0xff]  }
 0x8e1   : > { %7129 = vmatpush1.bf16.msra.mxu0 %v21712_v53  ;;  %7215 = vmatpush1.bf16.msra.mxu1 %v21715_v45  ;;  %v21759_v53 = vld [vmem:[#allocation17 + $0x56c] ss:$16 sps:$4 sm:$0xff]   ;;  %v21754_v45 = vld [vmem:[#allocation17 + $0x560] ss:$16 sps:$4 sm:$0xff]  }
 0x8e2   : > { %7130 = vmatprep.subr.bf16.mxu0 %v21720_v43  ;;  %7216 = vmatprep.subr.bf16.mxu1 %v21723_v50  ;;  %v21757_v43 = vld [vmem:[#allocation17 + $0x568] ss:$16 sps:$4 sm:$0xff]   ;;  %v21762_v50 = vld [vmem:[#allocation17 + $0x584] ss:$16 sps:$4 sm:$0xff]  }
 0x8e5   : > { %7131 = vmatpush1.bf16.msra.mxu0 %v21718_v61  ;;  %7217 = vmatpush1.bf16.msra.mxu1 %v21721_v60  ;;  %v21765_v61 = vld [vmem:[#allocation17 + $0x58c] ss:$16 sps:$4 sm:$0xff]   ;;  %v21760_v60 = vld [vmem:[#allocation17 + $0x580] ss:$16 sps:$4 sm:$0xff]  }
 0x8e6   : > { %7132 = vmatprep.subr.bf16.mxu0 %v21726_v21  ;;  %7218 = vmatprep.subr.bf16.mxu1 %v21729_v26  ;;  %v21763_v21 = vld [vmem:[#allocation17 + $0x588] ss:$16 sps:$4 sm:$0xff]   ;;  %v21766_v26 = vld [vmem:[#allocation17 + $0x5a0] ss:$16 sps:$4 sm:$0xff]  }
 0x8e9   : > { %7133 = vmatpush1.bf16.msra.mxu0 %v21724_v3  ;;  %7219 = vmatpush1.bf16.msra.mxu1 %v21727_v35  ;;  %v21768_v3 = vld [vmem:[#allocation17 + $0x5a4] ss:$16 sps:$4 sm:$0xff]   ;;  %v21769_v35 = vld [vmem:[#allocation17 + $0x5a8] ss:$16 sps:$4 sm:$0xff]  }
 0x8ea   : > { %7134 = vmatprep.subr.bf16.mxu0 %v21732_v5  ;;  %7220 = vmatprep.subr.bf16.mxu1 %v21735_v46  ;;  %v21771_v5 = vld [vmem:[#allocation17 + $0x5ac] ss:$16 sps:$4 sm:$0xff]   ;;  %v21774_v46 = vld [vmem:[#allocation17 + $0x5c4] ss:$16 sps:$4 sm:$0xff]  }
 0x8ed   : > { %7135 = vmatpush1.bf16.msra.mxu0 %v21730_v29  ;;  %7221 = vmatpush1.bf16.msra.mxu1 %v21733_v54  ;;  %v21777_v29 = vld [vmem:[#allocation17 + $0x5cc] ss:$16 sps:$4 sm:$0xff]   ;;  %v21772_v54 = vld [vmem:[#allocation17 + $0x5c0] ss:$16 sps:$4 sm:$0xff]  }
 0x8ee   : > { %7136 = vmatprep.subr.bf16.mxu0 %v21738_v11  ;;  %7222 = vmatprep.subr.bf16.mxu1 %v21741_v49  ;;  %v21775_v11 = vld [vmem:[#allocation17 + $0x5c8] ss:$16 sps:$4 sm:$0xff]   ;;  %v21780_v49 = vld [vmem:[#allocation17 + $0x5e4] ss:$16 sps:$4 sm:$0xff]  }
 0x8f1   : > { %7137 = vmatpush1.bf16.msra.mxu0 %v21736_v24  ;;  %7223 = vmatpush1.bf16.msra.mxu1 %v21739_v41  ;;  %v21783_v24 = vld [vmem:[#allocation17 + $0x5ec] ss:$16 sps:$4 sm:$0xff]   ;;  %v21778_v41 = vld [vmem:[#allocation17 + $0x5e0] ss:$16 sps:$4 sm:$0xff]  }
 0x8f2   : > { %7138 = vmatprep.subr.bf16.mxu0 %v21744_v58  ;;  %7224 = vmatprep.subr.bf16.mxu1 %v21747_v25  ;;  %v21781_v58 = vld [vmem:[#allocation17 + $0x5e8] ss:$16 sps:$4 sm:$0xff]   ;;  %v21786_v25 = vld [vmem:[#allocation17 + $0x604] ss:$16 sps:$4 sm:$0xff]  }
 0x8f5   : > { %7139 = vmatpush1.bf16.msra.mxu0 %v21742_v12  ;;  %7225 = vmatpush1.bf16.msra.mxu1 %v21745_v23  ;;  %v21789_v12 = vld [vmem:[#allocation17 + $0x60c] ss:$16 sps:$4 sm:$0xff]  }
 0x8f6   : > { %7140 = vmatprep.subr.bf16.mxu0 %v21750_v38  ;;  %7226 = vmatprep.subr.bf16.mxu1 %v21753_v20 }
 0x8f9   : > { %7141 = vmatpush1.bf16.msra.mxu0 %v21748_v48  ;;  %7227 = vmatpush1.bf16.msra.mxu1 %v21751_v32  ;;  %v5288_v32 = vld [vmem:[#allocation14] sm:$0xf] }
 0x8fa   : > { %7142 = vmatprep.subr.bf16.mxu0 %v21756_v39  ;;  %7228 = vmatprep.subr.bf16.mxu1 %v21759_v53  ;;  %v26947_v39 = vld [vmem:[#allocation69_spill] sm:$0xff] }
 0x8fb   : > { %v5934_v53 = vrot.slane %v5288_v32, %v26947_v39 }
 0x8fd   : > { %7143 = vmatpush1.bf16.msra.mxu0 %v21754_v45  ;;  %7229 = vmatpush1.bf16.msra.mxu1 %v21757_v43  ;;  %v26948_v45 = vld [vmem:[#allocation70_spill] sm:$0xff] }
 0x8fe   : > { %7144 = vmatprep.subr.bf16.mxu0 %v21762_v50  ;;  %7230 = vmatprep.subr.bf16.mxu1 %v21765_v61  ;;  %v5942_v43 = vrot.slane %v5288_v32, %v26948_v45  ;;  %v26949_v50 = vld [vmem:[#allocation67_spill] sm:$0xff] }
 0x8ff   : > { %v5938_v61 = vrot.slane %v5288_v32, %v26949_v50 }
 0x901   : > { %7145 = vmatpush1.bf16.msra.mxu0 %v21760_v60  ;;  %7231 = vmatpush1.bf16.msra.mxu1 %v21763_v21  ;;  %v26950_v60 = vld [vmem:[#allocation68_spill] sm:$0xff] }
 0x902   : > { %7146 = vmatprep.subr.bf16.mxu0 %v21768_v3  ;;  %7232 = vmatprep.subr.bf16.mxu1 %v21771_v5  ;;  %v5946_v21 = vrot.slane %v5288_v32, %v26950_v60 }
 0x905   : > { %7147 = vmatpush1.bf16.msra.mxu0 %v21766_v26  ;;  %7233 = vmatpush1.bf16.msra.mxu1 %v21769_v35 }
 0x906   : > { %7148 = vmatprep.subr.bf16.mxu0 %v21774_v46  ;;  %7234 = vmatprep.subr.bf16.mxu1 %v21777_v29 }
 0x909   : > { %7149 = vmatpush1.bf16.msra.mxu0 %v21772_v54  ;;  %7235 = vmatpush1.bf16.msra.mxu1 %v21775_v11 }
 0x90a   : > { %7150 = vmatprep.subr.bf16.mxu0 %v21780_v49  ;;  %7236 = vmatprep.subr.bf16.mxu1 %v21783_v24 }
 0x90d   : > { %7151 = vmatpush1.bf16.msra.mxu0 %v21778_v41  ;;  %7237 = vmatpush1.bf16.msra.mxu1 %v21781_v58 }
 0x90e   : > { %7163 = vmatprep.subr.bf16.mxu0 %v21786_v25  ;;  %7249 = vmatprep.subr.bf16.mxu1 %v21789_v12 }
 0x963   : > { %v5709_v23 = vpop.f32.mrb[20].mxu0  ;;  %v5780_v38 = vpop.f32.mrb[20].mxu1 }
 0x964   : > { %v5711_v20 = vpop.f32.mrb[21].mxu0  ;;  %v5782_v48 = vpop.f32.mrb[21].mxu1 }
 0x9a3   : > { %v5854_v26 = vpop.f32.mrb[22].mxu0  ;;  %v5925_v3 = vpop.f32.mrb[22].mxu1 }
 0x9a4   : > { %v5951_v35 = vmul.f32 %v5934_v53, %v5854_v26  ;;  %v5953_v5 = vmul.f32 %v5942_v43, %v5925_v3  ;;  %v5856_v46 = vpop.f32.mrb[23].mxu0  ;;  %v5927_v29 = vpop.f32.mrb[23].mxu1  ;;  %v5289_v43 = vld [vmem:[#allocation16] sm:$0xf]  ;;  %v26953_v3 = vld [vmem:[#allocation72_spill] sm:$0xff] }
 0x9a5   : > { %v5952_v54 = vmul.f32 %v5938_v61, %v5856_v46  ;;  %v5954_v11 = vmul.f32 %v5946_v21, %v5927_v29 }
 0x9a6   : > { %v5955_v49 = vmul.f32 %v5951_v35, %v5709_v23  ;;  %v5957_v24 = vmul.f32 %v5953_v5, %v5780_v38  ;;  %v5992_v32 = vrot.slane %v5951_v35, %v26947_v39  ;;  %v6000_v61 = vrot.slane %v5953_v5, %v26947_v39 }
 0x9a7   : > { %v5956_v41 = vmul.f32 %v5952_v54, %v5711_v20  ;;  %v5958_v58 = vmul.f32 %v5954_v11, %v5782_v48  ;;  %v5996_v53 = vrot.slane %v5952_v54, %v26947_v39  ;;  %v6004_v23 = vrot.slane %v5954_v11, %v26947_v39  ;;  %v26952_v20 = vld [vmem:[#allocation53_spill] sm:$0xff] }
 0x9a8   : > { %vm6443_vm15 = vcmp.lt.s32.totalorder %v26952_v20, 4  ;;  %v6005_v48 = vmul.f32 %v5992_v32, %v25304_v4  ;;  %v6009_v21 = vmul.f32 %v5992_v32, %v25308_v37  ;;  %v6007_v54 = vmul.f32 %v6000_v61, %v25310_v57 }
 0x9a9   : > { %v5963_v25 = vcombine.low %v5955_v49, %v5956_v41  ;;  %v5964_v12 = vcombine.low %v5957_v24, %v5958_v58  ;;  %v6011_v11 = vmul.f32 %v6000_v61, %v25312_v6  ;;  %v26955_v49 = vld [vmem:[#allocation74_spill] sm:$0xff] }
 0x9aa   : > { %v6008_v4 = vmul.f32 %v6004_v23, %v26955_v49  ;;  %v26956_v24 = vld [vmem:[#allocation78_spill] sm:$0xff] }
 0x9ab   : > { %v5971_v1 = vrot.slane %v5963_v25, %v26951_v30  ;;  %v5978_v52 = vrot.slane %v5964_v12, %v26951_v30  ;;  %v6012_v37 = vmul.f32 %v6004_v23, %v26956_v24 }
 0x9ad   : > { %v5979_v62 = vcombine.low %v5971_v1, %v5978_v52  ;;  %v6006_v52 = vmul.f32 %v5996_v53, %v26953_v3  ;;  %v26954_v1 = vld [vmem:[#allocation77_spill] sm:$0xff] }
 0x9ae   : > { %v6010_v35 = vmul.f32 %v5996_v53, %v26954_v1 }
 0x9af   : > { %v5986_v26 = vrot.slane %v5979_v62, %v26951_v30 }
 0x9b1   : > { %v5988_v38 = vsub.f32 %v5289_v43, %v5986_v26 }
 0x9b3   : > { %v6021_v46 = vrot.slane %v5988_v38, %v26949_v50  ;;  %v6017_v29 = vrot.slane %v5988_v38, %v26947_v39  ;;  %v6029_v62 = vrot.slane %v5988_v38, %v26950_v60  ;;  %v6025_v5 = vrot.slane %v5988_v38, %v26948_v45  ;;  %v21784_v45 = vld [vmem:[#allocation17 + $0x600] ss:$16 sps:$4 sm:$0xff]  }
 0x9b5   : > { %v6035_v41 = vadd.f32 %v6021_v46, %v6006_v52  ;;  %v6039_v58 = vadd.f32 %v6021_v46, %v6010_v35  ;;  %v6034_v25 = vadd.f32 %v6017_v29, %v6005_v48  ;;  %v6038_v12 = vadd.f32 %v6017_v29, %v6009_v21  ;;  %v21787_v52 = vld [vmem:[#allocation17 + $0x608] ss:$16 sps:$4 sm:$0xff]  }
 0x9b6   : > { %v6037_v32 = vadd.f32 %v6029_v62, %v6008_v4  ;;  %v6041_v53 = vadd.f32 %v6029_v62, %v6012_v37  ;;  %v6036_v43 = vadd.f32 %v6025_v5, %v6007_v54  ;;  %v6040_v26 = vadd.f32 %v6025_v5, %v6011_v11  ;;  %v21792_v5 = vld [vmem:[#allocation17 + $0x624] ss:$16 sps:$4 sm:$0xff]   ;;  %v21795_v54 = vld [vmem:[#allocation17 + $0x62c] ss:$16 sps:$4 sm:$0xff]  }
 0x9b7   : > { %v6043_v3 = vmax.f32 %v6035_v41, 0.0  ;;  %v6047_v1 = vmax.f32 %v6039_v58, 0.0  ;;  %v6042_v30 = vmax.f32 %v6034_v25, 0.0  ;;  %v6046_v38 = vmax.f32 %v6038_v12, 0.0  ;;  %v21793_v58 = vld [vmem:[#allocation17 + $0x628] ss:$16 sps:$4 sm:$0xff]  }
 0x9b8   : > { %v6045_v57 = vmax.f32 %v6037_v32, 0.0  ;;  %v6049_v60 = vmax.f32 %v6041_v53, 0.0  ;;  %v6044_v6 = vmax.f32 %v6036_v43, 0.0  ;;  %v6048_v61 = vmax.f32 %v6040_v26, 0.0  ;;  %v21798_v53 = vld [vmem:[#allocation17 + $0x644] ss:$16 sps:$4 sm:$0xff]  }
 0x9b9   : > { %v6436_v49 = vrot.slane %v6043_v3, 4  ;;  %v6440_v39 = vrot.slane %v6047_v1, 4  ;;  %v6477_v23 = vpack.c.bf16 %v6047_v1, %v6043_v3  ;;  %v6435_v35 = vrot.slane %v6042_v30, 4  ;;  %v21801_v43 = vld [vmem:[#allocation17 + $0x64c] ss:$16 sps:$4 sm:$0xff]  }
 0x9ba   : > { %v6439_v48 = vrot.slane %v6046_v38, 4  ;;  %v6476_v21 = vpack.c.bf16 %v6046_v38, %v6042_v30  ;;  %v6438_v46 = vrot.slane %v6045_v57, 4  ;;  %v6442_v29 = vrot.slane %v6049_v60, 4 }
 0x9bb   : > { %7152 = vmatprep.mubr.bf16.mxu0 %v6477_v23  ;;  %7238 = vmatprep.mubr.bf16.mxu1 %v6477_v23  ;;  %v6479_v62 = vpack.c.bf16 %v6049_v60, %v6045_v57  ;;  %v6437_v11 = vrot.slane %v6044_v6, 4  ;;  %v6441_v4 = vrot.slane %v6048_v61, 4  ;;  %v25596_v24 = vpack.c.bf16 %v6048_v61, %v6044_v6  ;;  %v21790_v60 = vld [vmem:[#allocation17 + $0x620] ss:$16 sps:$4 sm:$0xff]  }
 0x9bc   : > { %7153 = vmatmul.mubr.bf16.vlgmr.msra.gmra.mrb[24].mxu0 %v6476_v21  ;;  %7239 = vmatmul.mubr.bf16.vlgmr.msra.gmra.mrb[24].mxu1 %v6476_v21  ;;  %v6445_v37 = vsel %vm6443_vm15, %v6436_v49, %v6440_v39  ;;  %v6449_v41 = vsel %vm6443_vm15, %v6440_v39, %v6436_v49  ;;  %v6444_v30 = vsel %vm6443_vm15, %v6435_v35, %v6439_v48  ;;  %v21796_v23 = vld [vmem:[#allocation17 + $0x640] ss:$16 sps:$4 sm:$0xff]  }
 0x9bd   : > { %7164 = vmatpush1.bf16.msra.mxu0 %v21784_v45  ;;  %7250 = vmatpush1.bf16.msra.mxu1 %v21787_v52  ;;  %v25604_v25 = vpack.c.bf16 %v6445_v37, %v6449_v41  ;;  %v6448_v12 = vsel %vm6443_vm15, %v6439_v48, %v6435_v35  ;;  %v6447_v32 = vsel %vm6443_vm15, %v6438_v46, %v6442_v29  ;;  %v21799_v52 = vld [vmem:[#allocation17 + $0x648] ss:$16 sps:$4 sm:$0xff]   ;;  %v21804_v35 = vld [vmem:[#allocation17 + $0x664] ss:$16 sps:$4 sm:$0xff]   ;;  %v21807_v48 = vld [vmem:[#allocation17 + $0x66c] ss:$16 sps:$4 sm:$0xff]  }
 0x9be   : > { %7195 = vmatprep.mubr.bf16.mxu0 %v6479_v62  ;;  %7281 = vmatprep.mubr.bf16.mxu1 %v6479_v62  ;;  %v25610_v39 = vpack.c.bf16 %v6444_v30, %v6448_v12  ;;  %v6451_v45 = vsel %vm6443_vm15, %v6442_v29, %v6438_v46  ;;  %v6446_v26 = vsel %vm6443_vm15, %v6437_v11, %v6441_v4  ;;  %v21802_v21 = vld [vmem:[#allocation17 + $0x660] ss:$16 sps:$4 sm:$0xff]   ;;  %v21805_v46 = vld [vmem:[#allocation17 + $0x668] ss:$16 sps:$4 sm:$0xff]   ;;  %v21810_v29 = vld [vmem:[#allocation17 + $0x684] ss:$16 sps:$4 sm:$0xff]  }
 0x9bf   : > { %7165 = vmatprep.subr.bf16.mxu0 %v21792_v5  ;;  %7251 = vmatprep.subr.bf16.mxu1 %v21795_v54  ;;  %v25616_v3 = vpack.c.bf16 %v6447_v32, %v6451_v45  ;;  %v6450_v1 = vsel %vm6443_vm15, %v6441_v4, %v6437_v11  ;;  %v25620_v38 = vpack.c.bf16 %v6449_v41, %v6445_v37  ;;  %v21813_v62 = vld [vmem:[#allocation17 + $0x68c] ss:$16 sps:$4 sm:$0xff]   ;;  %v21808_v5 = vld [vmem:[#allocation17 + $0x680] ss:$16 sps:$4 sm:$0xff]   ;;  %v21811_v54 = vld [vmem:[#allocation17 + $0x688] ss:$16 sps:$4 sm:$0xff]  }
 0x9c0   : > { %v25622_v57 = vpack.c.bf16 %v6446_v26, %v6450_v1  ;;  %v25624_v6 = vpack.c.bf16 %v6448_v12, %v6444_v30  ;;  %v25626_v61 = vpack.c.bf16 %v6451_v45, %v6447_v32  ;;  %v25628_v49 = vpack.c.bf16 %v6450_v1, %v6446_v26  ;;  %v21816_v11 = vld [vmem:[#allocation17 + $0x6a4] ss:$16 sps:$4 sm:$0xff]   ;;  %v21819_v4 = vld [vmem:[#allocation17 + $0x6ac] ss:$16 sps:$4 sm:$0xff]   ;;  %v21814_v37 = vld [vmem:[#allocation17 + $0x6a0] ss:$16 sps:$4 sm:$0xff]  }
 0x9c1   : > { %7166 = vmatpush1.bf16.msra.mxu0 %v21790_v60  ;;  %7252 = vmatpush1.bf16.msra.mxu1 %v21793_v58  ;;  %v21817_v41 = vld [vmem:[#allocation17 + $0x6a8] ss:$16 sps:$4 sm:$0xff]   ;;  %v21822_v30 = vld [vmem:[#allocation17 + $0x6c4] ss:$16 sps:$4 sm:$0xff]   ;;  %v21825_v60 = vld [vmem:[#allocation17 + $0x6cc] ss:$16 sps:$4 sm:$0xff]  }
 0x9c2   : > { %7167 = vmatprep.subr.bf16.mxu0 %v21798_v53  ;;  %7253 = vmatprep.subr.bf16.mxu1 %v21801_v43  ;;  %v21820_v58 = vld [vmem:[#allocation17 + $0x6c0] ss:$16 sps:$4 sm:$0xff]   ;;  %v21823_v12 = vld [vmem:[#allocation17 + $0x6c8] ss:$16 sps:$4 sm:$0xff]   ;;  %v21828_v32 = vld [vmem:[#allocation17 + $0x6e4] ss:$16 sps:$4 sm:$0xff]  }
 0x9c3   : > { %v21831_v53 = vld [vmem:[#allocation17 + $0x6ec] ss:$16 sps:$4 sm:$0xff]   ;;  %v21826_v43 = vld [vmem:[#allocation17 + $0x6e0] ss:$16 sps:$4 sm:$0xff]   ;;  %v21829_v45 = vld [vmem:[#allocation17 + $0x6e8] ss:$16 sps:$4 sm:$0xff]  }
 0x9c4   : > { %v21834_v26 = vld [vmem:[#allocation17 + $0x704] ss:$16 sps:$4 sm:$0xff]   ;;  %v21837_v1 = vld [vmem:[#allocation17 + $0x70c] ss:$16 sps:$4 sm:$0xff]   ;;  %vm26060_vm15 = vmpackc.low %vm23970_vm11, %vm982_vm3 }
 0x9c5   : > { %7168 = vmatpush1.bf16.msra.mxu0 %v21796_v23  ;;  %7254 = vmatpush1.bf16.msra.mxu1 %v21799_v52  ;;  %v21832_v23 = vld [vmem:[#allocation17 + $0x700] ss:$16 sps:$4 sm:$0xff]   ;;  %v21835_v52 = vld [vmem:[#allocation17 + $0x708] ss:$16 sps:$4 sm:$0xff]  }
 0x9c6   : > { %7169 = vmatprep.subr.bf16.mxu0 %v21804_v35  ;;  %7255 = vmatprep.subr.bf16.mxu1 %v21807_v48  ;;  %v21840_v35 = vld [vmem:[#allocation17 + $0x724] ss:$16 sps:$4 sm:$0xff]   ;;  %v21843_v48 = vld [vmem:[#allocation17 + $0x72c] ss:$16 sps:$4 sm:$0xff]  }
 0x9c9   : > { %7170 = vmatpush1.bf16.msra.mxu0 %v21802_v21  ;;  %7256 = vmatpush1.bf16.msra.mxu1 %v21805_v46  ;;  %v21838_v21 = vld [vmem:[#allocation17 + $0x720] ss:$16 sps:$4 sm:$0xff]   ;;  %v21841_v46 = vld [vmem:[#allocation17 + $0x728] ss:$16 sps:$4 sm:$0xff]  }
 0x9ca   : > { %7171 = vmatprep.subr.bf16.mxu0 %v21810_v29  ;;  %7257 = vmatprep.subr.bf16.mxu1 %v21813_v62  ;;  %v21846_v29 = vld [vmem:[#allocation17 + $0x744] ss:$16 sps:$4 sm:$0xff]   ;;  %v21849_v62 = vld [vmem:[#allocation17 + $0x74c] ss:$16 sps:$4 sm:$0xff]  }
 0x9cd   : > { %7172 = vmatpush1.bf16.msra.mxu0 %v21808_v5  ;;  %7258 = vmatpush1.bf16.msra.mxu1 %v21811_v54  ;;  %v21844_v5 = vld [vmem:[#allocation17 + $0x740] ss:$16 sps:$4 sm:$0xff]   ;;  %v21847_v54 = vld [vmem:[#allocation17 + $0x748] ss:$16 sps:$4 sm:$0xff]  }
 0x9ce   : > { %7173 = vmatprep.subr.bf16.mxu0 %v21816_v11  ;;  %7259 = vmatprep.subr.bf16.mxu1 %v21819_v4  ;;  %v21852_v11 = vld [vmem:[#allocation17 + $0x764] ss:$16 sps:$4 sm:$0xff]   ;;  %v21855_v4 = vld [vmem:[#allocation17 + $0x76c] ss:$16 sps:$4 sm:$0xff]  }
 0x9d1   : > { %7174 = vmatpush1.bf16.msra.mxu0 %v21814_v37  ;;  %7260 = vmatpush1.bf16.msra.mxu1 %v21817_v41  ;;  %v21850_v37 = vld [vmem:[#allocation17 + $0x760] ss:$16 sps:$4 sm:$0xff]   ;;  %v21853_v41 = vld [vmem:[#allocation17 + $0x768] ss:$16 sps:$4 sm:$0xff]  }
 0x9d2   : > { %7175 = vmatprep.subr.bf16.mxu0 %v21822_v30  ;;  %7261 = vmatprep.subr.bf16.mxu1 %v21825_v60  ;;  %v21858_v30 = vld [vmem:[#allocation17 + $0x784] ss:$16 sps:$4 sm:$0xff]   ;;  %v21861_v60 = vld [vmem:[#allocation17 + $0x78c] ss:$16 sps:$4 sm:$0xff]  }
 0x9d5   : > { %7176 = vmatpush1.bf16.msra.mxu0 %v21820_v58  ;;  %7262 = vmatpush1.bf16.msra.mxu1 %v21823_v12  ;;  %v21856_v58 = vld [vmem:[#allocation17 + $0x780] ss:$16 sps:$4 sm:$0xff]   ;;  %v21859_v12 = vld [vmem:[#allocation17 + $0x788] ss:$16 sps:$4 sm:$0xff]  }
 0x9d6   : > { %7177 = vmatprep.subr.bf16.mxu0 %v21828_v32  ;;  %7263 = vmatprep.subr.bf16.mxu1 %v21831_v53  ;;  %v21864_v32 = vld [vmem:[#allocation17 + $0x7a4] ss:$16 sps:$4 sm:$0xff]   ;;  %v21867_v53 = vld [vmem:[#allocation17 + $0x7ac] ss:$16 sps:$4 sm:$0xff]  }
 0x9d9   : > { %7178 = vmatpush1.bf16.msra.mxu0 %v21826_v43  ;;  %7264 = vmatpush1.bf16.msra.mxu1 %v21829_v45  ;;  %v21862_v43 = vld [vmem:[#allocation17 + $0x7a0] ss:$16 sps:$4 sm:$0xff]   ;;  %v21865_v45 = vld [vmem:[#allocation17 + $0x7a8] ss:$16 sps:$4 sm:$0xff]  }
 0x9da   : > { %7179 = vmatprep.subr.bf16.mxu0 %v21834_v26  ;;  %7265 = vmatprep.subr.bf16.mxu1 %v21837_v1  ;;  %v21870_v26 = vld [vmem:[#allocation17 + $0x7c4] ss:$16 sps:$4 sm:$0xff]   ;;  %v21873_v1 = vld [vmem:[#allocation17 + $0x7cc] ss:$16 sps:$4 sm:$0xff]  }
 0x9dd   : > { %7180 = vmatpush1.bf16.msra.mxu0 %v21832_v23  ;;  %7266 = vmatpush1.bf16.msra.mxu1 %v21835_v52  ;;  %v21868_v23 = vld [vmem:[#allocation17 + $0x7c0] ss:$16 sps:$4 sm:$0xff]   ;;  %v21871_v52 = vld [vmem:[#allocation17 + $0x7c8] ss:$16 sps:$4 sm:$0xff]  }
 0x9de   : > { %7181 = vmatprep.subr.bf16.mxu0 %v21840_v35  ;;  %7267 = vmatprep.subr.bf16.mxu1 %v21843_v48  ;;  %v21876_v35 = vld [vmem:[#allocation17 + $0x7e4] ss:$16 sps:$4 sm:$0xff]   ;;  %v21879_v48 = vld [vmem:[#allocation17 + $0x7ec] ss:$16 sps:$4 sm:$0xff]  }
 0x9e1   : > { %7182 = vmatpush1.bf16.msra.mxu0 %v21838_v21  ;;  %7268 = vmatpush1.bf16.msra.mxu1 %v21841_v46  ;;  %v6452_v21 = vadd.s32 4294967292, %v26952_v20  ;;  %v21874_v46 = vld [vmem:[#allocation17 + $0x7e0] ss:$16 sps:$4 sm:$0xff]  }
 0x9e2   : > { %7183 = vmatprep.subr.bf16.mxu0 %v21846_v29  ;;  %7269 = vmatprep.subr.bf16.mxu1 %v21849_v62  ;;  %v21877_v29 = vld [vmem:[#allocation17 + $0x7e8] ss:$16 sps:$4 sm:$0xff]   ;;  %v21882_v62 = vld [vmem:[#allocation17 + $0x4] ss:$16 sps:$4 sm:$0xff]  }
 0x9e3   : > { %vm6454_vm0 = vcmp.ge.s32.totalorder %v6452_v21, 0  ;;  %v21910_v21 = vld [vmem:[#allocation17 + $0xa0] ss:$16 sps:$4 sm:$0xff]  }
 0x9e4   : > { %vm25632_vm1 = vmpackc.low %vm23970_vm11, %vm6454_vm0 }
 0x9e5   : > { %7184 = vmatpush1.bf16.msra.mxu0 %v21844_v5  ;;  %7270 = vmatpush1.bf16.msra.mxu1 %v21847_v54  ;;  %v21885_v5 = vld [vmem:[#allocation17 + $0xc] ss:$16 sps:$4 sm:$0xff]   ;;  %v21880_v54 = vld [vmem:[#allocation17] ss:$16 sps:$4 sm:$0xff]  }
 0x9e6   : > { %7185 = vmatprep.subr.bf16.mxu0 %v21852_v11  ;;  %7271 = vmatprep.subr.bf16.mxu1 %v21855_v4  ;;  %v21883_v11 = vld [vmem:[#allocation17 + $0x8] ss:$16 sps:$4 sm:$0xff]   ;;  %v22092_v4 = vld [vmem:[#allocation17 + $0x864] ss:$16 sps:$4 sm:$0xff]  }
 0x9e9   : > { %7186 = vmatpush1.bf16.msra.mxu0 %v21850_v37  ;;  %7272 = vmatpush1.bf16.msra.mxu1 %v21853_v41  ;;  %v21888_v37 = vld [vmem:[#allocation17 + $0x24] ss:$16 sps:$4 sm:$0xff]   ;;  %v21891_v41 = vld [vmem:[#allocation17 + $0x2c] ss:$16 sps:$4 sm:$0xff]  }
 0x9ea   : > { %7187 = vmatprep.subr.bf16.mxu0 %v21858_v30  ;;  %7273 = vmatprep.subr.bf16.mxu1 %v21861_v60  ;;  %v21886_v30 = vld [vmem:[#allocation17 + $0x20] ss:$16 sps:$4 sm:$0xff]   ;;  %v21889_v60 = vld [vmem:[#allocation17 + $0x28] ss:$16 sps:$4 sm:$0xff]  }
 0x9ed   : > { %7188 = vmatpush1.bf16.msra.mxu0 %v21856_v58  ;;  %7274 = vmatpush1.bf16.msra.mxu1 %v21859_v12  ;;  %v21894_v58 = vld [vmem:[#allocation17 + $0x44] ss:$16 sps:$4 sm:$0xff]   ;;  %v21897_v12 = vld [vmem:[#allocation17 + $0x4c] ss:$16 sps:$4 sm:$0xff]  }
 0x9ee   : > { %7189 = vmatprep.subr.bf16.mxu0 %v21864_v32  ;;  %7275 = vmatprep.subr.bf16.mxu1 %v21867_v53  ;;  %v21892_v32 = vld [vmem:[#allocation17 + $0x40] ss:$16 sps:$4 sm:$0xff]   ;;  %v21900_v53 = vld [vmem:[#allocation17 + $0x64] ss:$16 sps:$4 sm:$0xff]  }
 0x9f1   : > { %7190 = vmatpush1.bf16.msra.mxu0 %v21862_v43  ;;  %7276 = vmatpush1.bf16.msra.mxu1 %v21865_v45  ;;  %v21903_v43 = vld [vmem:[#allocation17 + $0x6c] ss:$16 sps:$4 sm:$0xff]   ;;  %v21898_v45 = vld [vmem:[#allocation17 + $0x60] ss:$16 sps:$4 sm:$0xff]  }
 0x9f2   : > { %7191 = vmatprep.subr.bf16.mxu0 %v21870_v26  ;;  %7277 = vmatprep.subr.bf16.mxu1 %v21873_v1  ;;  %v21901_v26 = vld [vmem:[#allocation17 + $0x68] ss:$16 sps:$4 sm:$0xff]   ;;  %v21906_v1 = vld [vmem:[#allocation17 + $0x84] ss:$16 sps:$4 sm:$0xff]  }
 0x9f5   : > { %7192 = vmatpush1.bf16.msra.mxu0 %v21868_v23  ;;  %7278 = vmatpush1.bf16.msra.mxu1 %v21871_v52  ;;  %v21904_v23 = vld [vmem:[#allocation17 + $0x80] ss:$16 sps:$4 sm:$0xff]   ;;  %v21907_v52 = vld [vmem:[#allocation17 + $0x88] ss:$16 sps:$4 sm:$0xff]  }
 0x9f6   : > { %7193 = vmatprep.subr.bf16.mxu0 %v21876_v35  ;;  %7279 = vmatprep.subr.bf16.mxu1 %v21879_v48  ;;  %v21912_v35 = vld [vmem:[#allocation17 + $0xa4] ss:$16 sps:$4 sm:$0xff]   ;;  %v21915_v48 = vld [vmem:[#allocation17 + $0xac] ss:$16 sps:$4 sm:$0xff]  }
 0x9f9   : > { %7194 = vmatpush1.bf16.msra.mxu0 %v21874_v46  ;;  %7280 = vmatpush1.bf16.msra.mxu1 %v21877_v29  ;;  %v21913_v46 = vld [vmem:[#allocation17 + $0xa8] ss:$16 sps:$4 sm:$0xff]   ;;  %v21918_v29 = vld [vmem:[#allocation17 + $0xc4] ss:$16 sps:$4 sm:$0xff]  }
 0x9fa   : > { %7932 = vmatprep.subr.bf16.mxu0 %v21882_v62  ;;  %8018 = vmatprep.subr.bf16.mxu1 %v21885_v5  ;;  %v21921_v62 = vld [vmem:[#allocation17 + $0xcc] ss:$16 sps:$4 sm:$0xff]   ;;  %v21916_v5 = vld [vmem:[#allocation17 + $0xc0] ss:$16 sps:$4 sm:$0xff]  }
 0x9fc   : > { %7196 = vmatmul.mubr.bf16.vlgmr.msra.gmra.mrb[24].mxu0 %v25596_v24  ;;  %7282 = vmatmul.mubr.bf16.vlgmr.msra.gmra.mrb[24].mxu1 %v25596_v24  ;;  %v21895_v24 = vld [vmem:[#allocation17 + $0x48] ss:$16 sps:$4 sm:$0xff]  }
 0x9fd   : > { %7933 = vmatpush1.bf16.msra.mxu0 %v21880_v54  ;;  %17042 = vmatprep.mubr.msk.bf16.mxu0 %vm25632_vm1, %v25604_v25  ;;  %v21919_v54 = vld [vmem:[#allocation17 + $0xc8] ss:$16 sps:$4 sm:$0xff]  }
 0x9fe   : > { %8019 = vmatpush1.bf16.msra.mxu1 %v21883_v11  ;;  %17054 = vmatprep.mubr.msk.bf16.mxu1 %vm25632_vm1, %v25604_v25  ;;  %v21909_v25 = vld [vmem:[#allocation17 + $0x8c] ss:$16 sps:$4 sm:$0xff]   ;;  %v21924_v11 = vld [vmem:[#allocation17 + $0xe4] ss:$16 sps:$4 sm:$0xff]  }
 0x9ff   : > { %7934 = vmatprep.subr.bf16.mxu0 %v21888_v37  ;;  %8020 = vmatprep.subr.bf16.mxu1 %v21891_v41  ;;  %v21927_v37 = vld [vmem:[#allocation17 + $0xec] ss:$16 sps:$4 sm:$0xff]   ;;  %v21922_v41 = vld [vmem:[#allocation17 + $0xe0] ss:$16 sps:$4 sm:$0xff]  }
 0xa01   : > { %7935 = vmatpush1.bf16.msra.mxu0 %v21886_v30  ;;  %v21925_v30 = vld [vmem:[#allocation17 + $0xe8] ss:$16 sps:$4 sm:$0xff]  }
 0xa02   : > { %8021 = vmatpush1.bf16.msra.mxu1 %v21889_v60  ;;  %7936 = vmatprep.subr.bf16.mxu0 %v21894_v58  ;;  %v21930_v60 = vld [vmem:[#allocation17 + $0x104] ss:$16 sps:$4 sm:$0xff]   ;;  %v21933_v58 = vld [vmem:[#allocation17 + $0x10c] ss:$16 sps:$4 sm:$0xff]  }
 0xa03   : > { %8022 = vmatprep.subr.bf16.mxu1 %v21897_v12  ;;  %v21928_v12 = vld [vmem:[#allocation17 + $0x100] ss:$16 sps:$4 sm:$0xff]  }
 0xa05   : > { %7937 = vmatpush1.bf16.msra.mxu0 %v21892_v32  ;;  %v21931_v32 = vld [vmem:[#allocation17 + $0x108] ss:$16 sps:$4 sm:$0xff]  }
 0xa06   : > { %8023 = vmatpush1.bf16.msra.mxu1 %v21895_v24  ;;  %7938 = vmatprep.subr.bf16.mxu0 %v21900_v53  ;;  %v21936_v24 = vld [vmem:[#allocation17 + $0x124] ss:$16 sps:$4 sm:$0xff]   ;;  %v21939_v53 = vld [vmem:[#allocation17 + $0x12c] ss:$16 sps:$4 sm:$0xff]  }
 0xa07   : > { %8024 = vmatprep.subr.bf16.mxu1 %v21903_v43  ;;  %v21934_v43 = vld [vmem:[#allocation17 + $0x120] ss:$16 sps:$4 sm:$0xff]  }
 0xa09   : > { %7939 = vmatpush1.bf16.msra.mxu0 %v21898_v45  ;;  %v21937_v45 = vld [vmem:[#allocation17 + $0x128] ss:$16 sps:$4 sm:$0xff]  }
 0xa0a   : > { %8025 = vmatpush1.bf16.msra.mxu1 %v21901_v26  ;;  %7940 = vmatprep.subr.bf16.mxu0 %v21906_v1  ;;  %v21942_v26 = vld [vmem:[#allocation17 + $0x144] ss:$16 sps:$4 sm:$0xff]   ;;  %v21945_v1 = vld [vmem:[#allocation17 + $0x14c] ss:$16 sps:$4 sm:$0xff]  }
 0xa0b   : > { %8026 = vmatprep.subr.bf16.mxu1 %v21909_v25  ;;  %v21940_v25 = vld [vmem:[#allocation17 + $0x140] ss:$16 sps:$4 sm:$0xff]  }
 0xa0d   : > { %7941 = vmatpush1.bf16.msra.mxu0 %v21904_v23  ;;  %v21943_v23 = vld [vmem:[#allocation17 + $0x148] ss:$16 sps:$4 sm:$0xff]  }
 0xa0e   : > { %8027 = vmatpush1.bf16.msra.mxu1 %v21907_v52  ;;  %7942 = vmatprep.subr.bf16.mxu0 %v21912_v35  ;;  %v21948_v52 = vld [vmem:[#allocation17 + $0x164] ss:$16 sps:$4 sm:$0xff]   ;;  %v21951_v35 = vld [vmem:[#allocation17 + $0x16c] ss:$16 sps:$4 sm:$0xff]  }
 0xa0f   : > { %8028 = vmatprep.subr.bf16.mxu1 %v21915_v48  ;;  %v21946_v48 = vld [vmem:[#allocation17 + $0x160] ss:$16 sps:$4 sm:$0xff]  }
 0xa11   : > { %7943 = vmatpush1.bf16.msra.mxu0 %v21910_v21  ;;  %v21949_v21 = vld [vmem:[#allocation17 + $0x168] ss:$16 sps:$4 sm:$0xff]  }
 0xa12   : > { %8029 = vmatpush1.bf16.msra.mxu1 %v21913_v46  ;;  %7944 = vmatprep.subr.bf16.mxu0 %v21918_v29  ;;  %v21954_v46 = vld [vmem:[#allocation17 + $0x184] ss:$16 sps:$4 sm:$0xff]   ;;  %v21957_v29 = vld [vmem:[#allocation17 + $0x18c] ss:$16 sps:$4 sm:$0xff]  }
 0xa13   : > { %8030 = vmatprep.subr.bf16.mxu1 %v21921_v62  ;;  %v21952_v62 = vld [vmem:[#allocation17 + $0x180] ss:$16 sps:$4 sm:$0xff]  }
 0xa15   : > { %7945 = vmatpush1.bf16.msra.mxu0 %v21916_v5  ;;  %v21955_v5 = vld [vmem:[#allocation17 + $0x188] ss:$16 sps:$4 sm:$0xff]  }
 0xa16   : > { %8031 = vmatpush1.bf16.msra.mxu1 %v21919_v54  ;;  %7946 = vmatprep.subr.bf16.mxu0 %v21924_v11  ;;  %v21960_v54 = vld [vmem:[#allocation17 + $0x1a4] ss:$16 sps:$4 sm:$0xff]   ;;  %v21963_v11 = vld [vmem:[#allocation17 + $0x1ac] ss:$16 sps:$4 sm:$0xff]  }
 0xa17   : > { %8032 = vmatprep.subr.bf16.mxu1 %v21927_v37  ;;  %v21958_v37 = vld [vmem:[#allocation17 + $0x1a0] ss:$16 sps:$4 sm:$0xff]  }
 0xa19   : > { %7947 = vmatpush1.bf16.msra.mxu0 %v21922_v41  ;;  %v21961_v41 = vld [vmem:[#allocation17 + $0x1a8] ss:$16 sps:$4 sm:$0xff]  }
 0xa1a   : > { %8033 = vmatpush1.bf16.msra.mxu1 %v21925_v30  ;;  %7948 = vmatprep.subr.bf16.mxu0 %v21930_v60  ;;  %v21966_v30 = vld [vmem:[#allocation17 + $0x1c4] ss:$16 sps:$4 sm:$0xff]   ;;  %v21969_v60 = vld [vmem:[#allocation17 + $0x1cc] ss:$16 sps:$4 sm:$0xff]  }
 0xa1b   : > { %8034 = vmatprep.subr.bf16.mxu1 %v21933_v58  ;;  %v21964_v58 = vld [vmem:[#allocation17 + $0x1c0] ss:$16 sps:$4 sm:$0xff]  }
 0xa1d   : > { %7949 = vmatpush1.bf16.msra.mxu0 %v21928_v12  ;;  %v21967_v12 = vld [vmem:[#allocation17 + $0x1c8] ss:$16 sps:$4 sm:$0xff]  }
 0xa1e   : > { %8035 = vmatpush1.bf16.msra.mxu1 %v21931_v32  ;;  %7950 = vmatprep.subr.bf16.mxu0 %v21936_v24  ;;  %v21972_v32 = vld [vmem:[#allocation17 + $0x1e4] ss:$16 sps:$4 sm:$0xff]   ;;  %v21975_v24 = vld [vmem:[#allocation17 + $0x1ec] ss:$16 sps:$4 sm:$0xff]  }
 0xa1f   : > { %8036 = vmatprep.subr.bf16.mxu1 %v21939_v53  ;;  %v21970_v53 = vld [vmem:[#allocation17 + $0x1e0] ss:$16 sps:$4 sm:$0xff]  }
 0xa21   : > { %7951 = vmatpush1.bf16.msra.mxu0 %v21934_v43  ;;  %v21973_v43 = vld [vmem:[#allocation17 + $0x1e8] ss:$16 sps:$4 sm:$0xff]  }
 0xa22   : > { %8037 = vmatpush1.bf16.msra.mxu1 %v21937_v45  ;;  %7952 = vmatprep.subr.bf16.mxu0 %v21942_v26  ;;  %v21978_v45 = vld [vmem:[#allocation17 + $0x204] ss:$16 sps:$4 sm:$0xff]   ;;  %v21981_v26 = vld [vmem:[#allocation17 + $0x20c] ss:$16 sps:$4 sm:$0xff]  }
 0xa23   : > { %8038 = vmatprep.subr.bf16.mxu1 %v21945_v1  ;;  %v21976_v1 = vld [vmem:[#allocation17 + $0x200] ss:$16 sps:$4 sm:$0xff]  }
 0xa25   : > { %7953 = vmatpush1.bf16.msra.mxu0 %v21940_v25  ;;  %v21979_v25 = vld [vmem:[#allocation17 + $0x208] ss:$16 sps:$4 sm:$0xff]  }
 0xa26   : > { %8039 = vmatpush1.bf16.msra.mxu1 %v21943_v23  ;;  %7954 = vmatprep.subr.bf16.mxu0 %v21948_v52  ;;  %v21984_v23 = vld [vmem:[#allocation17 + $0x224] ss:$16 sps:$4 sm:$0xff]   ;;  %v21987_v52 = vld [vmem:[#allocation17 + $0x22c] ss:$16 sps:$4 sm:$0xff]  }
 0xa27   : > { %8040 = vmatprep.subr.bf16.mxu1 %v21951_v35  ;;  %v21982_v35 = vld [vmem:[#allocation17 + $0x220] ss:$16 sps:$4 sm:$0xff]  }
 0xa29   : > { %7955 = vmatpush1.bf16.msra.mxu0 %v21946_v48  ;;  %v21985_v48 = vld [vmem:[#allocation17 + $0x228] ss:$16 sps:$4 sm:$0xff]  }
 0xa2a   : > { %8041 = vmatpush1.bf16.msra.mxu1 %v21949_v21  ;;  %7956 = vmatprep.subr.bf16.mxu0 %v21954_v46  ;;  %v21990_v21 = vld [vmem:[#allocation17 + $0x244] ss:$16 sps:$4 sm:$0xff]   ;;  %v21993_v46 = vld [vmem:[#allocation17 + $0x24c] ss:$16 sps:$4 sm:$0xff]  }
 0xa2b   : > { %8042 = vmatprep.subr.bf16.mxu1 %v21957_v29  ;;  %v21988_v29 = vld [vmem:[#allocation17 + $0x240] ss:$16 sps:$4 sm:$0xff]  }
 0xa2d   : > { %7957 = vmatpush1.bf16.msra.mxu0 %v21952_v62  ;;  %v21996_v62 = vld [vmem:[#allocation17 + $0x264] ss:$16 sps:$4 sm:$0xff]  }
 0xa2e   : > { %8043 = vmatpush1.bf16.msra.mxu1 %v21955_v5  ;;  %7958 = vmatprep.subr.bf16.mxu0 %v21960_v54  ;;  %v21999_v5 = vld [vmem:[#allocation17 + $0x26c] ss:$16 sps:$4 sm:$0xff]   ;;  %v21994_v54 = vld [vmem:[#allocation17 + $0x260] ss:$16 sps:$4 sm:$0xff]  }
 0xa2f   : > { %8044 = vmatprep.subr.bf16.mxu1 %v21963_v11  ;;  %v21997_v11 = vld [vmem:[#allocation17 + $0x268] ss:$16 sps:$4 sm:$0xff]  }
 0xa31   : > { %7959 = vmatpush1.bf16.msra.mxu0 %v21958_v37  ;;  %v22002_v37 = vld [vmem:[#allocation17 + $0x284] ss:$16 sps:$4 sm:$0xff]  }
 0xa32   : > { %8045 = vmatpush1.bf16.msra.mxu1 %v21961_v41  ;;  %7960 = vmatprep.subr.bf16.mxu0 %v21966_v30  ;;  %v22005_v41 = vld [vmem:[#allocation17 + $0x28c] ss:$16 sps:$4 sm:$0xff]   ;;  %v22003_v30 = vld [vmem:[#allocation17 + $0x288] ss:$16 sps:$4 sm:$0xff]  }
 0xa33   : > { %8046 = vmatprep.subr.bf16.mxu1 %v21969_v60  ;;  %v22008_v60 = vld [vmem:[#allocation17 + $0x2a4] ss:$16 sps:$4 sm:$0xff]  }
 0xa35   : > { %7961 = vmatpush1.bf16.msra.mxu0 %v21964_v58  ;;  %v22011_v58 = vld [vmem:[#allocation17 + $0x2ac] ss:$16 sps:$4 sm:$0xff]  }
 0xa36   : > { %8047 = vmatpush1.bf16.msra.mxu1 %v21967_v12  ;;  %7962 = vmatprep.subr.bf16.mxu0 %v21972_v32  ;;  %v22006_v12 = vld [vmem:[#allocation17 + $0x2a0] ss:$16 sps:$4 sm:$0xff]   ;;  %v22009_v32 = vld [vmem:[#allocation17 + $0x2a8] ss:$16 sps:$4 sm:$0xff]  }
 0xa37   : > { %8048 = vmatprep.subr.bf16.mxu1 %v21975_v24  ;;  %v22014_v24 = vld [vmem:[#allocation17 + $0x2c4] ss:$16 sps:$4 sm:$0xff]  }
 0xa39   : > { %7963 = vmatpush1.bf16.msra.mxu0 %v21970_v53  ;;  %v22017_v53 = vld [vmem:[#allocation17 + $0x2cc] ss:$16 sps:$4 sm:$0xff]  }
 0xa3a   : > { %8049 = vmatpush1.bf16.msra.mxu1 %v21973_v43  ;;  %7975 = vmatprep.subr.bf16.mxu0 %v21978_v45  ;;  %v22012_v43 = vld [vmem:[#allocation17 + $0x2c0] ss:$16 sps:$4 sm:$0xff]   ;;  %v22015_v45 = vld [vmem:[#allocation17 + $0x2c8] ss:$16 sps:$4 sm:$0xff]  }
 0xa3b   : > { %8061 = vmatprep.subr.bf16.mxu1 %v21981_v26  ;;  %v22020_v26 = vld [vmem:[#allocation17 + $0x2e4] ss:$16 sps:$4 sm:$0xff]  }
 0xa3c   : > { %17045 = vmatmul.mubr.msk.bf16.vlgmr.msra.gmra.mrb[24].mxu0 %vm25632_vm1, %v25610_v39 }
 0xa3d   : > { %17057 = vmatmul.mubr.msk.bf16.vlgmr.msra.gmra.mrb[24].mxu1 %vm25632_vm1, %v25610_v39  ;;  %7976 = vmatpush1.bf16.msra.mxu0 %v21976_v1  ;;  %v21991_v39 = vld [vmem:[#allocation17 + $0x248] ss:$16 sps:$4 sm:$0xff]   ;;  %v22023_v1 = vld [vmem:[#allocation17 + $0x2ec] ss:$16 sps:$4 sm:$0xff]  }
 0xa3e   : > { %17048 = vmatprep.mubr.msk.bf16.mxu0 %vm25632_vm1, %v25616_v3  ;;  %8062 = vmatpush1.bf16.msra.mxu1 %v21979_v25  ;;  %v22018_v25 = vld [vmem:[#allocation17 + $0x2e0] ss:$16 sps:$4 sm:$0xff]  }
 0xa3f   : > { %17060 = vmatprep.mubr.msk.bf16.mxu1 %vm25632_vm1, %v25616_v3  ;;  %7977 = vmatprep.subr.bf16.mxu0 %v21984_v23  ;;  %v22000_v3 = vld [vmem:[#allocation17 + $0x280] ss:$16 sps:$4 sm:$0xff]   ;;  %v22021_v23 = vld [vmem:[#allocation17 + $0x2e8] ss:$16 sps:$4 sm:$0xff]  }
 0xa40   : > { %8063 = vmatprep.subr.bf16.mxu1 %v21987_v52  ;;  %v22026_v52 = vld [vmem:[#allocation17 + $0x304] ss:$16 sps:$4 sm:$0xff]  }
 0xa41   : > { %7978 = vmatpush1.bf16.msra.mxu0 %v21982_v35  ;;  %v22029_v35 = vld [vmem:[#allocation17 + $0x30c] ss:$16 sps:$4 sm:$0xff]  }
 0xa42   : > { %8064 = vmatpush1.bf16.msra.mxu1 %v21985_v48  ;;  %7979 = vmatprep.subr.bf16.mxu0 %v21990_v21  ;;  %v22024_v48 = vld [vmem:[#allocation17 + $0x300] ss:$16 sps:$4 sm:$0xff]   ;;  %v22027_v21 = vld [vmem:[#allocation17 + $0x308] ss:$16 sps:$4 sm:$0xff]  }
 0xa43   : > { %8065 = vmatprep.subr.bf16.mxu1 %v21993_v46  ;;  %v22032_v46 = vld [vmem:[#allocation17 + $0x324] ss:$16 sps:$4 sm:$0xff]  }
 0xa45   : > { %7980 = vmatpush1.bf16.msra.mxu0 %v21988_v29  ;;  %v22035_v29 = vld [vmem:[#allocation17 + $0x32c] ss:$16 sps:$4 sm:$0xff]  }
 0xa46   : > { %8066 = vmatpush1.bf16.msra.mxu1 %v21991_v39  ;;  %7981 = vmatprep.subr.bf16.mxu0 %v21996_v62  ;;  %v22030_v39 = vld [vmem:[#allocation17 + $0x320] ss:$16 sps:$4 sm:$0xff]   ;;  %v22033_v62 = vld [vmem:[#allocation17 + $0x328] ss:$16 sps:$4 sm:$0xff]  }
 0xa47   : > { %8067 = vmatprep.subr.bf16.mxu1 %v21999_v5  ;;  %v22038_v5 = vld [vmem:[#allocation17 + $0x344] ss:$16 sps:$4 sm:$0xff]  }
 0xa49   : > { %7982 = vmatpush1.bf16.msra.mxu0 %v21994_v54  ;;  %v22041_v54 = vld [vmem:[#allocation17 + $0x34c] ss:$16 sps:$4 sm:$0xff]  }
 0xa4a   : > { %8068 = vmatpush1.bf16.msra.mxu1 %v21997_v11  ;;  %7983 = vmatprep.subr.bf16.mxu0 %v22002_v37  ;;  %v22036_v11 = vld [vmem:[#allocation17 + $0x340] ss:$16 sps:$4 sm:$0xff]   ;;  %v22039_v37 = vld [vmem:[#allocation17 + $0x348] ss:$16 sps:$4 sm:$0xff]  }
 0xa4b   : > { %8069 = vmatprep.subr.bf16.mxu1 %v22005_v41  ;;  %v22044_v41 = vld [vmem:[#allocation17 + $0x364] ss:$16 sps:$4 sm:$0xff]  }
 0xa4d   : > { %7984 = vmatpush1.bf16.msra.mxu0 %v22000_v3  ;;  %v22047_v3 = vld [vmem:[#allocation17 + $0x36c] ss:$16 sps:$4 sm:$0xff]  }
 0xa4e   : > { %8070 = vmatpush1.bf16.msra.mxu1 %v22003_v30  ;;  %7985 = vmatprep.subr.bf16.mxu0 %v22008_v60  ;;  %v22042_v30 = vld [vmem:[#allocation17 + $0x360] ss:$16 sps:$4 sm:$0xff]   ;;  %v22045_v60 = vld [vmem:[#allocation17 + $0x368] ss:$16 sps:$4 sm:$0xff]  }
 0xa4f   : > { %8071 = vmatprep.subr.bf16.mxu1 %v22011_v58  ;;  %v22050_v58 = vld [vmem:[#allocation17 + $0x384] ss:$16 sps:$4 sm:$0xff]  }
 0xa51   : > { %7986 = vmatpush1.bf16.msra.mxu0 %v22006_v12  ;;  %v22053_v12 = vld [vmem:[#allocation17 + $0x38c] ss:$16 sps:$4 sm:$0xff]  }
 0xa52   : > { %8072 = vmatpush1.bf16.msra.mxu1 %v22009_v32  ;;  %7987 = vmatprep.subr.bf16.mxu0 %v22014_v24  ;;  %v22048_v32 = vld [vmem:[#allocation17 + $0x380] ss:$16 sps:$4 sm:$0xff]   ;;  %v22051_v24 = vld [vmem:[#allocation17 + $0x388] ss:$16 sps:$4 sm:$0xff]  }
 0xa53   : > { %8073 = vmatprep.subr.bf16.mxu1 %v22017_v53  ;;  %v22056_v53 = vld [vmem:[#allocation17 + $0x3a4] ss:$16 sps:$4 sm:$0xff]  }
 0xa55   : > { %7988 = vmatpush1.bf16.msra.mxu0 %v22012_v43  ;;  %v22059_v43 = vld [vmem:[#allocation17 + $0x3ac] ss:$16 sps:$4 sm:$0xff]  }
 0xa56   : > { %8074 = vmatpush1.bf16.msra.mxu1 %v22015_v45  ;;  %7989 = vmatprep.subr.bf16.mxu0 %v22020_v26  ;;  %v22054_v45 = vld [vmem:[#allocation17 + $0x3a0] ss:$16 sps:$4 sm:$0xff]   ;;  %v22057_v26 = vld [vmem:[#allocation17 + $0x3a8] ss:$16 sps:$4 sm:$0xff]  }
 0xa57   : > { %8075 = vmatprep.subr.bf16.mxu1 %v22023_v1  ;;  %v22062_v1 = vld [vmem:[#allocation17 + $0x3c4] ss:$16 sps:$4 sm:$0xff]  }
 0xa59   : > { %7990 = vmatpush1.bf16.msra.mxu0 %v22018_v25  ;;  %v22065_v25 = vld [vmem:[#allocation17 + $0x3cc] ss:$16 sps:$4 sm:$0xff]  }
 0xa5a   : > { %8076 = vmatpush1.bf16.msra.mxu1 %v22021_v23  ;;  %7991 = vmatprep.subr.bf16.mxu0 %v22026_v52  ;;  %v22060_v23 = vld [vmem:[#allocation17 + $0x3c0] ss:$16 sps:$4 sm:$0xff]   ;;  %v22063_v52 = vld [vmem:[#allocation17 + $0x3c8] ss:$16 sps:$4 sm:$0xff]  }
 0xa5b   : > { %8077 = vmatprep.subr.bf16.mxu1 %v22029_v35  ;;  %v22068_v35 = vld [vmem:[#allocation17 + $0x3e4] ss:$16 sps:$4 sm:$0xff]  }
 0xa5d   : > { %7992 = vmatpush1.bf16.msra.mxu0 %v22024_v48  ;;  %v22071_v48 = vld [vmem:[#allocation17 + $0x3ec] ss:$16 sps:$4 sm:$0xff]  }
 0xa5e   : > { %8078 = vmatpush1.bf16.msra.mxu1 %v22027_v21  ;;  %7993 = vmatprep.subr.bf16.mxu0 %v22032_v46  ;;  %v26959_v21 = vld [vmem:[#allocation55_spill] sm:$0xff] }
 0xa5f   : > { %8079 = vmatprep.subr.bf16.mxu1 %v22035_v29  ;;  %v8105_v46 = vadd.s32 4, %v26959_v21  ;;  %v22066_v29 = vld [vmem:[#allocation17 + $0x3e0] ss:$16 sps:$4 sm:$0xff]   ;;  %v22113_v21 = vld [vmem:[#allocation17 + $0x8cc] ss:$16 sps:$4 sm:$0xff]  }
 0xa61   : > { %7994 = vmatpush1.bf16.msra.mxu0 %v22030_v39  ;;  %v22069_v39 = vld [vmem:[#allocation17 + $0x3e8] ss:$16 sps:$4 sm:$0xff]   ;;  %vm8109_vm10 = vcmp.lt.s32.totalorder %v8105_v46, 16  ;;  %v22108_v46 = vld [vmem:[#allocation17 + $0x8c0] ss:$16 sps:$4 sm:$0xff]  }
 0xa62   : > { %8080 = vmatpush1.bf16.msra.mxu1 %v22033_v62  ;;  %7995 = vmatprep.subr.bf16.mxu0 %v22038_v5  ;;  %v22074_v62 = vld [vmem:[#allocation17 + $0x804] ss:$16 sps:$4 sm:$0xff]   ;;  %v22077_v5 = vld [vmem:[#allocation17 + $0x80c] ss:$16 sps:$4 sm:$0xff]   ;;  %vm25658_vm13 = vmpackc.low %vm8109_vm10, %vm23970_vm11 }
 0xa63   : > { %8081 = vmatprep.subr.bf16.mxu1 %v22041_v54  ;;  %v22072_v54 = vld [vmem:[#allocation17 + $0x800] ss:$16 sps:$4 sm:$0xff]  }
 0xa65   : > { %7996 = vmatpush1.bf16.msra.mxu0 %v22036_v11  ;;  %v22075_v11 = vld [vmem:[#allocation17 + $0x808] ss:$16 sps:$4 sm:$0xff]  }
 0xa66   : > { %8082 = vmatpush1.bf16.msra.mxu1 %v22039_v37  ;;  %7997 = vmatprep.subr.bf16.mxu0 %v22044_v41  ;;  %v22080_v41 = vld [vmem:[#allocation17 + $0x824] ss:$16 sps:$4 sm:$0xff]   ;;  %v26963_v37 = vld [vmem:[#allocation65_spill] sm:$0xff] }
 0xa67   : > { %8083 = vmatprep.subr.bf16.mxu1 %v22047_v3  ;;  %v22083_v3 = vld [vmem:[#allocation17 + $0x82c] ss:$16 sps:$4 sm:$0xff]  }
 0xa69   : > { %7998 = vmatpush1.bf16.msra.mxu0 %v22042_v30  ;;  %v22078_v30 = vld [vmem:[#allocation17 + $0x820] ss:$16 sps:$4 sm:$0xff]  }
 0xa6a   : > { %8084 = vmatpush1.bf16.msra.mxu1 %v22045_v60  ;;  %7999 = vmatprep.subr.bf16.mxu0 %v22050_v58  ;;  %v22081_v60 = vld [vmem:[#allocation17 + $0x828] ss:$16 sps:$4 sm:$0xff]   ;;  %v22086_v58 = vld [vmem:[#allocation17 + $0x844] ss:$16 sps:$4 sm:$0xff]  }
 0xa6b   : > { %8085 = vmatprep.subr.bf16.mxu1 %v22053_v12  ;;  %v22089_v12 = vld [vmem:[#allocation17 + $0x84c] ss:$16 sps:$4 sm:$0xff]  }
 0xa6d   : > { %8000 = vmatpush1.bf16.msra.mxu0 %v22048_v32  ;;  %v22084_v32 = vld [vmem:[#allocation17 + $0x840] ss:$16 sps:$4 sm:$0xff]  }
 0xa6e   : > { %8086 = vmatpush1.bf16.msra.mxu1 %v22051_v24  ;;  %8001 = vmatprep.subr.bf16.mxu0 %v22056_v53  ;;  %v22095_v24 = vld [vmem:[#allocation17 + $0x86c] ss:$16 sps:$4 sm:$0xff]   ;;  %v22090_v53 = vld [vmem:[#allocation17 + $0x860] ss:$16 sps:$4 sm:$0xff]  }
 0xa6f   : > { %8087 = vmatprep.subr.bf16.mxu1 %v22059_v43  ;;  %v22093_v43 = vld [vmem:[#allocation17 + $0x868] ss:$16 sps:$4 sm:$0xff]  }
 0xa71   : > { %8002 = vmatpush1.bf16.msra.mxu0 %v22054_v45  ;;  %v22098_v45 = vld [vmem:[#allocation17 + $0x884] ss:$16 sps:$4 sm:$0xff]  }
 0xa72   : > { %8088 = vmatpush1.bf16.msra.mxu1 %v22057_v26  ;;  %8003 = vmatprep.subr.bf16.mxu0 %v22062_v1  ;;  %v22101_v26 = vld [vmem:[#allocation17 + $0x88c] ss:$16 sps:$4 sm:$0xff]   ;;  %v22099_v1 = vld [vmem:[#allocation17 + $0x888] ss:$16 sps:$4 sm:$0xff]  }
 0xa73   : > { %8089 = vmatprep.subr.bf16.mxu1 %v22065_v25  ;;  %v22104_v25 = vld [vmem:[#allocation17 + $0x8a4] ss:$16 sps:$4 sm:$0xff]  }
 0xa75   : > { %8004 = vmatpush1.bf16.msra.mxu0 %v22060_v23  ;;  %v22107_v23 = vld [vmem:[#allocation17 + $0x8ac] ss:$16 sps:$4 sm:$0xff]  }
 0xa76   : > { %8090 = vmatpush1.bf16.msra.mxu1 %v22063_v52  ;;  %8005 = vmatprep.subr.bf16.mxu0 %v22068_v35  ;;  %v22102_v52 = vld [vmem:[#allocation17 + $0x8a0] ss:$16 sps:$4 sm:$0xff]   ;;  %v22105_v35 = vld [vmem:[#allocation17 + $0x8a8] ss:$16 sps:$4 sm:$0xff]  }
 0xa77   : > { %8091 = vmatprep.subr.bf16.mxu1 %v22071_v48  ;;  %v22110_v48 = vld [vmem:[#allocation17 + $0x8c4] ss:$16 sps:$4 sm:$0xff]  }
 0xa79   : > { %8006 = vmatpush1.bf16.msra.mxu0 %v22066_v29  ;;  %v22111_v29 = vld [vmem:[#allocation17 + $0x8c8] ss:$16 sps:$4 sm:$0xff]  }
 0xa7a   : > { %8092 = vmatpush1.bf16.msra.mxu1 %v22069_v39  ;;  %8768 = vmatprep.subr.bf16.mxu0 %v22074_v62  ;;  %v22116_v39 = vld [vmem:[#allocation17 + $0x8e4] ss:$16 sps:$4 sm:$0xff]   ;;  %v22119_v62 = vld [vmem:[#allocation17 + $0x8ec] ss:$16 sps:$4 sm:$0xff]  }
 0xa7b   : > { %8854 = vmatprep.subr.bf16.mxu1 %v22077_v5  ;;  %v22114_v5 = vld [vmem:[#allocation17 + $0x8e0] ss:$16 sps:$4 sm:$0xff]  }
 0xa7c   : > { %17051 = vmatmul.mubr.msk.bf16.vlgmr.msra.gmra.mrb[24].mxu0 %vm25632_vm1, %v25622_v57 }
 0xa7d   : > { %17063 = vmatmul.mubr.msk.bf16.vlgmr.msra.gmra.mrb[24].mxu1 %vm25632_vm1, %v25622_v57  ;;  %8769 = vmatpush1.bf16.msra.mxu0 %v22072_v54  ;;  %v22087_v57 = vld [vmem:[#allocation17 + $0x848] ss:$16 sps:$4 sm:$0xff]  }
 0xa7e   : > { %17194 = vmatprep.mubr.msk.bf16.mxu0 %vm25658_vm13, %v25620_v38  ;;  %8855 = vmatpush1.bf16.msra.mxu1 %v22075_v11  ;;  %v22117_v54 = vld [vmem:[#allocation17 + $0x8e8] ss:$16 sps:$4 sm:$0xff]   ;;  %v22122_v11 = vld [vmem:[#allocation17 + $0x904] ss:$16 sps:$4 sm:$0xff]  }
 0xa7f   : > { %17206 = vmatprep.mubr.msk.bf16.mxu1 %vm25658_vm13, %v25620_v38  ;;  %8770 = vmatprep.subr.bf16.mxu0 %v22080_v41  ;;  %v22096_v38 = vld [vmem:[#allocation17 + $0x880] ss:$16 sps:$4 sm:$0xff]   ;;  %v22125_v41 = vld [vmem:[#allocation17 + $0x90c] ss:$16 sps:$4 sm:$0xff]  }
 0xa80   : > { %8856 = vmatprep.subr.bf16.mxu1 %v22083_v3  ;;  %v22120_v3 = vld [vmem:[#allocation17 + $0x900] ss:$16 sps:$4 sm:$0xff]  }
 0xa81   : > { %8771 = vmatpush1.bf16.msra.mxu0 %v22078_v30  ;;  %v22123_v30 = vld [vmem:[#allocation17 + $0x908] ss:$16 sps:$4 sm:$0xff]  }
 0xa82   : > { %8857 = vmatpush1.bf16.msra.mxu1 %v22081_v60  ;;  %8772 = vmatprep.subr.bf16.mxu0 %v22086_v58  ;;  %v22128_v60 = vld [vmem:[#allocation17 + $0x924] ss:$16 sps:$4 sm:$0xff]   ;;  %v22131_v58 = vld [vmem:[#allocation17 + $0x92c] ss:$16 sps:$4 sm:$0xff]  }
 0xa83   : > { %8858 = vmatprep.subr.bf16.mxu1 %v22089_v12  ;;  %v22126_v12 = vld [vmem:[#allocation17 + $0x920] ss:$16 sps:$4 sm:$0xff]  }
 0xa85   : > { %8773 = vmatpush1.bf16.msra.mxu0 %v22084_v32  ;;  %v22129_v32 = vld [vmem:[#allocation17 + $0x928] ss:$16 sps:$4 sm:$0xff]  }
 0xa86   : > { %8859 = vmatpush1.bf16.msra.mxu1 %v22087_v57  ;;  %8774 = vmatprep.subr.bf16.mxu0 %v22092_v4  ;;  %v22134_v57 = vld [vmem:[#allocation17 + $0x944] ss:$16 sps:$4 sm:$0xff]   ;;  %v22137_v4 = vld [vmem:[#allocation17 + $0x94c] ss:$16 sps:$4 sm:$0xff]  }
 0xa87   : > { %8860 = vmatprep.subr.bf16.mxu1 %v22095_v24  ;;  %v22132_v24 = vld [vmem:[#allocation17 + $0x940] ss:$16 sps:$4 sm:$0xff]  }
 0xa89   : > { %8775 = vmatpush1.bf16.msra.mxu0 %v22090_v53  ;;  %v22135_v53 = vld [vmem:[#allocation17 + $0x948] ss:$16 sps:$4 sm:$0xff]  }
 0xa8a   : > { %8861 = vmatpush1.bf16.msra.mxu1 %v22093_v43  ;;  %8776 = vmatprep.subr.bf16.mxu0 %v22098_v45  ;;  %v22140_v43 = vld [vmem:[#allocation17 + $0x964] ss:$16 sps:$4 sm:$0xff]   ;;  %v22143_v45 = vld [vmem:[#allocation17 + $0x96c] ss:$16 sps:$4 sm:$0xff]  }
 0xa8b   : > { %8862 = vmatprep.subr.bf16.mxu1 %v22101_v26  ;;  %v22138_v26 = vld [vmem:[#allocation17 + $0x960] ss:$16 sps:$4 sm:$0xff]  }
 0xa8d   : > { %8777 = vmatpush1.bf16.msra.mxu0 %v22096_v38  ;;  %v22141_v38 = vld [vmem:[#allocation17 + $0x968] ss:$16 sps:$4 sm:$0xff]  }
 0xa8e   : > { %8863 = vmatpush1.bf16.msra.mxu1 %v22099_v1  ;;  %8778 = vmatprep.subr.bf16.mxu0 %v22104_v25  ;;  %v22146_v1 = vld [vmem:[#allocation17 + $0x984] ss:$16 sps:$4 sm:$0xff]   ;;  %v22149_v25 = vld [vmem:[#allocation17 + $0x98c] ss:$16 sps:$4 sm:$0xff]  }
 0xa8f   : > { %8864 = vmatprep.subr.bf16.mxu1 %v22107_v23  ;;  %v22144_v23 = vld [vmem:[#allocation17 + $0x980] ss:$16 sps:$4 sm:$0xff]  }
 0xa91   : > { %8779 = vmatpush1.bf16.msra.mxu0 %v22102_v52  ;;  %v22147_v52 = vld [vmem:[#allocation17 + $0x988] ss:$16 sps:$4 sm:$0xff]  }
 0xa92   : > { %8865 = vmatpush1.bf16.msra.mxu1 %v22105_v35  ;;  %8780 = vmatprep.subr.bf16.mxu0 %v22110_v48  ;;  %v22152_v35 = vld [vmem:[#allocation17 + $0x9a4] ss:$16 sps:$4 sm:$0xff]   ;;  %v22155_v48 = vld [vmem:[#allocation17 + $0x9ac] ss:$16 sps:$4 sm:$0xff]  }
 0xa93   : > { %8866 = vmatprep.subr.bf16.mxu1 %v22113_v21  ;;  %v22150_v21 = vld [vmem:[#allocation17 + $0x9a0] ss:$16 sps:$4 sm:$0xff]  }
 0xa95   : > { %8781 = vmatpush1.bf16.msra.mxu0 %v22108_v46  ;;  %v22153_v46 = vld [vmem:[#allocation17 + $0x9a8] ss:$16 sps:$4 sm:$0xff]  }
 0xa96   : > { %8867 = vmatpush1.bf16.msra.mxu1 %v22111_v29  ;;  %8782 = vmatprep.subr.bf16.mxu0 %v22116_v39  ;;  %v22158_v29 = vld [vmem:[#allocation17 + $0x9c4] ss:$16 sps:$4 sm:$0xff]   ;;  %v22161_v39 = vld [vmem:[#allocation17 + $0x9cc] ss:$16 sps:$4 sm:$0xff]  }
 0xa97   : > { %8868 = vmatprep.subr.bf16.mxu1 %v22119_v62  ;;  %v22156_v62 = vld [vmem:[#allocation17 + $0x9c0] ss:$16 sps:$4 sm:$0xff]  }
 0xa99   : > { %8783 = vmatpush1.bf16.msra.mxu0 %v22114_v5  ;;  %v22159_v5 = vld [vmem:[#allocation17 + $0x9c8] ss:$16 sps:$4 sm:$0xff]  }
 0xa9a   : > { %8869 = vmatpush1.bf16.msra.mxu1 %v22117_v54  ;;  %8784 = vmatprep.subr.bf16.mxu0 %v22122_v11  ;;  %v22164_v54 = vld [vmem:[#allocation17 + $0x9e4] ss:$16 sps:$4 sm:$0xff]   ;;  %v22167_v11 = vld [vmem:[#allocation17 + $0x9ec] ss:$16 sps:$4 sm:$0xff]  }
 0xa9b   : > { %8870 = vmatprep.subr.bf16.mxu1 %v22125_v41  ;;  %v22162_v41 = vld [vmem:[#allocation17 + $0x9e0] ss:$16 sps:$4 sm:$0xff]  }
 0xa9d   : > { %8785 = vmatpush1.bf16.msra.mxu0 %v22120_v3  ;;  %v22165_v3 = vld [vmem:[#allocation17 + $0x9e8] ss:$16 sps:$4 sm:$0xff]  }
 0xa9e   : > { %8871 = vmatpush1.bf16.msra.mxu1 %v22123_v30  ;;  %8786 = vmatprep.subr.bf16.mxu0 %v22128_v60  ;;  %v22170_v30 = vld [vmem:[#allocation17 + $0xa04] ss:$16 sps:$4 sm:$0xff]   ;;  %v22173_v60 = vld [vmem:[#allocation17 + $0xa0c] ss:$16 sps:$4 sm:$0xff]  }
 0xa9f   : > { %8872 = vmatprep.subr.bf16.mxu1 %v22131_v58  ;;  %v22168_v58 = vld [vmem:[#allocation17 + $0xa00] ss:$16 sps:$4 sm:$0xff]  }
 0xaa1   : > { %8787 = vmatpush1.bf16.msra.mxu0 %v22126_v12  ;;  %v22171_v12 = vld [vmem:[#allocation17 + $0xa08] ss:$16 sps:$4 sm:$0xff]  }
 0xaa2   : > { %8873 = vmatpush1.bf16.msra.mxu1 %v22129_v32  ;;  %8788 = vmatprep.subr.bf16.mxu0 %v22134_v57  ;;  %v22176_v32 = vld [vmem:[#allocation17 + $0xa24] ss:$16 sps:$4 sm:$0xff]   ;;  %v22179_v57 = vld [vmem:[#allocation17 + $0xa2c] ss:$16 sps:$4 sm:$0xff]  }
 0xaa3   : > { %8874 = vmatprep.subr.bf16.mxu1 %v22137_v4  ;;  %v22174_v4 = vld [vmem:[#allocation17 + $0xa20] ss:$16 sps:$4 sm:$0xff]  }
 0xaa5   : > { %8789 = vmatpush1.bf16.msra.mxu0 %v22132_v24  ;;  %v22177_v24 = vld [vmem:[#allocation17 + $0xa28] ss:$16 sps:$4 sm:$0xff]  }
 0xaa6   : > { %8875 = vmatpush1.bf16.msra.mxu1 %v22135_v53  ;;  %8790 = vmatprep.subr.bf16.mxu0 %v22140_v43  ;;  %v22182_v53 = vld [vmem:[#allocation17 + $0xa44] ss:$16 sps:$4 sm:$0xff]   ;;  %v22185_v43 = vld [vmem:[#allocation17 + $0xa4c] ss:$16 sps:$4 sm:$0xff]  }
 0xaa7   : > { %8876 = vmatprep.subr.bf16.mxu1 %v22143_v45  ;;  %v22180_v45 = vld [vmem:[#allocation17 + $0xa40] ss:$16 sps:$4 sm:$0xff]  }
 0xaa9   : > { %8791 = vmatpush1.bf16.msra.mxu0 %v22138_v26  ;;  %v22188_v26 = vld [vmem:[#allocation17 + $0xa64] ss:$16 sps:$4 sm:$0xff]  }
 0xaaa   : > { %8877 = vmatpush1.bf16.msra.mxu1 %v22141_v38  ;;  %8792 = vmatprep.subr.bf16.mxu0 %v22146_v1  ;;  %v22191_v38 = vld [vmem:[#allocation17 + $0xa6c] ss:$16 sps:$4 sm:$0xff]   ;;  %v22186_v1 = vld [vmem:[#allocation17 + $0xa60] ss:$16 sps:$4 sm:$0xff]  }
 0xaab   : > { %8878 = vmatprep.subr.bf16.mxu1 %v22149_v25  ;;  %v22189_v25 = vld [vmem:[#allocation17 + $0xa68] ss:$16 sps:$4 sm:$0xff]  }
 0xaad   : > { %8793 = vmatpush1.bf16.msra.mxu0 %v22144_v23  ;;  %v22194_v23 = vld [vmem:[#allocation17 + $0xa84] ss:$16 sps:$4 sm:$0xff]  }
 0xaae   : > { %8879 = vmatpush1.bf16.msra.mxu1 %v22147_v52  ;;  %8794 = vmatprep.subr.bf16.mxu0 %v22152_v35  ;;  %v22197_v52 = vld [vmem:[#allocation17 + $0xa8c] ss:$16 sps:$4 sm:$0xff]   ;;  %v22195_v35 = vld [vmem:[#allocation17 + $0xa88] ss:$16 sps:$4 sm:$0xff]  }
 0xaaf   : > { %8880 = vmatprep.subr.bf16.mxu1 %v22155_v48  ;;  %v22200_v48 = vld [vmem:[#allocation17 + $0xaa4] ss:$16 sps:$4 sm:$0xff]  }
 0xab1   : > { %8795 = vmatpush1.bf16.msra.mxu0 %v22150_v21  ;;  %v22203_v21 = vld [vmem:[#allocation17 + $0xaac] ss:$16 sps:$4 sm:$0xff]  }
 0xab2   : > { %8881 = vmatpush1.bf16.msra.mxu1 %v22153_v46  ;;  %8796 = vmatprep.subr.bf16.mxu0 %v22158_v29  ;;  %v22198_v46 = vld [vmem:[#allocation17 + $0xaa0] ss:$16 sps:$4 sm:$0xff]   ;;  %v22201_v29 = vld [vmem:[#allocation17 + $0xaa8] ss:$16 sps:$4 sm:$0xff]  }
 0xab3   : > { %8882 = vmatprep.subr.bf16.mxu1 %v22161_v39  ;;  %v22206_v39 = vld [vmem:[#allocation17 + $0xac4] ss:$16 sps:$4 sm:$0xff]  }
 0xab5   : > { %8797 = vmatpush1.bf16.msra.mxu0 %v22156_v62  ;;  %v22209_v62 = vld [vmem:[#allocation17 + $0xacc] ss:$16 sps:$4 sm:$0xff]  }
 0xab6   : > { %8883 = vmatpush1.bf16.msra.mxu1 %v22159_v5  ;;  %8798 = vmatprep.subr.bf16.mxu0 %v22164_v54  ;;  %v22204_v5 = vld [vmem:[#allocation17 + $0xac0] ss:$16 sps:$4 sm:$0xff]   ;;  %v22207_v54 = vld [vmem:[#allocation17 + $0xac8] ss:$16 sps:$4 sm:$0xff]  }
 0xab7   : > { %8884 = vmatprep.subr.bf16.mxu1 %v22167_v11  ;;  %v22212_v11 = vld [vmem:[#allocation17 + $0xae4] ss:$16 sps:$4 sm:$0xff]  }
 0xab9   : > { %8799 = vmatpush1.bf16.msra.mxu0 %v22162_v41  ;;  %v22215_v41 = vld [vmem:[#allocation17 + $0xaec] ss:$16 sps:$4 sm:$0xff]  }
 0xaba   : > { %8885 = vmatpush1.bf16.msra.mxu1 %v22165_v3  ;;  %8811 = vmatprep.subr.bf16.mxu0 %v22170_v30  ;;  %v22210_v3 = vld [vmem:[#allocation17 + $0xae0] ss:$16 sps:$4 sm:$0xff]   ;;  %v22213_v30 = vld [vmem:[#allocation17 + $0xae8] ss:$16 sps:$4 sm:$0xff]  }
 0xabb   : > { %8897 = vmatprep.subr.bf16.mxu1 %v22173_v60  ;;  %v22218_v60 = vld [vmem:[#allocation17 + $0xb04] ss:$16 sps:$4 sm:$0xff]  }
 0xabc   : > { %17197 = vmatmul.mubr.msk.bf16.vlgmr.msra.gmra.mrb[24].mxu0 %vm25658_vm13, %v25624_v6 }
 0xabd   : > { %17209 = vmatmul.mubr.msk.bf16.vlgmr.msra.gmra.mrb[24].mxu1 %vm25658_vm13, %v25624_v6  ;;  %8812 = vmatpush1.bf16.msra.mxu0 %v22168_v58  ;;  %v22183_v6 = vld [vmem:[#allocation17 + $0xa48] ss:$16 sps:$4 sm:$0xff]   ;;  %v22221_v58 = vld [vmem:[#allocation17 + $0xb0c] ss:$16 sps:$4 sm:$0xff]  }
 0xabe   : > { %17200 = vmatprep.mubr.msk.bf16.mxu0 %vm25658_vm13, %v25626_v61  ;;  %8898 = vmatpush1.bf16.msra.mxu1 %v22171_v12  ;;  %v22216_v12 = vld [vmem:[#allocation17 + $0xb00] ss:$16 sps:$4 sm:$0xff]  }
 0xabf   : > { %17212 = vmatprep.mubr.msk.bf16.mxu1 %vm25658_vm13, %v25626_v61  ;;  %8813 = vmatprep.subr.bf16.mxu0 %v22176_v32  ;;  %v22192_v61 = vld [vmem:[#allocation17 + $0xa80] ss:$16 sps:$4 sm:$0xff]   ;;  %v22219_v32 = vld [vmem:[#allocation17 + $0xb08] ss:$16 sps:$4 sm:$0xff]  }
 0xac0   : > { %8899 = vmatprep.subr.bf16.mxu1 %v22179_v57  ;;  %v22224_v57 = vld [vmem:[#allocation17 + $0xb24] ss:$16 sps:$4 sm:$0xff]  }
 0xac1   : > { %8814 = vmatpush1.bf16.msra.mxu0 %v22174_v4  ;;  %v22227_v4 = vld [vmem:[#allocation17 + $0xb2c] ss:$16 sps:$4 sm:$0xff]  }
 0xac2   : > { %8900 = vmatpush1.bf16.msra.mxu1 %v22177_v24  ;;  %8815 = vmatprep.subr.bf16.mxu0 %v22182_v53  ;;  %v22222_v24 = vld [vmem:[#allocation17 + $0xb20] ss:$16 sps:$4 sm:$0xff]   ;;  %v22225_v53 = vld [vmem:[#allocation17 + $0xb28] ss:$16 sps:$4 sm:$0xff]  }
 0xac3   : > { %8901 = vmatprep.subr.bf16.mxu1 %v22185_v43  ;;  %v22230_v43 = vld [vmem:[#allocation17 + $0xb44] ss:$16 sps:$4 sm:$0xff]  }
 0xac5   : > { %8816 = vmatpush1.bf16.msra.mxu0 %v22180_v45  ;;  %v22233_v45 = vld [vmem:[#allocation17 + $0xb4c] ss:$16 sps:$4 sm:$0xff]  }
 0xac6   : > { %8902 = vmatpush1.bf16.msra.mxu1 %v22183_v6  ;;  %8817 = vmatprep.subr.bf16.mxu0 %v22188_v26  ;;  %v22228_v6 = vld [vmem:[#allocation17 + $0xb40] ss:$16 sps:$4 sm:$0xff]   ;;  %v22231_v26 = vld [vmem:[#allocation17 + $0xb48] ss:$16 sps:$4 sm:$0xff]  }
 0xac7   : > { %8903 = vmatprep.subr.bf16.mxu1 %v22191_v38  ;;  %v22236_v38 = vld [vmem:[#allocation17 + $0xb64] ss:$16 sps:$4 sm:$0xff]  }
 0xac9   : > { %8818 = vmatpush1.bf16.msra.mxu0 %v22186_v1  ;;  %v22239_v1 = vld [vmem:[#allocation17 + $0xb6c] ss:$16 sps:$4 sm:$0xff]  }
 0xaca   : > { %8904 = vmatpush1.bf16.msra.mxu1 %v22189_v25  ;;  %8819 = vmatprep.subr.bf16.mxu0 %v22194_v23  ;;  %v22234_v25 = vld [vmem:[#allocation17 + $0xb60] ss:$16 sps:$4 sm:$0xff]   ;;  %v22237_v23 = vld [vmem:[#allocation17 + $0xb68] ss:$16 sps:$4 sm:$0xff]  }
 0xacb   : > { %8905 = vmatprep.subr.bf16.mxu1 %v22197_v52  ;;  %v22242_v52 = vld [vmem:[#allocation17 + $0xb84] ss:$16 sps:$4 sm:$0xff]  }
 0xacd   : > { %8820 = vmatpush1.bf16.msra.mxu0 %v22192_v61  ;;  %v22245_v61 = vld [vmem:[#allocation17 + $0xb8c] ss:$16 sps:$4 sm:$0xff]  }
 0xace   : > { %8906 = vmatpush1.bf16.msra.mxu1 %v22195_v35  ;;  %8821 = vmatprep.subr.bf16.mxu0 %v22200_v48  ;;  %v22240_v35 = vld [vmem:[#allocation17 + $0xb80] ss:$16 sps:$4 sm:$0xff]   ;;  %v22243_v48 = vld [vmem:[#allocation17 + $0xb88] ss:$16 sps:$4 sm:$0xff]  }
 0xacf   : > { %8907 = vmatprep.subr.bf16.mxu1 %v22203_v21  ;;  %v22248_v21 = vld [vmem:[#allocation17 + $0xba4] ss:$16 sps:$4 sm:$0xff]  }
 0xad1   : > { %8822 = vmatpush1.bf16.msra.mxu0 %v22198_v46  ;;  %v22251_v46 = vld [vmem:[#allocation17 + $0xbac] ss:$16 sps:$4 sm:$0xff]  }
 0xad2   : > { %8908 = vmatpush1.bf16.msra.mxu1 %v22201_v29  ;;  %8823 = vmatprep.subr.bf16.mxu0 %v22206_v39  ;;  %v22246_v29 = vld [vmem:[#allocation17 + $0xba0] ss:$16 sps:$4 sm:$0xff]   ;;  %v22249_v39 = vld [vmem:[#allocation17 + $0xba8] ss:$16 sps:$4 sm:$0xff]  }
 0xad3   : > { %8909 = vmatprep.subr.bf16.mxu1 %v22209_v62  ;;  %v22254_v62 = vld [vmem:[#allocation17 + $0xbc4] ss:$16 sps:$4 sm:$0xff]  }
 0xad5   : > { %8824 = vmatpush1.bf16.msra.mxu0 %v22204_v5  ;;  %v22257_v5 = vld [vmem:[#allocation17 + $0xbcc] ss:$16 sps:$4 sm:$0xff]  }
 0xad6   : > { %8910 = vmatpush1.bf16.msra.mxu1 %v22207_v54  ;;  %8825 = vmatprep.subr.bf16.mxu0 %v22212_v11  ;;  %v22252_v54 = vld [vmem:[#allocation17 + $0xbc0] ss:$16 sps:$4 sm:$0xff]   ;;  %v22255_v11 = vld [vmem:[#allocation17 + $0xbc8] ss:$16 sps:$4 sm:$0xff]  }
 0xad7   : > { %8911 = vmatprep.subr.bf16.mxu1 %v22215_v41  ;;  %v22260_v41 = vld [vmem:[#allocation17 + $0xbe4] ss:$16 sps:$4 sm:$0xff]  }
 0xad9   : > { %8826 = vmatpush1.bf16.msra.mxu0 %v22210_v3  ;;  %v22263_v3 = vld [vmem:[#allocation17 + $0xbec] ss:$16 sps:$4 sm:$0xff]  }
 0xada   : > { %8912 = vmatpush1.bf16.msra.mxu1 %v22213_v30  ;;  %8827 = vmatprep.subr.bf16.mxu0 %v22218_v60  ;;  %v22258_v30 = vld [vmem:[#allocation17 + $0xbe0] ss:$16 sps:$4 sm:$0xff]   ;;  %v22261_v60 = vld [vmem:[#allocation17 + $0xbe8] ss:$16 sps:$4 sm:$0xff]  }
 0xadb   : > { %8913 = vmatprep.subr.bf16.mxu1 %v22221_v58  ;;  %v26964_v58 = vld [vmem:[#allocation66_spill] sm:$0xff] }
 0xadd   : > { %8828 = vmatpush1.bf16.msra.mxu0 %v22216_v12  ;;  %v6434_v12 = vld [vmem:[#allocation19] sm:$0xf] }
 0xade   : > { %8914 = vmatpush1.bf16.msra.mxu1 %v22219_v32  ;;  %8829 = vmatprep.subr.bf16.mxu0 %v22224_v57  ;;  %v8956_v32 = vrot.slane %v6434_v12, %v26949_v50  ;;  %v26965_v57 = vld [vmem:[#allocation69_spill] sm:$0xff] }
 0xadf   : > { %8915 = vmatprep.subr.bf16.mxu1 %v22227_v4  ;;  %v8952_v4 = vrot.slane %v6434_v12, %v26965_v57 }
 0xae1   : > { %8830 = vmatpush1.bf16.msra.mxu0 %v22222_v24  ;;  %v26966_v24 = vld [vmem:[#allocation68_spill] sm:$0xff] }
 0xae2   : > { %8916 = vmatpush1.bf16.msra.mxu1 %v22225_v53  ;;  %8831 = vmatprep.subr.bf16.mxu0 %v22230_v43  ;;  %v8964_v53 = vrot.slane %v6434_v12, %v26966_v24 }
 0xae3   : > { %8917 = vmatprep.subr.bf16.mxu1 %v22233_v45  ;;  %v26967_v45 = vld [vmem:[#allocation70_spill] sm:$0xff] }
 0xae5   : > { %8832 = vmatpush1.bf16.msra.mxu0 %v22228_v6  ;;  %v8960_v6 = vrot.slane %v6434_v12, %v26967_v45 }
 0xae6   : > { %8918 = vmatpush1.bf16.msra.mxu1 %v22231_v26  ;;  %8833 = vmatprep.subr.bf16.mxu0 %v22236_v38 }
 0xae7   : > { %8919 = vmatprep.subr.bf16.mxu1 %v22239_v1 }
 0xae9   : > { %8834 = vmatpush1.bf16.msra.mxu0 %v22234_v25 }
 0xaea   : > { %8920 = vmatpush1.bf16.msra.mxu1 %v22237_v23  ;;  %8835 = vmatprep.subr.bf16.mxu0 %v22242_v52 }
 0xaeb   : > { %8921 = vmatprep.subr.bf16.mxu1 %v22245_v61 }
 0xaed   : > { %8836 = vmatpush1.bf16.msra.mxu0 %v22240_v35 }
 0xaee   : > { %8922 = vmatpush1.bf16.msra.mxu1 %v22243_v48  ;;  %8837 = vmatprep.subr.bf16.mxu0 %v22248_v21 }
 0xaef   : > { %8923 = vmatprep.subr.bf16.mxu1 %v22251_v46 }
 0xaf1   : > { %8838 = vmatpush1.bf16.msra.mxu0 %v22246_v29 }
 0xaf2   : > { %8924 = vmatpush1.bf16.msra.mxu1 %v22249_v39  ;;  %8839 = vmatprep.subr.bf16.mxu0 %v22254_v62 }
 0xaf3   : > { %8925 = vmatprep.subr.bf16.mxu1 %v22257_v5 }
 0xaf5   : > { %8840 = vmatpush1.bf16.msra.mxu0 %v22252_v54 }
 0xaf6   : > { %8926 = vmatpush1.bf16.msra.mxu1 %v22255_v11  ;;  %8841 = vmatprep.subr.bf16.mxu0 %v22260_v41 }
 0xaf7   : > { %8927 = vmatprep.subr.bf16.mxu1 %v22263_v3 }
 0xaf9   : > { %8842 = vmatpush1.bf16.msra.mxu0 %v22258_v30 }
 0xafa   : > { %8928 = vmatpush1.bf16.msra.mxu1 %v22261_v60  ;;  %20045 = vmatprep.subr.bf16.mxu0 %v26944_v44 }
 0xafb   : > { %20077 = vmatprep.subr.bf16.mxu1 %v26946_v33 }
 0xafc   : > { %17203 = vmatmul.mubr.msk.bf16.vlgmr.msra.gmra.mrb[24].mxu0 %vm25658_vm13, %v25628_v49 }
 0xafd   : > { %17215 = vmatmul.mubr.msk.bf16.vlgmr.msra.gmra.mrb[24].mxu1 %vm25658_vm13, %v25628_v49  ;;  %20047 = vmatpush3.bf16.msra.mxu0 %v24700_v63  ;;  %v26962_v49 = vld [vmem:[#allocation64_spill] sm:$0xff] }
 0xafe   : > { %20079 = vmatpush3.bf16.msra.mxu1 %v24702_v0  ;;  %20049 = vmatprep.subr.bf16.mxu0 %v24704_v7 }
 0xaff   : > { %20081 = vmatprep.subr.bf16.mxu1 %v24706_v8 }
 0xb01   : > { %20051 = vmatpush3.bf16.msra.mxu0 %v24712_v13 }
 0xb02   : > { %20083 = vmatpush3.bf16.msra.mxu1 %v24714_v14  ;;  %20053 = vmatprep.subr.bf16.mxu0 %v24718_v15 }
 0xb03   : > { %20085 = vmatprep.subr.bf16.mxu1 %v24720_v16 }
 0xb05   : > { %20055 = vmatpush3.bf16.msra.mxu0 %v24724_v17 }
 0xb06   : > { %20087 = vmatpush3.bf16.msra.mxu1 %v24726_v18  ;;  %20057 = vmatprep.subr.bf16.mxu0 %v24732_v22 }
 0xb07   : > { %20089 = vmatprep.subr.bf16.mxu1 %v24734_v27 }
 0xb09   : > { %20059 = vmatpush3.bf16.msra.mxu0 %v24736_v28 }
 0xb0a   : > { %20091 = vmatpush3.bf16.msra.mxu1 %v24739_v31  ;;  %20061 = vmatprep.subr.bf16.mxu0 %v24744_v36 }
 0xb0b   : > { %20093 = vmatprep.subr.bf16.mxu1 %v24746_v40 }
 0xb0d   : > { %20063 = vmatpush3.bf16.msra.mxu0 %v24748_v42 }
 0xb0e   : > { %20095 = vmatpush3.bf16.msra.mxu1 %v24751_v47  ;;  %20065 = vmatprep.subr.bf16.mxu0 %v24756_v51 }
 0xb0f   : > { %20097 = vmatprep.subr.bf16.mxu1 %v24758_v55 }
 0xb11   : > { %20067 = vmatpush3.bf16.msra.mxu0 %v24760_v56 }
 0xb12   : > { %20099 = vmatpush3.bf16.msra.mxu1 %v24763_v59  ;;  %20069 = vmatprep.subr.bf16.mxu0 %v24768_v2 }
 0xb13   : > { %20101 = vmatprep.subr.bf16.mxu1 %v24770_v9 }
 0xb15   : > { %20071 = vmatpush3.bf16.msra.mxu0 %v24772_v10 }
 0xb16   : > { %20103 = vmatpush3.bf16.msra.mxu1 %v24775_v19  ;;  %20073 = vmatprep.subr.bf16.mxu0 %v26934_v34 }
 0xb17   : > { %20105 = vmatprep.subr.bf16.mxu1 %v26962_v49 }
 0xb19   : > { %20075 = vmatpush3.bf16.msra.mxu0 %v26963_v37 }
 0xb1a   : > { %20107 = vmatpush3.bf16.msra.mxu1 %v26964_v58  ;;  %20109 = vmatprep.subr.bf16.mxu0 %v26944_v44 }
 0xb1b   : > { %20141 = vmatprep.subr.bf16.mxu1 %v26946_v33 }
 0xbcf   : > { %v8845_v43 = vpop.f32.mrb[24].mxu0 }
 0xbd0   : > { %v8931_v26 = vpop.f32.mrb[24].mxu1  ;;  %v8847_v38 = vpop.f32.mrb[25].mxu0  ;;  %v25732_v52 = vadd.f32 %v8952_v4, %v8845_v43 }
 0xbd1   : > { %v25730_v1 = vadd.f32 %v8956_v32, %v8847_v38  ;;  %v8933_v25 = vpop.f32.mrb[25].mxu1  ;;  %v8849_v23 = vpop.f32.mrb[26].mxu0  ;;  %v25738_v46 = vadd.f32 %v8960_v6, %v8931_v26 }
 0xbd2   : > { %v25734_v61 = vadd.f32 %v8964_v53, %v8933_v25  ;;  %v25736_v35 = vadd.f32 %v8952_v4, %v8849_v23  ;;  %v8935_v48 = vpop.f32.mrb[26].mxu1  ;;  %v8851_v21 = vpop.f32.mrb[27].mxu0 }
 0xbd3   : > { %26968 = vst [vmem:[#allocation72_spill] sm:$0xff] %v25730_v1  ;;  %v25740_v29 = vadd.f32 %v8960_v6, %v8935_v48  ;;  %v25742_v39 = vadd.f32 %v8956_v32, %v8851_v21  ;;  %v8937_v62 = vpop.f32.mrb[27].mxu1  ;;  %v9008_v11 = vmul.f32 %v25730_v1, %v25730_v1 }
 0xbd4   : > { %26969 = vst [vmem:[#allocation77_spill] sm:$0xff] %v25734_v61  ;;  %v8979_v5 = vadd.f32 %v25736_v35, %v25732_v52  ;;  %v25746_v54 = vadd.f32 %v8964_v53, %v8937_v62  ;;  %v9010_v60 = vmul.f32 %v25734_v61, %v25734_v61 }
 0xbd5   : > { %26970 = vst [vmem:[#allocation74_spill] sm:$0xff] %v25742_v39  ;;  %v8993_v41 = vadd.f32 %v25740_v29, %v25738_v46  ;;  %v8986_v3 = vadd.f32 %v25742_v39, %v25730_v1  ;;  %v9012_v30 = vmul.f32 %v25742_v39, %v25742_v39 }
 0xbd6   : > { %26971 = vst [vmem:[#allocation78_spill] sm:$0xff] %v25746_v54  ;;  %v8980_v12 = vrot.slane %v8979_v5, 4  ;;  %v9000_v32 = vadd.f32 %v25746_v54, %v25734_v61  ;;  %v9014_v4 = vmul.f32 %v25746_v54, %v25746_v54 }
 0xbd7   : > { %v8994_v53 = vrot.slane %v8993_v41, 4  ;;  %v8987_v43 = vrot.slane %v8986_v3, 4  ;;  %v9022_v6 = vadd.f32 %v9012_v30, %v9008_v11 }
 0xbd8   : > { %v8981_v26 = vadd.f32 %v8980_v12, %v8979_v5  ;;  %v9001_v38 = vrot.slane %v9000_v32, 4  ;;  %v9036_v25 = vadd.f32 %v9014_v4, %v9010_v60 }
 0xbd9   : > { %v8995_v23 = vadd.f32 %v8994_v53, %v8993_v41  ;;  %v8988_v48 = vadd.f32 %v8987_v43, %v8986_v3  ;;  %v9023_v21 = vrot.slane %v9022_v6, 4 }
 0xbda   : > { %v8982_v62 = vrot.slane %v8981_v26, 2  ;;  %v9002_v20 = vadd.f32 %v9001_v38, %v9000_v32  ;;  %v9037_v39 = vrot.slane %v9036_v25, 4 }
 0xbdb   : > { %v8996_v1 = vrot.slane %v8995_v23, 2  ;;  %v8989_v24 = vrot.slane %v8988_v48, 2  ;;  %v9024_v50 = vadd.f32 %v9023_v21, %v9022_v6 }
 0xbdc   : > { %v8983_v45 = vadd.f32 %v8982_v62, %v8981_v26  ;;  %v9003_v61 = vrot.slane %v9002_v20, 2  ;;  %v9038_v57 = vadd.f32 %v9037_v39, %v9036_v25 }
 0xbdd   : > { %v8997_v33 = vadd.f32 %v8996_v1, %v8995_v23  ;;  %v8990_v54 = vadd.f32 %v8989_v24, %v8988_v48  ;;  %v9025_v44 = vrot.slane %v9024_v50, 2 }
 0xbde   : > { %v9004_v58 = vadd.f32 %v9003_v61, %v9002_v20  ;;  %v8984_v11 = vrot.slane %v8983_v45, 1  ;;  %v9039_v5 = vrot.slane %v9038_v57, 2  ;;  %v9011_v20 = vmul.f32 %v25736_v35, %v25736_v35 }
 0xbdf   : > { %v8991_v30 = vrot.slane %v8990_v54, 1  ;;  %v8998_v60 = vrot.slane %v8997_v33, 1  ;;  %v9026_v41 = vadd.f32 %v9025_v44, %v9024_v50  ;;  %v9013_v44 = vmul.f32 %v25740_v29, %v25740_v29 }
 0xbe0   : > { %v9005_v3 = vrot.slane %v9004_v58, 1  ;;  %v9040_v12 = vadd.f32 %v9039_v5, %v9038_v57  ;;  %v8985_v43 = vadd.f32 %v8984_v11, %v8983_v45  ;;  %v9009_v50 = vmul.f32 %v25738_v46, %v25738_v46  ;;  %v26972_v11 = vld [vmem:[#allocation66_spill] sm:$0xff] }
 0xbe1   : > { %v8992_v4 = vadd.f32 %v8991_v30, %v8990_v54  ;;  %v9027_v32 = vrot.slane %v9026_v41, 1  ;;  %v8999_v6 = vadd.f32 %v8998_v60, %v8997_v33  ;;  %v9007_v33 = vmul.f32 %v25732_v52, %v25732_v52  ;;  %v26973_v30 = vld [vmem:[#allocation57_spill] sm:$0xff]  ;;  %v26980_v60 = vld [vmem:[#allocation76_spill] sm:$0xff] }
 0xbe2   : > { %v9006_v53 = vadd.f32 %v9005_v3, %v9004_v58  ;;  %v9041_v38 = vrot.slane %v9040_v12, 1  ;;  %v9029_v57 = vadd.f32 %v9013_v44, %v9009_v50  ;;  %v26975_v3 = vld [vmem:[#allocation58_spill] sm:$0xff] }
 0xbe3   : > { %9107 = vmatprep.mubr.f32.mxu0 %v8992_v4  ;;  %v9028_v26 = vadd.f32 %v9027_v32, %v9026_v41  ;;  %v9015_v58 = vadd.f32 %v9011_v20, %v9007_v33 }
 0xbe4   : > { %9177 = vmatprep.mubr.f32.mxu1 %v9006_v53  ;;  %9108 = vmatmul.mubr.f32.vlgmr.msra.gmra.mrb[28].mxu0 %v8985_v43  ;;  %v9042_v24 = vadd.f32 %v9041_v38, %v9040_v12  ;;  %v9030_v1 = vrot.slane %v9029_v57, 4 }
 0xbe5   : > { %9178 = vmatmul.mubr.f32.vlgmr.msra.gmra.mrb[28].mxu1 %v8999_v6  ;;  %20111 = vmatpush3.bf16.msra.mxu0 %v24700_v63  ;;  %v9016_v45 = vrot.slane %v9015_v58, 4 }
 0xbe6   : > { %20143 = vmatpush3.bf16.msra.mxu1 %v24702_v0  ;;  %9248 = vmatprep.mubr.f32.mxu0 %v9028_v26  ;;  %v9031_v39 = vadd.f32 %v9030_v1, %v9029_v57 }
 0xbe7   : > { %9318 = vmatprep.mubr.f32.mxu1 %v9042_v24  ;;  %20113 = vmatprep.subr.bf16.mxu0 %v24704_v7  ;;  %v9017_v61 = vadd.f32 %v9016_v45, %v9015_v58 }
 0xbe8   : > { %20145 = vmatprep.subr.bf16.mxu1 %v24706_v8  ;;  %v9032_v25 = vrot.slane %v9031_v39, 2 }
 0xbe9   : > { %20115 = vmatpush3.bf16.msra.mxu0 %v24712_v13  ;;  %v9018_v54 = vrot.slane %v9017_v61, 2 }
 0xbea   : > { %20147 = vmatpush3.bf16.msra.mxu1 %v24714_v14  ;;  %20117 = vmatprep.subr.bf16.mxu0 %v24718_v15  ;;  %v9033_v48 = vadd.f32 %v9032_v25, %v9031_v39  ;;  %v22264_v25 = vld [vmem:[#allocation23 + $0x400] ss:$16 sps:$4 sm:$0xff]  }
 0xbeb   : > { %20149 = vmatprep.subr.bf16.mxu1 %v24720_v16  ;;  %v9019_v23 = vadd.f32 %v9018_v54, %v9017_v61 }
 0xbec   : > { %v9034_v62 = vrot.slane %v9033_v48, 1 }
 0xbed   : > { %20119 = vmatpush3.bf16.msra.mxu0 %v24724_v17  ;;  %v9020_v21 = vrot.slane %v9019_v23, 1 }
 0xbee   : > { %20151 = vmatpush3.bf16.msra.mxu1 %v24726_v18  ;;  %20121 = vmatprep.subr.bf16.mxu0 %v24732_v22  ;;  %v9035_v41 = vadd.f32 %v9034_v62, %v9033_v48  ;;  %v22267_v48 = vld [vmem:[#allocation23 + $0x408] ss:$16 sps:$4 sm:$0xff]   ;;  %v22272_v62 = vld [vmem:[#allocation23 + $0x424] ss:$16 sps:$4 sm:$0xff]  }
 0xbef   : > { %20153 = vmatprep.subr.bf16.mxu1 %v24734_v27  ;;  %v9021_v5 = vadd.f32 %v9020_v21, %v9019_v23  ;;  %v22266_v23 = vld [vmem:[#allocation23 + $0x404] ss:$16 sps:$4 sm:$0xff]   ;;  %v22269_v21 = vld [vmem:[#allocation23 + $0x40c] ss:$16 sps:$4 sm:$0xff]  }
 0xbf1   : > { %20123 = vmatpush3.bf16.msra.mxu0 %v24736_v28 }
 0xbf2   : > { %20155 = vmatpush3.bf16.msra.mxu1 %v24739_v31  ;;  %20125 = vmatprep.subr.bf16.mxu0 %v24744_v36 }
 0xbf3   : > { %20157 = vmatprep.subr.bf16.mxu1 %v24746_v40 }
 0xbf5   : > { %20127 = vmatpush3.bf16.msra.mxu0 %v24748_v42 }
 0xbf6   : > { %20159 = vmatpush3.bf16.msra.mxu1 %v24751_v47  ;;  %20129 = vmatprep.subr.bf16.mxu0 %v24756_v51 }
 0xbf7   : > { %20161 = vmatprep.subr.bf16.mxu1 %v24758_v55 }
 0xbf9   : > { %20131 = vmatpush3.bf16.msra.mxu0 %v24760_v56 }
 0xbfa   : > { %20163 = vmatpush3.bf16.msra.mxu1 %v24763_v59  ;;  %20133 = vmatprep.subr.bf16.mxu0 %v24768_v2 }
 0xbfb   : > { %20165 = vmatprep.subr.bf16.mxu1 %v24770_v9 }
 0xbfd   : > { %20135 = vmatpush3.bf16.msra.mxu0 %v24772_v10 }
 0xbfe   : > { %20167 = vmatpush3.bf16.msra.mxu1 %v24775_v19  ;;  %20137 = vmatprep.subr.bf16.mxu0 %v26934_v34 }
 0xbff   : > { %20169 = vmatprep.subr.bf16.mxu1 %v26962_v49 }
 0xc01   : > { %20139 = vmatpush3.bf16.msra.mxu0 %v26963_v37 }
 0xc02   : > { %20171 = vmatpush3.bf16.msra.mxu1 %v26972_v11  ;;  %20174 = vmatprep.subr.msk.bf16.mxu0 %vm24872_vm7, %v26973_v30 }
 0xc03   : > { %20222 = vmatprep.subr.msk.bf16.mxu1 %vm24872_vm7, %v26975_v3 }
 0xc04   : > { %9249 = vmatmul.mubr.f32.vlgmr.msra.gmra.mrb[30].mxu0 %v9021_v5  ;;  %v22275_v5 = vld [vmem:[#allocation23 + $0x42c] ss:$16 sps:$4 sm:$0xff]  }
 0xc05   : > { %9319 = vmatmul.mubr.f32.vlgmr.msra.gmra.mrb[30].mxu1 %v9035_v41  ;;  %v22270_v41 = vld [vmem:[#allocation23 + $0x420] ss:$16 sps:$4 sm:$0xff]  }
 0xc0a   : > { %20177 = vmatpush3.bf16.xpose.msk.msra.mxu0 %vm24872_vm7, %v24700_v63 }
 0xc0b   : > { %20225 = vmatpush3.bf16.xpose.msk.msra.mxu1 %vm24872_vm7, %v24702_v0  ;;  %20180 = vmatprep.subr.msk.bf16.mxu0 %vm24872_vm7, %v24704_v7 }
 0xc0c   : > { %20228 = vmatprep.subr.msk.bf16.mxu1 %vm24872_vm7, %v24706_v8 }
 0xc12   : > { %20183 = vmatpush3.bf16.xpose.msk.msra.mxu0 %vm24872_vm7, %v24712_v13 }
 0xc13   : > { %20231 = vmatpush3.bf16.xpose.msk.msra.mxu1 %vm24872_vm7, %v24714_v14  ;;  %20186 = vmatprep.subr.msk.bf16.mxu0 %vm24872_vm7, %v24718_v15 }
 0xc14   : > { %20234 = vmatprep.subr.msk.bf16.mxu1 %vm24872_vm7, %v24720_v16 }
 0xc1a   : > { %20189 = vmatpush3.bf16.xpose.msk.msra.mxu0 %vm24872_vm7, %v24724_v17 }
 0xc1b   : > { %20237 = vmatpush3.bf16.xpose.msk.msra.mxu1 %vm24872_vm7, %v24726_v18  ;;  %20192 = vmatprep.subr.msk.bf16.mxu0 %vm24872_vm7, %v24732_v22 }
 0xc1c   : > { %20240 = vmatprep.subr.msk.bf16.mxu1 %vm24872_vm7, %v24734_v27 }
 0xc22   : > { %20195 = vmatpush3.bf16.xpose.msk.msra.mxu0 %vm24872_vm7, %v24736_v28 }
 0xc23   : > { %20243 = vmatpush3.bf16.xpose.msk.msra.mxu1 %vm24872_vm7, %v24739_v31  ;;  %20198 = vmatprep.subr.msk.bf16.mxu0 %vm24872_vm7, %v24744_v36 }
 0xc24   : > { %20246 = vmatprep.subr.msk.bf16.mxu1 %vm24872_vm7, %v24746_v40 }
 0xc2a   : > { %20201 = vmatpush3.bf16.xpose.msk.msra.mxu0 %vm24872_vm7, %v24748_v42 }
 0xc2b   : > { %20249 = vmatpush3.bf16.xpose.msk.msra.mxu1 %vm24872_vm7, %v24751_v47  ;;  %20204 = vmatprep.subr.msk.bf16.mxu0 %vm24872_vm7, %v24756_v51 }
 0xc2c   : > { %20252 = vmatprep.subr.msk.bf16.mxu1 %vm24872_vm7, %v24758_v55 }
 0xc32   : > { %20207 = vmatpush3.bf16.xpose.msk.msra.mxu0 %vm24872_vm7, %v24760_v56 }
 0xc33   : > { %20255 = vmatpush3.bf16.xpose.msk.msra.mxu1 %vm24872_vm7, %v24763_v59  ;;  %20210 = vmatprep.subr.msk.bf16.mxu0 %vm24872_vm7, %v24768_v2 }
 0xc34   : > { %20258 = vmatprep.subr.msk.bf16.mxu1 %vm24872_vm7, %v24770_v9 }
 0xc3a   : > { %20213 = vmatpush3.bf16.xpose.msk.msra.mxu0 %vm24872_vm7, %v24772_v10 }
 0xc3b   : > { %20261 = vmatpush3.bf16.xpose.msk.msra.mxu1 %vm24872_vm7, %v24775_v19  ;;  %20216 = vmatprep.subr.msk.bf16.mxu0 %vm24872_vm7, %v26934_v34 }
 0xc3c   : > { %20264 = vmatprep.subr.msk.bf16.mxu1 %vm24872_vm7, %v26962_v49 }
 0xc42   : > { %20219 = vmatpush3.bf16.xpose.msk.msra.mxu0 %vm24872_vm7, %v26963_v37 }
 0xc43   : > { %20267 = vmatpush3.bf16.xpose.msk.msra.mxu1 %vm24872_vm7, %v26972_v11  ;;  %20270 = vmatprep.subr.msk.bf16.mxu0 %vm24872_vm7, %v26973_v30 }
 0xc44   : > { %20318 = vmatprep.subr.msk.bf16.mxu1 %vm24872_vm7, %v26975_v3 }
 0xcb7   : > { %v18840_v12 = vpop.f32.mrb[28].mxu0 }
 0xcb8   : > { %v18875_v4 = vpop.f32.mrb[28].mxu1  ;;  %v18841_v32 = vpop.f32.mrb[29].mxu0 }
 0xcb9   : > { %v18842_v53 = vadd.f32 %v18841_v32, %v18840_v12  ;;  %v18876_v43 = vpop.f32.mrb[29].mxu1  ;;  %v22273_v12 = vld [vmem:[#allocation23 + $0x428] ss:$16 sps:$4 sm:$0xff]   ;;  %v22281_v32 = vld [vmem:[#allocation23 + $0x44c] ss:$16 sps:$4 sm:$0xff]  }
 0xcba   : > { %v18877_v38 = vadd.f32 %v18876_v43, %v18875_v4  ;;  %v22278_v4 = vld [vmem:[#allocation23 + $0x444] ss:$16 sps:$4 sm:$0xff]   ;;  %v22279_v43 = vld [vmem:[#allocation23 + $0x448] ss:$16 sps:$4 sm:$0xff]  }
 0xcbc   : > { %v9180_v6 = vadd.f32 %v18877_v38, %v18842_v53  ;;  %v22276_v53 = vld [vmem:[#allocation23 + $0x440] ss:$16 sps:$4 sm:$0xff]   ;;  %v22284_v38 = vld [vmem:[#allocation23 + $0x464] ss:$16 sps:$4 sm:$0xff]  }
 0xcbe   : > { %v9183_v26 = vmul.f32 0.00390625, %v9180_v6  ;;  %v22287_v6 = vld [vmem:[#allocation23 + $0x46c] ss:$16 sps:$4 sm:$0xff]  }
 0xcc0   : > { %18980 = vmatprep.mubr.msk.f32.mxu0 %vm1741_vm6, %v9183_v26  ;;  %19014 = vmatprep.mubr.msk.f32.mxu1 %vm1741_vm6, %v9183_v26  ;;  %v9325_v1 = vmul.f32 %v9183_v26, %v9183_v26 }
 0xcc1   : > { %18981 = vmatmul.mubr.msk.f32.vlgmr.msra.gmra.mrb[32].mxu0 %vm1741_vm6, %v9183_v26  ;;  %19015 = vmatmul.mubr.msk.f32.vlgmr.msra.gmra.mrb[32].mxu1 %vm1741_vm6, %v9183_v26  ;;  %v22282_v26 = vld [vmem:[#allocation23 + $0x460] ss:$16 sps:$4 sm:$0xff]  }
 0xcc2   : > { %20273 = vmatpush3.bf16.xpose.msk.msra.mxu0 %vm24872_vm7, %v24700_v63  ;;  %20321 = vmatpush3.bf16.xpose.msk.msra.mxu1 %vm24872_vm7, %v24702_v0 }
 0xcc3   : > { %20276 = vmatprep.subr.msk.bf16.mxu0 %vm24872_vm7, %v24704_v7  ;;  %20324 = vmatprep.subr.msk.bf16.mxu1 %vm24872_vm7, %v24706_v8 }
 0xcca   : > { %20279 = vmatpush3.bf16.xpose.msk.msra.mxu0 %vm24872_vm7, %v24712_v13  ;;  %20327 = vmatpush3.bf16.xpose.msk.msra.mxu1 %vm24872_vm7, %v24714_v14 }
 0xccb   : > { %20282 = vmatprep.subr.msk.bf16.mxu0 %vm24872_vm7, %v24718_v15  ;;  %20330 = vmatprep.subr.msk.bf16.mxu1 %vm24872_vm7, %v24720_v16 }
 0xcd2   : > { %20285 = vmatpush3.bf16.xpose.msk.msra.mxu0 %vm24872_vm7, %v24724_v17  ;;  %20333 = vmatpush3.bf16.xpose.msk.msra.mxu1 %vm24872_vm7, %v24726_v18 }
 0xcd3   : > { %20288 = vmatprep.subr.msk.bf16.mxu0 %vm24872_vm7, %v24732_v22  ;;  %20336 = vmatprep.subr.msk.bf16.mxu1 %vm24872_vm7, %v24734_v27 }
 0xcd7   : > { %v18910_v24 = vpop.f32.mrb[30].mxu0 }
 0xcd8   : > { %v18945_v20 = vpop.f32.mrb[30].mxu1  ;;  %v18911_v44 = vpop.f32.mrb[31].mxu0 }
 0xcd9   : > { %v18912_v33 = vadd.f32 %v18911_v44, %v18910_v24  ;;  %v18946_v50 = vpop.f32.mrb[31].mxu1  ;;  %v22285_v24 = vld [vmem:[#allocation23 + $0x468] ss:$16 sps:$4 sm:$0xff]   ;;  %v22293_v44 = vld [vmem:[#allocation23 + $0x48c] ss:$16 sps:$4 sm:$0xff]  }
 0xcda   : > { %v18947_v58 = vadd.f32 %v18946_v50, %v18945_v20  ;;  %20291 = vmatpush3.bf16.xpose.msk.msra.mxu0 %vm24872_vm7, %v24736_v28  ;;  %20339 = vmatpush3.bf16.xpose.msk.msra.mxu1 %vm24872_vm7, %v24739_v31  ;;  %v22290_v20 = vld [vmem:[#allocation23 + $0x484] ss:$16 sps:$4 sm:$0xff]   ;;  %v22291_v50 = vld [vmem:[#allocation23 + $0x488] ss:$16 sps:$4 sm:$0xff]  }
 0xcdb   : > { %20294 = vmatprep.subr.msk.bf16.mxu0 %vm24872_vm7, %v24744_v36  ;;  %20342 = vmatprep.subr.msk.bf16.mxu1 %vm24872_vm7, %v24746_v40 }
 0xcdc   : > { %v9321_v57 = vadd.f32 %v18947_v58, %v18912_v33  ;;  %v22288_v33 = vld [vmem:[#allocation23 + $0x480] ss:$16 sps:$4 sm:$0xff]   ;;  %v22296_v58 = vld [vmem:[#allocation23 + $0x4a4] ss:$16 sps:$4 sm:$0xff]  }
 0xcde   : > { %v9324_v45 = vmul.f32 0.00390625, %v9321_v57  ;;  %v22299_v57 = vld [vmem:[#allocation23 + $0x4ac] ss:$16 sps:$4 sm:$0xff]  }
 0xce0   : > { %v9326_v61 = vsub.f32 %v9324_v45, %v9325_v1  ;;  %v22294_v45 = vld [vmem:[#allocation23 + $0x4a0] ss:$16 sps:$4 sm:$0xff]   ;;  %v22297_v1 = vld [vmem:[#allocation23 + $0x4a8] ss:$16 sps:$4 sm:$0xff]  }
 0xce2   : > { %v9327_v39 = vadd.f32 1e-05, %v9326_v61  ;;  %20297 = vmatpush3.bf16.xpose.msk.msra.mxu0 %vm24872_vm7, %v24748_v42  ;;  %20345 = vmatpush3.bf16.xpose.msk.msra.mxu1 %vm24872_vm7, %v24751_v47  ;;  %v22302_v61 = vld [vmem:[#allocation23 + $0x4c4] ss:$16 sps:$4 sm:$0xff]  }
 0xce3   : > { %20300 = vmatprep.subr.msk.bf16.mxu0 %vm24872_vm7, %v24756_v51  ;;  %20348 = vmatprep.subr.msk.bf16.mxu1 %vm24872_vm7, %v24758_v55 }
 0xce4   : > { %23260 = vrsqrt.f32 %v9327_v39  ;;  %v22305_v39 = vld [vmem:[#allocation23 + $0x4cc] ss:$16 sps:$4 sm:$0xff]  }
 0xcea   : > { %20303 = vmatpush3.bf16.xpose.msk.msra.mxu0 %vm24872_vm7, %v24760_v56  ;;  %20351 = vmatpush3.bf16.xpose.msk.msra.mxu1 %vm24872_vm7, %v24763_v59 }
 0xceb   : > { %20306 = vmatprep.subr.msk.bf16.mxu0 %vm24872_vm7, %v24768_v2  ;;  %20354 = vmatprep.subr.msk.bf16.mxu1 %vm24872_vm7, %v24770_v9 }
 0xcee   : > { %v23261_v54 = vpop.eup %23260 }
 0xcef   : > { %19048 = vmatprep.mubr.msk.f32.mxu0 %vm1741_vm6, %v23261_v54  ;;  %19082 = vmatprep.mubr.msk.f32.mxu1 %vm1741_vm6, %v23261_v54 }
 0xcf2   : > { %20309 = vmatpush3.bf16.xpose.msk.msra.mxu0 %vm24872_vm7, %v24772_v10  ;;  %20357 = vmatpush3.bf16.xpose.msk.msra.mxu1 %vm24872_vm7, %v24775_v19 }
 0xcf3   : > { %20312 = vmatprep.subr.msk.bf16.mxu0 %vm24872_vm7, %v26934_v34  ;;  %20360 = vmatprep.subr.msk.bf16.mxu1 %vm24872_vm7, %v26962_v49 }
 0xcfa   : > { %20315 = vmatpush3.bf16.xpose.msk.msra.mxu0 %vm24872_vm7, %v26963_v37  ;;  %20363 = vmatpush3.bf16.xpose.msk.msra.mxu1 %vm24872_vm7, %v26972_v11 }
 0xcfb   : > { %11076 = vmatprep.subr.bf16.mxu0 %v22266_v23  ;;  %11162 = vmatprep.subr.bf16.mxu1 %v22269_v21  ;;  %v22308_v23 = vld [vmem:[#allocation23 + $0x4e4] ss:$16 sps:$4 sm:$0xff]   ;;  %v22306_v21 = vld [vmem:[#allocation23 + $0x4e0] ss:$16 sps:$4 sm:$0xff]  }
 0xd01   : > { %19049 = vmatmul.mubr.msk.f32.vlgmr.msra.gmra.mrb[34].mxu0 %vm1741_vm6, %v23261_v54  ;;  %19083 = vmatmul.mubr.msk.f32.vlgmr.msra.gmra.mrb[34].mxu1 %vm1741_vm6, %v23261_v54  ;;  %v22300_v54 = vld [vmem:[#allocation23 + $0x4c0] ss:$16 sps:$4 sm:$0xff]  }
 0xd02   : > { %11077 = vmatpush1.bf16.msra.mxu0 %v22264_v25  ;;  %11163 = vmatpush1.bf16.msra.mxu1 %v22267_v48  ;;  %v22303_v25 = vld [vmem:[#allocation23 + $0x4c8] ss:$16 sps:$4 sm:$0xff]   ;;  %v22311_v48 = vld [vmem:[#allocation23 + $0x4ec] ss:$16 sps:$4 sm:$0xff]  }
 0xd03   : > { %11078 = vmatprep.subr.bf16.mxu0 %v22272_v62  ;;  %11164 = vmatprep.subr.bf16.mxu1 %v22275_v5  ;;  %v22309_v62 = vld [vmem:[#allocation23 + $0x4e8] ss:$16 sps:$4 sm:$0xff]   ;;  %v22314_v5 = vld [vmem:[#allocation23 + $0x504] ss:$16 sps:$4 sm:$0xff]  }
 0xd06   : > { %11079 = vmatpush1.bf16.msra.mxu0 %v22270_v41  ;;  %11165 = vmatpush1.bf16.msra.mxu1 %v22273_v12  ;;  %v22317_v41 = vld [vmem:[#allocation23 + $0x50c] ss:$16 sps:$4 sm:$0xff]   ;;  %v22312_v12 = vld [vmem:[#allocation23 + $0x500] ss:$16 sps:$4 sm:$0xff]  }
 0xd07   : > { %11080 = vmatprep.subr.bf16.mxu0 %v22278_v4  ;;  %11166 = vmatprep.subr.bf16.mxu1 %v22281_v32  ;;  %v22315_v4 = vld [vmem:[#allocation23 + $0x508] ss:$16 sps:$4 sm:$0xff]   ;;  %v22320_v32 = vld [vmem:[#allocation23 + $0x524] ss:$16 sps:$4 sm:$0xff]  }
 0xd0a   : > { %11081 = vmatpush1.bf16.msra.mxu0 %v22276_v53  ;;  %11167 = vmatpush1.bf16.msra.mxu1 %v22279_v43  ;;  %v22323_v53 = vld [vmem:[#allocation23 + $0x52c] ss:$16 sps:$4 sm:$0xff]   ;;  %v22318_v43 = vld [vmem:[#allocation23 + $0x520] ss:$16 sps:$4 sm:$0xff]  }
 0xd0b   : > { %11082 = vmatprep.subr.bf16.mxu0 %v22284_v38  ;;  %11168 = vmatprep.subr.bf16.mxu1 %v22287_v6  ;;  %v22321_v38 = vld [vmem:[#allocation23 + $0x528] ss:$16 sps:$4 sm:$0xff]   ;;  %v22326_v6 = vld [vmem:[#allocation23 + $0x544] ss:$16 sps:$4 sm:$0xff]  }
 0xd0e   : > { %11083 = vmatpush1.bf16.msra.mxu0 %v22282_v26  ;;  %11169 = vmatpush1.bf16.msra.mxu1 %v22285_v24  ;;  %v22329_v26 = vld [vmem:[#allocation23 + $0x54c] ss:$16 sps:$4 sm:$0xff]   ;;  %v22324_v24 = vld [vmem:[#allocation23 + $0x540] ss:$16 sps:$4 sm:$0xff]  }
 0xd0f   : > { %11084 = vmatprep.subr.bf16.mxu0 %v22290_v20  ;;  %11170 = vmatprep.subr.bf16.mxu1 %v22293_v44  ;;  %v22327_v20 = vld [vmem:[#allocation23 + $0x548] ss:$16 sps:$4 sm:$0xff]   ;;  %v22332_v44 = vld [vmem:[#allocation23 + $0x564] ss:$16 sps:$4 sm:$0xff]  }
 0xd12   : > { %11085 = vmatpush1.bf16.msra.mxu0 %v22288_v33  ;;  %11171 = vmatpush1.bf16.msra.mxu1 %v22291_v50  ;;  %v22335_v33 = vld [vmem:[#allocation23 + $0x56c] ss:$16 sps:$4 sm:$0xff]   ;;  %v22330_v50 = vld [vmem:[#allocation23 + $0x560] ss:$16 sps:$4 sm:$0xff]  }
 0xd13   : > { %11086 = vmatprep.subr.bf16.mxu0 %v22296_v58  ;;  %11172 = vmatprep.subr.bf16.mxu1 %v22299_v57  ;;  %v22333_v58 = vld [vmem:[#allocation23 + $0x568] ss:$16 sps:$4 sm:$0xff]   ;;  %v22338_v57 = vld [vmem:[#allocation23 + $0x584] ss:$16 sps:$4 sm:$0xff]  }
 0xd16   : > { %11087 = vmatpush1.bf16.msra.mxu0 %v22294_v45  ;;  %11173 = vmatpush1.bf16.msra.mxu1 %v22297_v1  ;;  %v22341_v45 = vld [vmem:[#allocation23 + $0x58c] ss:$16 sps:$4 sm:$0xff]   ;;  %v22336_v1 = vld [vmem:[#allocation23 + $0x580] ss:$16 sps:$4 sm:$0xff]  }
 0xd17   : > { %11088 = vmatprep.subr.bf16.mxu0 %v22302_v61  ;;  %11174 = vmatprep.subr.bf16.mxu1 %v22305_v39  ;;  %v22339_v61 = vld [vmem:[#allocation23 + $0x588] ss:$16 sps:$4 sm:$0xff]   ;;  %v22344_v39 = vld [vmem:[#allocation23 + $0x5a4] ss:$16 sps:$4 sm:$0xff]  }
 0xd1a   : > { %11089 = vmatpush1.bf16.msra.mxu0 %v22300_v54  ;;  %11175 = vmatpush1.bf16.msra.mxu1 %v22303_v25  ;;  %v22347_v54 = vld [vmem:[#allocation23 + $0x5ac] ss:$16 sps:$4 sm:$0xff]   ;;  %v22342_v25 = vld [vmem:[#allocation23 + $0x5a0] ss:$16 sps:$4 sm:$0xff]  }
 0xd1b   : > { %11090 = vmatprep.subr.bf16.mxu0 %v22308_v23  ;;  %11176 = vmatprep.subr.bf16.mxu1 %v22311_v48  ;;  %v22345_v23 = vld [vmem:[#allocation23 + $0x5a8] ss:$16 sps:$4 sm:$0xff]   ;;  %v22350_v48 = vld [vmem:[#allocation23 + $0x5c4] ss:$16 sps:$4 sm:$0xff]  }
 0xd1e   : > { %11091 = vmatpush1.bf16.msra.mxu0 %v22306_v21  ;;  %11177 = vmatpush1.bf16.msra.mxu1 %v22309_v62  ;;  %v22353_v21 = vld [vmem:[#allocation23 + $0x5cc] ss:$16 sps:$4 sm:$0xff]   ;;  %v22348_v62 = vld [vmem:[#allocation23 + $0x5c0] ss:$16 sps:$4 sm:$0xff]  }
 0xd1f   : > { %11092 = vmatprep.subr.bf16.mxu0 %v22314_v5  ;;  %11178 = vmatprep.subr.bf16.mxu1 %v22317_v41  ;;  %v22351_v5 = vld [vmem:[#allocation23 + $0x5c8] ss:$16 sps:$4 sm:$0xff]   ;;  %v22356_v41 = vld [vmem:[#allocation23 + $0x5e4] ss:$16 sps:$4 sm:$0xff]  }
 0xd22   : > { %11093 = vmatpush1.bf16.msra.mxu0 %v22312_v12  ;;  %11179 = vmatpush1.bf16.msra.mxu1 %v22315_v4  ;;  %v22354_v12 = vld [vmem:[#allocation23 + $0x5e0] ss:$16 sps:$4 sm:$0xff]   ;;  %v22357_v4 = vld [vmem:[#allocation23 + $0x5e8] ss:$16 sps:$4 sm:$0xff]  }
 0xd23   : > { %11094 = vmatprep.subr.bf16.mxu0 %v22320_v32  ;;  %11180 = vmatprep.subr.bf16.mxu1 %v22323_v53  ;;  %v22359_v32 = vld [vmem:[#allocation23 + $0x5ec] ss:$16 sps:$4 sm:$0xff]   ;;  %v22362_v53 = vld [vmem:[#allocation23 + $0x604] ss:$16 sps:$4 sm:$0xff]  }
 0xd26   : > { %11095 = vmatpush1.bf16.msra.mxu0 %v22318_v43  ;;  %11181 = vmatpush1.bf16.msra.mxu1 %v22321_v38  ;;  %v22365_v43 = vld [vmem:[#allocation23 + $0x60c] ss:$16 sps:$4 sm:$0xff]  }
 0xd27   : > { %11096 = vmatprep.subr.bf16.mxu0 %v22326_v6  ;;  %11182 = vmatprep.subr.bf16.mxu1 %v22329_v26 }
 0xd2a   : > { %11097 = vmatpush1.bf16.msra.mxu0 %v22324_v24  ;;  %11183 = vmatpush1.bf16.msra.mxu1 %v22327_v20  ;;  %v8977_v20 = vld [vmem:[#allocation20] sm:$0xf] }
 0xd2b   : > { %11098 = vmatprep.subr.bf16.mxu0 %v22332_v44  ;;  %11184 = vmatprep.subr.bf16.mxu1 %v22335_v33  ;;  %v26976_v44 = vld [vmem:[#allocation69_spill] sm:$0xff] }
 0xd2c   : > { %v9623_v33 = vrot.slane %v8977_v20, %v26976_v44 }
 0xd2e   : > { %11099 = vmatpush1.bf16.msra.mxu0 %v22330_v50  ;;  %11185 = vmatpush1.bf16.msra.mxu1 %v22333_v58  ;;  %v26977_v50 = vld [vmem:[#allocation70_spill] sm:$0xff] }
 0xd2f   : > { %11100 = vmatprep.subr.bf16.mxu0 %v22338_v57  ;;  %11186 = vmatprep.subr.bf16.mxu1 %v22341_v45  ;;  %v9631_v58 = vrot.slane %v8977_v20, %v26977_v50  ;;  %v26978_v57 = vld [vmem:[#allocation67_spill] sm:$0xff] }
 0xd30   : > { %v9627_v45 = vrot.slane %v8977_v20, %v26978_v57 }
 0xd32   : > { %11101 = vmatpush1.bf16.msra.mxu0 %v22336_v1  ;;  %11187 = vmatpush1.bf16.msra.mxu1 %v22339_v61  ;;  %v26979_v1 = vld [vmem:[#allocation68_spill] sm:$0xff] }
 0xd33   : > { %11102 = vmatprep.subr.bf16.mxu0 %v22344_v39  ;;  %11188 = vmatprep.subr.bf16.mxu1 %v22347_v54  ;;  %v9635_v61 = vrot.slane %v8977_v20, %v26979_v1 }
 0xd36   : > { %11103 = vmatpush1.bf16.msra.mxu0 %v22342_v25  ;;  %11189 = vmatpush1.bf16.msra.mxu1 %v22345_v23 }
 0xd37   : > { %11104 = vmatprep.subr.bf16.mxu0 %v22350_v48  ;;  %11190 = vmatprep.subr.bf16.mxu1 %v22353_v21 }
 0xd3a   : > { %11105 = vmatpush1.bf16.msra.mxu0 %v22348_v62  ;;  %11191 = vmatpush1.bf16.msra.mxu1 %v22351_v5 }
 0xd3b   : > { %11106 = vmatprep.subr.bf16.mxu0 %v22356_v41  ;;  %11192 = vmatprep.subr.bf16.mxu1 %v22359_v32 }
 0xd3e   : > { %11107 = vmatpush1.bf16.msra.mxu0 %v22354_v12  ;;  %11193 = vmatpush1.bf16.msra.mxu1 %v22357_v4 }
 0xd3f   : > { %11119 = vmatprep.subr.bf16.mxu0 %v22362_v53  ;;  %11205 = vmatprep.subr.bf16.mxu1 %v22365_v43 }
 0xd94   : > { %v9398_v38 = vpop.f32.mrb[32].mxu0  ;;  %v9469_v6 = vpop.f32.mrb[32].mxu1 }
 0xd95   : > { %v9400_v26 = vpop.f32.mrb[33].mxu0  ;;  %v9471_v24 = vpop.f32.mrb[33].mxu1 }
 0xdd4   : > { %v9543_v39 = vpop.f32.mrb[34].mxu0  ;;  %v9614_v54 = vpop.f32.mrb[34].mxu1 }
 0xdd5   : > { %v9640_v25 = vmul.f32 %v9623_v33, %v9543_v39  ;;  %v9642_v23 = vmul.f32 %v9631_v58, %v9614_v54  ;;  %v9545_v48 = vpop.f32.mrb[35].mxu0  ;;  %v9616_v21 = vpop.f32.mrb[35].mxu1  ;;  %v8978_v39 = vld [vmem:[#allocation22] sm:$0xf] }
 0xdd6   : > { %v9641_v62 = vmul.f32 %v9627_v45, %v9545_v48  ;;  %v9643_v5 = vmul.f32 %v9635_v61, %v9616_v21  ;;  %v26981_v61 = vld [vmem:[#allocation72_spill] sm:$0xff]  ;;  %v26982_v48 = vld [vmem:[#allocation77_spill] sm:$0xff] }
 0xdd7   : > { %v9644_v41 = vmul.f32 %v9640_v25, %v9398_v38  ;;  %v9646_v12 = vmul.f32 %v9642_v23, %v9469_v6  ;;  %v9681_v20 = vrot.slane %v9640_v25, %v26976_v44  ;;  %v9689_v33 = vrot.slane %v9642_v23, %v26976_v44 }
 0xdd8   : > { %v9645_v4 = vmul.f32 %v9641_v62, %v9400_v26  ;;  %v9647_v32 = vmul.f32 %v9643_v5, %v9471_v24  ;;  %v9685_v58 = vrot.slane %v9641_v62, %v26976_v44  ;;  %v9693_v45 = vrot.slane %v9643_v5, %v26976_v44  ;;  %v26983_v5 = vld [vmem:[#allocation74_spill] sm:$0xff] }
 0xdd9   : > { %v9694_v26 = vmul.f32 %v9681_v20, %v25732_v52  ;;  %v9696_v24 = vmul.f32 %v9689_v33, %v25738_v46  ;;  %v9698_v62 = vmul.f32 %v9681_v20, %v25736_v35 }
 0xdda   : > { %v9652_v53 = vcombine.low %v9644_v41, %v9645_v4  ;;  %v9653_v43 = vcombine.low %v9646_v12, %v9647_v32  ;;  %v9695_v54 = vmul.f32 %v9685_v58, %v26981_v61  ;;  %v9699_v52 = vmul.f32 %v9685_v58, %v26983_v5  ;;  %v26984_v41 = vld [vmem:[#allocation78_spill] sm:$0xff] }
 0xddb   : > { %v9701_v46 = vmul.f32 %v9693_v45, %v26984_v41  ;;  %v22471_v41 = vld [vmem:[#allocation23 + $0x48] ss:$16 sps:$4 sm:$0xff]  }
 0xddc   : > { %v9660_v11 = vrot.slane %v9652_v53, %v26980_v60  ;;  %v9667_v37 = vrot.slane %v9653_v43, %v26980_v60 }
 0xdde   : > { %v9668_v49 = vcombine.low %v9660_v11, %v9667_v37  ;;  %v9697_v37 = vmul.f32 %v9693_v45, %v26982_v48 }
 0xde0   : > { %v9675_v38 = vrot.slane %v9668_v49, %v26980_v60  ;;  %v9700_v49 = vmul.f32 %v9689_v33, %v25740_v29 }
 0xde2   : > { %v9677_v6 = vsub.f32 %v8978_v39, %v9675_v38 }
 0xde4   : > { %v9706_v11 = vrot.slane %v9677_v6, %v26976_v44  ;;  %v9710_v25 = vrot.slane %v9677_v6, %v26978_v57  ;;  %v9714_v23 = vrot.slane %v9677_v6, %v26977_v50  ;;  %v9718_v21 = vrot.slane %v9677_v6, %v26979_v1 }
 0xde6   : > { %v9723_v12 = vadd.f32 %v9706_v11, %v9694_v26  ;;  %v9724_v4 = vadd.f32 %v9710_v25, %v9695_v54  ;;  %v9725_v32 = vadd.f32 %v9714_v23, %v9696_v24  ;;  %v9726_v53 = vadd.f32 %v9718_v21, %v9697_v37 }
 0xde7   : > { %v9727_v43 = vadd.f32 %v9706_v11, %v9698_v62  ;;  %v9728_v39 = vadd.f32 %v9710_v25, %v9699_v52  ;;  %v9729_v38 = vadd.f32 %v9714_v23, %v9700_v49  ;;  %v9730_v61 = vadd.f32 %v9718_v21, %v9701_v46  ;;  %v22402_v46 = vld [vmem:[#allocation23 + $0x6e0] ss:$16 sps:$4 sm:$0xff]  }
 0xde8   : > { %v26023_v48 = vmax.f32 %v9723_v12, 0.0  ;;  %v26025_v60 = vmax.f32 %v9724_v4, 0.0  ;;  %v26027_v6 = vmax.f32 %v9725_v32, 0.0  ;;  %v26029_v35 = vmax.f32 %v9726_v53, 0.0 }
 0xde9   : > { %v26031_v29 = vmax.f32 %v9727_v43, 0.0  ;;  %v26033_v20 = vmax.f32 %v9728_v39, 0.0  ;;  %v26035_v33 = vmax.f32 %v9729_v38, 0.0  ;;  %v26037_v58 = vmax.f32 %v9730_v61, 0.0  ;;  %v22360_v39 = vld [vmem:[#allocation23 + $0x600] ss:$16 sps:$4 sm:$0xff]  }
 0xdea   : > { %v10409_v45 = vrot.slane %v26025_v60, 7  ;;  %v10408_v26 = vrot.slane %v26023_v48, 7  ;;  %v10411_v24 = vrot.slane %v26029_v35, 7  ;;  %v10410_v54 = vrot.slane %v26027_v6, 7  ;;  %v22363_v38 = vld [vmem:[#allocation23 + $0x608] ss:$16 sps:$4 sm:$0xff]  }
 0xdeb   : > { %v10413_v37 = vrot.slane %v26033_v20, 7  ;;  %v10412_v11 = vrot.slane %v26031_v29, 7  ;;  %v10415_v25 = vrot.slane %v26037_v58, 7  ;;  %v10414_v23 = vrot.slane %v26035_v33, 7 }
 0xdec   : > { %v10381_v21 = vrot.slane %v26025_v60, 6  ;;  %v10385_v62 = vrot.slane %v26033_v20, 6  ;;  %v26051_v49 = vpack.c.bf16 %v26033_v20, %v26025_v60  ;;  %v26055_v5 = vpack.c.bf16 %v26031_v29, %v26023_v48 }
 0xded   : > { %v10417_v12 = vsel %vm977_vm2, %v10409_v45, %v10413_v37  ;;  %v10421_v4 = vsel %vm977_vm2, %v10413_v37, %v10409_v45  ;;  %v10416_v32 = vsel %vm977_vm2, %v10408_v26, %v10412_v11  ;;  %v10420_v53 = vsel %vm977_vm2, %v10412_v11, %v10408_v26  ;;  %v22368_v11 = vld [vmem:[#allocation23 + $0x624] ss:$16 sps:$4 sm:$0xff]  }
 0xdee   : > { %v17477_v43 = vpack.c.bf16 %v10417_v12, %v10421_v4  ;;  %v17480_v61 = vpack.c.bf16 %v10416_v32, %v10420_v53  ;;  %v10419_v52 = vsel %vm977_vm2, %v10411_v24, %v10415_v25  ;;  %v10423_v50 = vsel %vm977_vm2, %v10415_v25, %v10411_v24  ;;  %v22371_v12 = vld [vmem:[#allocation23 + $0x62c] ss:$16 sps:$4 sm:$0xff]  }
 0xdef   : > { %v17483_v1 = vpack.c.bf16 %v10419_v52, %v10423_v50  ;;  %v10418_v45 = vsel %vm977_vm2, %v10410_v54, %v10414_v23  ;;  %v10422_v37 = vsel %vm977_vm2, %v10414_v23, %v10410_v54  ;;  %v10389_v26 = vsel %vm2737_vm8, %v10381_v21, %v10385_v62  ;;  %vm26235_vm2 = vmpackc.low %vm1230_vm5, %vm23970_vm11 }
 0xdf0   : > { %17478 = vmatprep.mubr.msk.bf16.mxu0 %vm26060_vm15, %v17477_v43  ;;  %17490 = vmatprep.mubr.msk.bf16.mxu1 %vm26060_vm15, %v17477_v43  ;;  %v26086_v4 = vpack.c.bf16 %v10418_v45, %v10422_v37  ;;  %v10393_v50 = vsel %vm2737_vm8, %v10385_v62, %v10381_v21  ;;  %v10380_v24 = vrot.slane %v26023_v48, 6  ;;  %v10384_v54 = vrot.slane %v26031_v29, 6  ;;  %v22366_v21 = vld [vmem:[#allocation23 + $0x620] ss:$16 sps:$4 sm:$0xff]   ;;  %v22369_v62 = vld [vmem:[#allocation23 + $0x628] ss:$16 sps:$4 sm:$0xff]  }
 0xdf1   : > { %17481 = vmatmul.mubr.msk.bf16.vlgmr.msra.gmra.mrb[36].mxu0 %vm26060_vm15, %v17480_v61  ;;  %17493 = vmatmul.mubr.msk.bf16.vlgmr.msra.gmra.mrb[36].mxu1 %vm26060_vm15, %v17480_v61  ;;  %v26096_v25 = vpack.c.bf16 %v10389_v26, %v10393_v50  ;;  %v10383_v23 = vrot.slane %v26029_v35, 6  ;;  %v10387_v32 = vrot.slane %v26037_v58, 6  ;;  %v26102_v53 = vpack.c.bf16 %v26037_v58, %v26029_v35 }
 0xdf2   : > { %11120 = vmatpush1.bf16.msra.mxu0 %v22360_v39  ;;  %11206 = vmatpush1.bf16.msra.mxu1 %v22363_v38  ;;  %v10388_v43 = vsel %vm2737_vm8, %v10380_v24, %v10384_v54  ;;  %v10392_v61 = vsel %vm2737_vm8, %v10384_v54, %v10380_v24  ;;  %v10382_v52 = vrot.slane %v26027_v6, 6  ;;  %v10386_v45 = vrot.slane %v26035_v33, 6  ;;  %v22374_v39 = vld [vmem:[#allocation23 + $0x644] ss:$16 sps:$4 sm:$0xff]   ;;  %v22377_v38 = vld [vmem:[#allocation23 + $0x64c] ss:$16 sps:$4 sm:$0xff]  }
 0xdf3   : > { %17484 = vmatprep.mubr.msk.bf16.mxu0 %vm26060_vm15, %v17483_v1  ;;  %17496 = vmatprep.mubr.msk.bf16.mxu1 %vm26060_vm15, %v17483_v1  ;;  %v26114_v37 = vpack.c.bf16 %v10388_v43, %v10392_v61  ;;  %v10391_v26 = vsel %vm2737_vm8, %v10383_v23, %v10387_v32  ;;  %v10395_v50 = vsel %vm2737_vm8, %v10387_v32, %v10383_v23  ;;  %v12885_v24 = vrot.slane %v26025_v60, 1  ;;  %v22372_v43 = vld [vmem:[#allocation23 + $0x640] ss:$16 sps:$4 sm:$0xff]  }
 0xdf4   : > { %11121 = vmatprep.subr.bf16.mxu0 %v22368_v11  ;;  %11207 = vmatprep.subr.bf16.mxu1 %v22371_v12  ;;  %v26121_v54 = vpack.c.bf16 %v10391_v26, %v10395_v50  ;;  %v10390_v44 = vsel %vm2737_vm8, %v10382_v52, %v10386_v45  ;;  %v10394_v1 = vsel %vm2737_vm8, %v10386_v45, %v10382_v52  ;;  %v12889_v23 = vrot.slane %v26033_v20, 1  ;;  %v22375_v12 = vld [vmem:[#allocation23 + $0x648] ss:$16 sps:$4 sm:$0xff]   ;;  %v22383_v45 = vld [vmem:[#allocation23 + $0x66c] ss:$16 sps:$4 sm:$0xff]  }
 0xdf5   : > { %v26127_v61 = vpack.c.bf16 %v10390_v44, %v10394_v1  ;;  %v26131_v57 = vpack.c.bf16 %v26035_v33, %v26027_v6  ;;  %v12884_v11 = vrot.slane %v26023_v48, 1  ;;  %v12888_v32 = vrot.slane %v26031_v29, 1  ;;  %v22380_v44 = vld [vmem:[#allocation23 + $0x664] ss:$16 sps:$4 sm:$0xff]  }
 0xdf6   : > { %11122 = vmatpush1.bf16.msra.mxu0 %v22366_v21  ;;  %11208 = vmatpush1.bf16.msra.mxu1 %v22369_v62  ;;  %v12887_v26 = vrot.slane %v26029_v35, 1  ;;  %v12891_v52 = vrot.slane %v26037_v58, 1  ;;  %v12893_v50 = vsel %vm1222_vm4, %v12885_v24, %v12889_v23  ;;  %v12897_v1 = vsel %vm1222_vm4, %v12889_v23, %v12885_v24 }
 0xdf7   : > { %11123 = vmatprep.subr.bf16.mxu0 %v22374_v39  ;;  %11209 = vmatprep.subr.bf16.mxu1 %v22377_v38  ;;  %v12886_v21 = vrot.slane %v26027_v6, 1  ;;  %v26143_v62 = vpack.c.bf16 %v12897_v1, %v12893_v50  ;;  %v12892_v34 = vsel %vm1222_vm4, %v12884_v11, %v12888_v32  ;;  %v12896_v19 = vsel %vm1222_vm4, %v12888_v32, %v12884_v11  ;;  %v22378_v38 = vld [vmem:[#allocation23 + $0x660] ss:$16 sps:$4 sm:$0xff]   ;;  %v22381_v50 = vld [vmem:[#allocation23 + $0x668] ss:$16 sps:$4 sm:$0xff]  }
 0xdf8   : > { %v12895_v39 = vsel %vm1222_vm4, %v12887_v26, %v12891_v52  ;;  %v26151_v10 = vpack.c.bf16 %v12896_v19, %v12892_v34  ;;  %v12899_v9 = vsel %vm1222_vm4, %v12891_v52, %v12887_v26  ;;  %v12890_v24 = vrot.slane %v26035_v33, 1  ;;  %v22386_v19 = vld [vmem:[#allocation23 + $0x684] ss:$16 sps:$4 sm:$0xff]   ;;  %v22389_v34 = vld [vmem:[#allocation23 + $0x68c] ss:$16 sps:$4 sm:$0xff]  }
 0xdf9   : > { %v13733_v23 = vrot.slane %v26025_v60, 2  ;;  %v26157_v1 = vpack.c.bf16 %v12899_v9, %v12895_v39  ;;  %v13737_v11 = vrot.slane %v26033_v20, 2  ;;  %v13732_v32 = vrot.slane %v26023_v48, 2 }
 0xdfa   : > { %11124 = vmatpush1.bf16.msra.mxu0 %v22372_v43  ;;  %11210 = vmatpush1.bf16.msra.mxu1 %v22375_v12  ;;  %v13736_v2 = vrot.slane %v26031_v29, 2  ;;  %v12894_v26 = vsel %vm1222_vm4, %v12886_v21, %v12890_v24  ;;  %v12898_v60 = vsel %vm1222_vm4, %v12890_v24, %v12886_v21  ;;  %v13735_v52 = vrot.slane %v26029_v35, 2  ;;  %v22387_v21 = vld [vmem:[#allocation23 + $0x688] ss:$16 sps:$4 sm:$0xff]  }
 0xdfb   : > { %11125 = vmatprep.subr.bf16.mxu0 %v22380_v44  ;;  %11211 = vmatprep.subr.bf16.mxu1 %v22383_v45  ;;  %v26166_v43 = vpack.c.bf16 %v12898_v60, %v12894_v26  ;;  %v13741_v9 = vsel %vm4406_vm9, %v13733_v23, %v13737_v11  ;;  %v13745_v48 = vsel %vm4406_vm9, %v13737_v11, %v13733_v23  ;;  %v13739_v44 = vrot.slane %v26037_v58, 2  ;;  %v22384_v45 = vld [vmem:[#allocation23 + $0x680] ss:$16 sps:$4 sm:$0xff]   ;;  %v22392_v11 = vld [vmem:[#allocation23 + $0x6a4] ss:$16 sps:$4 sm:$0xff]  }
 0xdfc   : > { %v13740_v29 = vsel %vm4406_vm9, %v13732_v32, %v13736_v2  ;;  %v26174_v20 = vpack.c.bf16 %v13745_v48, %v13741_v9  ;;  %v13744_v12 = vsel %vm4406_vm9, %v13736_v2, %v13732_v32  ;;  %v13734_v24 = vrot.slane %v26027_v6, 2  ;;  %v22395_v26 = vld [vmem:[#allocation23 + $0x6ac] ss:$16 sps:$4 sm:$0xff]   ;;  %v22393_v32 = vld [vmem:[#allocation23 + $0x6a8] ss:$16 sps:$4 sm:$0xff]  }
 0xdfd   : > { %v26180_v39 = vpack.c.bf16 %v13744_v12, %v13740_v29  ;;  %v13738_v23 = vrot.slane %v26035_v33, 2  ;;  %v13743_v2 = vsel %vm4406_vm9, %v13735_v52, %v13739_v44  ;;  %v13747_v35 = vsel %vm4406_vm9, %v13739_v44, %v13735_v52  ;;  %v22390_v33 = vld [vmem:[#allocation23 + $0x6a0] ss:$16 sps:$4 sm:$0xff]   ;;  %v22399_v9 = vld [vmem:[#allocation23 + $0x6c8] ss:$16 sps:$4 sm:$0xff]  }
 0xdfe   : > { %11126 = vmatpush1.bf16.msra.mxu0 %v22378_v38  ;;  %11212 = vmatpush1.bf16.msra.mxu1 %v22381_v50  ;;  %v26188_v58 = vpack.c.bf16 %v13747_v35, %v13743_v2  ;;  %v22396_v60 = vld [vmem:[#allocation23 + $0x6c0] ss:$16 sps:$4 sm:$0xff]   ;;  %v22404_v48 = vld [vmem:[#allocation23 + $0x6e4] ss:$16 sps:$4 sm:$0xff]   ;;  %v22407_v29 = vld [vmem:[#allocation23 + $0x6ec] ss:$16 sps:$4 sm:$0xff]  }
 0xdff   : > { %11127 = vmatprep.subr.bf16.mxu0 %v22386_v19  ;;  %11213 = vmatprep.subr.bf16.mxu1 %v22389_v34  ;;  %v13742_v38 = vsel %vm4406_vm9, %v13734_v24, %v13738_v23  ;;  %v13746_v6 = vsel %vm4406_vm9, %v13738_v23, %v13734_v24  ;;  %v22398_v19 = vld [vmem:[#allocation23 + $0x6c4] ss:$16 sps:$4 sm:$0xff]   ;;  %v22401_v34 = vld [vmem:[#allocation23 + $0x6cc] ss:$16 sps:$4 sm:$0xff]   ;;  %v22405_v12 = vld [vmem:[#allocation23 + $0x6e8] ss:$16 sps:$4 sm:$0xff]  }
 0xe00   : > { %v26194_v50 = vpack.c.bf16 %v13746_v6, %v13742_v38  ;;  %v22410_v52 = vld [vmem:[#allocation23 + $0x704] ss:$16 sps:$4 sm:$0xff]   ;;  %v22413_v44 = vld [vmem:[#allocation23 + $0x70c] ss:$16 sps:$4 sm:$0xff]   ;;  %v22420_v38 = vld [vmem:[#allocation23 + $0x740] ss:$16 sps:$4 sm:$0xff]  }
 0xe01   : > { %v22416_v24 = vld [vmem:[#allocation23 + $0x724] ss:$16 sps:$4 sm:$0xff]   ;;  %v22419_v23 = vld [vmem:[#allocation23 + $0x72c] ss:$16 sps:$4 sm:$0xff]   ;;  %v22423_v6 = vld [vmem:[#allocation23 + $0x748] ss:$16 sps:$4 sm:$0xff]  }
 0xe02   : > { %11128 = vmatpush1.bf16.msra.mxu0 %v22384_v45  ;;  %11214 = vmatpush1.bf16.msra.mxu1 %v22387_v21  ;;  %v22408_v45 = vld [vmem:[#allocation23 + $0x700] ss:$16 sps:$4 sm:$0xff]   ;;  %v22411_v21 = vld [vmem:[#allocation23 + $0x708] ss:$16 sps:$4 sm:$0xff]   ;;  %v22422_v2 = vld [vmem:[#allocation23 + $0x744] ss:$16 sps:$4 sm:$0xff]  }
 0xe03   : > { %11129 = vmatprep.subr.bf16.mxu0 %v22392_v11  ;;  %11215 = vmatprep.subr.bf16.mxu1 %v22395_v26  ;;  %v22414_v11 = vld [vmem:[#allocation23 + $0x720] ss:$16 sps:$4 sm:$0xff]   ;;  %v22417_v26 = vld [vmem:[#allocation23 + $0x728] ss:$16 sps:$4 sm:$0xff]   ;;  %v22425_v35 = vld [vmem:[#allocation23 + $0x74c] ss:$16 sps:$4 sm:$0xff]  }
 0xe06   : > { %11130 = vmatpush1.bf16.msra.mxu0 %v22390_v33  ;;  %11216 = vmatpush1.bf16.msra.mxu1 %v22393_v32  ;;  %v22428_v33 = vld [vmem:[#allocation23 + $0x764] ss:$16 sps:$4 sm:$0xff]   ;;  %v22431_v32 = vld [vmem:[#allocation23 + $0x76c] ss:$16 sps:$4 sm:$0xff]  }
 0xe07   : > { %11131 = vmatprep.subr.bf16.mxu0 %v22398_v19  ;;  %11217 = vmatprep.subr.bf16.mxu1 %v22401_v34  ;;  %v22426_v19 = vld [vmem:[#allocation23 + $0x760] ss:$16 sps:$4 sm:$0xff]   ;;  %v22429_v34 = vld [vmem:[#allocation23 + $0x768] ss:$16 sps:$4 sm:$0xff]  }
 0xe0a   : > { %11132 = vmatpush1.bf16.msra.mxu0 %v22396_v60  ;;  %11218 = vmatpush1.bf16.msra.mxu1 %v22399_v9  ;;  %v22434_v60 = vld [vmem:[#allocation23 + $0x784] ss:$16 sps:$4 sm:$0xff]   ;;  %v22437_v9 = vld [vmem:[#allocation23 + $0x78c] ss:$16 sps:$4 sm:$0xff]  }
 0xe0b   : > { %11133 = vmatprep.subr.bf16.mxu0 %v22404_v48  ;;  %11219 = vmatprep.subr.bf16.mxu1 %v22407_v29  ;;  %v22432_v48 = vld [vmem:[#allocation23 + $0x780] ss:$16 sps:$4 sm:$0xff]   ;;  %v22435_v29 = vld [vmem:[#allocation23 + $0x788] ss:$16 sps:$4 sm:$0xff]  }
 0xe0e   : > { %11134 = vmatpush1.bf16.msra.mxu0 %v22402_v46  ;;  %11220 = vmatpush1.bf16.msra.mxu1 %v22405_v12  ;;  %v22440_v46 = vld [vmem:[#allocation23 + $0x7a4] ss:$16 sps:$4 sm:$0xff]   ;;  %v22443_v12 = vld [vmem:[#allocation23 + $0x7ac] ss:$16 sps:$4 sm:$0xff]  }
 0xe0f   : > { %11135 = vmatprep.subr.bf16.mxu0 %v22410_v52  ;;  %11221 = vmatprep.subr.bf16.mxu1 %v22413_v44  ;;  %v22438_v52 = vld [vmem:[#allocation23 + $0x7a0] ss:$16 sps:$4 sm:$0xff]   ;;  %v22441_v44 = vld [vmem:[#allocation23 + $0x7a8] ss:$16 sps:$4 sm:$0xff]  }
 0xe12   : > { %11136 = vmatpush1.bf16.msra.mxu0 %v22408_v45  ;;  %11222 = vmatpush1.bf16.msra.mxu1 %v22411_v21  ;;  %v22446_v45 = vld [vmem:[#allocation23 + $0x7c4] ss:$16 sps:$4 sm:$0xff]   ;;  %v22449_v21 = vld [vmem:[#allocation23 + $0x7cc] ss:$16 sps:$4 sm:$0xff]  }
 0xe13   : > { %11137 = vmatprep.subr.bf16.mxu0 %v22416_v24  ;;  %11223 = vmatprep.subr.bf16.mxu1 %v22419_v23  ;;  %v22444_v24 = vld [vmem:[#allocation23 + $0x7c0] ss:$16 sps:$4 sm:$0xff]   ;;  %v22447_v23 = vld [vmem:[#allocation23 + $0x7c8] ss:$16 sps:$4 sm:$0xff]  }
 0xe16   : > { %11138 = vmatpush1.bf16.msra.mxu0 %v22414_v11  ;;  %11224 = vmatpush1.bf16.msra.mxu1 %v22417_v26  ;;  %v22452_v11 = vld [vmem:[#allocation23 + $0x7e4] ss:$16 sps:$4 sm:$0xff]   ;;  %v22455_v26 = vld [vmem:[#allocation23 + $0x7ec] ss:$16 sps:$4 sm:$0xff]  }
 0xe17   : > { %11139 = vmatprep.subr.bf16.mxu0 %v22422_v2  ;;  %11225 = vmatprep.subr.bf16.mxu1 %v22425_v35  ;;  %v22450_v2 = vld [vmem:[#allocation23 + $0x7e0] ss:$16 sps:$4 sm:$0xff]   ;;  %v22453_v35 = vld [vmem:[#allocation23 + $0x7e8] ss:$16 sps:$4 sm:$0xff]  }
 0xe1a   : > { %11140 = vmatpush1.bf16.msra.mxu0 %v22420_v38  ;;  %11226 = vmatpush1.bf16.msra.mxu1 %v22423_v6  ;;  %v22458_v38 = vld [vmem:[#allocation23 + $0x4] ss:$16 sps:$4 sm:$0xff]   ;;  %v22461_v6 = vld [vmem:[#allocation23 + $0xc] ss:$16 sps:$4 sm:$0xff]  }
 0xe1b   : > { %11141 = vmatprep.subr.bf16.mxu0 %v22428_v33  ;;  %11227 = vmatprep.subr.bf16.mxu1 %v22431_v32  ;;  %v22456_v33 = vld [vmem:[#allocation23] ss:$16 sps:$4 sm:$0xff]   ;;  %v22459_v32 = vld [vmem:[#allocation23 + $0x8] ss:$16 sps:$4 sm:$0xff]  }
 0xe1e   : > { %11142 = vmatpush1.bf16.msra.mxu0 %v22426_v19  ;;  %11228 = vmatpush1.bf16.msra.mxu1 %v22429_v34  ;;  %v22464_v19 = vld [vmem:[#allocation23 + $0x24] ss:$16 sps:$4 sm:$0xff]   ;;  %v22467_v34 = vld [vmem:[#allocation23 + $0x2c] ss:$16 sps:$4 sm:$0xff]  }
 0xe1f   : > { %11143 = vmatprep.subr.bf16.mxu0 %v22434_v60  ;;  %11229 = vmatprep.subr.bf16.mxu1 %v22437_v9  ;;  %v22462_v9 = vld [vmem:[#allocation23 + $0x20] ss:$16 sps:$4 sm:$0xff]  }
 0xe20   : > { %v22666_v60 = vld [vmem:[#allocation23 + $0x860] ss:$16 sps:$4 sm:$0xff]  }
 0xe22   : > { %11144 = vmatpush1.bf16.msra.mxu0 %v22432_v48  ;;  %11230 = vmatpush1.bf16.msra.mxu1 %v22435_v29  ;;  %v22465_v48 = vld [vmem:[#allocation23 + $0x28] ss:$16 sps:$4 sm:$0xff]   ;;  %v22470_v29 = vld [vmem:[#allocation23 + $0x44] ss:$16 sps:$4 sm:$0xff]  }
 0xe23   : > { %11145 = vmatprep.subr.bf16.mxu0 %v22440_v46  ;;  %11231 = vmatprep.subr.bf16.mxu1 %v22443_v12  ;;  %v22473_v46 = vld [vmem:[#allocation23 + $0x4c] ss:$16 sps:$4 sm:$0xff]   ;;  %v22468_v12 = vld [vmem:[#allocation23 + $0x40] ss:$16 sps:$4 sm:$0xff]  }
 0xe26   : > { %11146 = vmatpush1.bf16.msra.mxu0 %v22438_v52  ;;  %11232 = vmatpush1.bf16.msra.mxu1 %v22441_v44  ;;  %v22479_v52 = vld [vmem:[#allocation23 + $0x6c] ss:$16 sps:$4 sm:$0xff]   ;;  %v22474_v44 = vld [vmem:[#allocation23 + $0x60] ss:$16 sps:$4 sm:$0xff]  }
 0xe27   : > { %11147 = vmatprep.subr.bf16.mxu0 %v22446_v45  ;;  %11233 = vmatprep.subr.bf16.mxu1 %v22449_v21  ;;  %v22477_v45 = vld [vmem:[#allocation23 + $0x68] ss:$16 sps:$4 sm:$0xff]   ;;  %v22482_v21 = vld [vmem:[#allocation23 + $0x84] ss:$16 sps:$4 sm:$0xff]  }
 0xe2a   : > { %11148 = vmatpush1.bf16.msra.mxu0 %v22444_v24  ;;  %11234 = vmatpush1.bf16.msra.mxu1 %v22447_v23  ;;  %v22480_v24 = vld [vmem:[#allocation23 + $0x80] ss:$16 sps:$4 sm:$0xff]   ;;  %v22483_v23 = vld [vmem:[#allocation23 + $0x88] ss:$16 sps:$4 sm:$0xff]  }
 0xe2b   : > { %11149 = vmatprep.subr.bf16.mxu0 %v22452_v11  ;;  %11235 = vmatprep.subr.bf16.mxu1 %v22455_v26  ;;  %v22488_v11 = vld [vmem:[#allocation23 + $0xa4] ss:$16 sps:$4 sm:$0xff]   ;;  %v22491_v26 = vld [vmem:[#allocation23 + $0xac] ss:$16 sps:$4 sm:$0xff]  }
 0xe2e   : > { %11150 = vmatpush1.bf16.msra.mxu0 %v22450_v2  ;;  %11236 = vmatpush1.bf16.msra.mxu1 %v22453_v35  ;;  %v22486_v2 = vld [vmem:[#allocation23 + $0xa0] ss:$16 sps:$4 sm:$0xff]   ;;  %v22489_v35 = vld [vmem:[#allocation23 + $0xa8] ss:$16 sps:$4 sm:$0xff]  }
 0xe2f   : > { %11888 = vmatprep.subr.bf16.mxu0 %v22458_v38  ;;  %11974 = vmatprep.subr.bf16.mxu1 %v22461_v6  ;;  %v22494_v38 = vld [vmem:[#allocation23 + $0xc4] ss:$16 sps:$4 sm:$0xff]   ;;  %v22497_v6 = vld [vmem:[#allocation23 + $0xcc] ss:$16 sps:$4 sm:$0xff]  }
 0xe31   : > { %17487 = vmatmul.mubr.msk.bf16.vlgmr.msra.gmra.mrb[36].mxu0 %vm26060_vm15, %v26086_v4  ;;  %17499 = vmatmul.mubr.msk.bf16.vlgmr.msra.gmra.mrb[36].mxu1 %vm26060_vm15, %v26086_v4  ;;  %v22476_v4 = vld [vmem:[#allocation23 + $0x64] ss:$16 sps:$4 sm:$0xff]  }
 0xe32   : > { %11889 = vmatpush1.bf16.msra.mxu0 %v22456_v33  ;;  %17630 = vmatprep.mubr.msk.bf16.mxu0 %vm25204_vm12, %v26096_v25  ;;  %v22492_v33 = vld [vmem:[#allocation23 + $0xc0] ss:$16 sps:$4 sm:$0xff]  }
 0xe33   : > { %11975 = vmatpush1.bf16.msra.mxu1 %v22459_v32  ;;  %17642 = vmatprep.mubr.msk.bf16.mxu1 %vm25204_vm12, %v26096_v25  ;;  %v22485_v25 = vld [vmem:[#allocation23 + $0x8c] ss:$16 sps:$4 sm:$0xff]   ;;  %v22495_v32 = vld [vmem:[#allocation23 + $0xc8] ss:$16 sps:$4 sm:$0xff]  }
 0xe34   : > { %11890 = vmatprep.subr.bf16.mxu0 %v22464_v19  ;;  %11976 = vmatprep.subr.bf16.mxu1 %v22467_v34  ;;  %v22500_v19 = vld [vmem:[#allocation23 + $0xe4] ss:$16 sps:$4 sm:$0xff]   ;;  %v22503_v34 = vld [vmem:[#allocation23 + $0xec] ss:$16 sps:$4 sm:$0xff]  }
 0xe36   : > { %11891 = vmatpush1.bf16.msra.mxu0 %v22462_v9  ;;  %v22498_v9 = vld [vmem:[#allocation23 + $0xe0] ss:$16 sps:$4 sm:$0xff]  }
 0xe37   : > { %11977 = vmatpush1.bf16.msra.mxu1 %v22465_v48  ;;  %11892 = vmatprep.subr.bf16.mxu0 %v22470_v29  ;;  %v22501_v48 = vld [vmem:[#allocation23 + $0xe8] ss:$16 sps:$4 sm:$0xff]   ;;  %v22506_v29 = vld [vmem:[#allocation23 + $0x104] ss:$16 sps:$4 sm:$0xff]  }
 0xe38   : > { %11978 = vmatprep.subr.bf16.mxu1 %v22473_v46  ;;  %v22509_v46 = vld [vmem:[#allocation23 + $0x10c] ss:$16 sps:$4 sm:$0xff]  }
 0xe3a   : > { %11893 = vmatpush1.bf16.msra.mxu0 %v22468_v12  ;;  %v22504_v12 = vld [vmem:[#allocation23 + $0x100] ss:$16 sps:$4 sm:$0xff]  }
 0xe3b   : > { %11979 = vmatpush1.bf16.msra.mxu1 %v22471_v41  ;;  %11894 = vmatprep.subr.bf16.mxu0 %v22476_v4  ;;  %v22507_v41 = vld [vmem:[#allocation23 + $0x108] ss:$16 sps:$4 sm:$0xff]   ;;  %v22512_v4 = vld [vmem:[#allocation23 + $0x124] ss:$16 sps:$4 sm:$0xff]  }
 0xe3c   : > { %11980 = vmatprep.subr.bf16.mxu1 %v22479_v52  ;;  %v22515_v52 = vld [vmem:[#allocation23 + $0x12c] ss:$16 sps:$4 sm:$0xff]  }
 0xe3e   : > { %11895 = vmatpush1.bf16.msra.mxu0 %v22474_v44  ;;  %v22510_v44 = vld [vmem:[#allocation23 + $0x120] ss:$16 sps:$4 sm:$0xff]  }
 0xe3f   : > { %11981 = vmatpush1.bf16.msra.mxu1 %v22477_v45  ;;  %11896 = vmatprep.subr.bf16.mxu0 %v22482_v21  ;;  %v22513_v45 = vld [vmem:[#allocation23 + $0x128] ss:$16 sps:$4 sm:$0xff]   ;;  %v22518_v21 = vld [vmem:[#allocation23 + $0x144] ss:$16 sps:$4 sm:$0xff]  }
 0xe40   : > { %11982 = vmatprep.subr.bf16.mxu1 %v22485_v25  ;;  %v22521_v25 = vld [vmem:[#allocation23 + $0x14c] ss:$16 sps:$4 sm:$0xff]  }
 0xe42   : > { %11897 = vmatpush1.bf16.msra.mxu0 %v22480_v24  ;;  %v22516_v24 = vld [vmem:[#allocation23 + $0x140] ss:$16 sps:$4 sm:$0xff]  }
 0xe43   : > { %11983 = vmatpush1.bf16.msra.mxu1 %v22483_v23  ;;  %11898 = vmatprep.subr.bf16.mxu0 %v22488_v11  ;;  %v22519_v23 = vld [vmem:[#allocation23 + $0x148] ss:$16 sps:$4 sm:$0xff]   ;;  %v22524_v11 = vld [vmem:[#allocation23 + $0x164] ss:$16 sps:$4 sm:$0xff]  }
 0xe44   : > { %11984 = vmatprep.subr.bf16.mxu1 %v22491_v26  ;;  %v22527_v26 = vld [vmem:[#allocation23 + $0x16c] ss:$16 sps:$4 sm:$0xff]  }
 0xe46   : > { %11899 = vmatpush1.bf16.msra.mxu0 %v22486_v2  ;;  %v22522_v2 = vld [vmem:[#allocation23 + $0x160] ss:$16 sps:$4 sm:$0xff]  }
 0xe47   : > { %11985 = vmatpush1.bf16.msra.mxu1 %v22489_v35  ;;  %11900 = vmatprep.subr.bf16.mxu0 %v22494_v38  ;;  %v22525_v35 = vld [vmem:[#allocation23 + $0x168] ss:$16 sps:$4 sm:$0xff]   ;;  %v22530_v38 = vld [vmem:[#allocation23 + $0x184] ss:$16 sps:$4 sm:$0xff]  }
 0xe48   : > { %11986 = vmatprep.subr.bf16.mxu1 %v22497_v6  ;;  %v22533_v6 = vld [vmem:[#allocation23 + $0x18c] ss:$16 sps:$4 sm:$0xff]  }
 0xe4a   : > { %11901 = vmatpush1.bf16.msra.mxu0 %v22492_v33  ;;  %v22528_v33 = vld [vmem:[#allocation23 + $0x180] ss:$16 sps:$4 sm:$0xff]  }
 0xe4b   : > { %11987 = vmatpush1.bf16.msra.mxu1 %v22495_v32  ;;  %11902 = vmatprep.subr.bf16.mxu0 %v22500_v19  ;;  %v22531_v32 = vld [vmem:[#allocation23 + $0x188] ss:$16 sps:$4 sm:$0xff]   ;;  %v22536_v19 = vld [vmem:[#allocation23 + $0x1a4] ss:$16 sps:$4 sm:$0xff]  }
 0xe4c   : > { %11988 = vmatprep.subr.bf16.mxu1 %v22503_v34  ;;  %v22539_v34 = vld [vmem:[#allocation23 + $0x1ac] ss:$16 sps:$4 sm:$0xff]  }
 0xe4e   : > { %11903 = vmatpush1.bf16.msra.mxu0 %v22498_v9  ;;  %v22534_v9 = vld [vmem:[#allocation23 + $0x1a0] ss:$16 sps:$4 sm:$0xff]  }
 0xe4f   : > { %11989 = vmatpush1.bf16.msra.mxu1 %v22501_v48  ;;  %11904 = vmatprep.subr.bf16.mxu0 %v22506_v29  ;;  %v22537_v48 = vld [vmem:[#allocation23 + $0x1a8] ss:$16 sps:$4 sm:$0xff]   ;;  %v22542_v29 = vld [vmem:[#allocation23 + $0x1c4] ss:$16 sps:$4 sm:$0xff]  }
 0xe50   : > { %11990 = vmatprep.subr.bf16.mxu1 %v22509_v46  ;;  %v22545_v46 = vld [vmem:[#allocation23 + $0x1cc] ss:$16 sps:$4 sm:$0xff]  }
 0xe52   : > { %11905 = vmatpush1.bf16.msra.mxu0 %v22504_v12  ;;  %v22540_v12 = vld [vmem:[#allocation23 + $0x1c0] ss:$16 sps:$4 sm:$0xff]  }
 0xe53   : > { %11991 = vmatpush1.bf16.msra.mxu1 %v22507_v41  ;;  %11906 = vmatprep.subr.bf16.mxu0 %v22512_v4  ;;  %v22543_v41 = vld [vmem:[#allocation23 + $0x1c8] ss:$16 sps:$4 sm:$0xff]   ;;  %v22548_v4 = vld [vmem:[#allocation23 + $0x1e4] ss:$16 sps:$4 sm:$0xff]  }
 0xe54   : > { %11992 = vmatprep.subr.bf16.mxu1 %v22515_v52  ;;  %v22551_v52 = vld [vmem:[#allocation23 + $0x1ec] ss:$16 sps:$4 sm:$0xff]  }
 0xe56   : > { %11907 = vmatpush1.bf16.msra.mxu0 %v22510_v44  ;;  %v22546_v44 = vld [vmem:[#allocation23 + $0x1e0] ss:$16 sps:$4 sm:$0xff]  }
 0xe57   : > { %11993 = vmatpush1.bf16.msra.mxu1 %v22513_v45  ;;  %11908 = vmatprep.subr.bf16.mxu0 %v22518_v21  ;;  %v22549_v45 = vld [vmem:[#allocation23 + $0x1e8] ss:$16 sps:$4 sm:$0xff]   ;;  %v22554_v21 = vld [vmem:[#allocation23 + $0x204] ss:$16 sps:$4 sm:$0xff]  }
 0xe58   : > { %11994 = vmatprep.subr.bf16.mxu1 %v22521_v25  ;;  %v22557_v25 = vld [vmem:[#allocation23 + $0x20c] ss:$16 sps:$4 sm:$0xff]  }
 0xe5a   : > { %11909 = vmatpush1.bf16.msra.mxu0 %v22516_v24  ;;  %v22552_v24 = vld [vmem:[#allocation23 + $0x200] ss:$16 sps:$4 sm:$0xff]  }
 0xe5b   : > { %11995 = vmatpush1.bf16.msra.mxu1 %v22519_v23  ;;  %11910 = vmatprep.subr.bf16.mxu0 %v22524_v11  ;;  %v22555_v23 = vld [vmem:[#allocation23 + $0x208] ss:$16 sps:$4 sm:$0xff]   ;;  %v22560_v11 = vld [vmem:[#allocation23 + $0x224] ss:$16 sps:$4 sm:$0xff]  }
 0xe5c   : > { %11996 = vmatprep.subr.bf16.mxu1 %v22527_v26  ;;  %v22563_v26 = vld [vmem:[#allocation23 + $0x22c] ss:$16 sps:$4 sm:$0xff]  }
 0xe5e   : > { %11911 = vmatpush1.bf16.msra.mxu0 %v22522_v2  ;;  %v22558_v2 = vld [vmem:[#allocation23 + $0x220] ss:$16 sps:$4 sm:$0xff]  }
 0xe5f   : > { %11997 = vmatpush1.bf16.msra.mxu1 %v22525_v35  ;;  %11912 = vmatprep.subr.bf16.mxu0 %v22530_v38  ;;  %v22561_v35 = vld [vmem:[#allocation23 + $0x228] ss:$16 sps:$4 sm:$0xff]   ;;  %v22566_v38 = vld [vmem:[#allocation23 + $0x244] ss:$16 sps:$4 sm:$0xff]  }
 0xe60   : > { %11998 = vmatprep.subr.bf16.mxu1 %v22533_v6  ;;  %v22569_v6 = vld [vmem:[#allocation23 + $0x24c] ss:$16 sps:$4 sm:$0xff]  }
 0xe62   : > { %11913 = vmatpush1.bf16.msra.mxu0 %v22528_v33  ;;  %v22564_v33 = vld [vmem:[#allocation23 + $0x240] ss:$16 sps:$4 sm:$0xff]  }
 0xe63   : > { %11999 = vmatpush1.bf16.msra.mxu1 %v22531_v32  ;;  %11914 = vmatprep.subr.bf16.mxu0 %v22536_v19  ;;  %v22572_v32 = vld [vmem:[#allocation23 + $0x264] ss:$16 sps:$4 sm:$0xff]   ;;  %v22575_v19 = vld [vmem:[#allocation23 + $0x26c] ss:$16 sps:$4 sm:$0xff]  }
 0xe64   : > { %12000 = vmatprep.subr.bf16.mxu1 %v22539_v34  ;;  %v22570_v34 = vld [vmem:[#allocation23 + $0x260] ss:$16 sps:$4 sm:$0xff]  }
 0xe66   : > { %11915 = vmatpush1.bf16.msra.mxu0 %v22534_v9  ;;  %v22573_v9 = vld [vmem:[#allocation23 + $0x268] ss:$16 sps:$4 sm:$0xff]  }
 0xe67   : > { %12001 = vmatpush1.bf16.msra.mxu1 %v22537_v48  ;;  %11916 = vmatprep.subr.bf16.mxu0 %v22542_v29  ;;  %v22578_v48 = vld [vmem:[#allocation23 + $0x284] ss:$16 sps:$4 sm:$0xff]   ;;  %v22581_v29 = vld [vmem:[#allocation23 + $0x28c] ss:$16 sps:$4 sm:$0xff]  }
 0xe68   : > { %12002 = vmatprep.subr.bf16.mxu1 %v22545_v46  ;;  %v22579_v46 = vld [vmem:[#allocation23 + $0x288] ss:$16 sps:$4 sm:$0xff]  }
 0xe6a   : > { %11917 = vmatpush1.bf16.msra.mxu0 %v22540_v12  ;;  %v22584_v12 = vld [vmem:[#allocation23 + $0x2a4] ss:$16 sps:$4 sm:$0xff]  }
 0xe6b   : > { %12003 = vmatpush1.bf16.msra.mxu1 %v22543_v41  ;;  %11918 = vmatprep.subr.bf16.mxu0 %v22548_v4  ;;  %v22587_v41 = vld [vmem:[#allocation23 + $0x2ac] ss:$16 sps:$4 sm:$0xff]   ;;  %v22582_v4 = vld [vmem:[#allocation23 + $0x2a0] ss:$16 sps:$4 sm:$0xff]  }
 0xe6c   : > { %12004 = vmatprep.subr.bf16.mxu1 %v22551_v52  ;;  %v22585_v52 = vld [vmem:[#allocation23 + $0x2a8] ss:$16 sps:$4 sm:$0xff]  }
 0xe6e   : > { %11919 = vmatpush1.bf16.msra.mxu0 %v22546_v44  ;;  %v22590_v44 = vld [vmem:[#allocation23 + $0x2c4] ss:$16 sps:$4 sm:$0xff]  }
 0xe6f   : > { %12005 = vmatpush1.bf16.msra.mxu1 %v22549_v45  ;;  %11931 = vmatprep.subr.bf16.mxu0 %v22554_v21  ;;  %v22593_v45 = vld [vmem:[#allocation23 + $0x2cc] ss:$16 sps:$4 sm:$0xff]   ;;  %v22588_v21 = vld [vmem:[#allocation23 + $0x2c0] ss:$16 sps:$4 sm:$0xff]  }
 0xe70   : > { %12017 = vmatprep.subr.bf16.mxu1 %v22557_v25  ;;  %v22591_v25 = vld [vmem:[#allocation23 + $0x2c8] ss:$16 sps:$4 sm:$0xff]  }
 0xe71   : > { %17633 = vmatmul.mubr.msk.bf16.vlgmr.msra.gmra.mrb[36].mxu0 %vm25204_vm12, %v26114_v37 }
 0xe72   : > { %17645 = vmatmul.mubr.msk.bf16.vlgmr.msra.gmra.mrb[36].mxu1 %vm25204_vm12, %v26114_v37  ;;  %11932 = vmatpush1.bf16.msra.mxu0 %v22552_v24  ;;  %v22567_v37 = vld [vmem:[#allocation23 + $0x248] ss:$16 sps:$4 sm:$0xff]   ;;  %v22596_v24 = vld [vmem:[#allocation23 + $0x2e4] ss:$16 sps:$4 sm:$0xff]  }
 0xe73   : > { %17636 = vmatprep.mubr.msk.bf16.mxu0 %vm25204_vm12, %v26121_v54  ;;  %12018 = vmatpush1.bf16.msra.mxu1 %v22555_v23  ;;  %v22599_v23 = vld [vmem:[#allocation23 + $0x2ec] ss:$16 sps:$4 sm:$0xff]  }
 0xe74   : > { %17648 = vmatprep.mubr.msk.bf16.mxu1 %vm25204_vm12, %v26121_v54  ;;  %11933 = vmatprep.subr.bf16.mxu0 %v22560_v11  ;;  %v22576_v54 = vld [vmem:[#allocation23 + $0x280] ss:$16 sps:$4 sm:$0xff]  }
 0xe75   : > { %12019 = vmatprep.subr.bf16.mxu1 %v22563_v26  ;;  %v22594_v11 = vld [vmem:[#allocation23 + $0x2e0] ss:$16 sps:$4 sm:$0xff]   ;;  %v22597_v26 = vld [vmem:[#allocation23 + $0x2e8] ss:$16 sps:$4 sm:$0xff]  }
 0xe76   : > { %11934 = vmatpush1.bf16.msra.mxu0 %v22558_v2  ;;  %v22602_v2 = vld [vmem:[#allocation23 + $0x304] ss:$16 sps:$4 sm:$0xff]  }
 0xe77   : > { %12020 = vmatpush1.bf16.msra.mxu1 %v22561_v35  ;;  %11935 = vmatprep.subr.bf16.mxu0 %v22566_v38  ;;  %v22605_v35 = vld [vmem:[#allocation23 + $0x30c] ss:$16 sps:$4 sm:$0xff]   ;;  %v22600_v38 = vld [vmem:[#allocation23 + $0x300] ss:$16 sps:$4 sm:$0xff]  }
 0xe78   : > { %12021 = vmatprep.subr.bf16.mxu1 %v22569_v6  ;;  %v22603_v6 = vld [vmem:[#allocation23 + $0x308] ss:$16 sps:$4 sm:$0xff]  }
 0xe7a   : > { %11936 = vmatpush1.bf16.msra.mxu0 %v22564_v33  ;;  %v22608_v33 = vld [vmem:[#allocation23 + $0x324] ss:$16 sps:$4 sm:$0xff]  }
 0xe7b   : > { %12022 = vmatpush1.bf16.msra.mxu1 %v22567_v37  ;;  %11937 = vmatprep.subr.bf16.mxu0 %v22572_v32  ;;  %v22611_v37 = vld [vmem:[#allocation23 + $0x32c] ss:$16 sps:$4 sm:$0xff]   ;;  %v22606_v32 = vld [vmem:[#allocation23 + $0x320] ss:$16 sps:$4 sm:$0xff]  }
 0xe7c   : > { %12023 = vmatprep.subr.bf16.mxu1 %v22575_v19  ;;  %v22609_v19 = vld [vmem:[#allocation23 + $0x328] ss:$16 sps:$4 sm:$0xff]  }
 0xe7e   : > { %11938 = vmatpush1.bf16.msra.mxu0 %v22570_v34  ;;  %v22614_v34 = vld [vmem:[#allocation23 + $0x344] ss:$16 sps:$4 sm:$0xff]  }
 0xe7f   : > { %12024 = vmatpush1.bf16.msra.mxu1 %v22573_v9  ;;  %11939 = vmatprep.subr.bf16.mxu0 %v22578_v48  ;;  %v22617_v9 = vld [vmem:[#allocation23 + $0x34c] ss:$16 sps:$4 sm:$0xff]   ;;  %v22612_v48 = vld [vmem:[#allocation23 + $0x340] ss:$16 sps:$4 sm:$0xff]  }
 0xe80   : > { %12025 = vmatprep.subr.bf16.mxu1 %v22581_v29  ;;  %v22615_v29 = vld [vmem:[#allocation23 + $0x348] ss:$16 sps:$4 sm:$0xff]  }
 0xe82   : > { %11940 = vmatpush1.bf16.msra.mxu0 %v22576_v54  ;;  %v22620_v54 = vld [vmem:[#allocation23 + $0x364] ss:$16 sps:$4 sm:$0xff]  }
 0xe83   : > { %12026 = vmatpush1.bf16.msra.mxu1 %v22579_v46  ;;  %11941 = vmatprep.subr.bf16.mxu0 %v22584_v12  ;;  %v22623_v46 = vld [vmem:[#allocation23 + $0x36c] ss:$16 sps:$4 sm:$0xff]   ;;  %v22618_v12 = vld [vmem:[#allocation23 + $0x360] ss:$16 sps:$4 sm:$0xff]  }
 0xe84   : > { %12027 = vmatprep.subr.bf16.mxu1 %v22587_v41  ;;  %v22621_v41 = vld [vmem:[#allocation23 + $0x368] ss:$16 sps:$4 sm:$0xff]  }
 0xe86   : > { %11942 = vmatpush1.bf16.msra.mxu0 %v22582_v4  ;;  %v22626_v4 = vld [vmem:[#allocation23 + $0x384] ss:$16 sps:$4 sm:$0xff]  }
 0xe87   : > { %12028 = vmatpush1.bf16.msra.mxu1 %v22585_v52  ;;  %11943 = vmatprep.subr.bf16.mxu0 %v22590_v44  ;;  %v22629_v52 = vld [vmem:[#allocation23 + $0x38c] ss:$16 sps:$4 sm:$0xff]   ;;  %v22624_v44 = vld [vmem:[#allocation23 + $0x380] ss:$16 sps:$4 sm:$0xff]  }
 0xe88   : > { %12029 = vmatprep.subr.bf16.mxu1 %v22593_v45  ;;  %v22627_v45 = vld [vmem:[#allocation23 + $0x388] ss:$16 sps:$4 sm:$0xff]  }
 0xe8a   : > { %11944 = vmatpush1.bf16.msra.mxu0 %v22588_v21  ;;  %v22632_v21 = vld [vmem:[#allocation23 + $0x3a4] ss:$16 sps:$4 sm:$0xff]  }
 0xe8b   : > { %12030 = vmatpush1.bf16.msra.mxu1 %v22591_v25  ;;  %11945 = vmatprep.subr.bf16.mxu0 %v22596_v24  ;;  %v22635_v25 = vld [vmem:[#allocation23 + $0x3ac] ss:$16 sps:$4 sm:$0xff]   ;;  %v22630_v24 = vld [vmem:[#allocation23 + $0x3a0] ss:$16 sps:$4 sm:$0xff]  }
 0xe8c   : > { %12031 = vmatprep.subr.bf16.mxu1 %v22599_v23  ;;  %v22633_v23 = vld [vmem:[#allocation23 + $0x3a8] ss:$16 sps:$4 sm:$0xff]  }
 0xe8e   : > { %11946 = vmatpush1.bf16.msra.mxu0 %v22594_v11  ;;  %v22638_v11 = vld [vmem:[#allocation23 + $0x3c4] ss:$16 sps:$4 sm:$0xff]  }
 0xe8f   : > { %12032 = vmatpush1.bf16.msra.mxu1 %v22597_v26  ;;  %11947 = vmatprep.subr.bf16.mxu0 %v22602_v2  ;;  %v22641_v26 = vld [vmem:[#allocation23 + $0x3cc] ss:$16 sps:$4 sm:$0xff]   ;;  %v22636_v2 = vld [vmem:[#allocation23 + $0x3c0] ss:$16 sps:$4 sm:$0xff]  }
 0xe90   : > { %12033 = vmatprep.subr.bf16.mxu1 %v22605_v35  ;;  %v22639_v35 = vld [vmem:[#allocation23 + $0x3c8] ss:$16 sps:$4 sm:$0xff]  }
 0xe92   : > { %11948 = vmatpush1.bf16.msra.mxu0 %v22600_v38  ;;  %v22644_v38 = vld [vmem:[#allocation23 + $0x3e4] ss:$16 sps:$4 sm:$0xff]  }
 0xe93   : > { %12034 = vmatpush1.bf16.msra.mxu1 %v22603_v6  ;;  %11949 = vmatprep.subr.bf16.mxu0 %v22608_v33  ;;  %v22647_v6 = vld [vmem:[#allocation23 + $0x3ec] ss:$16 sps:$4 sm:$0xff]   ;;  %v22642_v33 = vld [vmem:[#allocation23 + $0x3e0] ss:$16 sps:$4 sm:$0xff]  }
 0xe94   : > { %12035 = vmatprep.subr.bf16.mxu1 %v22611_v37  ;;  %v22645_v37 = vld [vmem:[#allocation23 + $0x3e8] ss:$16 sps:$4 sm:$0xff]  }
 0xe96   : > { %11950 = vmatpush1.bf16.msra.mxu0 %v22606_v32  ;;  %v22650_v32 = vld [vmem:[#allocation23 + $0x804] ss:$16 sps:$4 sm:$0xff]  }
 0xe97   : > { %12036 = vmatpush1.bf16.msra.mxu1 %v22609_v19  ;;  %11951 = vmatprep.subr.bf16.mxu0 %v22614_v34  ;;  %v22653_v19 = vld [vmem:[#allocation23 + $0x80c] ss:$16 sps:$4 sm:$0xff]   ;;  %v22648_v34 = vld [vmem:[#allocation23 + $0x800] ss:$16 sps:$4 sm:$0xff]  }
 0xe98   : > { %12037 = vmatprep.subr.bf16.mxu1 %v22617_v9  ;;  %v22651_v9 = vld [vmem:[#allocation23 + $0x808] ss:$16 sps:$4 sm:$0xff]  }
 0xe9a   : > { %11952 = vmatpush1.bf16.msra.mxu0 %v22612_v48  ;;  %v22656_v48 = vld [vmem:[#allocation23 + $0x824] ss:$16 sps:$4 sm:$0xff]  }
 0xe9b   : > { %12038 = vmatpush1.bf16.msra.mxu1 %v22615_v29  ;;  %11953 = vmatprep.subr.bf16.mxu0 %v22620_v54  ;;  %v22659_v29 = vld [vmem:[#allocation23 + $0x82c] ss:$16 sps:$4 sm:$0xff]   ;;  %v22654_v54 = vld [vmem:[#allocation23 + $0x820] ss:$16 sps:$4 sm:$0xff]  }
 0xe9c   : > { %12039 = vmatprep.subr.bf16.mxu1 %v22623_v46  ;;  %v22657_v46 = vld [vmem:[#allocation23 + $0x828] ss:$16 sps:$4 sm:$0xff]  }
 0xe9e   : > { %11954 = vmatpush1.bf16.msra.mxu0 %v22618_v12  ;;  %v22662_v12 = vld [vmem:[#allocation23 + $0x844] ss:$16 sps:$4 sm:$0xff]  }
 0xe9f   : > { %12040 = vmatpush1.bf16.msra.mxu1 %v22621_v41  ;;  %11955 = vmatprep.subr.bf16.mxu0 %v22626_v4  ;;  %v22665_v41 = vld [vmem:[#allocation23 + $0x84c] ss:$16 sps:$4 sm:$0xff]   ;;  %v22660_v4 = vld [vmem:[#allocation23 + $0x840] ss:$16 sps:$4 sm:$0xff]  }
 0xea0   : > { %12041 = vmatprep.subr.bf16.mxu1 %v22629_v52  ;;  %v22663_v52 = vld [vmem:[#allocation23 + $0x848] ss:$16 sps:$4 sm:$0xff]  }
 0xea2   : > { %11956 = vmatpush1.bf16.msra.mxu0 %v22624_v44  ;;  %v22668_v44 = vld [vmem:[#allocation23 + $0x864] ss:$16 sps:$4 sm:$0xff]  }
 0xea3   : > { %12042 = vmatpush1.bf16.msra.mxu1 %v22627_v45  ;;  %11957 = vmatprep.subr.bf16.mxu0 %v22632_v21  ;;  %v22669_v45 = vld [vmem:[#allocation23 + $0x868] ss:$16 sps:$4 sm:$0xff]   ;;  %v22674_v21 = vld [vmem:[#allocation23 + $0x884] ss:$16 sps:$4 sm:$0xff]  }
 0xea4   : > { %12043 = vmatprep.subr.bf16.mxu1 %v22635_v25  ;;  %v22677_v25 = vld [vmem:[#allocation23 + $0x88c] ss:$16 sps:$4 sm:$0xff]  }
 0xea6   : > { %11958 = vmatpush1.bf16.msra.mxu0 %v22630_v24  ;;  %v22675_v24 = vld [vmem:[#allocation23 + $0x888] ss:$16 sps:$4 sm:$0xff]  }
 0xea7   : > { %12044 = vmatpush1.bf16.msra.mxu1 %v22633_v23  ;;  %11959 = vmatprep.subr.bf16.mxu0 %v22638_v11  ;;  %v22680_v23 = vld [vmem:[#allocation23 + $0x8a4] ss:$16 sps:$4 sm:$0xff]   ;;  %v22683_v11 = vld [vmem:[#allocation23 + $0x8ac] ss:$16 sps:$4 sm:$0xff]  }
 0xea8   : > { %12045 = vmatprep.subr.bf16.mxu1 %v22641_v26  ;;  %v22678_v26 = vld [vmem:[#allocation23 + $0x8a0] ss:$16 sps:$4 sm:$0xff]  }
 0xeaa   : > { %11960 = vmatpush1.bf16.msra.mxu0 %v22636_v2  ;;  %v22681_v2 = vld [vmem:[#allocation23 + $0x8a8] ss:$16 sps:$4 sm:$0xff]  }
 0xeab   : > { %12046 = vmatpush1.bf16.msra.mxu1 %v22639_v35  ;;  %11961 = vmatprep.subr.bf16.mxu0 %v22644_v38  ;;  %v22686_v35 = vld [vmem:[#allocation23 + $0x8c4] ss:$16 sps:$4 sm:$0xff]   ;;  %v22689_v38 = vld [vmem:[#allocation23 + $0x8cc] ss:$16 sps:$4 sm:$0xff]  }
 0xeac   : > { %12047 = vmatprep.subr.bf16.mxu1 %v22647_v6  ;;  %v22684_v6 = vld [vmem:[#allocation23 + $0x8c0] ss:$16 sps:$4 sm:$0xff]  }
 0xeae   : > { %11962 = vmatpush1.bf16.msra.mxu0 %v22642_v33  ;;  %v22687_v33 = vld [vmem:[#allocation23 + $0x8c8] ss:$16 sps:$4 sm:$0xff]  }
 0xeaf   : > { %12048 = vmatpush1.bf16.msra.mxu1 %v22645_v37  ;;  %12704 = vmatprep.subr.bf16.mxu0 %v22650_v32  ;;  %v22692_v37 = vld [vmem:[#allocation23 + $0x8e4] ss:$16 sps:$4 sm:$0xff]   ;;  %v22695_v32 = vld [vmem:[#allocation23 + $0x8ec] ss:$16 sps:$4 sm:$0xff]  }
 0xeb0   : > { %12790 = vmatprep.subr.bf16.mxu1 %v22653_v19  ;;  %v22690_v19 = vld [vmem:[#allocation23 + $0x8e0] ss:$16 sps:$4 sm:$0xff]  }
 0xeb1   : > { %17639 = vmatmul.mubr.msk.bf16.vlgmr.msra.gmra.mrb[36].mxu0 %vm25204_vm12, %v26127_v61 }
 0xeb2   : > { %17651 = vmatmul.mubr.msk.bf16.vlgmr.msra.gmra.mrb[36].mxu1 %vm25204_vm12, %v26127_v61  ;;  %12705 = vmatpush1.bf16.msra.mxu0 %v22648_v34  ;;  %v22671_v61 = vld [vmem:[#allocation23 + $0x86c] ss:$16 sps:$4 sm:$0xff]   ;;  %v22693_v34 = vld [vmem:[#allocation23 + $0x8e8] ss:$16 sps:$4 sm:$0xff]  }
 0xeb3   : > { %12736 = vmatprep.mubr.bf16.mxu0 %v26051_v49  ;;  %12791 = vmatpush1.bf16.msra.mxu1 %v22651_v9  ;;  %v22698_v9 = vld [vmem:[#allocation23 + $0x904] ss:$16 sps:$4 sm:$0xff]  }
 0xeb4   : > { %12822 = vmatprep.mubr.bf16.mxu1 %v26051_v49  ;;  %12706 = vmatprep.subr.bf16.mxu0 %v22656_v48  ;;  %v22672_v49 = vld [vmem:[#allocation23 + $0x880] ss:$16 sps:$4 sm:$0xff]   ;;  %v22701_v48 = vld [vmem:[#allocation23 + $0x90c] ss:$16 sps:$4 sm:$0xff]  }
 0xeb5   : > { %12792 = vmatprep.subr.bf16.mxu1 %v22659_v29  ;;  %v22696_v29 = vld [vmem:[#allocation23 + $0x900] ss:$16 sps:$4 sm:$0xff]  }
 0xeb6   : > { %12707 = vmatpush1.bf16.msra.mxu0 %v22654_v54  ;;  %v22699_v54 = vld [vmem:[#allocation23 + $0x908] ss:$16 sps:$4 sm:$0xff]  }
 0xeb7   : > { %12793 = vmatpush1.bf16.msra.mxu1 %v22657_v46  ;;  %12708 = vmatprep.subr.bf16.mxu0 %v22662_v12  ;;  %v22704_v46 = vld [vmem:[#allocation23 + $0x924] ss:$16 sps:$4 sm:$0xff]   ;;  %v22707_v12 = vld [vmem:[#allocation23 + $0x92c] ss:$16 sps:$4 sm:$0xff]  }
 0xeb8   : > { %12794 = vmatprep.subr.bf16.mxu1 %v22665_v41  ;;  %v22702_v41 = vld [vmem:[#allocation23 + $0x920] ss:$16 sps:$4 sm:$0xff]  }
 0xeba   : > { %12709 = vmatpush1.bf16.msra.mxu0 %v22660_v4  ;;  %v22705_v4 = vld [vmem:[#allocation23 + $0x928] ss:$16 sps:$4 sm:$0xff]  }
 0xebb   : > { %12795 = vmatpush1.bf16.msra.mxu1 %v22663_v52  ;;  %12710 = vmatprep.subr.bf16.mxu0 %v22668_v44  ;;  %v22710_v52 = vld [vmem:[#allocation23 + $0x944] ss:$16 sps:$4 sm:$0xff]   ;;  %v22713_v44 = vld [vmem:[#allocation23 + $0x94c] ss:$16 sps:$4 sm:$0xff]  }
 0xebc   : > { %12796 = vmatprep.subr.bf16.mxu1 %v22671_v61  ;;  %v22708_v61 = vld [vmem:[#allocation23 + $0x940] ss:$16 sps:$4 sm:$0xff]  }
 0xebe   : > { %12711 = vmatpush1.bf16.msra.mxu0 %v22666_v60  ;;  %v22711_v60 = vld [vmem:[#allocation23 + $0x948] ss:$16 sps:$4 sm:$0xff]  }
 0xebf   : > { %12797 = vmatpush1.bf16.msra.mxu1 %v22669_v45  ;;  %12712 = vmatprep.subr.bf16.mxu0 %v22674_v21  ;;  %v22716_v45 = vld [vmem:[#allocation23 + $0x964] ss:$16 sps:$4 sm:$0xff]   ;;  %v22719_v21 = vld [vmem:[#allocation23 + $0x96c] ss:$16 sps:$4 sm:$0xff]  }
 0xec0   : > { %12798 = vmatprep.subr.bf16.mxu1 %v22677_v25  ;;  %v22714_v25 = vld [vmem:[#allocation23 + $0x960] ss:$16 sps:$4 sm:$0xff]  }
 0xec2   : > { %12713 = vmatpush1.bf16.msra.mxu0 %v22672_v49  ;;  %v22717_v49 = vld [vmem:[#allocation23 + $0x968] ss:$16 sps:$4 sm:$0xff]  }
 0xec3   : > { %12799 = vmatpush1.bf16.msra.mxu1 %v22675_v24  ;;  %12714 = vmatprep.subr.bf16.mxu0 %v22680_v23  ;;  %v22722_v24 = vld [vmem:[#allocation23 + $0x984] ss:$16 sps:$4 sm:$0xff]   ;;  %v22725_v23 = vld [vmem:[#allocation23 + $0x98c] ss:$16 sps:$4 sm:$0xff]  }
 0xec4   : > { %12800 = vmatprep.subr.bf16.mxu1 %v22683_v11  ;;  %v22720_v11 = vld [vmem:[#allocation23 + $0x980] ss:$16 sps:$4 sm:$0xff]  }
 0xec6   : > { %12715 = vmatpush1.bf16.msra.mxu0 %v22678_v26  ;;  %v22723_v26 = vld [vmem:[#allocation23 + $0x988] ss:$16 sps:$4 sm:$0xff]  }
 0xec7   : > { %12801 = vmatpush1.bf16.msra.mxu1 %v22681_v2  ;;  %12716 = vmatprep.subr.bf16.mxu0 %v22686_v35  ;;  %v22728_v2 = vld [vmem:[#allocation23 + $0x9a4] ss:$16 sps:$4 sm:$0xff]   ;;  %v22731_v35 = vld [vmem:[#allocation23 + $0x9ac] ss:$16 sps:$4 sm:$0xff]  }
 0xec8   : > { %12802 = vmatprep.subr.bf16.mxu1 %v22689_v38  ;;  %v22726_v38 = vld [vmem:[#allocation23 + $0x9a0] ss:$16 sps:$4 sm:$0xff]  }
 0xeca   : > { %12717 = vmatpush1.bf16.msra.mxu0 %v22684_v6  ;;  %v22729_v6 = vld [vmem:[#allocation23 + $0x9a8] ss:$16 sps:$4 sm:$0xff]  }
 0xecb   : > { %12803 = vmatpush1.bf16.msra.mxu1 %v22687_v33  ;;  %12718 = vmatprep.subr.bf16.mxu0 %v22692_v37  ;;  %v22734_v33 = vld [vmem:[#allocation23 + $0x9c4] ss:$16 sps:$4 sm:$0xff]   ;;  %v22737_v37 = vld [vmem:[#allocation23 + $0x9cc] ss:$16 sps:$4 sm:$0xff]  }
 0xecc   : > { %12804 = vmatprep.subr.bf16.mxu1 %v22695_v32  ;;  %v22732_v32 = vld [vmem:[#allocation23 + $0x9c0] ss:$16 sps:$4 sm:$0xff]  }
 0xece   : > { %12719 = vmatpush1.bf16.msra.mxu0 %v22690_v19  ;;  %v22735_v19 = vld [vmem:[#allocation23 + $0x9c8] ss:$16 sps:$4 sm:$0xff]  }
 0xecf   : > { %12805 = vmatpush1.bf16.msra.mxu1 %v22693_v34  ;;  %12720 = vmatprep.subr.bf16.mxu0 %v22698_v9  ;;  %v22740_v34 = vld [vmem:[#allocation23 + $0x9e4] ss:$16 sps:$4 sm:$0xff]   ;;  %v22743_v9 = vld [vmem:[#allocation23 + $0x9ec] ss:$16 sps:$4 sm:$0xff]  }
 0xed0   : > { %12806 = vmatprep.subr.bf16.mxu1 %v22701_v48  ;;  %v22738_v48 = vld [vmem:[#allocation23 + $0x9e0] ss:$16 sps:$4 sm:$0xff]  }
 0xed2   : > { %12721 = vmatpush1.bf16.msra.mxu0 %v22696_v29  ;;  %v22741_v29 = vld [vmem:[#allocation23 + $0x9e8] ss:$16 sps:$4 sm:$0xff]  }
 0xed3   : > { %12807 = vmatpush1.bf16.msra.mxu1 %v22699_v54  ;;  %12722 = vmatprep.subr.bf16.mxu0 %v22704_v46  ;;  %v22746_v54 = vld [vmem:[#allocation23 + $0xa04] ss:$16 sps:$4 sm:$0xff]   ;;  %v22749_v46 = vld [vmem:[#allocation23 + $0xa0c] ss:$16 sps:$4 sm:$0xff]  }
 0xed4   : > { %12808 = vmatprep.subr.bf16.mxu1 %v22707_v12  ;;  %v22744_v12 = vld [vmem:[#allocation23 + $0xa00] ss:$16 sps:$4 sm:$0xff]  }
 0xed6   : > { %12723 = vmatpush1.bf16.msra.mxu0 %v22702_v41  ;;  %v22747_v41 = vld [vmem:[#allocation23 + $0xa08] ss:$16 sps:$4 sm:$0xff]  }
 0xed7   : > { %12809 = vmatpush1.bf16.msra.mxu1 %v22705_v4  ;;  %12724 = vmatprep.subr.bf16.mxu0 %v22710_v52  ;;  %v22752_v4 = vld [vmem:[#allocation23 + $0xa24] ss:$16 sps:$4 sm:$0xff]   ;;  %v22755_v52 = vld [vmem:[#allocation23 + $0xa2c] ss:$16 sps:$4 sm:$0xff]  }
 0xed8   : > { %12810 = vmatprep.subr.bf16.mxu1 %v22713_v44  ;;  %v22750_v44 = vld [vmem:[#allocation23 + $0xa20] ss:$16 sps:$4 sm:$0xff]  }
 0xeda   : > { %12725 = vmatpush1.bf16.msra.mxu0 %v22708_v61  ;;  %v22753_v61 = vld [vmem:[#allocation23 + $0xa28] ss:$16 sps:$4 sm:$0xff]  }
 0xedb   : > { %12811 = vmatpush1.bf16.msra.mxu1 %v22711_v60  ;;  %12726 = vmatprep.subr.bf16.mxu0 %v22716_v45  ;;  %v22758_v60 = vld [vmem:[#allocation23 + $0xa44] ss:$16 sps:$4 sm:$0xff]   ;;  %v22761_v45 = vld [vmem:[#allocation23 + $0xa4c] ss:$16 sps:$4 sm:$0xff]  }
 0xedc   : > { %12812 = vmatprep.subr.bf16.mxu1 %v22719_v21  ;;  %v22756_v21 = vld [vmem:[#allocation23 + $0xa40] ss:$16 sps:$4 sm:$0xff]  }
 0xede   : > { %12727 = vmatpush1.bf16.msra.mxu0 %v22714_v25  ;;  %v22759_v25 = vld [vmem:[#allocation23 + $0xa48] ss:$16 sps:$4 sm:$0xff]  }
 0xedf   : > { %12813 = vmatpush1.bf16.msra.mxu1 %v22717_v49  ;;  %12728 = vmatprep.subr.bf16.mxu0 %v22722_v24  ;;  %v22764_v49 = vld [vmem:[#allocation23 + $0xa64] ss:$16 sps:$4 sm:$0xff]   ;;  %v22762_v24 = vld [vmem:[#allocation23 + $0xa60] ss:$16 sps:$4 sm:$0xff]  }
 0xee0   : > { %12814 = vmatprep.subr.bf16.mxu1 %v22725_v23  ;;  %v22765_v23 = vld [vmem:[#allocation23 + $0xa68] ss:$16 sps:$4 sm:$0xff]  }
 0xee2   : > { %12729 = vmatpush1.bf16.msra.mxu0 %v22720_v11  ;;  %v22770_v11 = vld [vmem:[#allocation23 + $0xa84] ss:$16 sps:$4 sm:$0xff]  }
 0xee3   : > { %12815 = vmatpush1.bf16.msra.mxu1 %v22723_v26  ;;  %12730 = vmatprep.subr.bf16.mxu0 %v22728_v2  ;;  %v22773_v26 = vld [vmem:[#allocation23 + $0xa8c] ss:$16 sps:$4 sm:$0xff]   ;;  %v22771_v2 = vld [vmem:[#allocation23 + $0xa88] ss:$16 sps:$4 sm:$0xff]  }
 0xee4   : > { %12816 = vmatprep.subr.bf16.mxu1 %v22731_v35  ;;  %v22776_v35 = vld [vmem:[#allocation23 + $0xaa4] ss:$16 sps:$4 sm:$0xff]  }
 0xee6   : > { %12731 = vmatpush1.bf16.msra.mxu0 %v22726_v38  ;;  %v22779_v38 = vld [vmem:[#allocation23 + $0xaac] ss:$16 sps:$4 sm:$0xff]  }
 0xee7   : > { %12817 = vmatpush1.bf16.msra.mxu1 %v22729_v6  ;;  %12732 = vmatprep.subr.bf16.mxu0 %v22734_v33  ;;  %v22774_v6 = vld [vmem:[#allocation23 + $0xaa0] ss:$16 sps:$4 sm:$0xff]   ;;  %v22777_v33 = vld [vmem:[#allocation23 + $0xaa8] ss:$16 sps:$4 sm:$0xff]  }
 0xee8   : > { %12818 = vmatprep.subr.bf16.mxu1 %v22737_v37  ;;  %v22782_v37 = vld [vmem:[#allocation23 + $0xac4] ss:$16 sps:$4 sm:$0xff]  }
 0xeea   : > { %12733 = vmatpush1.bf16.msra.mxu0 %v22732_v32  ;;  %v22785_v32 = vld [vmem:[#allocation23 + $0xacc] ss:$16 sps:$4 sm:$0xff]  }
 0xeeb   : > { %12819 = vmatpush1.bf16.msra.mxu1 %v22735_v19  ;;  %12734 = vmatprep.subr.bf16.mxu0 %v22740_v34  ;;  %v22780_v19 = vld [vmem:[#allocation23 + $0xac0] ss:$16 sps:$4 sm:$0xff]   ;;  %v22783_v34 = vld [vmem:[#allocation23 + $0xac8] ss:$16 sps:$4 sm:$0xff]  }
 0xeec   : > { %12820 = vmatprep.subr.bf16.mxu1 %v22743_v9  ;;  %v22788_v9 = vld [vmem:[#allocation23 + $0xae4] ss:$16 sps:$4 sm:$0xff]  }
 0xeee   : > { %12735 = vmatpush1.bf16.msra.mxu0 %v22738_v48  ;;  %v22791_v48 = vld [vmem:[#allocation23 + $0xaec] ss:$16 sps:$4 sm:$0xff]  }
 0xeef   : > { %12821 = vmatpush1.bf16.msra.mxu1 %v22741_v29  ;;  %12747 = vmatprep.subr.bf16.mxu0 %v22746_v54  ;;  %v22786_v29 = vld [vmem:[#allocation23 + $0xae0] ss:$16 sps:$4 sm:$0xff]   ;;  %v22789_v54 = vld [vmem:[#allocation23 + $0xae8] ss:$16 sps:$4 sm:$0xff]  }
 0xef0   : > { %12833 = vmatprep.subr.bf16.mxu1 %v22749_v46  ;;  %v22794_v46 = vld [vmem:[#allocation23 + $0xb04] ss:$16 sps:$4 sm:$0xff]  }
 0xef1   : > { %12737 = vmatmul.mubr.bf16.vlgmr.msra.gmra.mrb[36].mxu0 %v26055_v5 }
 0xef2   : > { %12823 = vmatmul.mubr.bf16.vlgmr.msra.gmra.mrb[36].mxu1 %v26055_v5  ;;  %12748 = vmatpush1.bf16.msra.mxu0 %v22744_v12  ;;  %v22767_v5 = vld [vmem:[#allocation23 + $0xa6c] ss:$16 sps:$4 sm:$0xff]  }
 0xef3   : > { %12779 = vmatprep.mubr.bf16.mxu0 %v26102_v53  ;;  %12834 = vmatpush1.bf16.msra.mxu1 %v22747_v41  ;;  %v22797_v12 = vld [vmem:[#allocation23 + $0xb0c] ss:$16 sps:$4 sm:$0xff]   ;;  %v22792_v41 = vld [vmem:[#allocation23 + $0xb00] ss:$16 sps:$4 sm:$0xff]  }
 0xef4   : > { %12865 = vmatprep.mubr.bf16.mxu1 %v26102_v53  ;;  %12749 = vmatprep.subr.bf16.mxu0 %v22752_v4  ;;  %v22768_v53 = vld [vmem:[#allocation23 + $0xa80] ss:$16 sps:$4 sm:$0xff]   ;;  %v22795_v4 = vld [vmem:[#allocation23 + $0xb08] ss:$16 sps:$4 sm:$0xff]  }
 0xef5   : > { %12835 = vmatprep.subr.bf16.mxu1 %v22755_v52  ;;  %v22800_v52 = vld [vmem:[#allocation23 + $0xb24] ss:$16 sps:$4 sm:$0xff]  }
 0xef6   : > { %12750 = vmatpush1.bf16.msra.mxu0 %v22750_v44  ;;  %v22803_v44 = vld [vmem:[#allocation23 + $0xb2c] ss:$16 sps:$4 sm:$0xff]  }
 0xef7   : > { %12836 = vmatpush1.bf16.msra.mxu1 %v22753_v61  ;;  %12751 = vmatprep.subr.bf16.mxu0 %v22758_v60  ;;  %v22798_v61 = vld [vmem:[#allocation23 + $0xb20] ss:$16 sps:$4 sm:$0xff]   ;;  %v22801_v60 = vld [vmem:[#allocation23 + $0xb28] ss:$16 sps:$4 sm:$0xff]  }
 0xef8   : > { %12837 = vmatprep.subr.bf16.mxu1 %v22761_v45  ;;  %v22806_v45 = vld [vmem:[#allocation23 + $0xb44] ss:$16 sps:$4 sm:$0xff]  }
 0xefa   : > { %12752 = vmatpush1.bf16.msra.mxu0 %v22756_v21  ;;  %v22809_v21 = vld [vmem:[#allocation23 + $0xb4c] ss:$16 sps:$4 sm:$0xff]  }
 0xefb   : > { %12838 = vmatpush1.bf16.msra.mxu1 %v22759_v25  ;;  %12753 = vmatprep.subr.bf16.mxu0 %v22764_v49  ;;  %v22804_v25 = vld [vmem:[#allocation23 + $0xb40] ss:$16 sps:$4 sm:$0xff]   ;;  %v22807_v49 = vld [vmem:[#allocation23 + $0xb48] ss:$16 sps:$4 sm:$0xff]  }
 0xefc   : > { %12839 = vmatprep.subr.bf16.mxu1 %v22767_v5  ;;  %v22812_v5 = vld [vmem:[#allocation23 + $0xb64] ss:$16 sps:$4 sm:$0xff]  }
 0xefe   : > { %12754 = vmatpush1.bf16.msra.mxu0 %v22762_v24  ;;  %v22815_v24 = vld [vmem:[#allocation23 + $0xb6c] ss:$16 sps:$4 sm:$0xff]  }
 0xeff   : > { %12840 = vmatpush1.bf16.msra.mxu1 %v22765_v23  ;;  %12755 = vmatprep.subr.bf16.mxu0 %v22770_v11  ;;  %v22810_v23 = vld [vmem:[#allocation23 + $0xb60] ss:$16 sps:$4 sm:$0xff]   ;;  %v22813_v11 = vld [vmem:[#allocation23 + $0xb68] ss:$16 sps:$4 sm:$0xff]  }
 0xf00   : > { %12841 = vmatprep.subr.bf16.mxu1 %v22773_v26  ;;  %v22818_v26 = vld [vmem:[#allocation23 + $0xb84] ss:$16 sps:$4 sm:$0xff]  }
 0xf02   : > { %12756 = vmatpush1.bf16.msra.mxu0 %v22768_v53  ;;  %v22821_v53 = vld [vmem:[#allocation23 + $0xb8c] ss:$16 sps:$4 sm:$0xff]  }
 0xf03   : > { %12842 = vmatpush1.bf16.msra.mxu1 %v22771_v2  ;;  %12757 = vmatprep.subr.bf16.mxu0 %v22776_v35  ;;  %v22816_v2 = vld [vmem:[#allocation23 + $0xb80] ss:$16 sps:$4 sm:$0xff]   ;;  %v22819_v35 = vld [vmem:[#allocation23 + $0xb88] ss:$16 sps:$4 sm:$0xff]  }
 0xf04   : > { %12843 = vmatprep.subr.bf16.mxu1 %v22779_v38  ;;  %v22824_v38 = vld [vmem:[#allocation23 + $0xba4] ss:$16 sps:$4 sm:$0xff]  }
 0xf06   : > { %12758 = vmatpush1.bf16.msra.mxu0 %v22774_v6  ;;  %v22827_v6 = vld [vmem:[#allocation23 + $0xbac] ss:$16 sps:$4 sm:$0xff]  }
 0xf07   : > { %12844 = vmatpush1.bf16.msra.mxu1 %v22777_v33  ;;  %12759 = vmatprep.subr.bf16.mxu0 %v22782_v37  ;;  %v22822_v33 = vld [vmem:[#allocation23 + $0xba0] ss:$16 sps:$4 sm:$0xff]   ;;  %v22825_v37 = vld [vmem:[#allocation23 + $0xba8] ss:$16 sps:$4 sm:$0xff]  }
 0xf08   : > { %12845 = vmatprep.subr.bf16.mxu1 %v22785_v32  ;;  %v22830_v32 = vld [vmem:[#allocation23 + $0xbc4] ss:$16 sps:$4 sm:$0xff]  }
 0xf0a   : > { %12760 = vmatpush1.bf16.msra.mxu0 %v22780_v19  ;;  %v22833_v19 = vld [vmem:[#allocation23 + $0xbcc] ss:$16 sps:$4 sm:$0xff]  }
 0xf0b   : > { %12846 = vmatpush1.bf16.msra.mxu1 %v22783_v34  ;;  %12761 = vmatprep.subr.bf16.mxu0 %v22788_v9  ;;  %v22828_v34 = vld [vmem:[#allocation23 + $0xbc0] ss:$16 sps:$4 sm:$0xff]   ;;  %v22831_v9 = vld [vmem:[#allocation23 + $0xbc8] ss:$16 sps:$4 sm:$0xff]  }
 0xf0c   : > { %12847 = vmatprep.subr.bf16.mxu1 %v22791_v48  ;;  %v22836_v48 = vld [vmem:[#allocation23 + $0xbe4] ss:$16 sps:$4 sm:$0xff]  }
 0xf0e   : > { %12762 = vmatpush1.bf16.msra.mxu0 %v22786_v29  ;;  %v22839_v29 = vld [vmem:[#allocation23 + $0xbec] ss:$16 sps:$4 sm:$0xff]  }
 0xf0f   : > { %12848 = vmatpush1.bf16.msra.mxu1 %v22789_v54  ;;  %12763 = vmatprep.subr.bf16.mxu0 %v22794_v46  ;;  %v22834_v54 = vld [vmem:[#allocation23 + $0xbe0] ss:$16 sps:$4 sm:$0xff]   ;;  %v22837_v46 = vld [vmem:[#allocation23 + $0xbe8] ss:$16 sps:$4 sm:$0xff]  }
 0xf10   : > { %12849 = vmatprep.subr.bf16.mxu1 %v22797_v12  ;;  %v22842_v12 = vld [vmem:[#allocation23 + $0xc04] ss:$16 sps:$4 sm:$0xff]  }
 0xf12   : > { %12764 = vmatpush1.bf16.msra.mxu0 %v22792_v41  ;;  %v22845_v41 = vld [vmem:[#allocation23 + $0xc0c] ss:$16 sps:$4 sm:$0xff]  }
 0xf13   : > { %12850 = vmatpush1.bf16.msra.mxu1 %v22795_v4  ;;  %12765 = vmatprep.subr.bf16.mxu0 %v22800_v52  ;;  %v22840_v4 = vld [vmem:[#allocation23 + $0xc00] ss:$16 sps:$4 sm:$0xff]   ;;  %v22843_v52 = vld [vmem:[#allocation23 + $0xc08] ss:$16 sps:$4 sm:$0xff]  }
 0xf14   : > { %12851 = vmatprep.subr.bf16.mxu1 %v22803_v44  ;;  %v22891_v44 = vld [vmem:[#allocation23 + $0xd08] ss:$16 sps:$4 sm:$0xff]  }
 0xf16   : > { %12766 = vmatpush1.bf16.msra.mxu0 %v22798_v61  ;;  %v23052_v61 = vld [vmem:[#allocation23 + $0x1064] ss:$16 sps:$4 sm:$0xff]  }
 0xf17   : > { %12852 = vmatpush1.bf16.msra.mxu1 %v22801_v60  ;;  %12767 = vmatprep.subr.bf16.mxu0 %v22806_v45  ;;  %v22848_v60 = vld [vmem:[#allocation23 + $0xc24] ss:$16 sps:$4 sm:$0xff]   ;;  %v22851_v45 = vld [vmem:[#allocation23 + $0xc2c] ss:$16 sps:$4 sm:$0xff]  }
 0xf18   : > { %12853 = vmatprep.subr.bf16.mxu1 %v22809_v21  ;;  %v22846_v21 = vld [vmem:[#allocation23 + $0xc20] ss:$16 sps:$4 sm:$0xff]  }
 0xf1a   : > { %12768 = vmatpush1.bf16.msra.mxu0 %v22804_v25  ;;  %v22849_v25 = vld [vmem:[#allocation23 + $0xc28] ss:$16 sps:$4 sm:$0xff]  }
 0xf1b   : > { %12854 = vmatpush1.bf16.msra.mxu1 %v22807_v49  ;;  %12769 = vmatprep.subr.bf16.mxu0 %v22812_v5  ;;  %v22854_v49 = vld [vmem:[#allocation23 + $0xc44] ss:$16 sps:$4 sm:$0xff]   ;;  %v22857_v5 = vld [vmem:[#allocation23 + $0xc4c] ss:$16 sps:$4 sm:$0xff]  }
 0xf1c   : > { %12855 = vmatprep.subr.bf16.mxu1 %v22815_v24  ;;  %v22852_v24 = vld [vmem:[#allocation23 + $0xc40] ss:$16 sps:$4 sm:$0xff]  }
 0xf1e   : > { %12770 = vmatpush1.bf16.msra.mxu0 %v22810_v23  ;;  %v22860_v23 = vld [vmem:[#allocation23 + $0xc64] ss:$16 sps:$4 sm:$0xff]  }
 0xf1f   : > { %12856 = vmatpush1.bf16.msra.mxu1 %v22813_v11  ;;  %12771 = vmatprep.subr.bf16.mxu0 %v22818_v26  ;;  %v22863_v11 = vld [vmem:[#allocation23 + $0xc6c] ss:$16 sps:$4 sm:$0xff]   ;;  %v22858_v26 = vld [vmem:[#allocation23 + $0xc60] ss:$16 sps:$4 sm:$0xff]  }
 0xf20   : > { %12857 = vmatprep.subr.bf16.mxu1 %v22821_v53  ;;  %v22861_v53 = vld [vmem:[#allocation23 + $0xc68] ss:$16 sps:$4 sm:$0xff]  }
 0xf22   : > { %12772 = vmatpush1.bf16.msra.mxu0 %v22816_v2  ;;  %v22866_v2 = vld [vmem:[#allocation23 + $0xc84] ss:$16 sps:$4 sm:$0xff]  }
 0xf23   : > { %12858 = vmatpush1.bf16.msra.mxu1 %v22819_v35  ;;  %12773 = vmatprep.subr.bf16.mxu0 %v22824_v38  ;;  %v22869_v35 = vld [vmem:[#allocation23 + $0xc8c] ss:$16 sps:$4 sm:$0xff]   ;;  %v22867_v38 = vld [vmem:[#allocation23 + $0xc88] ss:$16 sps:$4 sm:$0xff]  }
 0xf24   : > { %12859 = vmatprep.subr.bf16.mxu1 %v22827_v6  ;;  %v22872_v6 = vld [vmem:[#allocation23 + $0xca4] ss:$16 sps:$4 sm:$0xff]  }
 0xf26   : > { %12774 = vmatpush1.bf16.msra.mxu0 %v22822_v33  ;;  %v22875_v33 = vld [vmem:[#allocation23 + $0xcac] ss:$16 sps:$4 sm:$0xff]  }
 0xf27   : > { %12860 = vmatpush1.bf16.msra.mxu1 %v22825_v37  ;;  %12775 = vmatprep.subr.bf16.mxu0 %v22830_v32  ;;  %v22870_v37 = vld [vmem:[#allocation23 + $0xca0] ss:$16 sps:$4 sm:$0xff]   ;;  %v22873_v32 = vld [vmem:[#allocation23 + $0xca8] ss:$16 sps:$4 sm:$0xff]  }
 0xf28   : > { %12861 = vmatprep.subr.bf16.mxu1 %v22833_v19  ;;  %v22878_v19 = vld [vmem:[#allocation23 + $0xcc4] ss:$16 sps:$4 sm:$0xff]  }
 0xf2a   : > { %12776 = vmatpush1.bf16.msra.mxu0 %v22828_v34  ;;  %v22881_v34 = vld [vmem:[#allocation23 + $0xccc] ss:$16 sps:$4 sm:$0xff]  }
 0xf2b   : > { %12862 = vmatpush1.bf16.msra.mxu1 %v22831_v9  ;;  %12777 = vmatprep.subr.bf16.mxu0 %v22836_v48  ;;  %v22876_v9 = vld [vmem:[#allocation23 + $0xcc0] ss:$16 sps:$4 sm:$0xff]   ;;  %v22879_v48 = vld [vmem:[#allocation23 + $0xcc8] ss:$16 sps:$4 sm:$0xff]  }
 0xf2c   : > { %12863 = vmatprep.subr.bf16.mxu1 %v22839_v29  ;;  %v22884_v29 = vld [vmem:[#allocation23 + $0xce4] ss:$16 sps:$4 sm:$0xff]  }
 0xf2e   : > { %12778 = vmatpush1.bf16.msra.mxu0 %v22834_v54  ;;  %v22887_v54 = vld [vmem:[#allocation23 + $0xcec] ss:$16 sps:$4 sm:$0xff]  }
 0xf2f   : > { %12864 = vmatpush1.bf16.msra.mxu1 %v22837_v46  ;;  %13552 = vmatprep.subr.bf16.mxu0 %v22842_v12  ;;  %v22882_v46 = vld [vmem:[#allocation23 + $0xce0] ss:$16 sps:$4 sm:$0xff]   ;;  %v22885_v12 = vld [vmem:[#allocation23 + $0xce8] ss:$16 sps:$4 sm:$0xff]  }
 0xf30   : > { %13638 = vmatprep.subr.bf16.mxu1 %v22845_v41  ;;  %v22890_v41 = vld [vmem:[#allocation23 + $0xd04] ss:$16 sps:$4 sm:$0xff]  }
 0xf31   : > { %12780 = vmatmul.mubr.bf16.vlgmr.msra.gmra.mrb[36].mxu0 %v26131_v57 }
 0xf32   : > { %12866 = vmatmul.mubr.bf16.vlgmr.msra.gmra.mrb[36].mxu1 %v26131_v57  ;;  %13553 = vmatpush1.bf16.msra.mxu0 %v22840_v4  ;;  %v22855_v57 = vld [vmem:[#allocation23 + $0xc48] ss:$16 sps:$4 sm:$0xff]   ;;  %v22893_v4 = vld [vmem:[#allocation23 + $0xd0c] ss:$16 sps:$4 sm:$0xff]  }
 0xf33   : > { %17910 = vmatprep.mubr.msk.bf16.mxu0 %vm26235_vm2, %v26143_v62  ;;  %13639 = vmatpush1.bf16.msra.mxu1 %v22843_v52  ;;  %v22888_v52 = vld [vmem:[#allocation23 + $0xd00] ss:$16 sps:$4 sm:$0xff]  }
 0xf34   : > { %17922 = vmatprep.mubr.msk.bf16.mxu1 %vm26235_vm2, %v26143_v62  ;;  %13554 = vmatprep.subr.bf16.mxu0 %v22848_v60  ;;  %v22864_v62 = vld [vmem:[#allocation23 + $0xc80] ss:$16 sps:$4 sm:$0xff]   ;;  %v22896_v60 = vld [vmem:[#allocation23 + $0xd24] ss:$16 sps:$4 sm:$0xff]  }
 0xf35   : > { %13640 = vmatprep.subr.bf16.mxu1 %v22851_v45  ;;  %v22899_v45 = vld [vmem:[#allocation23 + $0xd2c] ss:$16 sps:$4 sm:$0xff]  }
 0xf36   : > { %13555 = vmatpush1.bf16.msra.mxu0 %v22846_v21  ;;  %v22894_v21 = vld [vmem:[#allocation23 + $0xd20] ss:$16 sps:$4 sm:$0xff]  }
 0xf37   : > { %13641 = vmatpush1.bf16.msra.mxu1 %v22849_v25  ;;  %13556 = vmatprep.subr.bf16.mxu0 %v22854_v49  ;;  %v22897_v25 = vld [vmem:[#allocation23 + $0xd28] ss:$16 sps:$4 sm:$0xff]   ;;  %v22902_v49 = vld [vmem:[#allocation23 + $0xd44] ss:$16 sps:$4 sm:$0xff]  }
 0xf38   : > { %13642 = vmatprep.subr.bf16.mxu1 %v22857_v5  ;;  %v22905_v5 = vld [vmem:[#allocation23 + $0xd4c] ss:$16 sps:$4 sm:$0xff]  }
 0xf3a   : > { %13557 = vmatpush1.bf16.msra.mxu0 %v22852_v24  ;;  %v22900_v24 = vld [vmem:[#allocation23 + $0xd40] ss:$16 sps:$4 sm:$0xff]  }
 0xf3b   : > { %13643 = vmatpush1.bf16.msra.mxu1 %v22855_v57  ;;  %13558 = vmatprep.subr.bf16.mxu0 %v22860_v23  ;;  %v22903_v57 = vld [vmem:[#allocation23 + $0xd48] ss:$16 sps:$4 sm:$0xff]   ;;  %v22908_v23 = vld [vmem:[#allocation23 + $0xd64] ss:$16 sps:$4 sm:$0xff]  }
 0xf3c   : > { %13644 = vmatprep.subr.bf16.mxu1 %v22863_v11  ;;  %v22911_v11 = vld [vmem:[#allocation23 + $0xd6c] ss:$16 sps:$4 sm:$0xff]  }
 0xf3e   : > { %13559 = vmatpush1.bf16.msra.mxu0 %v22858_v26  ;;  %v22906_v26 = vld [vmem:[#allocation23 + $0xd60] ss:$16 sps:$4 sm:$0xff]  }
 0xf3f   : > { %13645 = vmatpush1.bf16.msra.mxu1 %v22861_v53  ;;  %13560 = vmatprep.subr.bf16.mxu0 %v22866_v2  ;;  %v22909_v53 = vld [vmem:[#allocation23 + $0xd68] ss:$16 sps:$4 sm:$0xff]   ;;  %v22914_v2 = vld [vmem:[#allocation23 + $0xd84] ss:$16 sps:$4 sm:$0xff]  }
 0xf40   : > { %13646 = vmatprep.subr.bf16.mxu1 %v22869_v35  ;;  %v22917_v35 = vld [vmem:[#allocation23 + $0xd8c] ss:$16 sps:$4 sm:$0xff]  }
 0xf42   : > { %13561 = vmatpush1.bf16.msra.mxu0 %v22864_v62  ;;  %v22912_v62 = vld [vmem:[#allocation23 + $0xd80] ss:$16 sps:$4 sm:$0xff]  }
 0xf43   : > { %13647 = vmatpush1.bf16.msra.mxu1 %v22867_v38  ;;  %13562 = vmatprep.subr.bf16.mxu0 %v22872_v6  ;;  %v22915_v38 = vld [vmem:[#allocation23 + $0xd88] ss:$16 sps:$4 sm:$0xff]   ;;  %v22920_v6 = vld [vmem:[#allocation23 + $0xda4] ss:$16 sps:$4 sm:$0xff]  }
 0xf44   : > { %13648 = vmatprep.subr.bf16.mxu1 %v22875_v33  ;;  %v22923_v33 = vld [vmem:[#allocation23 + $0xdac] ss:$16 sps:$4 sm:$0xff]  }
 0xf46   : > { %13563 = vmatpush1.bf16.msra.mxu0 %v22870_v37  ;;  %v22918_v37 = vld [vmem:[#allocation23 + $0xda0] ss:$16 sps:$4 sm:$0xff]  }
 0xf47   : > { %13649 = vmatpush1.bf16.msra.mxu1 %v22873_v32  ;;  %13564 = vmatprep.subr.bf16.mxu0 %v22878_v19  ;;  %v22921_v32 = vld [vmem:[#allocation23 + $0xda8] ss:$16 sps:$4 sm:$0xff]   ;;  %v22926_v19 = vld [vmem:[#allocation23 + $0xdc4] ss:$16 sps:$4 sm:$0xff]  }
 0xf48   : > { %13650 = vmatprep.subr.bf16.mxu1 %v22881_v34  ;;  %v22929_v34 = vld [vmem:[#allocation23 + $0xdcc] ss:$16 sps:$4 sm:$0xff]  }
 0xf4a   : > { %13565 = vmatpush1.bf16.msra.mxu0 %v22876_v9  ;;  %v22924_v9 = vld [vmem:[#allocation23 + $0xdc0] ss:$16 sps:$4 sm:$0xff]  }
 0xf4b   : > { %13651 = vmatpush1.bf16.msra.mxu1 %v22879_v48  ;;  %13566 = vmatprep.subr.bf16.mxu0 %v22884_v29  ;;  %v22927_v48 = vld [vmem:[#allocation23 + $0xdc8] ss:$16 sps:$4 sm:$0xff]   ;;  %v22932_v29 = vld [vmem:[#allocation23 + $0xde4] ss:$16 sps:$4 sm:$0xff]  }
 0xf4c   : > { %13652 = vmatprep.subr.bf16.mxu1 %v22887_v54  ;;  %v22935_v54 = vld [vmem:[#allocation23 + $0xdec] ss:$16 sps:$4 sm:$0xff]  }
 0xf4e   : > { %13567 = vmatpush1.bf16.msra.mxu0 %v22882_v46  ;;  %v22930_v46 = vld [vmem:[#allocation23 + $0xde0] ss:$16 sps:$4 sm:$0xff]  }
 0xf4f   : > { %13653 = vmatpush1.bf16.msra.mxu1 %v22885_v12  ;;  %13568 = vmatprep.subr.bf16.mxu0 %v22890_v41  ;;  %v22933_v12 = vld [vmem:[#allocation23 + $0xde8] ss:$16 sps:$4 sm:$0xff]   ;;  %v22938_v41 = vld [vmem:[#allocation23 + $0xe04] ss:$16 sps:$4 sm:$0xff]  }
 0xf50   : > { %13654 = vmatprep.subr.bf16.mxu1 %v22893_v4  ;;  %v22941_v4 = vld [vmem:[#allocation23 + $0xe0c] ss:$16 sps:$4 sm:$0xff]  }
 0xf52   : > { %13569 = vmatpush1.bf16.msra.mxu0 %v22888_v52  ;;  %v22936_v52 = vld [vmem:[#allocation23 + $0xe00] ss:$16 sps:$4 sm:$0xff]  }
 0xf53   : > { %13655 = vmatpush1.bf16.msra.mxu1 %v22891_v44  ;;  %13570 = vmatprep.subr.bf16.mxu0 %v22896_v60  ;;  %v22939_v44 = vld [vmem:[#allocation23 + $0xe08] ss:$16 sps:$4 sm:$0xff]   ;;  %v22944_v60 = vld [vmem:[#allocation23 + $0xe24] ss:$16 sps:$4 sm:$0xff]  }
 0xf54   : > { %13656 = vmatprep.subr.bf16.mxu1 %v22899_v45  ;;  %v22947_v45 = vld [vmem:[#allocation23 + $0xe2c] ss:$16 sps:$4 sm:$0xff]  }
 0xf56   : > { %13571 = vmatpush1.bf16.msra.mxu0 %v22894_v21  ;;  %v22942_v21 = vld [vmem:[#allocation23 + $0xe20] ss:$16 sps:$4 sm:$0xff]  }
 0xf57   : > { %13657 = vmatpush1.bf16.msra.mxu1 %v22897_v25  ;;  %13572 = vmatprep.subr.bf16.mxu0 %v22902_v49  ;;  %v22945_v25 = vld [vmem:[#allocation23 + $0xe28] ss:$16 sps:$4 sm:$0xff]   ;;  %v22950_v49 = vld [vmem:[#allocation23 + $0xe44] ss:$16 sps:$4 sm:$0xff]  }
 0xf58   : > { %13658 = vmatprep.subr.bf16.mxu1 %v22905_v5  ;;  %v22953_v5 = vld [vmem:[#allocation23 + $0xe4c] ss:$16 sps:$4 sm:$0xff]  }
 0xf5a   : > { %13573 = vmatpush1.bf16.msra.mxu0 %v22900_v24  ;;  %v22948_v24 = vld [vmem:[#allocation23 + $0xe40] ss:$16 sps:$4 sm:$0xff]  }
 0xf5b   : > { %13659 = vmatpush1.bf16.msra.mxu1 %v22903_v57  ;;  %13574 = vmatprep.subr.bf16.mxu0 %v22908_v23  ;;  %v22956_v57 = vld [vmem:[#allocation23 + $0xe64] ss:$16 sps:$4 sm:$0xff]   ;;  %v22959_v23 = vld [vmem:[#allocation23 + $0xe6c] ss:$16 sps:$4 sm:$0xff]  }
 0xf5c   : > { %13660 = vmatprep.subr.bf16.mxu1 %v22911_v11  ;;  %v22954_v11 = vld [vmem:[#allocation23 + $0xe60] ss:$16 sps:$4 sm:$0xff]  }
 0xf5e   : > { %13575 = vmatpush1.bf16.msra.mxu0 %v22906_v26  ;;  %v22957_v26 = vld [vmem:[#allocation23 + $0xe68] ss:$16 sps:$4 sm:$0xff]  }
 0xf5f   : > { %13661 = vmatpush1.bf16.msra.mxu1 %v22909_v53  ;;  %13576 = vmatprep.subr.bf16.mxu0 %v22914_v2  ;;  %v22962_v53 = vld [vmem:[#allocation23 + $0xe84] ss:$16 sps:$4 sm:$0xff]   ;;  %v22965_v2 = vld [vmem:[#allocation23 + $0xe8c] ss:$16 sps:$4 sm:$0xff]  }
 0xf60   : > { %13662 = vmatprep.subr.bf16.mxu1 %v22917_v35  ;;  %v22963_v35 = vld [vmem:[#allocation23 + $0xe88] ss:$16 sps:$4 sm:$0xff]  }
 0xf62   : > { %13577 = vmatpush1.bf16.msra.mxu0 %v22912_v62  ;;  %v22968_v62 = vld [vmem:[#allocation23 + $0xea4] ss:$16 sps:$4 sm:$0xff]  }
 0xf63   : > { %13663 = vmatpush1.bf16.msra.mxu1 %v22915_v38  ;;  %13578 = vmatprep.subr.bf16.mxu0 %v22920_v6  ;;  %v22971_v38 = vld [vmem:[#allocation23 + $0xeac] ss:$16 sps:$4 sm:$0xff]   ;;  %v22966_v6 = vld [vmem:[#allocation23 + $0xea0] ss:$16 sps:$4 sm:$0xff]  }
 0xf64   : > { %13664 = vmatprep.subr.bf16.mxu1 %v22923_v33  ;;  %v22969_v33 = vld [vmem:[#allocation23 + $0xea8] ss:$16 sps:$4 sm:$0xff]  }
 0xf66   : > { %13579 = vmatpush1.bf16.msra.mxu0 %v22918_v37  ;;  %v22974_v37 = vld [vmem:[#allocation23 + $0xec4] ss:$16 sps:$4 sm:$0xff]  }
 0xf67   : > { %13665 = vmatpush1.bf16.msra.mxu1 %v22921_v32  ;;  %13580 = vmatprep.subr.bf16.mxu0 %v22926_v19  ;;  %v22977_v32 = vld [vmem:[#allocation23 + $0xecc] ss:$16 sps:$4 sm:$0xff]   ;;  %v22972_v19 = vld [vmem:[#allocation23 + $0xec0] ss:$16 sps:$4 sm:$0xff]  }
 0xf68   : > { %13666 = vmatprep.subr.bf16.mxu1 %v22929_v34  ;;  %v22975_v34 = vld [vmem:[#allocation23 + $0xec8] ss:$16 sps:$4 sm:$0xff]  }
 0xf6a   : > { %13581 = vmatpush1.bf16.msra.mxu0 %v22924_v9  ;;  %v22980_v9 = vld [vmem:[#allocation23 + $0xee4] ss:$16 sps:$4 sm:$0xff]  }
 0xf6b   : > { %13667 = vmatpush1.bf16.msra.mxu1 %v22927_v48  ;;  %13582 = vmatprep.subr.bf16.mxu0 %v22932_v29  ;;  %v22983_v48 = vld [vmem:[#allocation23 + $0xeec] ss:$16 sps:$4 sm:$0xff]   ;;  %v22978_v29 = vld [vmem:[#allocation23 + $0xee0] ss:$16 sps:$4 sm:$0xff]  }
 0xf6c   : > { %13668 = vmatprep.subr.bf16.mxu1 %v22935_v54  ;;  %v22981_v54 = vld [vmem:[#allocation23 + $0xee8] ss:$16 sps:$4 sm:$0xff]  }
 0xf6e   : > { %13583 = vmatpush1.bf16.msra.mxu0 %v22930_v46  ;;  %v22986_v46 = vld [vmem:[#allocation23 + $0xf04] ss:$16 sps:$4 sm:$0xff]  }
 0xf6f   : > { %13669 = vmatpush1.bf16.msra.mxu1 %v22933_v12  ;;  %13595 = vmatprep.subr.bf16.mxu0 %v22938_v41  ;;  %v22989_v12 = vld [vmem:[#allocation23 + $0xf0c] ss:$16 sps:$4 sm:$0xff]   ;;  %v22984_v41 = vld [vmem:[#allocation23 + $0xf00] ss:$16 sps:$4 sm:$0xff]  }
 0xf70   : > { %13681 = vmatprep.subr.bf16.mxu1 %v22941_v4  ;;  %v22987_v4 = vld [vmem:[#allocation23 + $0xf08] ss:$16 sps:$4 sm:$0xff]  }
 0xf71   : > { %17913 = vmatmul.mubr.msk.bf16.vlgmr.msra.gmra.mrb[36].mxu0 %vm26235_vm2, %v26151_v10 }
 0xf72   : > { %17925 = vmatmul.mubr.msk.bf16.vlgmr.msra.gmra.mrb[36].mxu1 %vm26235_vm2, %v26151_v10  ;;  %13596 = vmatpush1.bf16.msra.mxu0 %v22936_v52  ;;  %v22951_v10 = vld [vmem:[#allocation23 + $0xe48] ss:$16 sps:$4 sm:$0xff]   ;;  %v22992_v52 = vld [vmem:[#allocation23 + $0xf24] ss:$16 sps:$4 sm:$0xff]  }
 0xf73   : > { %17916 = vmatprep.mubr.msk.bf16.mxu0 %vm26235_vm2, %v26157_v1  ;;  %13682 = vmatpush1.bf16.msra.mxu1 %v22939_v44  ;;  %v22995_v44 = vld [vmem:[#allocation23 + $0xf2c] ss:$16 sps:$4 sm:$0xff]  }
 0xf74   : > { %17928 = vmatprep.mubr.msk.bf16.mxu1 %vm26235_vm2, %v26157_v1  ;;  %13597 = vmatprep.subr.bf16.mxu0 %v22944_v60  ;;  %v22960_v1 = vld [vmem:[#allocation23 + $0xe80] ss:$16 sps:$4 sm:$0xff]  }
 0xf75   : > { %13683 = vmatprep.subr.bf16.mxu1 %v22947_v45  ;;  %v22990_v60 = vld [vmem:[#allocation23 + $0xf20] ss:$16 sps:$4 sm:$0xff]   ;;  %v22993_v45 = vld [vmem:[#allocation23 + $0xf28] ss:$16 sps:$4 sm:$0xff]  }
 0xf76   : > { %13598 = vmatpush1.bf16.msra.mxu0 %v22942_v21  ;;  %v22998_v21 = vld [vmem:[#allocation23 + $0xf44] ss:$16 sps:$4 sm:$0xff]  }
 0xf77   : > { %13684 = vmatpush1.bf16.msra.mxu1 %v22945_v25  ;;  %13599 = vmatprep.subr.bf16.mxu0 %v22950_v49  ;;  %v23001_v25 = vld [vmem:[#allocation23 + $0xf4c] ss:$16 sps:$4 sm:$0xff]   ;;  %v22996_v49 = vld [vmem:[#allocation23 + $0xf40] ss:$16 sps:$4 sm:$0xff]  }
 0xf78   : > { %13685 = vmatprep.subr.bf16.mxu1 %v22953_v5  ;;  %v22999_v5 = vld [vmem:[#allocation23 + $0xf48] ss:$16 sps:$4 sm:$0xff]  }
 0xf7a   : > { %13600 = vmatpush1.bf16.msra.mxu0 %v22948_v24  ;;  %v23004_v24 = vld [vmem:[#allocation23 + $0xf64] ss:$16 sps:$4 sm:$0xff]  }
 0xf7b   : > { %13686 = vmatpush1.bf16.msra.mxu1 %v22951_v10  ;;  %13601 = vmatprep.subr.bf16.mxu0 %v22956_v57  ;;  %v23007_v10 = vld [vmem:[#allocation23 + $0xf6c] ss:$16 sps:$4 sm:$0xff]   ;;  %v23002_v57 = vld [vmem:[#allocation23 + $0xf60] ss:$16 sps:$4 sm:$0xff]  }
 0xf7c   : > { %13687 = vmatprep.subr.bf16.mxu1 %v22959_v23  ;;  %v23005_v23 = vld [vmem:[#allocation23 + $0xf68] ss:$16 sps:$4 sm:$0xff]  }
 0xf7e   : > { %13602 = vmatpush1.bf16.msra.mxu0 %v22954_v11  ;;  %v23010_v11 = vld [vmem:[#allocation23 + $0xf84] ss:$16 sps:$4 sm:$0xff]  }
 0xf7f   : > { %13688 = vmatpush1.bf16.msra.mxu1 %v22957_v26  ;;  %13603 = vmatprep.subr.bf16.mxu0 %v22962_v53  ;;  %v23013_v26 = vld [vmem:[#allocation23 + $0xf8c] ss:$16 sps:$4 sm:$0xff]   ;;  %v23008_v53 = vld [vmem:[#allocation23 + $0xf80] ss:$16 sps:$4 sm:$0xff]  }
 0xf80   : > { %13689 = vmatprep.subr.bf16.mxu1 %v22965_v2  ;;  %v23011_v2 = vld [vmem:[#allocation23 + $0xf88] ss:$16 sps:$4 sm:$0xff]  }
 0xf82   : > { %13604 = vmatpush1.bf16.msra.mxu0 %v22960_v1  ;;  %v23016_v1 = vld [vmem:[#allocation23 + $0xfa4] ss:$16 sps:$4 sm:$0xff]  }
 0xf83   : > { %13690 = vmatpush1.bf16.msra.mxu1 %v22963_v35  ;;  %13605 = vmatprep.subr.bf16.mxu0 %v22968_v62  ;;  %v23019_v35 = vld [vmem:[#allocation23 + $0xfac] ss:$16 sps:$4 sm:$0xff]   ;;  %v23014_v62 = vld [vmem:[#allocation23 + $0xfa0] ss:$16 sps:$4 sm:$0xff]  }
 0xf84   : > { %13691 = vmatprep.subr.bf16.mxu1 %v22971_v38  ;;  %v23017_v38 = vld [vmem:[#allocation23 + $0xfa8] ss:$16 sps:$4 sm:$0xff]  }
 0xf86   : > { %13606 = vmatpush1.bf16.msra.mxu0 %v22966_v6  ;;  %v23022_v6 = vld [vmem:[#allocation23 + $0xfc4] ss:$16 sps:$4 sm:$0xff]  }
 0xf87   : > { %13692 = vmatpush1.bf16.msra.mxu1 %v22969_v33  ;;  %13607 = vmatprep.subr.bf16.mxu0 %v22974_v37  ;;  %v23025_v33 = vld [vmem:[#allocation23 + $0xfcc] ss:$16 sps:$4 sm:$0xff]   ;;  %v23020_v37 = vld [vmem:[#allocation23 + $0xfc0] ss:$16 sps:$4 sm:$0xff]  }
 0xf88   : > { %13693 = vmatprep.subr.bf16.mxu1 %v22977_v32  ;;  %v23023_v32 = vld [vmem:[#allocation23 + $0xfc8] ss:$16 sps:$4 sm:$0xff]  }
 0xf8a   : > { %13608 = vmatpush1.bf16.msra.mxu0 %v22972_v19  ;;  %v23028_v19 = vld [vmem:[#allocation23 + $0xfe4] ss:$16 sps:$4 sm:$0xff]  }
 0xf8b   : > { %13694 = vmatpush1.bf16.msra.mxu1 %v22975_v34  ;;  %13609 = vmatprep.subr.bf16.mxu0 %v22980_v9  ;;  %v23031_v34 = vld [vmem:[#allocation23 + $0xfec] ss:$16 sps:$4 sm:$0xff]   ;;  %v23026_v9 = vld [vmem:[#allocation23 + $0xfe0] ss:$16 sps:$4 sm:$0xff]  }
 0xf8c   : > { %13695 = vmatprep.subr.bf16.mxu1 %v22983_v48  ;;  %v23029_v48 = vld [vmem:[#allocation23 + $0xfe8] ss:$16 sps:$4 sm:$0xff]  }
 0xf8e   : > { %13610 = vmatpush1.bf16.msra.mxu0 %v22978_v29  ;;  %v23034_v29 = vld [vmem:[#allocation23 + $0x1004] ss:$16 sps:$4 sm:$0xff]  }
 0xf8f   : > { %13696 = vmatpush1.bf16.msra.mxu1 %v22981_v54  ;;  %13611 = vmatprep.subr.bf16.mxu0 %v22986_v46  ;;  %v23037_v54 = vld [vmem:[#allocation23 + $0x100c] ss:$16 sps:$4 sm:$0xff]   ;;  %v23032_v46 = vld [vmem:[#allocation23 + $0x1000] ss:$16 sps:$4 sm:$0xff]  }
 0xf90   : > { %13697 = vmatprep.subr.bf16.mxu1 %v22989_v12  ;;  %v23035_v12 = vld [vmem:[#allocation23 + $0x1008] ss:$16 sps:$4 sm:$0xff]  }
 0xf92   : > { %13612 = vmatpush1.bf16.msra.mxu0 %v22984_v41  ;;  %v23040_v41 = vld [vmem:[#allocation23 + $0x1024] ss:$16 sps:$4 sm:$0xff]  }
 0xf93   : > { %13698 = vmatpush1.bf16.msra.mxu1 %v22987_v4  ;;  %13613 = vmatprep.subr.bf16.mxu0 %v22992_v52  ;;  %v23043_v4 = vld [vmem:[#allocation23 + $0x102c] ss:$16 sps:$4 sm:$0xff]   ;;  %v23038_v52 = vld [vmem:[#allocation23 + $0x1020] ss:$16 sps:$4 sm:$0xff]  }
 0xf94   : > { %13699 = vmatprep.subr.bf16.mxu1 %v22995_v44  ;;  %v26995_v44 = vld [vmem:[#allocation60_spill] sm:$0xff] }
 0xf96   : > { %13614 = vmatpush1.bf16.msra.mxu0 %v22990_v60  ;;  %v23041_v60 = vld [vmem:[#allocation23 + $0x1028] ss:$16 sps:$4 sm:$0xff]  }
 0xf97   : > { %13700 = vmatpush1.bf16.msra.mxu1 %v22993_v45  ;;  %13615 = vmatprep.subr.bf16.mxu0 %v22998_v21  ;;  %v23046_v45 = vld [vmem:[#allocation23 + $0x1044] ss:$16 sps:$4 sm:$0xff]   ;;  %v23049_v21 = vld [vmem:[#allocation23 + $0x104c] ss:$16 sps:$4 sm:$0xff]  }
 0xf98   : > { %13701 = vmatprep.subr.bf16.mxu1 %v23001_v25  ;;  %v23044_v25 = vld [vmem:[#allocation23 + $0x1040] ss:$16 sps:$4 sm:$0xff]  }
 0xf9a   : > { %13616 = vmatpush1.bf16.msra.mxu0 %v22996_v49  ;;  %v23055_v49 = vld [vmem:[#allocation23 + $0x106c] ss:$16 sps:$4 sm:$0xff]  }
 0xf9b   : > { %13702 = vmatpush1.bf16.msra.mxu1 %v22999_v5  ;;  %13617 = vmatprep.subr.bf16.mxu0 %v23004_v24  ;;  %v23050_v5 = vld [vmem:[#allocation23 + $0x1060] ss:$16 sps:$4 sm:$0xff]   ;;  %v23053_v24 = vld [vmem:[#allocation23 + $0x1068] ss:$16 sps:$4 sm:$0xff]  }
 0xf9c   : > { %13703 = vmatprep.subr.bf16.mxu1 %v23007_v10  ;;  %v23058_v10 = vld [vmem:[#allocation23 + $0x1084] ss:$16 sps:$4 sm:$0xff]  }
 0xf9e   : > { %13618 = vmatpush1.bf16.msra.mxu0 %v23002_v57  ;;  %v23061_v57 = vld [vmem:[#allocation23 + $0x108c] ss:$16 sps:$4 sm:$0xff]  }
 0xf9f   : > { %13704 = vmatpush1.bf16.msra.mxu1 %v23005_v23  ;;  %13619 = vmatprep.subr.bf16.mxu0 %v23010_v11  ;;  %v23059_v23 = vld [vmem:[#allocation23 + $0x1088] ss:$16 sps:$4 sm:$0xff]   ;;  %v23064_v11 = vld [vmem:[#allocation23 + $0x10a4] ss:$16 sps:$4 sm:$0xff]  }
 0xfa0   : > { %13705 = vmatprep.subr.bf16.mxu1 %v23013_v26  ;;  %v23067_v26 = vld [vmem:[#allocation23 + $0x10ac] ss:$16 sps:$4 sm:$0xff]  }
 0xfa2   : > { %13620 = vmatpush1.bf16.msra.mxu0 %v23008_v53  ;;  %v23062_v53 = vld [vmem:[#allocation23 + $0x10a0] ss:$16 sps:$4 sm:$0xff]  }
 0xfa3   : > { %13706 = vmatpush1.bf16.msra.mxu1 %v23011_v2  ;;  %13621 = vmatprep.subr.bf16.mxu0 %v23016_v1  ;;  %v23065_v2 = vld [vmem:[#allocation23 + $0x10a8] ss:$16 sps:$4 sm:$0xff]   ;;  %v23070_v1 = vld [vmem:[#allocation23 + $0x10c4] ss:$16 sps:$4 sm:$0xff]  }
 0xfa4   : > { %13707 = vmatprep.subr.bf16.mxu1 %v23019_v35  ;;  %v23073_v35 = vld [vmem:[#allocation23 + $0x10cc] ss:$16 sps:$4 sm:$0xff]  }
 0xfa6   : > { %13622 = vmatpush1.bf16.msra.mxu0 %v23014_v62  ;;  %v23068_v62 = vld [vmem:[#allocation23 + $0x10c0] ss:$16 sps:$4 sm:$0xff]  }
 0xfa7   : > { %13708 = vmatpush1.bf16.msra.mxu1 %v23017_v38  ;;  %13623 = vmatprep.subr.bf16.mxu0 %v23022_v6  ;;  %v23071_v38 = vld [vmem:[#allocation23 + $0x10c8] ss:$16 sps:$4 sm:$0xff]   ;;  %v23076_v6 = vld [vmem:[#allocation23 + $0x10e4] ss:$16 sps:$4 sm:$0xff]  }
 0xfa8   : > { %13709 = vmatprep.subr.bf16.mxu1 %v23025_v33  ;;  %v23079_v33 = vld [vmem:[#allocation23 + $0x10ec] ss:$16 sps:$4 sm:$0xff]  }
 0xfaa   : > { %13624 = vmatpush1.bf16.msra.mxu0 %v23020_v37  ;;  %v23074_v37 = vld [vmem:[#allocation23 + $0x10e0] ss:$16 sps:$4 sm:$0xff]  }
 0xfab   : > { %13710 = vmatpush1.bf16.msra.mxu1 %v23023_v32  ;;  %13625 = vmatprep.subr.bf16.mxu0 %v23028_v19  ;;  %v23077_v32 = vld [vmem:[#allocation23 + $0x10e8] ss:$16 sps:$4 sm:$0xff]   ;;  %v23082_v19 = vld [vmem:[#allocation23 + $0x1104] ss:$16 sps:$4 sm:$0xff]  }
 0xfac   : > { %13711 = vmatprep.subr.bf16.mxu1 %v23031_v34  ;;  %v23085_v34 = vld [vmem:[#allocation23 + $0x110c] ss:$16 sps:$4 sm:$0xff]  }
 0xfae   : > { %13626 = vmatpush1.bf16.msra.mxu0 %v23026_v9  ;;  %v23080_v9 = vld [vmem:[#allocation23 + $0x1100] ss:$16 sps:$4 sm:$0xff]  }
 0xfaf   : > { %13712 = vmatpush1.bf16.msra.mxu1 %v23029_v48  ;;  %14400 = vmatprep.subr.bf16.mxu0 %v23034_v29  ;;  %v23083_v48 = vld [vmem:[#allocation23 + $0x1108] ss:$16 sps:$4 sm:$0xff]   ;;  %v23088_v29 = vld [vmem:[#allocation23 + $0x1124] ss:$16 sps:$4 sm:$0xff]  }
 0xfb0   : > { %14486 = vmatprep.subr.bf16.mxu1 %v23037_v54  ;;  %v23091_v54 = vld [vmem:[#allocation23 + $0x112c] ss:$16 sps:$4 sm:$0xff]  }
 0xfb1   : > { %17919 = vmatmul.mubr.msk.bf16.vlgmr.msra.gmra.mrb[36].mxu0 %vm26235_vm2, %v26166_v43 }
 0xfb2   : > { %17931 = vmatmul.mubr.msk.bf16.vlgmr.msra.gmra.mrb[36].mxu1 %vm26235_vm2, %v26166_v43  ;;  %14401 = vmatpush1.bf16.msra.mxu0 %v23032_v46  ;;  %v23047_v43 = vld [vmem:[#allocation23 + $0x1048] ss:$16 sps:$4 sm:$0xff]   ;;  %v23086_v46 = vld [vmem:[#allocation23 + $0x1120] ss:$16 sps:$4 sm:$0xff]  }
 0xfb3   : > { %18062 = vmatprep.mubr.msk.bf16.mxu0 %vm25230_vm14, %v26174_v20  ;;  %14487 = vmatpush1.bf16.msra.mxu1 %v23035_v12  ;;  %v23089_v12 = vld [vmem:[#allocation23 + $0x1128] ss:$16 sps:$4 sm:$0xff]  }
 0xfb4   : > { %18074 = vmatprep.mubr.msk.bf16.mxu1 %vm25230_vm14, %v26174_v20  ;;  %14402 = vmatprep.subr.bf16.mxu0 %v23040_v41  ;;  %v23056_v20 = vld [vmem:[#allocation23 + $0x1080] ss:$16 sps:$4 sm:$0xff]   ;;  %v23094_v41 = vld [vmem:[#allocation23 + $0x1144] ss:$16 sps:$4 sm:$0xff]  }
 0xfb5   : > { %14488 = vmatprep.subr.bf16.mxu1 %v23043_v4  ;;  %v23097_v4 = vld [vmem:[#allocation23 + $0x114c] ss:$16 sps:$4 sm:$0xff]  }
 0xfb6   : > { %14403 = vmatpush1.bf16.msra.mxu0 %v23038_v52  ;;  %v23092_v52 = vld [vmem:[#allocation23 + $0x1140] ss:$16 sps:$4 sm:$0xff]  }
 0xfb7   : > { %14489 = vmatpush1.bf16.msra.mxu1 %v23041_v60  ;;  %14404 = vmatprep.subr.bf16.mxu0 %v23046_v45  ;;  %v23095_v60 = vld [vmem:[#allocation23 + $0x1148] ss:$16 sps:$4 sm:$0xff]   ;;  %v23100_v45 = vld [vmem:[#allocation23 + $0x1164] ss:$16 sps:$4 sm:$0xff]  }
 0xfb8   : > { %14490 = vmatprep.subr.bf16.mxu1 %v23049_v21  ;;  %v23103_v21 = vld [vmem:[#allocation23 + $0x116c] ss:$16 sps:$4 sm:$0xff]  }
 0xfba   : > { %14405 = vmatpush1.bf16.msra.mxu0 %v23044_v25  ;;  %v23098_v25 = vld [vmem:[#allocation23 + $0x1160] ss:$16 sps:$4 sm:$0xff]  }
 0xfbb   : > { %14491 = vmatpush1.bf16.msra.mxu1 %v23047_v43  ;;  %14406 = vmatprep.subr.bf16.mxu0 %v23052_v61  ;;  %v23101_v43 = vld [vmem:[#allocation23 + $0x1168] ss:$16 sps:$4 sm:$0xff]   ;;  %v23106_v61 = vld [vmem:[#allocation23 + $0x1184] ss:$16 sps:$4 sm:$0xff]  }
 0xfbc   : > { %14492 = vmatprep.subr.bf16.mxu1 %v23055_v49  ;;  %v23109_v49 = vld [vmem:[#allocation23 + $0x118c] ss:$16 sps:$4 sm:$0xff]  }
 0xfbe   : > { %14407 = vmatpush1.bf16.msra.mxu0 %v23050_v5  ;;  %v23104_v5 = vld [vmem:[#allocation23 + $0x1180] ss:$16 sps:$4 sm:$0xff]  }
 0xfbf   : > { %14493 = vmatpush1.bf16.msra.mxu1 %v23053_v24  ;;  %14408 = vmatprep.subr.bf16.mxu0 %v23058_v10  ;;  %v23107_v24 = vld [vmem:[#allocation23 + $0x1188] ss:$16 sps:$4 sm:$0xff]   ;;  %v23112_v10 = vld [vmem:[#allocation23 + $0x11a4] ss:$16 sps:$4 sm:$0xff]  }
 0xfc0   : > { %14494 = vmatprep.subr.bf16.mxu1 %v23061_v57  ;;  %v23115_v57 = vld [vmem:[#allocation23 + $0x11ac] ss:$16 sps:$4 sm:$0xff]  }
 0xfc2   : > { %14409 = vmatpush1.bf16.msra.mxu0 %v23056_v20  ;;  %v23110_v20 = vld [vmem:[#allocation23 + $0x11a0] ss:$16 sps:$4 sm:$0xff]  }
 0xfc3   : > { %14495 = vmatpush1.bf16.msra.mxu1 %v23059_v23  ;;  %14410 = vmatprep.subr.bf16.mxu0 %v23064_v11  ;;  %v23113_v23 = vld [vmem:[#allocation23 + $0x11a8] ss:$16 sps:$4 sm:$0xff]   ;;  %v23118_v11 = vld [vmem:[#allocation23 + $0x11c4] ss:$16 sps:$4 sm:$0xff]  }
 0xfc4   : > { %14496 = vmatprep.subr.bf16.mxu1 %v23067_v26  ;;  %v23121_v26 = vld [vmem:[#allocation23 + $0x11cc] ss:$16 sps:$4 sm:$0xff]  }
 0xfc6   : > { %14411 = vmatpush1.bf16.msra.mxu0 %v23062_v53  ;;  %v23116_v53 = vld [vmem:[#allocation23 + $0x11c0] ss:$16 sps:$4 sm:$0xff]  }
 0xfc7   : > { %14497 = vmatpush1.bf16.msra.mxu1 %v23065_v2  ;;  %14412 = vmatprep.subr.bf16.mxu0 %v23070_v1  ;;  %v23119_v2 = vld [vmem:[#allocation23 + $0x11c8] ss:$16 sps:$4 sm:$0xff]   ;;  %v23124_v1 = vld [vmem:[#allocation23 + $0x11e4] ss:$16 sps:$4 sm:$0xff]  }
 0xfc8   : > { %14498 = vmatprep.subr.bf16.mxu1 %v23073_v35  ;;  %v23127_v35 = vld [vmem:[#allocation23 + $0x11ec] ss:$16 sps:$4 sm:$0xff]  }
 0xfca   : > { %14413 = vmatpush1.bf16.msra.mxu0 %v23068_v62  ;;  %v23122_v62 = vld [vmem:[#allocation23 + $0x11e0] ss:$16 sps:$4 sm:$0xff]  }
 0xfcb   : > { %14499 = vmatpush1.bf16.msra.mxu1 %v23071_v38  ;;  %14414 = vmatprep.subr.bf16.mxu0 %v23076_v6  ;;  %v23125_v38 = vld [vmem:[#allocation23 + $0x11e8] ss:$16 sps:$4 sm:$0xff]   ;;  %v23130_v6 = vld [vmem:[#allocation23 + $0x1204] ss:$16 sps:$4 sm:$0xff]  }
 0xfcc   : > { %14500 = vmatprep.subr.bf16.mxu1 %v23079_v33  ;;  %v23133_v33 = vld [vmem:[#allocation23 + $0x120c] ss:$16 sps:$4 sm:$0xff]  }
 0xfce   : > { %14415 = vmatpush1.bf16.msra.mxu0 %v23074_v37  ;;  %v23128_v37 = vld [vmem:[#allocation23 + $0x1200] ss:$16 sps:$4 sm:$0xff]  }
 0xfcf   : > { %14501 = vmatpush1.bf16.msra.mxu1 %v23077_v32  ;;  %14416 = vmatprep.subr.bf16.mxu0 %v23082_v19  ;;  %v23131_v32 = vld [vmem:[#allocation23 + $0x1208] ss:$16 sps:$4 sm:$0xff]   ;;  %v23136_v19 = vld [vmem:[#allocation23 + $0x1224] ss:$16 sps:$4 sm:$0xff]  }
 0xfd0   : > { %14502 = vmatprep.subr.bf16.mxu1 %v23085_v34  ;;  %v23139_v34 = vld [vmem:[#allocation23 + $0x122c] ss:$16 sps:$4 sm:$0xff]  }
 0xfd2   : > { %14417 = vmatpush1.bf16.msra.mxu0 %v23080_v9  ;;  %v23134_v9 = vld [vmem:[#allocation23 + $0x1220] ss:$16 sps:$4 sm:$0xff]  }
 0xfd3   : > { %14503 = vmatpush1.bf16.msra.mxu1 %v23083_v48  ;;  %14418 = vmatprep.subr.bf16.mxu0 %v23088_v29  ;;  %v23137_v48 = vld [vmem:[#allocation23 + $0x1228] ss:$16 sps:$4 sm:$0xff]   ;;  %v23142_v29 = vld [vmem:[#allocation23 + $0x1244] ss:$16 sps:$4 sm:$0xff]  }
 0xfd4   : > { %14504 = vmatprep.subr.bf16.mxu1 %v23091_v54  ;;  %v23145_v54 = vld [vmem:[#allocation23 + $0x124c] ss:$16 sps:$4 sm:$0xff]  }
 0xfd6   : > { %14419 = vmatpush1.bf16.msra.mxu0 %v23086_v46  ;;  %v23140_v46 = vld [vmem:[#allocation23 + $0x1240] ss:$16 sps:$4 sm:$0xff]  }
 0xfd7   : > { %14505 = vmatpush1.bf16.msra.mxu1 %v23089_v12  ;;  %14420 = vmatprep.subr.bf16.mxu0 %v23094_v41  ;;  %v23148_v12 = vld [vmem:[#allocation23 + $0x1264] ss:$16 sps:$4 sm:$0xff]   ;;  %v23151_v41 = vld [vmem:[#allocation23 + $0x126c] ss:$16 sps:$4 sm:$0xff]  }
 0xfd8   : > { %14506 = vmatprep.subr.bf16.mxu1 %v23097_v4  ;;  %v23146_v4 = vld [vmem:[#allocation23 + $0x1260] ss:$16 sps:$4 sm:$0xff]  }
 0xfda   : > { %14421 = vmatpush1.bf16.msra.mxu0 %v23092_v52  ;;  %v23149_v52 = vld [vmem:[#allocation23 + $0x1268] ss:$16 sps:$4 sm:$0xff]  }
 0xfdb   : > { %14507 = vmatpush1.bf16.msra.mxu1 %v23095_v60  ;;  %14422 = vmatprep.subr.bf16.mxu0 %v23100_v45  ;;  %v23154_v60 = vld [vmem:[#allocation23 + $0x1284] ss:$16 sps:$4 sm:$0xff]   ;;  %v23157_v45 = vld [vmem:[#allocation23 + $0x128c] ss:$16 sps:$4 sm:$0xff]  }
 0xfdc   : > { %14508 = vmatprep.subr.bf16.mxu1 %v23103_v21  ;;  %v23155_v21 = vld [vmem:[#allocation23 + $0x1288] ss:$16 sps:$4 sm:$0xff]  }
 0xfde   : > { %14423 = vmatpush1.bf16.msra.mxu0 %v23098_v25  ;;  %v23160_v25 = vld [vmem:[#allocation23 + $0x12a4] ss:$16 sps:$4 sm:$0xff]  }
 0xfdf   : > { %14509 = vmatpush1.bf16.msra.mxu1 %v23101_v43  ;;  %14424 = vmatprep.subr.bf16.mxu0 %v23106_v61  ;;  %v23163_v43 = vld [vmem:[#allocation23 + $0x12ac] ss:$16 sps:$4 sm:$0xff]   ;;  %v23158_v61 = vld [vmem:[#allocation23 + $0x12a0] ss:$16 sps:$4 sm:$0xff]  }
 0xfe0   : > { %14510 = vmatprep.subr.bf16.mxu1 %v23109_v49  ;;  %v23161_v49 = vld [vmem:[#allocation23 + $0x12a8] ss:$16 sps:$4 sm:$0xff]  }
 0xfe2   : > { %14425 = vmatpush1.bf16.msra.mxu0 %v23104_v5  ;;  %v23166_v5 = vld [vmem:[#allocation23 + $0x12c4] ss:$16 sps:$4 sm:$0xff]  }
 0xfe3   : > { %14511 = vmatpush1.bf16.msra.mxu1 %v23107_v24  ;;  %14426 = vmatprep.subr.bf16.mxu0 %v23112_v10  ;;  %v23169_v24 = vld [vmem:[#allocation23 + $0x12cc] ss:$16 sps:$4 sm:$0xff]   ;;  %v23164_v10 = vld [vmem:[#allocation23 + $0x12c0] ss:$16 sps:$4 sm:$0xff]  }
 0xfe4   : > { %14512 = vmatprep.subr.bf16.mxu1 %v23115_v57  ;;  %v23167_v57 = vld [vmem:[#allocation23 + $0x12c8] ss:$16 sps:$4 sm:$0xff]  }
 0xfe6   : > { %14427 = vmatpush1.bf16.msra.mxu0 %v23110_v20  ;;  %v23172_v20 = vld [vmem:[#allocation23 + $0x12e4] ss:$16 sps:$4 sm:$0xff]  }
 0xfe7   : > { %14513 = vmatpush1.bf16.msra.mxu1 %v23113_v23  ;;  %14428 = vmatprep.subr.bf16.mxu0 %v23118_v11  ;;  %v23175_v23 = vld [vmem:[#allocation23 + $0x12ec] ss:$16 sps:$4 sm:$0xff]   ;;  %v23170_v11 = vld [vmem:[#allocation23 + $0x12e0] ss:$16 sps:$4 sm:$0xff]  }
 0xfe8   : > { %14514 = vmatprep.subr.bf16.mxu1 %v23121_v26  ;;  %v23173_v26 = vld [vmem:[#allocation23 + $0x12e8] ss:$16 sps:$4 sm:$0xff]  }
 0xfea   : > { %14429 = vmatpush1.bf16.msra.mxu0 %v23116_v53  ;;  %v23178_v53 = vld [vmem:[#allocation23 + $0x1304] ss:$16 sps:$4 sm:$0xff]  }
 0xfeb   : > { %14515 = vmatpush1.bf16.msra.mxu1 %v23119_v2  ;;  %14430 = vmatprep.subr.bf16.mxu0 %v23124_v1  ;;  %v23181_v2 = vld [vmem:[#allocation23 + $0x130c] ss:$16 sps:$4 sm:$0xff]   ;;  %v23176_v1 = vld [vmem:[#allocation23 + $0x1300] ss:$16 sps:$4 sm:$0xff]  }
 0xfec   : > { %14516 = vmatprep.subr.bf16.mxu1 %v23127_v35  ;;  %v23179_v35 = vld [vmem:[#allocation23 + $0x1308] ss:$16 sps:$4 sm:$0xff]  }
 0xfee   : > { %14431 = vmatpush1.bf16.msra.mxu0 %v23122_v62  ;;  %v23184_v62 = vld [vmem:[#allocation23 + $0x1324] ss:$16 sps:$4 sm:$0xff]  }
 0xfef   : > { %14517 = vmatpush1.bf16.msra.mxu1 %v23125_v38  ;;  %14443 = vmatprep.subr.bf16.mxu0 %v23130_v6  ;;  %v23187_v38 = vld [vmem:[#allocation23 + $0x132c] ss:$16 sps:$4 sm:$0xff]   ;;  %v23182_v6 = vld [vmem:[#allocation23 + $0x1320] ss:$16 sps:$4 sm:$0xff]  }
 0xff0   : > { %14529 = vmatprep.subr.bf16.mxu1 %v23133_v33  ;;  %v23185_v33 = vld [vmem:[#allocation23 + $0x1328] ss:$16 sps:$4 sm:$0xff]  }
 0xff1   : > { %18065 = vmatmul.mubr.msk.bf16.vlgmr.msra.gmra.mrb[36].mxu0 %vm25230_vm14, %v26180_v39 }
 0xff2   : > { %18077 = vmatmul.mubr.msk.bf16.vlgmr.msra.gmra.mrb[36].mxu1 %vm25230_vm14, %v26180_v39  ;;  %14444 = vmatpush1.bf16.msra.mxu0 %v23128_v37  ;;  %v23143_v39 = vld [vmem:[#allocation23 + $0x1248] ss:$16 sps:$4 sm:$0xff]   ;;  %v23190_v37 = vld [vmem:[#allocation23 + $0x1344] ss:$16 sps:$4 sm:$0xff]  }
 0xff3   : > { %18068 = vmatprep.mubr.msk.bf16.mxu0 %vm25230_vm14, %v26188_v58  ;;  %14530 = vmatpush1.bf16.msra.mxu1 %v23131_v32  ;;  %v23193_v32 = vld [vmem:[#allocation23 + $0x134c] ss:$16 sps:$4 sm:$0xff]  }
 0xff4   : > { %18080 = vmatprep.mubr.msk.bf16.mxu1 %vm25230_vm14, %v26188_v58  ;;  %14445 = vmatprep.subr.bf16.mxu0 %v23136_v19  ;;  %v23152_v58 = vld [vmem:[#allocation23 + $0x1280] ss:$16 sps:$4 sm:$0xff]  }
 0xff5   : > { %14531 = vmatprep.subr.bf16.mxu1 %v23139_v34  ;;  %v23188_v19 = vld [vmem:[#allocation23 + $0x1340] ss:$16 sps:$4 sm:$0xff]   ;;  %v23191_v34 = vld [vmem:[#allocation23 + $0x1348] ss:$16 sps:$4 sm:$0xff]  }
 0xff6   : > { %14446 = vmatpush1.bf16.msra.mxu0 %v23134_v9  ;;  %v23196_v9 = vld [vmem:[#allocation23 + $0x1364] ss:$16 sps:$4 sm:$0xff]  }
 0xff7   : > { %14532 = vmatpush1.bf16.msra.mxu1 %v23137_v48  ;;  %14447 = vmatprep.subr.bf16.mxu0 %v23142_v29  ;;  %v23199_v48 = vld [vmem:[#allocation23 + $0x136c] ss:$16 sps:$4 sm:$0xff]   ;;  %v23194_v29 = vld [vmem:[#allocation23 + $0x1360] ss:$16 sps:$4 sm:$0xff]  }
 0xff8   : > { %14533 = vmatprep.subr.bf16.mxu1 %v23145_v54  ;;  %v23197_v54 = vld [vmem:[#allocation23 + $0x1368] ss:$16 sps:$4 sm:$0xff]  }
 0xffa   : > { %14448 = vmatpush1.bf16.msra.mxu0 %v23140_v46  ;;  %v23202_v46 = vld [vmem:[#allocation23 + $0x1384] ss:$16 sps:$4 sm:$0xff]  }
 0xffb   : > { %14534 = vmatpush1.bf16.msra.mxu1 %v23143_v39  ;;  %14449 = vmatprep.subr.bf16.mxu0 %v23148_v12  ;;  %v23205_v39 = vld [vmem:[#allocation23 + $0x138c] ss:$16 sps:$4 sm:$0xff]   ;;  %v23200_v12 = vld [vmem:[#allocation23 + $0x1380] ss:$16 sps:$4 sm:$0xff]  }
 0xffc   : > { %14535 = vmatprep.subr.bf16.mxu1 %v23151_v41  ;;  %v23203_v41 = vld [vmem:[#allocation23 + $0x1388] ss:$16 sps:$4 sm:$0xff]  }
 0xffe   : > { %14450 = vmatpush1.bf16.msra.mxu0 %v23146_v4  ;;  %v23208_v4 = vld [vmem:[#allocation23 + $0x13a4] ss:$16 sps:$4 sm:$0xff]  }
 0xfff   : > { %14536 = vmatpush1.bf16.msra.mxu1 %v23149_v52  ;;  %14451 = vmatprep.subr.bf16.mxu0 %v23154_v60  ;;  %v23211_v52 = vld [vmem:[#allocation23 + $0x13ac] ss:$16 sps:$4 sm:$0xff]   ;;  %v23206_v60 = vld [vmem:[#allocation23 + $0x13a0] ss:$16 sps:$4 sm:$0xff]  }
0x1000   : > { %14537 = vmatprep.subr.bf16.mxu1 %v23157_v45  ;;  %v23209_v45 = vld [vmem:[#allocation23 + $0x13a8] ss:$16 sps:$4 sm:$0xff]  }
0x1002   : > { %14452 = vmatpush1.bf16.msra.mxu0 %v23152_v58  ;;  %v23214_v58 = vld [vmem:[#allocation23 + $0x13c4] ss:$16 sps:$4 sm:$0xff]  }
0x1003   : > { %14538 = vmatpush1.bf16.msra.mxu1 %v23155_v21  ;;  %14453 = vmatprep.subr.bf16.mxu0 %v23160_v25  ;;  %v23217_v21 = vld [vmem:[#allocation23 + $0x13cc] ss:$16 sps:$4 sm:$0xff]   ;;  %v23212_v25 = vld [vmem:[#allocation23 + $0x13c0] ss:$16 sps:$4 sm:$0xff]  }
0x1004   : > { %14539 = vmatprep.subr.bf16.mxu1 %v23163_v43  ;;  %v23215_v43 = vld [vmem:[#allocation23 + $0x13c8] ss:$16 sps:$4 sm:$0xff]  }
0x1006   : > { %14454 = vmatpush1.bf16.msra.mxu0 %v23158_v61  ;;  %v23220_v61 = vld [vmem:[#allocation23 + $0x13e4] ss:$16 sps:$4 sm:$0xff]  }
0x1007   : > { %14540 = vmatpush1.bf16.msra.mxu1 %v23161_v49  ;;  %14455 = vmatprep.subr.bf16.mxu0 %v23166_v5  ;;  %v23223_v49 = vld [vmem:[#allocation23 + $0x13ec] ss:$16 sps:$4 sm:$0xff]   ;;  %v23218_v5 = vld [vmem:[#allocation23 + $0x13e0] ss:$16 sps:$4 sm:$0xff]  }
0x1008   : > { %14541 = vmatprep.subr.bf16.mxu1 %v23169_v24  ;;  %v23221_v24 = vld [vmem:[#allocation23 + $0x13e8] ss:$16 sps:$4 sm:$0xff]  }
0x100a   : > { %14456 = vmatpush1.bf16.msra.mxu0 %v23164_v10  ;;  %v26996_v10 = vld [vmem:[#allocation61_spill] sm:$0xff] }
0x100b   : > { %14542 = vmatpush1.bf16.msra.mxu1 %v23167_v57  ;;  %14457 = vmatprep.subr.bf16.mxu0 %v23172_v20  ;;  %v26997_v57 = vld [vmem:[#allocation62_spill] sm:$0xff]  ;;  %v26998_v20 = vld [vmem:[#allocation63_spill] sm:$0xff] }
0x100c   : > { %14543 = vmatprep.subr.bf16.mxu1 %v23175_v23  ;;  %v26999_v23 = vld [vmem:[#allocation64_spill] sm:$0xff] }
0x100e   : > { %14458 = vmatpush1.bf16.msra.mxu0 %v23170_v11  ;;  %v27000_v11 = vld [vmem:[#allocation65_spill] sm:$0xff] }
0x100f   : > { %14544 = vmatpush1.bf16.msra.mxu1 %v23173_v26  ;;  %14459 = vmatprep.subr.bf16.mxu0 %v23178_v53  ;;  %v27001_v26 = vld [vmem:[#allocation66_spill] sm:$0xff]  ;;  %v10379_v53 = vld [vmem:[#allocation25] sm:$0xf] }
0x1010   : > { %14545 = vmatprep.subr.bf16.mxu1 %v23181_v2  ;;  %v27002_v2 = vld [vmem:[#allocation67_spill] sm:$0xff] }
0x1012   : > { %14460 = vmatpush1.bf16.msra.mxu0 %v23176_v1  ;;  %v14588_v1 = vrot.slane %v10379_v53, %v27002_v2 }
0x1013   : > { %14546 = vmatpush1.bf16.msra.mxu1 %v23179_v35  ;;  %14461 = vmatprep.subr.bf16.mxu0 %v23184_v62  ;;  %v27003_v35 = vld [vmem:[#allocation69_spill] sm:$0xff] }
0x1014   : > { %14547 = vmatprep.subr.bf16.mxu1 %v23187_v38  ;;  %v14584_v62 = vrot.slane %v10379_v53, %v27003_v35  ;;  %v27004_v38 = vld [vmem:[#allocation68_spill] sm:$0xff] }
0x1016   : > { %14462 = vmatpush1.bf16.msra.mxu0 %v23182_v6  ;;  %v14596_v6 = vrot.slane %v10379_v53, %v27004_v38 }
0x1017   : > { %14548 = vmatpush1.bf16.msra.mxu1 %v23185_v33  ;;  %14463 = vmatprep.subr.bf16.mxu0 %v23190_v37  ;;  %v27005_v37 = vld [vmem:[#allocation70_spill] sm:$0xff] }
0x1018   : > { %14549 = vmatprep.subr.bf16.mxu1 %v23193_v32  ;;  %v14592_v32 = vrot.slane %v10379_v53, %v27005_v37 }
0x101a   : > { %14464 = vmatpush1.bf16.msra.mxu0 %v23188_v19 }
0x101b   : > { %14550 = vmatpush1.bf16.msra.mxu1 %v23191_v34  ;;  %14465 = vmatprep.subr.bf16.mxu0 %v23196_v9 }
0x101c   : > { %14551 = vmatprep.subr.bf16.mxu1 %v23199_v48 }
0x101e   : > { %14466 = vmatpush1.bf16.msra.mxu0 %v23194_v29 }
0x101f   : > { %14552 = vmatpush1.bf16.msra.mxu1 %v23197_v54  ;;  %14467 = vmatprep.subr.bf16.mxu0 %v23202_v46 }
0x1020   : > { %14553 = vmatprep.subr.bf16.mxu1 %v23205_v39 }
0x1022   : > { %14468 = vmatpush1.bf16.msra.mxu0 %v23200_v12 }
0x1023   : > { %14554 = vmatpush1.bf16.msra.mxu1 %v23203_v41  ;;  %14469 = vmatprep.subr.bf16.mxu0 %v23208_v4 }
0x1024   : > { %14555 = vmatprep.subr.bf16.mxu1 %v23211_v52 }
0x1026   : > { %14470 = vmatpush1.bf16.msra.mxu0 %v23206_v60 }
0x1027   : > { %14556 = vmatpush1.bf16.msra.mxu1 %v23209_v45  ;;  %14471 = vmatprep.subr.bf16.mxu0 %v23214_v58 }
0x1028   : > { %14557 = vmatprep.subr.bf16.mxu1 %v23217_v21 }
0x102a   : > { %14472 = vmatpush1.bf16.msra.mxu0 %v23212_v25 }
0x102b   : > { %14558 = vmatpush1.bf16.msra.mxu1 %v23215_v43  ;;  %14473 = vmatprep.subr.bf16.mxu0 %v23220_v61 }
0x102c   : > { %14559 = vmatprep.subr.bf16.mxu1 %v23223_v49 }
0x102e   : > { %14474 = vmatpush1.bf16.msra.mxu0 %v23218_v5 }
0x102f   : > { %14560 = vmatpush1.bf16.msra.mxu1 %v23221_v24  ;;  %20365 = vmatprep.subr.bf16.mxu0 %v26973_v30 }
0x1030   : > { %20397 = vmatprep.subr.bf16.mxu1 %v26975_v3 }
0x1031   : > { %18071 = vmatmul.mubr.msk.bf16.vlgmr.msra.gmra.mrb[36].mxu0 %vm25230_vm14, %v26194_v50 }
0x1032   : > { %18083 = vmatmul.mubr.msk.bf16.vlgmr.msra.gmra.mrb[36].mxu1 %vm25230_vm14, %v26194_v50  ;;  %20367 = vmatpush3.bf16.msra.mxu0 %v24700_v63  ;;  %v26994_v50 = vld [vmem:[#allocation59_spill] sm:$0xff] }
0x1033   : > { %20399 = vmatpush3.bf16.msra.mxu1 %v24702_v0  ;;  %20369 = vmatprep.subr.bf16.mxu0 %v24704_v7 }
0x1034   : > { %20401 = vmatprep.subr.bf16.mxu1 %v24706_v8 }
0x1036   : > { %20371 = vmatpush3.bf16.msra.mxu0 %v24712_v13 }
0x1037   : > { %20403 = vmatpush3.bf16.msra.mxu1 %v24714_v14  ;;  %20373 = vmatprep.subr.bf16.mxu0 %v24718_v15 }
0x1038   : > { %20405 = vmatprep.subr.bf16.mxu1 %v24720_v16 }
0x103a   : > { %20375 = vmatpush3.bf16.msra.mxu0 %v24724_v17 }
0x103b   : > { %20407 = vmatpush3.bf16.msra.mxu1 %v24726_v18  ;;  %20377 = vmatprep.subr.bf16.mxu0 %v24732_v22 }
0x103c   : > { %20409 = vmatprep.subr.bf16.mxu1 %v24734_v27 }
0x103e   : > { %20379 = vmatpush3.bf16.msra.mxu0 %v24736_v28 }
0x103f   : > { %20411 = vmatpush3.bf16.msra.mxu1 %v24739_v31  ;;  %20381 = vmatprep.subr.bf16.mxu0 %v24744_v36 }
0x1040   : > { %20413 = vmatprep.subr.bf16.mxu1 %v24746_v40 }
0x1042   : > { %20383 = vmatpush3.bf16.msra.mxu0 %v24748_v42 }
0x1043   : > { %20415 = vmatpush3.bf16.msra.mxu1 %v24751_v47  ;;  %20385 = vmatprep.subr.bf16.mxu0 %v24756_v51 }
0x1044   : > { %20417 = vmatprep.subr.bf16.mxu1 %v24758_v55 }
0x1046   : > { %20387 = vmatpush3.bf16.msra.mxu0 %v24760_v56 }
0x1047   : > { %20419 = vmatpush3.bf16.msra.mxu1 %v24763_v59  ;;  %20389 = vmatprep.subr.bf16.mxu0 %v26994_v50 }
0x1048   : > { %20421 = vmatprep.subr.bf16.mxu1 %v26995_v44 }
0x104a   : > { %20391 = vmatpush3.bf16.msra.mxu0 %v26996_v10 }
0x104b   : > { %20423 = vmatpush3.bf16.msra.mxu1 %v26997_v57  ;;  %20393 = vmatprep.subr.bf16.mxu0 %v26998_v20 }
0x104c   : > { %20425 = vmatprep.subr.bf16.mxu1 %v26999_v23 }
0x104e   : > { %20395 = vmatpush3.bf16.msra.mxu0 %v27000_v11 }
0x104f   : > { %20427 = vmatpush3.bf16.msra.mxu1 %v27001_v26  ;;  %20429 = vmatprep.subr.bf16.mxu0 %v26973_v30 }
0x1050   : > { %20461 = vmatprep.subr.bf16.mxu1 %v26975_v3 }
0x1104   : > { %v14477_v33 = vpop.f32.mrb[36].mxu0 }
0x1105   : > { %v14563_v19 = vpop.f32.mrb[36].mxu1  ;;  %v14479_v34 = vpop.f32.mrb[37].mxu0  ;;  %v26329_v54 = vadd.f32 %v14584_v62, %v14477_v33 }
0x1106   : > { %v26327_v9 = vadd.f32 %v14588_v1, %v14479_v34  ;;  %v14565_v48 = vpop.f32.mrb[37].mxu1  ;;  %v14481_v29 = vpop.f32.mrb[38].mxu0  ;;  %v26335_v4 = vadd.f32 %v14592_v32, %v14563_v19 }
0x1107   : > { %v26331_v46 = vadd.f32 %v14596_v6, %v14565_v48  ;;  %v26333_v39 = vadd.f32 %v14584_v62, %v14481_v29  ;;  %v14567_v12 = vpop.f32.mrb[38].mxu1  ;;  %v14483_v41 = vpop.f32.mrb[39].mxu0 }
0x1108   : > { %27006 = vst [vmem:[#allocation55_spill] sm:$0xff] %v26327_v9  ;;  %v26337_v52 = vadd.f32 %v14592_v32, %v14567_v12  ;;  %v26339_v60 = vadd.f32 %v14588_v1, %v14483_v41  ;;  %v14569_v45 = vpop.f32.mrb[39].mxu1  ;;  %v14640_v25 = vmul.f32 %v26327_v9, %v26327_v9 }
0x1109   : > { %27007 = vst [vmem:[#allocation72_spill] sm:$0xff] %v26331_v46  ;;  %v14611_v58 = vadd.f32 %v26333_v39, %v26329_v54  ;;  %v26343_v21 = vadd.f32 %v14596_v6, %v14569_v45  ;;  %v14642_v5 = vmul.f32 %v26331_v46, %v26331_v46 }
0x110a   : > { %27008 = vst [vmem:[#allocation77_spill] sm:$0xff] %v26339_v60  ;;  %v14625_v43 = vadd.f32 %v26337_v52, %v26335_v4  ;;  %v14618_v61 = vadd.f32 %v26339_v60, %v26327_v9  ;;  %v14644_v49 = vmul.f32 %v26339_v60, %v26339_v60 }
0x110b   : > { %27009 = vst [vmem:[#allocation74_spill] sm:$0xff] %v26343_v21  ;;  %v14612_v24 = vrot.slane %v14611_v58, 4  ;;  %v14632_v53 = vadd.f32 %v26343_v21, %v26331_v46  ;;  %v14646_v1 = vmul.f32 %v26343_v21, %v26343_v21 }
0x110c   : > { %v14626_v62 = vrot.slane %v14625_v43, 4  ;;  %v14619_v6 = vrot.slane %v14618_v61, 4  ;;  %v14654_v33 = vadd.f32 %v14644_v49, %v14640_v25 }
0x110d   : > { %v14613_v32 = vadd.f32 %v14612_v24, %v14611_v58  ;;  %v14633_v19 = vrot.slane %v14632_v53, 4  ;;  %v14668_v34 = vadd.f32 %v14646_v1, %v14642_v5 }
0x110e   : > { %v14627_v48 = vadd.f32 %v14626_v62, %v14625_v43  ;;  %v14620_v29 = vadd.f32 %v14619_v6, %v14618_v61  ;;  %v14655_v12 = vrot.slane %v14654_v33, 4 }
0x110f   : > { %v14614_v41 = vrot.slane %v14613_v32, 2  ;;  %v14634_v45 = vadd.f32 %v14633_v19, %v14632_v53  ;;  %v14669_v60 = vrot.slane %v14668_v34, 4 }
0x1110   : > { %v14628_v9 = vrot.slane %v14627_v48, 2  ;;  %v14621_v38 = vrot.slane %v14620_v29, 2  ;;  %v14656_v2 = vadd.f32 %v14655_v12, %v14654_v33 }
0x1111   : > { %v14615_v37 = vadd.f32 %v14614_v41, %v14613_v32  ;;  %v14635_v46 = vrot.slane %v14634_v45, 2  ;;  %v14670_v35 = vadd.f32 %v14669_v60, %v14668_v34 }
0x1112   : > { %v14629_v3 = vadd.f32 %v14628_v9, %v14627_v48  ;;  %v14622_v21 = vadd.f32 %v14621_v38, %v14620_v29  ;;  %v14657_v30 = vrot.slane %v14656_v2, 2  ;;  %v14643_v9 = vmul.f32 %v26333_v39, %v26333_v39 }
0x1113   : > { %v14636_v26 = vadd.f32 %v14635_v46, %v14634_v45  ;;  %v14616_v25 = vrot.slane %v14615_v37, 1  ;;  %v14671_v58 = vrot.slane %v14670_v35, 2 }
0x1114   : > { %v14623_v49 = vrot.slane %v14622_v21, 1  ;;  %v14630_v5 = vrot.slane %v14629_v3, 1  ;;  %v14658_v43 = vadd.f32 %v14657_v30, %v14656_v2  ;;  %v14645_v30 = vmul.f32 %v26337_v52, %v26337_v52 }
0x1115   : > { %v14637_v61 = vrot.slane %v14636_v26, 1  ;;  %v14672_v24 = vadd.f32 %v14671_v58, %v14670_v35  ;;  %v14617_v6 = vadd.f32 %v14616_v25, %v14615_v37  ;;  %v27010_v25 = vld [vmem:[#allocation66_spill] sm:$0xff] }
0x1116   : > { %v14624_v1 = vadd.f32 %v14623_v49, %v14622_v21  ;;  %v14659_v53 = vrot.slane %v14658_v43, 1  ;;  %v14631_v33 = vadd.f32 %v14630_v5, %v14629_v3  ;;  %v14639_v3 = vmul.f32 %v26329_v54, %v26329_v54  ;;  %v27011_v49 = vld [vmem:[#allocation57_spill] sm:$0xff] }
0x1117   : > { %v14638_v62 = vadd.f32 %v14637_v61, %v14636_v26  ;;  %v14673_v19 = vrot.slane %v14672_v24, 1  ;;  %v14641_v26 = vmul.f32 %v26335_v4, %v26335_v4  ;;  %v27013_v61 = vld [vmem:[#allocation58_spill] sm:$0xff]  ;;  %v27014_v5 = vld [vmem:[#allocation69_spill] sm:$0xff] }
0x1118   : > { %14739 = vmatprep.mubr.f32.mxu0 %v14624_v1  ;;  %v14660_v32 = vadd.f32 %v14659_v53, %v14658_v43  ;;  %v14647_v2 = vadd.f32 %v14643_v9, %v14639_v3  ;;  %v23242_v9 = vld [vmem:[#allocation29 + $0x20] sm:$0xff]   ;;  %v23244_v3 = vld [vmem:[#allocation29 + $0x68] sm:$0xff]  }
0x1119   : > { %14809 = vmatprep.mubr.f32.mxu1 %v14638_v62  ;;  %14740 = vmatmul.mubr.f32.vlgmr.msra.gmra.mrb[40].mxu0 %v14617_v6  ;;  %v14674_v38 = vadd.f32 %v14673_v19, %v14672_v24  ;;  %v14661_v35 = vadd.f32 %v14645_v30, %v14641_v26  ;;  %v23243_v30 = vld [vmem:[#allocation29 + $0xa0] sm:$0xff]   ;;  %v23245_v26 = vld [vmem:[#allocation29 + $0xe8] sm:$0xff]  }
0x111a   : > { %14810 = vmatmul.mubr.f32.vlgmr.msra.gmra.mrb[40].mxu1 %v14631_v33  ;;  %20431 = vmatpush3.bf16.msra.mxu0 %v24700_v63  ;;  %v14648_v37 = vrot.slane %v14647_v2, 4 }
0x111b   : > { %20463 = vmatpush3.bf16.msra.mxu1 %v24702_v0  ;;  %14880 = vmatprep.mubr.f32.mxu0 %v14660_v32  ;;  %v14662_v46 = vrot.slane %v14661_v35, 4 }
0x111c   : > { %14950 = vmatprep.mubr.f32.mxu1 %v14674_v38  ;;  %20433 = vmatprep.subr.bf16.mxu0 %v24704_v7  ;;  %v14649_v60 = vadd.f32 %v14648_v37, %v14647_v2  ;;  %v23241_v38 = vld [vmem:[#allocation29 + $0xe0] sm:$0xff]   ;;  %v23246_v2 = vld [vmem:[#allocation29 + $0x28] sm:$0xff]   ;;  %v23248_v37 = vld [vmem:[#allocation29 + $0x70] sm:$0xff]  }
0x111d   : > { %20465 = vmatprep.subr.bf16.mxu1 %v24706_v8  ;;  %v14663_v21 = vadd.f32 %v14662_v46, %v14661_v35  ;;  %v23247_v35 = vld [vmem:[#allocation29 + $0xa8] sm:$0xff]   ;;  %v23249_v46 = vld [vmem:[#allocation29 + $0xf0] sm:$0xff]  }
0x111e   : > { %20435 = vmatpush3.bf16.msra.mxu0 %v24712_v13  ;;  %v14650_v34 = vrot.slane %v14649_v60, 2 }
0x111f   : > { %20467 = vmatpush3.bf16.msra.mxu1 %v24714_v14  ;;  %20437 = vmatprep.subr.bf16.mxu0 %v24718_v15  ;;  %v14664_v48 = vrot.slane %v14663_v21, 2 }
0x1120   : > { %20469 = vmatprep.subr.bf16.mxu1 %v24720_v16  ;;  %v14651_v29 = vadd.f32 %v14650_v34, %v14649_v60  ;;  %v23250_v60 = vld [vmem:[#allocation29 + $0x30] sm:$0xff]   ;;  %v23252_v34 = vld [vmem:[#allocation29 + $0x78] sm:$0xff]  }
0x1121   : > { %v14665_v12 = vadd.f32 %v14664_v48, %v14663_v21  ;;  %v23251_v21 = vld [vmem:[#allocation29 + $0xb0] sm:$0xff]   ;;  %v23253_v48 = vld [vmem:[#allocation29 + $0xf8] sm:$0xff]  }
0x1122   : > { %20439 = vmatpush3.bf16.msra.mxu0 %v24724_v17  ;;  %v14652_v41 = vrot.slane %v14651_v29, 1 }
0x1123   : > { %20471 = vmatpush3.bf16.msra.mxu1 %v24726_v18  ;;  %20441 = vmatprep.subr.bf16.mxu0 %v24732_v22  ;;  %v14666_v45 = vrot.slane %v14665_v12, 1 }
0x1124   : > { %20473 = vmatprep.subr.bf16.mxu1 %v24734_v27  ;;  %v14653_v58 = vadd.f32 %v14652_v41, %v14651_v29  ;;  %v23254_v29 = vld [vmem:[#allocation29 + $0x38] sm:$0xff]  }
0x1125   : > { %v14667_v43 = vadd.f32 %v14666_v45, %v14665_v12  ;;  %v23255_v12 = vld [vmem:[#allocation29 + $0xb8] sm:$0xff]  }
0x1126   : > { %20443 = vmatpush3.bf16.msra.mxu0 %v24736_v28 }
0x1127   : > { %20475 = vmatpush3.bf16.msra.mxu1 %v24739_v31  ;;  %20445 = vmatprep.subr.bf16.mxu0 %v24744_v36 }
0x1128   : > { %20477 = vmatprep.subr.bf16.mxu1 %v24746_v40 }
0x112a   : > { %20447 = vmatpush3.bf16.msra.mxu0 %v24748_v42 }
0x112b   : > { %20479 = vmatpush3.bf16.msra.mxu1 %v24751_v47  ;;  %20449 = vmatprep.subr.bf16.mxu0 %v24756_v51 }
0x112c   : > { %20481 = vmatprep.subr.bf16.mxu1 %v24758_v55 }
0x112e   : > { %20451 = vmatpush3.bf16.msra.mxu0 %v24760_v56 }
0x112f   : > { %20483 = vmatpush3.bf16.msra.mxu1 %v24763_v59  ;;  %20453 = vmatprep.subr.bf16.mxu0 %v26994_v50 }
0x1130   : > { %20485 = vmatprep.subr.bf16.mxu1 %v26995_v44 }
0x1132   : > { %20455 = vmatpush3.bf16.msra.mxu0 %v26996_v10 }
0x1133   : > { %20487 = vmatpush3.bf16.msra.mxu1 %v26997_v57  ;;  %20457 = vmatprep.subr.bf16.mxu0 %v26998_v20 }
0x1134   : > { %20489 = vmatprep.subr.bf16.mxu1 %v26999_v23 }
0x1136   : > { %20459 = vmatpush3.bf16.msra.mxu0 %v27000_v11 }
0x1137   : > { %20491 = vmatpush3.bf16.msra.mxu1 %v27010_v25  ;;  %20494 = vmatprep.subr.msk.bf16.mxu0 %vm24872_vm7, %v27011_v49 }
0x1138   : > { %20542 = vmatprep.subr.msk.bf16.mxu1 %vm24872_vm7, %v27013_v61 }
0x1139   : > { %14881 = vmatmul.mubr.f32.vlgmr.msra.gmra.mrb[42].mxu0 %v14653_v58 }
0x113a   : > { %14951 = vmatmul.mubr.f32.vlgmr.msra.gmra.mrb[42].mxu1 %v14667_v43 }
0x113f   : > { %20497 = vmatpush3.bf16.xpose.msk.msra.mxu0 %vm24872_vm7, %v24700_v63 }
0x1140   : > { %20545 = vmatpush3.bf16.xpose.msk.msra.mxu1 %vm24872_vm7, %v24702_v0  ;;  %20500 = vmatprep.subr.msk.bf16.mxu0 %vm24872_vm7, %v24704_v7 }
0x1141   : > { %20548 = vmatprep.subr.msk.bf16.mxu1 %vm24872_vm7, %v24706_v8 }
0x1147   : > { %20503 = vmatpush3.bf16.xpose.msk.msra.mxu0 %vm24872_vm7, %v24712_v13 }
0x1148   : > { %20551 = vmatpush3.bf16.xpose.msk.msra.mxu1 %vm24872_vm7, %v24714_v14  ;;  %20506 = vmatprep.subr.msk.bf16.mxu0 %vm24872_vm7, %v24718_v15 }
0x1149   : > { %20554 = vmatprep.subr.msk.bf16.mxu1 %vm24872_vm7, %v24720_v16 }
0x114f   : > { %20509 = vmatpush3.bf16.xpose.msk.msra.mxu0 %vm24872_vm7, %v24724_v17 }
0x1150   : > { %20557 = vmatpush3.bf16.xpose.msk.msra.mxu1 %vm24872_vm7, %v24726_v18  ;;  %20512 = vmatprep.subr.msk.bf16.mxu0 %vm24872_vm7, %v24732_v22 }
0x1151   : > { %20560 = vmatprep.subr.msk.bf16.mxu1 %vm24872_vm7, %v24734_v27 }
0x1157   : > { %20515 = vmatpush3.bf16.xpose.msk.msra.mxu0 %vm24872_vm7, %v24736_v28 }
0x1158   : > { %20563 = vmatpush3.bf16.xpose.msk.msra.mxu1 %vm24872_vm7, %v24739_v31  ;;  %20518 = vmatprep.subr.msk.bf16.mxu0 %vm24872_vm7, %v24744_v36 }
0x1159   : > { %20566 = vmatprep.subr.msk.bf16.mxu1 %vm24872_vm7, %v24746_v40 }
0x115f   : > { %20521 = vmatpush3.bf16.xpose.msk.msra.mxu0 %vm24872_vm7, %v24748_v42 }
0x1160   : > { %20569 = vmatpush3.bf16.xpose.msk.msra.mxu1 %vm24872_vm7, %v24751_v47  ;;  %20524 = vmatprep.subr.msk.bf16.mxu0 %vm24872_vm7, %v24756_v51 }
0x1161   : > { %20572 = vmatprep.subr.msk.bf16.mxu1 %vm24872_vm7, %v24758_v55 }
0x1167   : > { %20527 = vmatpush3.bf16.xpose.msk.msra.mxu0 %vm24872_vm7, %v24760_v56 }
0x1168   : > { %20575 = vmatpush3.bf16.xpose.msk.msra.mxu1 %vm24872_vm7, %v24763_v59  ;;  %20530 = vmatprep.subr.msk.bf16.mxu0 %vm24872_vm7, %v26994_v50 }
0x1169   : > { %20578 = vmatprep.subr.msk.bf16.mxu1 %vm24872_vm7, %v26995_v44 }
0x116f   : > { %20533 = vmatpush3.bf16.xpose.msk.msra.mxu0 %vm24872_vm7, %v26996_v10 }
0x1170   : > { %20581 = vmatpush3.bf16.xpose.msk.msra.mxu1 %vm24872_vm7, %v26997_v57  ;;  %20536 = vmatprep.subr.msk.bf16.mxu0 %vm24872_vm7, %v26998_v20 }
0x1171   : > { %20584 = vmatprep.subr.msk.bf16.mxu1 %vm24872_vm7, %v26999_v23 }
0x1177   : > { %20539 = vmatpush3.bf16.xpose.msk.msra.mxu0 %vm24872_vm7, %v27000_v11 }
0x1178   : > { %20587 = vmatpush3.bf16.xpose.msk.msra.mxu1 %vm24872_vm7, %v27010_v25  ;;  %20590 = vmatprep.subr.msk.bf16.mxu0 %vm24872_vm7, %v27011_v49  ;;  %v14609_v49 = vld [vmem:[#allocation26] sm:$0xf] }
0x1179   : > { %20638 = vmatprep.subr.msk.bf16.mxu1 %vm24872_vm7, %v27013_v61  ;;  %v15255_v43 = vrot.slane %v14609_v49, %v27014_v5  ;;  %v27015_v61 = vld [vmem:[#allocation70_spill] sm:$0xff] }
0x11ec   : > { %v19116_v24 = vpop.f32.mrb[40].mxu0 }
0x11ed   : > { %v19151_v1 = vpop.f32.mrb[40].mxu1  ;;  %v19117_v53 = vpop.f32.mrb[41].mxu0 }
0x11ee   : > { %v19118_v62 = vadd.f32 %v19117_v53, %v19116_v24  ;;  %v19152_v6 = vpop.f32.mrb[41].mxu1  ;;  %v15263_v24 = vrot.slane %v14609_v49, %v27015_v61 }
0x11ef   : > { %v19153_v19 = vadd.f32 %v19152_v6, %v19151_v1  ;;  %v27016_v1 = vld [vmem:[#allocation67_spill] sm:$0xff] }
0x11f0   : > { %v15259_v53 = vrot.slane %v14609_v49, %v27016_v1 }
0x11f1   : > { %v14812_v33 = vadd.f32 %v19153_v19, %v19118_v62  ;;  %v27017_v62 = vld [vmem:[#allocation68_spill] sm:$0xff] }
0x11f2   : > { %v15267_v6 = vrot.slane %v14609_v49, %v27017_v62 }
0x11f3   : > { %v14815_v32 = vmul.f32 0.00390625, %v14812_v33 }
0x11f5   : > { %19256 = vmatprep.mubr.msk.f32.mxu0 %vm1741_vm6, %v14815_v32  ;;  %19290 = vmatprep.mubr.msk.f32.mxu1 %vm1741_vm6, %v14815_v32 }
0x11f6   : > { %19257 = vmatmul.mubr.msk.f32.vlgmr.msra.gmra.mrb[44].mxu0 %vm1741_vm6, %v14815_v32  ;;  %19291 = vmatmul.mubr.msk.f32.vlgmr.msra.gmra.mrb[44].mxu1 %vm1741_vm6, %v14815_v32 }
0x11f7   : > { %20593 = vmatpush3.bf16.xpose.msk.msra.mxu0 %vm24872_vm7, %v24700_v63  ;;  %20641 = vmatpush3.bf16.xpose.msk.msra.mxu1 %vm24872_vm7, %v24702_v0 }
0x11f8   : > { %20596 = vmatprep.subr.msk.bf16.mxu0 %vm24872_vm7, %v24704_v7  ;;  %20644 = vmatprep.subr.msk.bf16.mxu1 %vm24872_vm7, %v24706_v8 }
0x11ff   : > { %20599 = vmatpush3.bf16.xpose.msk.msra.mxu0 %vm24872_vm7, %v24712_v13  ;;  %20647 = vmatpush3.bf16.xpose.msk.msra.mxu1 %vm24872_vm7, %v24714_v14 }
0x1200   : > { %20602 = vmatprep.subr.msk.bf16.mxu0 %vm24872_vm7, %v24718_v15  ;;  %20650 = vmatprep.subr.msk.bf16.mxu1 %vm24872_vm7, %v24720_v16 }
0x1207   : > { %20605 = vmatpush3.bf16.xpose.msk.msra.mxu0 %vm24872_vm7, %v24724_v17  ;;  %20653 = vmatpush3.bf16.xpose.msk.msra.mxu1 %vm24872_vm7, %v24726_v18  ;;  %v14957_v17 = vmul.f32 %v14815_v32, %v14815_v32 }
0x1208   : > { %20608 = vmatprep.subr.msk.bf16.mxu0 %vm24872_vm7, %v24732_v22  ;;  %20656 = vmatprep.subr.msk.bf16.mxu1 %vm24872_vm7, %v24734_v27 }
0x120c   : > { %v19186_v63 = vpop.f32.mrb[42].mxu0 }
0x120d   : > { %v19221_v0 = vpop.f32.mrb[42].mxu1  ;;  %v19187_v7 = vpop.f32.mrb[43].mxu0 }
0x120e   : > { %v19188_v8 = vadd.f32 %v19187_v7, %v19186_v63  ;;  %v19222_v13 = vpop.f32.mrb[43].mxu1 }
0x120f   : > { %v19223_v14 = vadd.f32 %v19222_v13, %v19221_v0  ;;  %20611 = vmatpush3.bf16.xpose.msk.msra.mxu0 %vm24872_vm7, %v24736_v28  ;;  %20659 = vmatpush3.bf16.xpose.msk.msra.mxu1 %vm24872_vm7, %v24739_v31  ;;  %v23224_v28 = vld [vmem:[#allocation29 + $0x40] sm:$0xff]  }
0x1210   : > { %20614 = vmatprep.subr.msk.bf16.mxu0 %vm24872_vm7, %v24744_v36  ;;  %20662 = vmatprep.subr.msk.bf16.mxu1 %vm24872_vm7, %v24746_v40  ;;  %v23225_v31 = vld [vmem:[#allocation29 + $0xc0] sm:$0xff]  }
0x1211   : > { %v14953_v15 = vadd.f32 %v19223_v14, %v19188_v8  ;;  %v23226_v36 = vld [vmem:[#allocation29] sm:$0xff]  }
0x1212   : > { %v23227_v40 = vld [vmem:[#allocation29 + $0x80] sm:$0xff]  }
0x1213   : > { %v14956_v16 = vmul.f32 0.00390625, %v14953_v15 }
0x1215   : > { %v14958_v18 = vsub.f32 %v14956_v16, %v14957_v17 }
0x1217   : > { %v14959_v22 = vadd.f32 1e-05, %v14958_v18  ;;  %20617 = vmatpush3.bf16.xpose.msk.msra.mxu0 %vm24872_vm7, %v24748_v42  ;;  %20665 = vmatpush3.bf16.xpose.msk.msra.mxu1 %vm24872_vm7, %v24751_v47  ;;  %v23228_v42 = vld [vmem:[#allocation29 + $0x48] sm:$0xff]  }
0x1218   : > { %20620 = vmatprep.subr.msk.bf16.mxu0 %vm24872_vm7, %v24756_v51  ;;  %20668 = vmatprep.subr.msk.bf16.mxu1 %vm24872_vm7, %v24758_v55  ;;  %v23229_v47 = vld [vmem:[#allocation29 + $0xc8] sm:$0xff]  }
0x1219   : > { %23262 = vrsqrt.f32 %v14959_v22  ;;  %v23230_v51 = vld [vmem:[#allocation29 + $0x8] sm:$0xff]  }
0x121a   : > { %v23231_v55 = vld [vmem:[#allocation29 + $0x88] sm:$0xff]  }
0x121f   : > { %20623 = vmatpush3.bf16.xpose.msk.msra.mxu0 %vm24872_vm7, %v24760_v56  ;;  %20671 = vmatpush3.bf16.xpose.msk.msra.mxu1 %vm24872_vm7, %v24763_v59  ;;  %v23232_v56 = vld [vmem:[#allocation29 + $0x50] sm:$0xff]  }
0x1220   : > { %20626 = vmatprep.subr.msk.bf16.mxu0 %vm24872_vm7, %v26994_v50  ;;  %20674 = vmatprep.subr.msk.bf16.mxu1 %vm24872_vm7, %v26995_v44  ;;  %v23233_v59 = vld [vmem:[#allocation29 + $0xd0] sm:$0xff]  }
0x1221   : > { %v23234_v50 = vld [vmem:[#allocation29 + $0x10] sm:$0xff]  }
0x1222   : > { %v23235_v44 = vld [vmem:[#allocation29 + $0x90] sm:$0xff]  }
0x1223   : > { %v23263_v27 = vpop.eup %23262 }
0x1224   : > { %19324 = vmatprep.mubr.msk.f32.mxu0 %vm1741_vm6, %v23263_v27  ;;  %19358 = vmatprep.mubr.msk.f32.mxu1 %vm1741_vm6, %v23263_v27 }
0x1227   : > { %20629 = vmatpush3.bf16.xpose.msk.msra.mxu0 %vm24872_vm7, %v26996_v10  ;;  %20677 = vmatpush3.bf16.xpose.msk.msra.mxu1 %vm24872_vm7, %v26997_v57  ;;  %v23236_v10 = vld [vmem:[#allocation29 + $0x58] sm:$0xff]  }
0x1228   : > { %20632 = vmatprep.subr.msk.bf16.mxu0 %vm24872_vm7, %v26998_v20  ;;  %20680 = vmatprep.subr.msk.bf16.mxu1 %vm24872_vm7, %v26999_v23  ;;  %v23237_v57 = vld [vmem:[#allocation29 + $0xd8] sm:$0xff]  }
0x1229   : > { %v23238_v20 = vld [vmem:[#allocation29 + $0x18] sm:$0xff]  }
0x122a   : > { %v23239_v23 = vld [vmem:[#allocation29 + $0x98] sm:$0xff]  }
0x122f   : > { %20635 = vmatpush3.bf16.xpose.msk.msra.mxu0 %vm24872_vm7, %v27000_v11  ;;  %20683 = vmatpush3.bf16.xpose.msk.msra.mxu1 %vm24872_vm7, %v27010_v25  ;;  %v23240_v11 = vld [vmem:[#allocation29 + $0x60] sm:$0xff]  }
0x1230   : > { %19360 = vmatprep.subr.bf16.mxu0 %v23224_v28  ;;  %19382 = vmatprep.subr.bf16.mxu1 %v23225_v31 }
0x1236   : > { %19325 = vmatmul.mubr.msk.f32.vlgmr.msra.gmra.mrb[46].mxu0 %vm1741_vm6, %v23263_v27  ;;  %19359 = vmatmul.mubr.msk.f32.vlgmr.msra.gmra.mrb[46].mxu1 %vm1741_vm6, %v23263_v27  ;;  %v27018_v27 = vld [vmem:[#allocation76_spill] sm:$0xff] }
0x1237   : > { %19361 = vmatpush3.bf16.msra.mxu0 %v23226_v36  ;;  %19383 = vmatpush3.bf16.msra.mxu1 %v23227_v40 }
0x1238   : > { %19362 = vmatprep.subr.bf16.mxu0 %v23228_v42  ;;  %19384 = vmatprep.subr.bf16.mxu1 %v23229_v47  ;;  %v14610_v42 = vld [vmem:[#allocation28] sm:$0xf] }
0x123b   : > { %19363 = vmatpush3.bf16.msra.mxu0 %v23230_v51  ;;  %19385 = vmatpush3.bf16.msra.mxu1 %v23231_v55 }
0x123c   : > { %19364 = vmatprep.subr.bf16.mxu0 %v23232_v56  ;;  %19386 = vmatprep.subr.bf16.mxu1 %v23233_v59 }
0x123f   : > { %19365 = vmatpush3.bf16.msra.mxu0 %v23234_v50  ;;  %19387 = vmatpush3.bf16.msra.mxu1 %v23235_v44  ;;  %v27019_v50 = vld [vmem:[#allocation55_spill] sm:$0xff] }
0x1240   : > { %19366 = vmatprep.subr.bf16.mxu0 %v23236_v10  ;;  %19388 = vmatprep.subr.bf16.mxu1 %v23237_v57  ;;  %v27020_v10 = vld [vmem:[#allocation77_spill] sm:$0xff] }
0x1243   : > { %19367 = vmatpush3.bf16.msra.mxu0 %v23238_v20  ;;  %19389 = vmatpush3.bf16.msra.mxu1 %v23239_v23  ;;  %v27021_v20 = vld [vmem:[#allocation72_spill] sm:$0xff] }
0x1244   : > { %19368 = vmatprep.subr.bf16.mxu0 %v23240_v11  ;;  %19390 = vmatprep.subr.bf16.mxu1 %v23241_v38  ;;  %v27022_v11 = vld [vmem:[#allocation74_spill] sm:$0xff] }
0x1247   : > { %19369 = vmatpush3.bf16.msra.mxu0 %v23242_v9  ;;  %19391 = vmatpush3.bf16.msra.mxu1 %v23243_v30 }
0x1248   : > { %19370 = vmatprep.subr.bf16.mxu0 %v23244_v3  ;;  %19392 = vmatprep.subr.bf16.mxu1 %v23245_v26 }
0x124b   : > { %19371 = vmatpush3.bf16.msra.mxu0 %v23246_v2  ;;  %19393 = vmatpush3.bf16.msra.mxu1 %v23247_v35 }
0x124c   : > { %19372 = vmatprep.subr.bf16.mxu0 %v23248_v37  ;;  %19394 = vmatprep.subr.bf16.mxu1 %v23249_v46 }
0x124f   : > { %19373 = vmatpush3.bf16.msra.mxu0 %v23250_v60  ;;  %19395 = vmatpush3.bf16.msra.mxu1 %v23251_v21 }
0x1250   : > { %19374 = vmatprep.subr.bf16.mxu0 %v23252_v34  ;;  %19396 = vmatprep.subr.bf16.mxu1 %v23253_v48 }
0x1253   : > { %19375 = vmatpush3.bf16.msra.mxu0 %v23254_v29  ;;  %19397 = vmatpush3.bf16.msra.mxu1 %v23255_v12 }
0x12c9   : > { %v15030_v41 = vpop.f32.mrb[44].mxu0  ;;  %v15101_v45 = vpop.f32.mrb[44].mxu1 }
0x12ca   : > { %v15032_v25 = vpop.f32.mrb[45].mxu0  ;;  %v15103_v58 = vpop.f32.mrb[45].mxu1 }
0x1309   : > { %v15175_v19 = vpop.f32.mrb[46].mxu0  ;;  %v15246_v33 = vpop.f32.mrb[46].mxu1 }
0x130a   : > { %v15272_v32 = vmul.f32 %v15255_v43, %v15175_v19  ;;  %v15274_v63 = vmul.f32 %v15263_v24, %v15246_v33  ;;  %v15177_v0 = vpop.f32.mrb[47].mxu0  ;;  %v15248_v7 = vpop.f32.mrb[47].mxu1 }
0x130b   : > { %v15273_v8 = vmul.f32 %v15259_v53, %v15177_v0  ;;  %v15275_v13 = vmul.f32 %v15267_v6, %v15248_v7  ;;  %v18216_v6 = vld [vmem:[#allocation31] ss:$0 sm:$0xff] }
0x130c   : > { %v15276_v14 = vmul.f32 %v15272_v32, %v15030_v41  ;;  %v15278_v15 = vmul.f32 %v15274_v63, %v15101_v45  ;;  %v15313_v55 = vrot.slane %v15272_v32, %v27014_v5  ;;  %v15321_v56 = vrot.slane %v15274_v63, %v27014_v5 }
0x130d   : > { %v15277_v16 = vmul.f32 %v15273_v8, %v15032_v25  ;;  %v15279_v17 = vmul.f32 %v15275_v13, %v15103_v58  ;;  %v15317_v40 = vrot.slane %v15273_v8, %v27014_v5  ;;  %v15325_v47 = vrot.slane %v15275_v13, %v27014_v5 }
0x130e   : > { %v15326_v2 = vmul.f32 %v15313_v55, %v26329_v54  ;;  %v15330_v35 = vmul.f32 %v15313_v55, %v26333_v39  ;;  %v15328_v37 = vmul.f32 %v15321_v56, %v26335_v4  ;;  %v15332_v46 = vmul.f32 %v15321_v56, %v26337_v52 }
0x130f   : > { %v15284_v18 = vcombine.low %v15276_v14, %v15277_v16  ;;  %v15285_v22 = vcombine.low %v15278_v15, %v15279_v17  ;;  %v15327_v44 = vmul.f32 %v15317_v40, %v27019_v50  ;;  %v15331_v57 = vmul.f32 %v15317_v40, %v27020_v10 }
0x1310   : > { %v15329_v23 = vmul.f32 %v15325_v47, %v27021_v20  ;;  %v15333_v38 = vmul.f32 %v15325_v47, %v27022_v11  ;;  %v27023_v32 = vlaneseq }
0x1311   : > { %v15292_v28 = vrot.slane %v15284_v18, %v27018_v27  ;;  %v15299_v31 = vrot.slane %v15285_v22, %v27018_v27 }
0x1312   : > { %v15721_v63 = vand.u32 127, %v27023_v32 }
0x1313   : > { %v15300_v36 = vcombine.low %v15292_v28, %v15299_v31 }
0x1314   : > { %vm15722_vm3 = vcmp.lt.s32.totalorder %v15721_v63, 16 }
0x1315   : > { %v15307_v51 = vrot.slane %v15300_v36, %v27018_v27 }
0x1317   : > { %v15309_v59 = vsub.f32 %v14610_v42, %v15307_v51 }
0x1319   : > { %v15342_v9 = vrot.slane %v15309_v59, %v27016_v1  ;;  %v15350_v30 = vrot.slane %v15309_v59, %v27017_v62  ;;  %v15338_v3 = vrot.slane %v15309_v59, %v27014_v5  ;;  %v15346_v26 = vrot.slane %v15309_v59, %v27015_v61 }
0x131b   : > { %v15356_v60 = vadd.f32 %v15342_v9, %v15327_v44  ;;  %v15360_v21 = vadd.f32 %v15342_v9, %v15331_v57  ;;  %v15358_v34 = vadd.f32 %v15350_v30, %v15329_v23  ;;  %v15362_v48 = vadd.f32 %v15350_v30, %v15333_v38 }
0x131c   : > { %v15355_v29 = vadd.f32 %v15338_v3, %v15326_v2  ;;  %v15359_v12 = vadd.f32 %v15338_v3, %v15330_v35  ;;  %v15357_v41 = vadd.f32 %v15346_v26, %v15328_v37  ;;  %v15361_v45 = vadd.f32 %v15346_v26, %v15332_v46 }
0x131d   : > { %v15364_v25 = vmax.f32 %v15356_v60, 0.0  ;;  %v15368_v58 = vmax.f32 %v15360_v21, 0.0  ;;  %v15366_v49 = vmax.f32 %v15358_v34, 0.0  ;;  %v15370_v5 = vmax.f32 %v15362_v48, 0.0 }
0x131e   : > { %v15363_v43 = vmax.f32 %v15355_v29, 0.0  ;;  %v15367_v54 = vmax.f32 %v15359_v12, 0.0  ;;  %v15365_v61 = vmax.f32 %v15357_v41, 0.0  ;;  %v15369_v39 = vmax.f32 %v15361_v45, 0.0 }
0x131f   : > { %v15437_v24 = vpack.c.bf16 %v15368_v58, %v15364_v25  ;;  %v15439_v4 = vpack.c.bf16 %v15370_v5, %v15366_v49 }
0x1320   : > { %v15436_v1 = vpack.c.bf16 %v15367_v54, %v15363_v43  ;;  %v15438_v52 = vpack.c.bf16 %v15369_v39, %v15365_v61 }
0x1321   : > { %15670 = vmatprep.mubr.bf16.mxu0 %v15437_v24  ;;  %15711 = vmatprep.mubr.bf16.mxu1 %v15439_v4 }
0x1322   : > { %15671 = vmatmul.mubr.bf16.vlgmr.msra.gmra.mrb[48].mxu0 %v15436_v1  ;;  %15712 = vmatmul.mubr.bf16.vlgmr.msra.gmra.mrb[48].mxu1 %v15438_v52 }
0x13f5   : > { %v19376_v53 = vpop.f32.mrb[48].mxu0  ;;  %v19398_v62 = vpop.f32.mrb[48].mxu1 }
0x13f6   : > { %v19377_v19 = vpop.f32.mrb[49].mxu0  ;;  %v19399_v33 = vpop.f32.mrb[49].mxu1 }
0x13f7   : > { %v19378_v0 = vadd.f32 %v19377_v19, %v19376_v53  ;;  %v19400_v7 = vadd.f32 %v19399_v33, %v19398_v62  ;;  %v19379_v8 = vpop.f32.mrb[50].mxu0  ;;  %v19401_v13 = vpop.f32.mrb[50].mxu1 }
0x13f8   : > { %v19380_v14 = vpop.f32.mrb[51].mxu0  ;;  %v19402_v15 = vpop.f32.mrb[51].mxu1 }
0x13f9   : > { %v15673_v16 = vadd.f32 %v19378_v0, %v18216_v6  ;;  %v19381_v17 = vadd.f32 %v19380_v14, %v19379_v8  ;;  %v19403_v18 = vadd.f32 %v19402_v15, %v19401_v13 }
0x13fb   : > { %v15714_v22 = vadd.f32 %v19400_v7, %v15673_v16  ;;  %v15676_v27 = vadd.f32 %v19381_v17, %v18216_v6 }
0x13fd   : > { %v15717_v28 = vadd.f32 %v19403_v18, %v15676_v27  ;;  %v15723_v31 = vsel %vm15722_vm3, %v15714_v22, -1e+30 }
0x13fe   : > { %15725 = vmax.xlane.f32.xlu0 %v15723_v31 }
0x13ff   : > { %v15724_v36 = vsel %vm15722_vm3, %v15717_v28, -1e+30 }
0x1402   : > { %15727 = vmax.xlane.f32.xlu0 %v15724_v36 }
0x148b   : > { %v15726_v40 = vpop.xlane.xlu0 %15725 }
0x148c   : > { %v15729_v42 = vsub.f32 %v15723_v31, %v15726_v40 }
0x148e   : > { %v15731_v47 = vmul.f32 1.442695, %v15729_v42 }
0x148f   : > { %v15728_v51 = vpop.xlane.xlu0 %15727 }
0x1490   : > { %v15730_v55 = vsub.f32 %v15724_v36, %v15728_v51  ;;  %23264 = vpow2.f32 %v15731_v47 }
0x1492   : > { %v15733_v56 = vmul.f32 1.442695, %v15730_v55 }
0x1494   : > { %23266 = vpow2.f32 %v15733_v56 }
0x149a   : > { %v23265_v59 = vpop.eup %23264 }
0x149b   : > { %15735 = vadd.xlane.f32.xlu1 %v23265_v59 }
0x149e   : > { %v23267_v50 = vpop.eup %23266 }
0x149f   : > { %15737 = vadd.xlane.f32.xlu1 %v23267_v50 }
0x1528   : > { %v15736_v44 = vpop.xlane.xlu1 %15735 }
0x1529   : > { %23268 = vlog2.f32 %v15736_v44 }
0x152c   : > { %v15738_v10 = vpop.xlane.xlu1 %15737 }
0x152d   : > { %23270 = vlog2.f32 %v15738_v10 }
0x1533   : > { %v23269_v57 = vpop.eup %23268 }
0x1534   : > { %v15740_v20 = vmul.f32 0.6931472, %v23269_v57 }
0x1536   : > { %v15743_v23 = vadd.f32 %v15740_v20, %v15726_v40 }
0x1537   : > { %v23271_v11 = vpop.eup %23270 }
0x1538   : > { %v15745_v38 = vsub.f32 %v15723_v31, %v15743_v23  ;;  %v15742_v9 = vmul.f32 0.6931472, %v23271_v11 }
0x153a   : > { %15747 = vst [vmem:[%s897_s25] sm:$0xff] %v15745_v38  ;;  %v15744_v30 = vadd.f32 %v15742_v9, %v15728_v51 }
0x153c   : > { %v15746_v3 = vsub.f32 %v15724_v36, %v15744_v30 }
0x153e   : > { %15748 = vst [vmem:[%s897_s25 + $0x8] sm:$0xff] %v15746_v3 }
0x153f   : > { %23847 = shalt.err (!%p23844_p8)
}
0x1540   : > { %s23848_s8 = scalar_lea.hbm %s26627_s22, 256  ;;  %s23852_s26 = scalar_lea.hbm %s27025_s3, 512 }
0x1541   : > { %p23849_p6 = scmp.ne.s32.totalorder %s26627_s22, %s23848_s8  ;;  %p23853_p0 = scmp.lt.u32.totalorder %s26627_s22, %s27025_s3 }
0x1542   : > { %p23854_p5 = scmp.lt.u32.totalorder %s23852_s26, %s23848_s8  ;;  %p23856_p7 = scmp.lt.u32.totalorder %s23848_s8, %s26627_s22 }
0x1543   : > { %p23850_p10 = pnand %p23849_p6, %p27026_p4 }
0x1544   : > { %p23855_p9 = por %p23854_p5, %p23853_p0 }
0x1545   : > { %p23851_p11 = pneg %p23850_p10 }
0x1546   : > { %p23857_p12 = por %p23856_p7, %p23855_p9 }
0x1548   : > { %p23858_p13 = pnand %p23857_p12, %p23851_p11 }
0x154a   : > { %23861 = shalt.err (!%p23858_p13)
}
0x154b   : > { %s23972_s9 = smov 128   ;;  %s23973_s18 = smov 8  }
0x154c   : > { %20930 = dma.vmem_to_hbm [thread:$0]  (%p27026_p4), %s26629_s2, 256, %s26627_s22, %s15750_s30, %s23972_s9, %s23972_s9, %s23973_s18  }
0x154d PF: > { %s27027_s6 = sld [smem:[#allocation47_spill]]  ;;  %s27028_s25 = sld [smem:[#allocation50_spill]] }
0x154e   : > { %p27029_p1 = scmp.ne.s32.totalorder %s26855_s0, 0 }
0x1553   : > { %s15778_s7 = sand.u32 1, %s27027_s6   ;;  %p27030_p3 = scmp.ge.s32.totalorder %s27028_s25, 2 }
0x1554   : > { %s15779_s8 = scalar_lea.sflag [#allocation4], %s15778_s7 }
0x1555   : > { %p20995_p2 = pnand %p27030_p3, %p27029_p1 }
0x1557   : > { %23923 = dma.done.wait (!%p20995_p2), %s15779_s8, 256  }
0x1558   : > { %23925 = vsyncadd (!%p20995_p2), %s15779_s8, 4294967040  ;;  %s27031_s1 = sld [smem:[#allocation48_spill]]  ;;  %s27032_s22 = sld [smem:[#allocation49_spill]] }
0x1559   : > { %p43_p8 = scmp.ge.s32.totalorder %s24504_s24, 4   ;;  %s27033_s23 = smov %s24516_s4 }
0x155b   :  { %45 = sbr.rel (!%p43_p8) target bundleno = 30 (0x1e), region = 221 }
0x1562   :  { %15784 = vsyncpa [#allocation3], 1 }
0x1563   :  { %15786 = vsyncpa [#allocation3 + $0x1], 1 }
0x1564   :  { %15787 = vsyncpa [#allocation6], 1 }
0x1565   :  { %15788 = vsyncpa [#allocation9], 1 }
0x1566   :  { %15789 = vsyncpa [#allocation12], 1 }
0x1567   :  { %15790 = vsyncpa [#allocation15], 1 }
0x1568   :  { %15791 = vsyncpa [#allocation18], 1 }
0x1569   :  { %15792 = vsyncpa [#allocation21], 1 }
0x156a   :  { %15793 = vsyncpa [#allocation24], 1 }
0x156b   :  { %15794 = vsyncpa [#allocation27], 1 }
0x156c   :  { %15795 = vsyncpa [#allocation30], 1 }
0x156d   :  { %15796 = vsyncpa [#allocation33], 1 }
0x156e   :  { %15797 = vsyncpa [#allocation4], 1 }
0x156f   :  { %15799 = vsyncpa [#allocation4 + $0x1], 1 }

</bundles_post_ra>
